<compile_context>
chip_gen: v5e
topology: v5e:2x2
jax: 0.10.0
libtpu: 0.0.40
codegen_flags: <defaults>
</compile_context>

<pallas_src>
import math

import jax
import jax.numpy as jnp
from jax.experimental import pallas as pl
from jax.experimental.pallas import tpu as pltpu

EPS = 1e-5  # nn.BatchNorm3d default eps


def _round_up(x, m):
    return ((x + m - 1) // m) * m


# ----------------------------------------------------------------------------
# Pallas kernels
# ----------------------------------------------------------------------------
def _conv_matmul_kernel(w_ref, p_ref, b_ref, s_ref, t_ref, o_ref):
    """o = relu(w @ p + b) * s + t.

    w: (Cout, K) bf16, p: (K, tn) bf16, b/s/t: (Cout, 1) f32 (conv bias and
    eval-mode BatchNorm scale/shift), o: (Cout, tn) f32.  Transposed
    orientation: the big M axis is the lane (store) axis.
    """
    y = jnp.dot(w_ref[...], p_ref[...], preferred_element_type=jnp.float32)
    y = jnp.maximum(y + b_ref[...], 0.0)          # conv bias + ReLU
    o_ref[...] = y * s_ref[...] + t_ref[...]      # BatchNorm (eval) affine


def conv_matmul(w, p, b, s, t, *, tn_max=512):
    """(Cout, K) @ (K, M) with fused bias/ReLU/BN, tiled along M (cdiv grid)."""
    cout, K = w.shape
    K2, M = p.shape
    assert K == K2
    if M <= 256:
        tn = M                                    # single full block
    elif M <= 2 * tn_max:
        tn = _round_up(pl.cdiv(M, 2), 128)        # 2 blocks -> both TCs on v7x
    else:
        tn = tn_max
    grid = (pl.cdiv(M, tn),)
    return pl.pallas_call(
        _conv_matmul_kernel,
        out_shape=jax.ShapeDtypeStruct((cout, M), jnp.float32),
        grid=grid,
        in_specs=[
            pl.BlockSpec((cout, K), lambda j: (0, 0)),
            pl.BlockSpec((K, tn), lambda j: (0, j)),
            pl.BlockSpec((cout, 1), lambda j: (0, 0)),
            pl.BlockSpec((cout, 1), lambda j: (0, 0)),
            pl.BlockSpec((cout, 1), lambda j: (0, 0)),
        ],
        out_specs=pl.BlockSpec((cout, tn), lambda j: (0, j)),
        compiler_params=pltpu.CompilerParams(
            dimension_semantics=("parallel",)),
    )(w, p, b, s, t)


def _heads_kernel(x_ref, w1_ref, b1_ref, w2_ref, b2_ref, o_ref):
    """All class heads fused: o = sigmoid(relu(x @ W1cat + b1) @ W2bd + b2)."""
    h = jnp.dot(x_ref[...], w1_ref[...], preferred_element_type=jnp.float32)
    h = jnp.maximum(h + b1_ref[...], 0.0)
    y = jnp.dot(h, w2_ref[...], preferred_element_type=jnp.float32)
    y = y + b2_ref[...]
    o_ref[...] = pl.reciprocal(1.0 + jnp.exp(-y), approx=True)    # sigmoid


def heads_fused(x, hp):
    """x: (N, flat) -> (N, classes); one launch for every class head."""
    n, flat = x.shape
    ch = hp["w1"].shape[1]            # classes * hidden
    classes = hp["w2"].shape[1]
    return pl.pallas_call(
        _heads_kernel,
        out_shape=jax.ShapeDtypeStruct((n, classes), jnp.float32),
        grid=(1,),
        in_specs=[
            pl.BlockSpec((n, flat), lambda i: (0, 0)),
            pl.BlockSpec((flat, ch), lambda i: (0, 0)),
            pl.BlockSpec((1, ch), lambda i: (0, 0)),
            pl.BlockSpec((ch, classes), lambda i: (0, 0)),
            pl.BlockSpec((1, classes), lambda i: (0, 0)),
        ],
        out_specs=pl.BlockSpec((n, classes), lambda i: (0, 0)),
        compiler_params=pltpu.CompilerParams(
            dimension_semantics=("arbitrary",)),
    )(x.astype(jnp.bfloat16), hp["w1"], hp["b1"], hp["w2"], hp["b2"])


# ----------------------------------------------------------------------------
# Glue: im2col (channel-first), pool, conv block
# ----------------------------------------------------------------------------
def im2col_cf(x, ksize=3, pad=2):
    """x: (C, N, D, H, W) f32 -> patches (K, N*Do*Ho*Wo) bf16, tap-major/C-minor.

    K = 27*C, zero-padded up to a multiple of 16 (bf16 sublane granule); the
    weight is padded identically so the extra rows contribute zero.
    """
    C, N, D, H, W = x.shape
    xp = jnp.pad(x, ((0, 0), (0, 0), (pad, pad), (pad, pad), (pad, pad)))
    Do = D + 2 * pad - ksize + 1
    Ho = H + 2 * pad - ksize + 1
    Wo = W + 2 * pad - ksize + 1
    cols = []
    for kd in range(ksize):
        for kh in range(ksize):
            for kw in range(ksize):
                cols.append(xp[:, :, kd:kd + Do, kh:kh + Ho, kw:kw + Wo])
    p = jnp.stack(cols, axis=0)                       # (27, C, N, Do, Ho, Wo)
    K = ksize ** 3 * C
    p = p.reshape(K, N * Do * Ho * Wo)                # K index = tap*C + cin
    Kp = _round_up(K, 16)
    if Kp != K:
        p = jnp.pad(p, ((0, Kp - K), (0, 0)))
    return p.astype(jnp.bfloat16), (N, Do, Ho, Wo)


def conv3d_relu_bn(x, layer):
    """Conv3d(k=3, pad=2) -> ReLU -> BatchNorm3d(eval), channel-first layout."""
    p, (N, Do, Ho, Wo) = im2col_cf(x)
    out = conv_matmul(layer["w"], p, layer["b"], layer["s"], layer["t"])
    cout = layer["w"].shape[0]
    return out.reshape(cout, N, Do, Ho, Wo)


def maxpool3d_3x3x3(x):
    """nn.MaxPool3d(kernel_size=3, stride=3), floor mode, channel-first.

    Plain XLA (fused under jit); a Pallas launch here was pure overhead.
    """
    C, N, D, H, W = x.shape
    Do, Ho, Wo = D // 3, H // 3, W // 3
    xc = x[:, :, :Do * 3, :Ho * 3, :Wo * 3]
    xr = xc.reshape(C, N, Do, 3, Ho, 3, Wo, 3)
    return xr.max(axis=(3, 5, 7))


# ----------------------------------------------------------------------------
# Parameters
# ----------------------------------------------------------------------------
def xavier_uniform(key, shape, fan_in, fan_out):
    bound = math.sqrt(6.0 / (fan_in + fan_out))
    return jax.random.uniform(key, shape, jnp.float32, -bound, bound)


def init_params(key, num_channels, classes, num_nodes, flat_size):
    keys = jax.random.split(key, 4 + 2 * classes)
    conv_dims = [(num_channels, num_nodes[0]), (num_nodes[0], num_nodes[1]),
                 (num_nodes[1], num_nodes[2]), (num_nodes[2], num_nodes[3])]
    convs = []
    for i, (cin, cout) in enumerate(conv_dims):
        # weight stored in im2col-transposed form (Cout, 27*Cin);
        # xavier fan_in/fan_out match torch's Conv3d (cin*27, cout*27).
        w = xavier_uniform(keys[i], (cout, 27 * cin), cin * 27, cout * 27)
        convs.append(dict(
            w=w,
            b=jnp.zeros((cout,), jnp.float32),        # conv bias init zeros
            gamma=jnp.ones((cout,), jnp.float32),      # BN defaults
            beta=jnp.zeros((cout,), jnp.float32),
            rmean=jnp.zeros((cout,), jnp.float32),
            rvar=jnp.ones((cout,), jnp.float32)))
    heads = []
    for c in range(classes):
        k1, k2 = keys[4 + 2 * c], keys[4 + 2 * c + 1]
        w1 = xavier_uniform(k1, (flat_size, num_nodes[4]), flat_size, num_nodes[4])
        w2 = xavier_uniform(k2, (num_nodes[4], 1), num_nodes[4], 1)
        heads.append(dict(w1=w1, b1=jnp.zeros((num_nodes[4],), jnp.float32),
                          w2=w2, b2=jnp.zeros((1,), jnp.float32)))
    return {"convs": convs, "heads": heads}


def prepare_params(params):
    """One-time preprocessing (hoisted out of the forward path): fold BN
    running stats into per-channel scale/shift, cast MXU weights to bf16,
    zero-pad conv K to a 16 multiple, and fuse all class heads into one
    concatenated W1 plus a block-diagonal W2."""
    convs = []
    for c in params["convs"]:
        s = c["gamma"] / jnp.sqrt(c["rvar"] + EPS)
        t = c["beta"] - c["rmean"] * s
        w = c["w"]
        cout, K = w.shape
        Kp = _round_up(K, 16)
        if Kp != K:
            w = jnp.pad(w, ((0, 0), (0, Kp - K)))
        convs.append(dict(
            w=w.astype(jnp.bfloat16),
            b=c["b"].reshape(-1, 1).astype(jnp.float32),
            s=s.reshape(-1, 1).astype(jnp.float32),
            t=t.reshape(-1, 1).astype(jnp.float32)))
    hs = params["heads"]
    classes = len(hs)
    hid = hs[0]["w1"].shape[1]
    w1 = jnp.concatenate([h["w1"] for h in hs], axis=1).astype(jnp.bfloat16)
    b1 = jnp.concatenate([h["b1"] for h in hs], axis=0).reshape(1, classes * hid)
    w2 = jnp.zeros((classes * hid, classes), jnp.float32)
    for ci, h in enumerate(hs):
        w2 = w2.at[ci * hid:(ci + 1) * hid, ci].set(h["w2"][:, 0])
    b2 = jnp.concatenate([h["b2"] for h in hs], axis=0).reshape(1, classes)
    heads = dict(w1=w1, b1=b1.astype(jnp.float32), w2=w2,
                 b2=b2.astype(jnp.float32))
    return {"convs": convs, "heads": heads}


# ----------------------------------------------------------------------------
# Forward
# ----------------------------------------------------------------------------
@jax.jit
def forward(proc, x_ncdhw):
    # NCDHW -> channel-first (C, N, D, H, W)
    x = jnp.transpose(x_ncdhw, (1, 0, 2, 3, 4)).astype(jnp.float32)
    c = proc["convs"]
    # cnnblock1
    x = conv3d_relu_bn(x, c[0])
    x = conv3d_relu_bn(x, c[1])
    x = maxpool3d_3x3x3(x)           # Dropout(0.5): identity (eval mode)
    # cnnblock2
    x = conv3d_relu_bn(x, c[2])
    x = conv3d_relu_bn(x, c[3])
    x = maxpool3d_3x3x3(x)           # Dropout(0.5): identity (eval mode)
    # flatten exactly as torch.flatten on NCDHW
    C, N, d, h, w = x.shape
    xf = jnp.transpose(x, (1, 0, 2, 3, 4)).reshape(N, C * d * h * w)
    # all per-class heads in one fused Pallas launch
    return heads_fused(xf, proc["heads"])


if __name__ == "__main__":
    num_channels, classes, size = 4, 3, (8, 8, 8)
    num_nodes = [32, 32, 32, 32, 256]

    # trace the shapes analytically: conv(k=3,pad=2) adds +2 per conv, pool //3
    s1 = tuple((d + 4) // 3 for d in size)
    s2 = tuple((d + 4) // 3 for d in s1)
    flat_size = num_nodes[3] * s2[0] * s2[1] * s2[2]

    key = jax.random.PRNGKey(0)
    kp, kx = jax.random.split(key)
    params = init_params(kp, num_channels, classes, num_nodes, flat_size)
    proc = prepare_params(params)
    x = jax.random.normal(kx, (2, num_channels) + size, jnp.float32)

    out = forward(proc, x)
    out = jax.block_until_ready(out)
    assert out.shape == (2, classes), out.shape
    assert bool(jnp.all(jnp.isfinite(out)))
    print("KERNEL_OK")
</pallas_src>

<mosaic_0001>
module attributes {stable_mosaic.version = 11 : i64} {
  func.func @_conv_matmul_kernel(%arg0: i32, %arg1: memref<32x112xbf16, #tpu.memory_space<vmem>>, %arg2: memref<112x512xbf16, #tpu.memory_space<vmem>>, %arg3: memref<32x1xf32, #tpu.memory_space<vmem>>, %arg4: memref<32x1xf32, #tpu.memory_space<vmem>>, %arg5: memref<32x1xf32, #tpu.memory_space<vmem>>, %arg6: memref<32x512xf32, #tpu.memory_space<vmem>>) attributes {dimension_semantics = [#tpu.dimension_semantics<parallel>], iteration_bounds = array<i64: 4>, scalar_prefetch = 0 : i64, scratch_operands = 0 : i64, tpu.core_type = #tpu.core_type<tc>, window_params = [{pipeline_mode = #tpu.pipeline_mode<synchronous>, transform_indices = @transform_0, window_bounds = array<i64: 32, 112>}, {transform_indices = @transform_1, window_bounds = array<i64: 112, 512>}, {pipeline_mode = #tpu.pipeline_mode<synchronous>, transform_indices = @transform_2, window_bounds = array<i64: 32, 1>}, {pipeline_mode = #tpu.pipeline_mode<synchronous>, transform_indices = @transform_3, window_bounds = array<i64: 32, 1>}, {pipeline_mode = #tpu.pipeline_mode<synchronous>, transform_indices = @transform_4, window_bounds = array<i64: 32, 1>}, {transform_indices = @transform_5, window_bounds = array<i64: 32, 512>}]} {
    %c0 = arith.constant 0 : index
    %c0_0 = arith.constant 0 : index
    %0 = vector.load %arg1[%c0, %c0_0] : memref<32x112xbf16, #tpu.memory_space<vmem>>, vector<32x112xbf16>
    %c0_1 = arith.constant 0 : index
    %c0_2 = arith.constant 0 : index
    %1 = vector.load %arg2[%c0_1, %c0_2] : memref<112x512xbf16, #tpu.memory_space<vmem>>, vector<112x512xbf16>
    %cst = arith.constant dense<0.000000e+00> : vector<32x512xf32>
    %2 = tpu.matmul %0, %1, %cst {dimension_numbers = #tpu.dot_dimension_numbers<[1], [0], [0], [1], [0, 0, 1, 1], [], []>} : vector<32x112xbf16>, vector<112x512xbf16>, vector<32x512xf32> -> vector<32x512xf32>
    %c0_3 = arith.constant 0 : index
    %c0_4 = arith.constant 0 : index
    %3 = vector.load %arg3[%c0_3, %c0_4] : memref<32x1xf32, #tpu.memory_space<vmem>>, vector<32x1xf32>
    %4 = vector.broadcast %3 : vector<32x1xf32> to vector<32x512xf32>
    %5 = arith.addf %2, %4 : vector<32x512xf32>
    %cst_5 = arith.constant 0.000000e+00 : f32
    %6 = vector.broadcast %cst_5 : f32 to vector<32x512xf32>
    %7 = arith.maximumf %5, %6 : vector<32x512xf32>
    %c0_6 = arith.constant 0 : index
    %c0_7 = arith.constant 0 : index
    %8 = vector.load %arg4[%c0_6, %c0_7] : memref<32x1xf32, #tpu.memory_space<vmem>>, vector<32x1xf32>
    %9 = vector.broadcast %8 : vector<32x1xf32> to vector<32x512xf32>
    %10 = arith.mulf %7, %9 : vector<32x512xf32>
    %c0_8 = arith.constant 0 : index
    %c0_9 = arith.constant 0 : index
    %11 = vector.load %arg5[%c0_8, %c0_9] : memref<32x1xf32, #tpu.memory_space<vmem>>, vector<32x1xf32>
    %12 = vector.broadcast %11 : vector<32x1xf32> to vector<32x512xf32>
    %13 = arith.addf %10, %12 : vector<32x512xf32>
    %c0_10 = arith.constant 0 : index
    %c0_11 = arith.constant 0 : index
    %14 = vector.load %arg6[%c0_10, %c0_11] : memref<32x512xf32, #tpu.memory_space<vmem>>, vector<32x512xf32>
    tpu.vector_store %arg6[%c0_10, %c0_11], %13 {strides = array<i32>} : memref<32x512xf32, #tpu.memory_space<vmem>>, vector<32x512xf32>,
    return
  }
  func.func @transform_0(%arg0: i32) -> (i32, i32) {
    %c0_i32 = arith.constant 0 : i32
    %c0_i32_0 = arith.constant 0 : i32
    %c0_i32_1 = arith.constant 0 : i32
    return %c0_i32, %c0_i32_0 : i32, i32
  }
  func.func @transform_1(%arg0: i32) -> (i32, i32) {
    %c0_i32 = arith.constant 0 : i32
    %c0_i32_0 = arith.constant 0 : i32
    return %c0_i32, %arg0 : i32, i32
  }
  func.func @transform_2(%arg0: i32) -> (i32, i32) {
    %c0_i32 = arith.constant 0 : i32
    %c0_i32_0 = arith.constant 0 : i32
    %c0_i32_1 = arith.constant 0 : i32
    return %c0_i32, %c0_i32_0 : i32, i32
  }
  func.func @transform_3(%arg0: i32) -> (i32, i32) {
    %c0_i32 = arith.constant 0 : i32
    %c0_i32_0 = arith.constant 0 : i32
    %c0_i32_1 = arith.constant 0 : i32
    return %c0_i32, %c0_i32_0 : i32, i32
  }
  func.func @transform_4(%arg0: i32) -> (i32, i32) {
    %c0_i32 = arith.constant 0 : i32
    %c0_i32_0 = arith.constant 0 : i32
    %c0_i32_1 = arith.constant 0 : i32
    return %c0_i32, %c0_i32_0 : i32, i32
  }
  func.func @transform_5(%arg0: i32) -> (i32, i32) {
    %c0_i32 = arith.constant 0 : i32
    %c0_i32_0 = arith.constant 0 : i32
    return %c0_i32, %arg0 : i32, i32
  }
}

module attributes {stable_mosaic.version = 11 : i64} {
  func.func @_conv_matmul_kernel(%arg0: i32, %arg1: memref<32x864xbf16, #tpu.memory_space<vmem>>, %arg2: memref<864x512xbf16, #tpu.memory_space<vmem>>, %arg3: memref<32x1xf32, #tpu.memory_space<vmem>>, %arg4: memref<32x1xf32, #tpu.memory_space<vmem>>, %arg5: memref<32x1xf32, #tpu.memory_space<vmem>>, %arg6: memref<32x512xf32, #tpu.memory_space<vmem>>) attributes {dimension_semantics = [#tpu.dimension_semantics<parallel>], iteration_bounds = array<i64: 7>, scalar_prefetch = 0 : i64, scratch_operands = 0 : i64, tpu.core_type = #tpu.core_type<tc>, window_params = [{pipeline_mode = #tpu.pipeline_mode<synchronous>, transform_indices = @transform_0, window_bounds = array<i64: 32, 864>}, {transform_indices = @transform_1, window_bounds = array<i64: 864, 512>}, {pipeline_mode = #tpu.pipeline_mode<synchronous>, transform_indices = @transform_2, window_bounds = array<i64: 32, 1>}, {pipeline_mode = #tpu.pipeline_mode<synchronous>, transform_indices = @transform_3, window_bounds = array<i64: 32, 1>}, {pipeline_mode = #tpu.pipeline_mode<synchronous>, transform_indices = @transform_4, window_bounds = array<i64: 32, 1>}, {transform_indices = @transform_5, window_bounds = array<i64: 32, 512>}]} {
    %c0 = arith.constant 0 : index
    %c0_0 = arith.constant 0 : index
    %0 = vector.load %arg1[%c0, %c0_0] : memref<32x864xbf16, #tpu.memory_space<vmem>>, vector<32x864xbf16>
    %c0_1 = arith.constant 0 : index
    %c0_2 = arith.constant 0 : index
    %1 = vector.load %arg2[%c0_1, %c0_2] : memref<864x512xbf16, #tpu.memory_space<vmem>>, vector<864x512xbf16>
    %cst = arith.constant dense<0.000000e+00> : vector<32x512xf32>
    %2 = tpu.matmul %0, %1, %cst {dimension_numbers = #tpu.dot_dimension_numbers<[1], [0], [0], [1], [0, 0, 1, 1], [], []>} : vector<32x864xbf16>, vector<864x512xbf16>, vector<32x512xf32> -> vector<32x512xf32>
    %c0_3 = arith.constant 0 : index
    %c0_4 = arith.constant 0 : index
    %3 = vector.load %arg3[%c0_3, %c0_4] : memref<32x1xf32, #tpu.memory_space<vmem>>, vector<32x1xf32>
    %4 = vector.broadcast %3 : vector<32x1xf32> to vector<32x512xf32>
    %5 = arith.addf %2, %4 : vector<32x512xf32>
    %cst_5 = arith.constant 0.000000e+00 : f32
    %6 = vector.broadcast %cst_5 : f32 to vector<32x512xf32>
    %7 = arith.maximumf %5, %6 : vector<32x512xf32>
    %c0_6 = arith.constant 0 : index
    %c0_7 = arith.constant 0 : index
    %8 = vector.load %arg4[%c0_6, %c0_7] : memref<32x1xf32, #tpu.memory_space<vmem>>, vector<32x1xf32>
    %9 = vector.broadcast %8 : vector<32x1xf32> to vector<32x512xf32>
    %10 = arith.mulf %7, %9 : vector<32x512xf32>
    %c0_8 = arith.constant 0 : index
    %c0_9 = arith.constant 0 : index
    %11 = vector.load %arg5[%c0_8, %c0_9] : memref<32x1xf32, #tpu.memory_space<vmem>>, vector<32x1xf32>
    %12 = vector.broadcast %11 : vector<32x1xf32> to vector<32x512xf32>
    %13 = arith.addf %10, %12 : vector<32x512xf32>
    %c0_10 = arith.constant 0 : index
    %c0_11 = arith.constant 0 : index
    %14 = vector.load %arg6[%c0_10, %c0_11] : memref<32x512xf32, #tpu.memory_space<vmem>>, vector<32x512xf32>
    tpu.vector_store %arg6[%c0_10, %c0_11], %13 {strides = array<i32>} : memref<32x512xf32, #tpu.memory_space<vmem>>, vector<32x512xf32>,
    return
  }
  func.func @transform_0(%arg0: i32) -> (i32, i32) {
    %c0_i32 = arith.constant 0 : i32
    %c0_i32_0 = arith.constant 0 : i32
    %c0_i32_1 = arith.constant 0 : i32
    return %c0_i32, %c0_i32_0 : i32, i32
  }
  func.func @transform_1(%arg0: i32) -> (i32, i32) {
    %c0_i32 = arith.constant 0 : i32
    %c0_i32_0 = arith.constant 0 : i32
    return %c0_i32, %arg0 : i32, i32
  }
  func.func @transform_2(%arg0: i32) -> (i32, i32) {
    %c0_i32 = arith.constant 0 : i32
    %c0_i32_0 = arith.constant 0 : i32
    %c0_i32_1 = arith.constant 0 : i32
    return %c0_i32, %c0_i32_0 : i32, i32
  }
  func.func @transform_3(%arg0: i32) -> (i32, i32) {
    %c0_i32 = arith.constant 0 : i32
    %c0_i32_0 = arith.constant 0 : i32
    %c0_i32_1 = arith.constant 0 : i32
    return %c0_i32, %c0_i32_0 : i32, i32
  }
  func.func @transform_4(%arg0: i32) -> (i32, i32) {
    %c0_i32 = arith.constant 0 : i32
    %c0_i32_0 = arith.constant 0 : i32
    %c0_i32_1 = arith.constant 0 : i32
    return %c0_i32, %c0_i32_0 : i32, i32
  }
  func.func @transform_5(%arg0: i32) -> (i32, i32) {
    %c0_i32 = arith.constant 0 : i32
    %c0_i32_0 = arith.constant 0 : i32
    return %c0_i32, %arg0 : i32, i32
  }
}

module attributes {stable_mosaic.version = 11 : i64} {
  func.func @_conv_matmul_kernel(%arg0: i32, %arg1: memref<32x864xbf16, #tpu.memory_space<vmem>>, %arg2: memref<864x256xbf16, #tpu.memory_space<vmem>>, %arg3: memref<32x1xf32, #tpu.memory_space<vmem>>, %arg4: memref<32x1xf32, #tpu.memory_space<vmem>>, %arg5: memref<32x1xf32, #tpu.memory_space<vmem>>, %arg6: memref<32x256xf32, #tpu.memory_space<vmem>>) attributes {dimension_semantics = [#tpu.dimension_semantics<parallel>], iteration_bounds = array<i64: 2>, scalar_prefetch = 0 : i64, scratch_operands = 0 : i64, tpu.core_type = #tpu.core_type<tc>, window_params = [{pipeline_mode = #tpu.pipeline_mode<synchronous>, transform_indices = @transform_0, window_bounds = array<i64: 32, 864>}, {transform_indices = @transform_1, window_bounds = array<i64: 864, 256>}, {pipeline_mode = #tpu.pipeline_mode<synchronous>, transform_indices = @transform_2, window_bounds = array<i64: 32, 1>}, {pipeline_mode = #tpu.pipeline_mode<synchronous>, transform_indices = @transform_3, window_bounds = array<i64: 32, 1>}, {pipeline_mode = #tpu.pipeline_mode<synchronous>, transform_indices = @transform_4, window_bounds = array<i64: 32, 1>}, {transform_indices = @transform_5, window_bounds = array<i64: 32, 256>}]} {
    %c0 = arith.constant 0 : index
    %c0_0 = arith.constant 0 : index
    %0 = vector.load %arg1[%c0, %c0_0] : memref<32x864xbf16, #tpu.memory_space<vmem>>, vector<32x864xbf16>
    %c0_1 = arith.constant 0 : index
    %c0_2 = arith.constant 0 : index
    %1 = vector.load %arg2[%c0_1, %c0_2] : memref<864x256xbf16, #tpu.memory_space<vmem>>, vector<864x256xbf16>
    %cst = arith.constant dense<0.000000e+00> : vector<32x256xf32>
    %2 = tpu.matmul %0, %1, %cst {dimension_numbers = #tpu.dot_dimension_numbers<[1], [0], [0], [1], [0, 0, 1, 1], [], []>} : vector<32x864xbf16>, vector<864x256xbf16>, vector<32x256xf32> -> vector<32x256xf32>
    %c0_3 = arith.constant 0 : index
    %c0_4 = arith.constant 0 : index
    %3 = vector.load %arg3[%c0_3, %c0_4] : memref<32x1xf32, #tpu.memory_space<vmem>>, vector<32x1xf32>
    %4 = vector.broadcast %3 : vector<32x1xf32> to vector<32x256xf32>
    %5 = arith.addf %2, %4 : vector<32x256xf32>
    %cst_5 = arith.constant 0.000000e+00 : f32
    %6 = vector.broadcast %cst_5 : f32 to vector<32x256xf32>
    %7 = arith.maximumf %5, %6 : vector<32x256xf32>
    %c0_6 = arith.constant 0 : index
    %c0_7 = arith.constant 0 : index
    %8 = vector.load %arg4[%c0_6, %c0_7] : memref<32x1xf32, #tpu.memory_space<vmem>>, vector<32x1xf32>
    %9 = vector.broadcast %8 : vector<32x1xf32> to vector<32x256xf32>
    %10 = arith.mulf %7, %9 : vector<32x256xf32>
    %c0_8 = arith.constant 0 : index
    %c0_9 = arith.constant 0 : index
    %11 = vector.load %arg5[%c0_8, %c0_9] : memref<32x1xf32, #tpu.memory_space<vmem>>, vector<32x1xf32>
    %12 = vector.broadcast %11 : vector<32x1xf32> to vector<32x256xf32>
    %13 = arith.addf %10, %12 : vector<32x256xf32>
    %c0_10 = arith.constant 0 : index
    %c0_11 = arith.constant 0 : index
    %14 = vector.load %arg6[%c0_10, %c0_11] : memref<32x256xf32, #tpu.memory_space<vmem>>, vector<32x256xf32>
    tpu.vector_store %arg6[%c0_10, %c0_11], %13 {strides = array<i32>} : memref<32x256xf32, #tpu.memory_space<vmem>>, vector<32x256xf32>,
    return
  }
  func.func @transform_0(%arg0: i32) -> (i32, i32) {
    %c0_i32 = arith.constant 0 : i32
    %c0_i32_0 = arith.constant 0 : i32
    %c0_i32_1 = arith.constant 0 : i32
    return %c0_i32, %c0_i32_0 : i32, i32
  }
  func.func @transform_1(%arg0: i32) -> (i32, i32) {
    %c0_i32 = arith.constant 0 : i32
    %c0_i32_0 = arith.constant 0 : i32
    return %c0_i32, %arg0 : i32, i32
  }
  func.func @transform_2(%arg0: i32) -> (i32, i32) {
    %c0_i32 = arith.constant 0 : i32
    %c0_i32_0 = arith.constant 0 : i32
    %c0_i32_1 = arith.constant 0 : i32
    return %c0_i32, %c0_i32_0 : i32, i32
  }
  func.func @transform_3(%arg0: i32) -> (i32, i32) {
    %c0_i32 = arith.constant 0 : i32
    %c0_i32_0 = arith.constant 0 : i32
    %c0_i32_1 = arith.constant 0 : i32
    return %c0_i32, %c0_i32_0 : i32, i32
  }
  func.func @transform_4(%arg0: i32) -> (i32, i32) {
    %c0_i32 = arith.constant 0 : i32
    %c0_i32_0 = arith.constant 0 : i32
    %c0_i32_1 = arith.constant 0 : i32
    return %c0_i32, %c0_i32_0 : i32, i32
  }
  func.func @transform_5(%arg0: i32) -> (i32, i32) {
    %c0_i32 = arith.constant 0 : i32
    %c0_i32_0 = arith.constant 0 : i32
    return %c0_i32, %arg0 : i32, i32
  }
}

module attributes {stable_mosaic.version = 11 : i64} {
  func.func @_conv_matmul_kernel(%arg0: i32, %arg1: memref<32x864xbf16, #tpu.memory_space<vmem>>, %arg2: memref<864x512xbf16, #tpu.memory_space<vmem>>, %arg3: memref<32x1xf32, #tpu.memory_space<vmem>>, %arg4: memref<32x1xf32, #tpu.memory_space<vmem>>, %arg5: memref<32x1xf32, #tpu.memory_space<vmem>>, %arg6: memref<32x512xf32, #tpu.memory_space<vmem>>) attributes {dimension_semantics = [#tpu.dimension_semantics<parallel>], iteration_bounds = array<i64: 2>, scalar_prefetch = 0 : i64, scratch_operands = 0 : i64, tpu.core_type = #tpu.core_type<tc>, window_params = [{pipeline_mode = #tpu.pipeline_mode<synchronous>, transform_indices = @transform_0, window_bounds = array<i64: 32, 864>}, {transform_indices = @transform_1, window_bounds = array<i64: 864, 512>}, {pipeline_mode = #tpu.pipeline_mode<synchronous>, transform_indices = @transform_2, window_bounds = array<i64: 32, 1>}, {pipeline_mode = #tpu.pipeline_mode<synchronous>, transform_indices = @transform_3, window_bounds = array<i64: 32, 1>}, {pipeline_mode = #tpu.pipeline_mode<synchronous>, transform_indices = @transform_4, window_bounds = array<i64: 32, 1>}, {transform_indices = @transform_5, window_bounds = array<i64: 32, 512>}]} {
    %c0 = arith.constant 0 : index
    %c0_0 = arith.constant 0 : index
    %0 = vector.load %arg1[%c0, %c0_0] : memref<32x864xbf16, #tpu.memory_space<vmem>>, vector<32x864xbf16>
    %c0_1 = arith.constant 0 : index
    %c0_2 = arith.constant 0 : index
    %1 = vector.load %arg2[%c0_1, %c0_2] : memref<864x512xbf16, #tpu.memory_space<vmem>>, vector<864x512xbf16>
    %cst = arith.constant dense<0.000000e+00> : vector<32x512xf32>
    %2 = tpu.matmul %0, %1, %cst {dimension_numbers = #tpu.dot_dimension_numbers<[1], [0], [0], [1], [0, 0, 1, 1], [], []>} : vector<32x864xbf16>, vector<864x512xbf16>, vector<32x512xf32> -> vector<32x512xf32>
    %c0_3 = arith.constant 0 : index
    %c0_4 = arith.constant 0 : index
    %3 = vector.load %arg3[%c0_3, %c0_4] : memref<32x1xf32, #tpu.memory_space<vmem>>, vector<32x1xf32>
    %4 = vector.broadcast %3 : vector<32x1xf32> to vector<32x512xf32>
    %5 = arith.addf %2, %4 : vector<32x512xf32>
    %cst_5 = arith.constant 0.000000e+00 : f32
    %6 = vector.broadcast %cst_5 : f32 to vector<32x512xf32>
    %7 = arith.maximumf %5, %6 : vector<32x512xf32>
    %c0_6 = arith.constant 0 : index
    %c0_7 = arith.constant 0 : index
    %8 = vector.load %arg4[%c0_6, %c0_7] : memref<32x1xf32, #tpu.memory_space<vmem>>, vector<32x1xf32>
    %9 = vector.broadcast %8 : vector<32x1xf32> to vector<32x512xf32>
    %10 = arith.mulf %7, %9 : vector<32x512xf32>
    %c0_8 = arith.constant 0 : index
    %c0_9 = arith.constant 0 : index
    %11 = vector.load %arg5[%c0_8, %c0_9] : memref<32x1xf32, #tpu.memory_space<vmem>>, vector<32x1xf32>
    %12 = vector.broadcast %11 : vector<32x1xf32> to vector<32x512xf32>
    %13 = arith.addf %10, %12 : vector<32x512xf32>
    %c0_10 = arith.constant 0 : index
    %c0_11 = arith.constant 0 : index
    %14 = vector.load %arg6[%c0_10, %c0_11] : memref<32x512xf32, #tpu.memory_space<vmem>>, vector<32x512xf32>
    tpu.vector_store %arg6[%c0_10, %c0_11], %13 {strides = array<i32>} : memref<32x512xf32, #tpu.memory_space<vmem>>, vector<32x512xf32>,
    return
  }
  func.func @transform_0(%arg0: i32) -> (i32, i32) {
    %c0_i32 = arith.constant 0 : i32
    %c0_i32_0 = arith.constant 0 : i32
    %c0_i32_1 = arith.constant 0 : i32
    return %c0_i32, %c0_i32_0 : i32, i32
  }
  func.func @transform_1(%arg0: i32) -> (i32, i32) {
    %c0_i32 = arith.constant 0 : i32
    %c0_i32_0 = arith.constant 0 : i32
    return %c0_i32, %arg0 : i32, i32
  }
  func.func @transform_2(%arg0: i32) -> (i32, i32) {
    %c0_i32 = arith.constant 0 : i32
    %c0_i32_0 = arith.constant 0 : i32
    %c0_i32_1 = arith.constant 0 : i32
    return %c0_i32, %c0_i32_0 : i32, i32
  }
  func.func @transform_3(%arg0: i32) -> (i32, i32) {
    %c0_i32 = arith.constant 0 : i32
    %c0_i32_0 = arith.constant 0 : i32
    %c0_i32_1 = arith.constant 0 : i32
    return %c0_i32, %c0_i32_0 : i32, i32
  }
  func.func @transform_4(%arg0: i32) -> (i32, i32) {
    %c0_i32 = arith.constant 0 : i32
    %c0_i32_0 = arith.constant 0 : i32
    %c0_i32_1 = arith.constant 0 : i32
    return %c0_i32, %c0_i32_0 : i32, i32
  }
  func.func @transform_5(%arg0: i32) -> (i32, i32) {
    %c0_i32 = arith.constant 0 : i32
    %c0_i32_0 = arith.constant 0 : i32
    return %c0_i32, %arg0 : i32, i32
  }
}

module attributes {stable_mosaic.version = 11 : i64} {
  func.func @_heads_kernel(%arg0: i32, %arg1: memref<2x256xbf16, #tpu.memory_space<vmem>>, %arg2: memref<256x768xbf16, #tpu.memory_space<vmem>>, %arg3: memref<1x768xf32, #tpu.memory_space<vmem>>, %arg4: memref<768x3xf32, #tpu.memory_space<vmem>>, %arg5: memref<1x3xf32, #tpu.memory_space<vmem>>, %arg6: memref<2x3xf32, #tpu.memory_space<vmem>>) attributes {dimension_semantics = [#tpu.dimension_semantics<arbitrary>], iteration_bounds = array<i64: 1>, scalar_prefetch = 0 : i64, scratch_operands = 0 : i64, tpu.core_type = #tpu.core_type<tc>, window_params = [{pipeline_mode = #tpu.pipeline_mode<synchronous>, transform_indices = @transform_0, window_bounds = array<i64: 2, 256>}, {pipeline_mode = #tpu.pipeline_mode<synchronous>, transform_indices = @transform_1, window_bounds = array<i64: 256, 768>}, {pipeline_mode = #tpu.pipeline_mode<synchronous>, transform_indices = @transform_2, window_bounds = array<i64: 1, 768>}, {pipeline_mode = #tpu.pipeline_mode<synchronous>, transform_indices = @transform_3, window_bounds = array<i64: 768, 3>}, {pipeline_mode = #tpu.pipeline_mode<synchronous>, transform_indices = @transform_4, window_bounds = array<i64: 1, 3>}, {pipeline_mode = #tpu.pipeline_mode<synchronous>, transform_indices = @transform_5, window_bounds = array<i64: 2, 3>}]} {
    %c0 = arith.constant 0 : index
    %c0_0 = arith.constant 0 : index
    %0 = vector.load %arg1[%c0, %c0_0] : memref<2x256xbf16, #tpu.memory_space<vmem>>, vector<2x256xbf16>
    %c0_1 = arith.constant 0 : index
    %c0_2 = arith.constant 0 : index
    %1 = vector.load %arg2[%c0_1, %c0_2] : memref<256x768xbf16, #tpu.memory_space<vmem>>, vector<256x768xbf16>
    %cst = arith.constant dense<0.000000e+00> : vector<2x768xf32>
    %2 = tpu.matmul %0, %1, %cst {dimension_numbers = #tpu.dot_dimension_numbers<[1], [0], [0], [1], [0, 0, 1, 1], [], []>} : vector<2x256xbf16>, vector<256x768xbf16>, vector<2x768xf32> -> vector<2x768xf32>
    %c0_3 = arith.constant 0 : index
    %c0_4 = arith.constant 0 : index
    %3 = vector.load %arg3[%c0_3, %c0_4] : memref<1x768xf32, #tpu.memory_space<vmem>>, vector<1x768xf32>
    %4 = vector.broadcast %3 : vector<1x768xf32> to vector<2x768xf32>
    %5 = arith.addf %2, %4 : vector<2x768xf32>
    %cst_5 = arith.constant 0.000000e+00 : f32
    %6 = vector.broadcast %cst_5 : f32 to vector<2x768xf32>
    %7 = arith.maximumf %5, %6 : vector<2x768xf32>
    %c0_6 = arith.constant 0 : index
    %c0_7 = arith.constant 0 : index
    %8 = vector.load %arg4[%c0_6, %c0_7] : memref<768x3xf32, #tpu.memory_space<vmem>>, vector<768x3xf32>
    %cst_8 = arith.constant dense<0.000000e+00> : vector<2x3xf32>
    %9 = tpu.matmul %7, %8, %cst_8 {dimension_numbers = #tpu.dot_dimension_numbers<[1], [0], [0], [1], [0, 0, 1, 1], [], []>} : vector<2x768xf32>, vector<768x3xf32>, vector<2x3xf32> -> vector<2x3xf32>
    %c0_9 = arith.constant 0 : index
    %c0_10 = arith.constant 0 : index
    %10 = vector.load %arg5[%c0_9, %c0_10] : memref<1x3xf32, #tpu.memory_space<vmem>>, vector<1x3xf32>
    %11 = vector.broadcast %10 : vector<1x3xf32> to vector<2x3xf32>
    %12 = arith.addf %9, %11 : vector<2x3xf32>
    %cst_11 = arith.constant 0.000000e+00 : f32
    %13 = vector.broadcast %cst_11 : f32 to vector<2x3xf32>
    %14 = arith.subf %13, %12 : vector<2x3xf32>
    %15 = math.exp %14 : vector<2x3xf32>
    %cst_12 = arith.constant 1.000000e+00 : f32
    %16 = vector.broadcast %cst_12 : f32 to vector<2x3xf32>
    %17 = arith.addf %16, %15 : vector<2x3xf32>
    %18 = tpu.reciprocal %17 {approx = true} : vector<2x3xf32> -> vector<2x3xf32>
    %c0_13 = arith.constant 0 : index
    %c0_14 = arith.constant 0 : index
    %19 = vector.load %arg6[%c0_13, %c0_14] : memref<2x3xf32, #tpu.memory_space<vmem>>, vector<2x3xf32>
    tpu.vector_store %arg6[%c0_13, %c0_14], %18 {strides = array<i32>} : memref<2x3xf32, #tpu.memory_space<vmem>>, vector<2x3xf32>,
    return
  }
  func.func @transform_0(%arg0: i32) -> (i32, i32) {
    %c0_i32 = arith.constant 0 : i32
    %c0_i32_0 = arith.constant 0 : i32
    %c0_i32_1 = arith.constant 0 : i32
    return %c0_i32, %c0_i32_0 : i32, i32
  }
  func.func @transform_1(%arg0: i32) -> (i32, i32) {
    %c0_i32 = arith.constant 0 : i32
    %c0_i32_0 = arith.constant 0 : i32
    %c0_i32_1 = arith.constant 0 : i32
    return %c0_i32, %c0_i32_0 : i32, i32
  }
  func.func @transform_2(%arg0: i32) -> (i32, i32) {
    %c0_i32 = arith.constant 0 : i32
    %c0_i32_0 = arith.constant 0 : i32
    %c0_i32_1 = arith.constant 0 : i32
    return %c0_i32, %c0_i32_0 : i32, i32
  }
  func.func @transform_3(%arg0: i32) -> (i32, i32) {
    %c0_i32 = arith.constant 0 : i32
    %c0_i32_0 = arith.constant 0 : i32
    %c0_i32_1 = arith.constant 0 : i32
    return %c0_i32, %c0_i32_0 : i32, i32
  }
  func.func @transform_4(%arg0: i32) -> (i32, i32) {
    %c0_i32 = arith.constant 0 : i32
    %c0_i32_0 = arith.constant 0 : i32
    %c0_i32_1 = arith.constant 0 : i32
    return %c0_i32, %c0_i32_0 : i32, i32
  }
  func.func @transform_5(%arg0: i32) -> (i32, i32) {
    %c0_i32 = arith.constant 0 : i32
    %c0_i32_0 = arith.constant 0 : i32
    %c0_i32_1 = arith.constant 0 : i32
    return %c0_i32, %c0_i32_0 : i32, i32
  }
}

</mosaic_0001>

<bundles_post_ra>
// kernel: forward.5
= control target key start
LH: loop header
LB: loop body
LE: loop exit
PB: predicated region body
PF: predicated region fallthrough
CT: control target
= control target key end

     0   :  { %s1068_s18 = smov 0   ;;  %s1070_s19 = smov 0   ;;  %s1358_s0 = inlined_call_operand.vmem [shape: bf16[32,112], index: 0, kind: input, shape index: {}]   ;;  %s1359_s1 = inlined_call_operand.vmem [shape: bf16[112,2000], index: 1, kind: input, shape index: {}]   ;;  %s1360_s2 = inlined_call_operand.vmem [shape: f32[32,1], index: 2, kind: input, shape index: {}]   ;;  %s1361_s3 = inlined_call_operand.vmem [shape: f32[32,1], index: 3, kind: input, shape index: {}]   ;;  %s1362_s4 = inlined_call_operand.vmem [shape: f32[32,1], index: 4, kind: input, shape index: {}]   ;;  %s1363_s5 = inlined_call_operand.vmem [shape: f32[32,2000], index: 5, kind: output, shape index: {}]  }
   0x1   :  { %s1072_s20 = smov 0  }
   0x2 LB: > { %s810_s21 = sadd.s32 4294967295, %s1035_s20   ;;  %s1085_s22 = sadd.s32 1, %s1035_s20   ;;  %s1035_s20 = sphi %s1072_s20, %s1367_s20   ;;  %s1031_s19 = sphi %s1070_s19, %s1366_s19   ;;  %s1027_s18 = sphi %s1068_s18, %s1365_s18  }
   0x3   : > { %s40_s23 = ssub.s32 %s1035_s20, %s1085_s22  ;;  %s43_s24 = sadd.s32 1, %s1031_s19 }
   0x4   : > { %p41_p0 = scmp.eq.s32.totalorder %s40_s23, 0  ;;  %p50_p1 = scmp.ne.s32.totalorder %s1031_s19, %s1027_s18 }
   0x5   : > { %p51_p2 = scmp.eq.s32.totalorder %s1035_s20, 0  ;;  %p143_p3 = scmp.eq.s32.totalorder %s810_s21, 3 }
   0x6   : > { %s1096_s25 = scalar_select %p41_p0, %s1031_s19, %s43_s24  }
   0x7   : > { %p52_p4 = por %p51_p2, %p50_p1  ;;  %p1098_p5 = por %p143_p3, %p50_p1 }
   0x8   : > { %p813_p6 = scmp.ge.s32.totalorder %s1035_s20, 4 }
   0xa   : > { %177 = sbr.rel (%p813_p6) target bundleno = 47 (0x2f), region = 32 }
   0xf   : > { %180 = sbr.rel (!%p52_p4) target bundleno = 47 (0x2f), region = 36  ;;  %s182_s27 = sand.u32 (%p52_p4), 1, %s1031_s19  }
  0x10   : > { %s951_s28 = sshll.u32 (%p52_p4), %s1035_s20, 4  ;;  %s983_s29 = smul.u32 (%p52_p4), 224, %s182_s27 }
  0x11   : > { %s1108_s7 = scalar_lea.vmem (%p52_p4), %s1359_s1, %s951_s28 }
  0x12   : > { %v200_v0 = vld [vmem:[%s1108_s7] sm:$0xff] (%p52_p4)  ;;  %v202_v1 = vld [vmem:[%s1108_s7 + $0x8] sm:$0xff] (%p52_p4)  ;;  %s1113_s8 = scalar_lea.vmem (%p52_p4), [#allocation2], %s983_s29 }
  0x13   : > { %v204_v2 = vld [vmem:[%s1108_s7 + $0x40] sm:$0xff] (%p52_p4)  ;;  %201 = vst [vmem:[%s1113_s8] sm:$0xff] (%p52_p4), %v200_v0  ;;  %v206_v3 = vld [vmem:[%s1108_s7 + $0x48] sm:$0xff] (%p52_p4) }
  0x14   : > { %203 = vst [vmem:[%s1113_s8 + $0x8] sm:$0xff] %v202_v1  ;;  %v208_v4 = vld [vmem:[%s1108_s7 + $0x80] sm:$0xff]  ;;  %v210_v5 = vld [vmem:[%s1108_s7 + $0x88] sm:$0xff] }
  0x15   : > { %205 = vst [vmem:[%s1113_s8 + $0x10] sm:$0xff] %v204_v2  ;;  %v212_v6 = vld [vmem:[%s1108_s7 + $0xc0] sm:$0xff]  ;;  %v214_v7 = vld [vmem:[%s1108_s7 + $0xc8] sm:$0xff] }
  0x16   : > { %207 = vst [vmem:[%s1113_s8 + $0x18] sm:$0xff] %v206_v3  ;;  %v216_v8 = vld [vmem:[%s1108_s7 + $0x100] sm:$0xff]  ;;  %v218_v9 = vld [vmem:[%s1108_s7 + $0x108] sm:$0xff] }
  0x17   : > { %209 = vst [vmem:[%s1113_s8 + $0x20] sm:$0xff] %v208_v4  ;;  %v220_v10 = vld [vmem:[%s1108_s7 + $0x140] sm:$0xff]  ;;  %v222_v11 = vld [vmem:[%s1108_s7 + $0x148] sm:$0xff] }
  0x18   : > { %211 = vst [vmem:[%s1113_s8 + $0x28] sm:$0xff] %v210_v5  ;;  %v224_v12 = vld [vmem:[%s1108_s7 + $0x180] sm:$0xff]  ;;  %v226_v13 = vld [vmem:[%s1108_s7 + $0x188] sm:$0xff] }
  0x19   : > { %213 = vst [vmem:[%s1113_s8 + $0x30] sm:$0xff] %v212_v6  ;;  %v228_v14 = vld [vmem:[%s1108_s7 + $0x1c0] sm:$0xff]  ;;  %v230_v15 = vld [vmem:[%s1108_s7 + $0x1c8] sm:$0xff] }
  0x1a   : > { %215 = vst [vmem:[%s1113_s8 + $0x38] sm:$0xff] %v214_v7  ;;  %v232_v16 = vld [vmem:[%s1108_s7 + $0x200] sm:$0xff]  ;;  %v234_v17 = vld [vmem:[%s1108_s7 + $0x208] sm:$0xff] }
  0x1b   : > { %217 = vst [vmem:[%s1113_s8 + $0x40] sm:$0xff] %v216_v8  ;;  %v236_v18 = vld [vmem:[%s1108_s7 + $0x240] sm:$0xff]  ;;  %v238_v19 = vld [vmem:[%s1108_s7 + $0x248] sm:$0xff] }
  0x1c   : > { %219 = vst [vmem:[%s1113_s8 + $0x48] sm:$0xff] %v218_v9  ;;  %v240_v20 = vld [vmem:[%s1108_s7 + $0x280] sm:$0xff]  ;;  %v242_v21 = vld [vmem:[%s1108_s7 + $0x288] sm:$0xff] }
  0x1d   : > { %221 = vst [vmem:[%s1113_s8 + $0x50] sm:$0xff] %v220_v10  ;;  %v244_v22 = vld [vmem:[%s1108_s7 + $0x2c0] sm:$0xff]  ;;  %v246_v23 = vld [vmem:[%s1108_s7 + $0x2c8] sm:$0xff] }
  0x1e   : > { %223 = vst [vmem:[%s1113_s8 + $0x58] sm:$0xff] %v222_v11  ;;  %v248_v24 = vld [vmem:[%s1108_s7 + $0x300] sm:$0xff]  ;;  %v250_v25 = vld [vmem:[%s1108_s7 + $0x308] sm:$0xff] }
  0x1f   : > { %225 = vst [vmem:[%s1113_s8 + $0x60] sm:$0xff] %v224_v12  ;;  %v252_v26 = vld [vmem:[%s1108_s7 + $0x340] sm:$0xff]  ;;  %v254_v27 = vld [vmem:[%s1108_s7 + $0x348] sm:$0xff] }
  0x20   : > { %227 = vst [vmem:[%s1113_s8 + $0x68] sm:$0xff] %v226_v13 }
  0x21   : > { %229 = vst [vmem:[%s1113_s8 + $0x70] sm:$0xff] %v228_v14 }
  0x22   : > { %231 = vst [vmem:[%s1113_s8 + $0x78] sm:$0xff] %v230_v15 }
  0x23   : > { %233 = vst [vmem:[%s1113_s8 + $0x80] sm:$0xff] %v232_v16 }
  0x24   : > { %235 = vst [vmem:[%s1113_s8 + $0x88] sm:$0xff] %v234_v17 }
  0x25   : > { %237 = vst [vmem:[%s1113_s8 + $0x90] sm:$0xff] %v236_v18 }
  0x26   : > { %239 = vst [vmem:[%s1113_s8 + $0x98] sm:$0xff] %v238_v19 }
  0x27   : > { %241 = vst [vmem:[%s1113_s8 + $0xa0] sm:$0xff] %v240_v20 }
  0x28   : > { %243 = vst [vmem:[%s1113_s8 + $0xa8] sm:$0xff] %v242_v21 }
  0x29   : > { %245 = vst [vmem:[%s1113_s8 + $0xb0] sm:$0xff] %v244_v22 }
  0x2a   : > { %247 = vst [vmem:[%s1113_s8 + $0xb8] sm:$0xff] %v246_v23 }
  0x2b   : > { %249 = vst [vmem:[%s1113_s8 + $0xc0] sm:$0xff] %v248_v24 }
  0x2c   : > { %251 = vst [vmem:[%s1113_s8 + $0xc8] sm:$0xff] %v250_v25 }
  0x2d   : > { %253 = vst [vmem:[%s1113_s8 + $0xd0] sm:$0xff] %v252_v26 }
  0x2e   : > { %255 = vst [vmem:[%s1113_s8 + $0xd8] sm:$0xff] %v254_v27 }
  0x2f PF: > { %p816_p7 = scmp.ge.s32.totalorder %s1035_s20, 1  ;;  %p260_p8 = scmp.lt.s32.totalorder %s1035_s20, 5 }
  0x31   : > { %p261_p9 = pnand %p816_p7, %p260_p8 }
  0x32   : > { %s267_s9 = sand.u32 (!%p261_p9), 1, %s1027_s18  }
  0x33   : > { %264 = sbr.rel (%p261_p9) target bundleno = 262 (0x106), region = 59  ;;  %s817_s30 = sshll.u32 (!%p261_p9), %s267_s9, 7 }
  0x34   : > { %s984_s10 = smul.u32 (!%p261_p9), 224, %s267_s9  ;;  %s1289_s6 = scalar_lea.vmem (!%p261_p9), [#allocation3], %s817_s30 }
  0x36   : > { %s1179_s15 = scalar_lea.vmem (!%p261_p9), [#allocation2], %s984_s10 }
  0x38   : > { %v330_v28 = vld [vmem:[%s1360_s2 + $0x10] sm:$0xff]  ;;  %v328_v29 = vld [vmem:[%s1360_s2] sm:$0xff]  ;;  %v1037_v30 = vmov 0   ;;  %v932_v36 = vld [vmem:[%s1179_s15 + $0xc8] sm:$0xf]  ;;  %vm502_vm0 = vcmask 916480  }
  0x39   : > { %1011 = vset.pattern.permute.xlu1 %v1037_v30  ;;  %1010 = vset.pattern.permute.xlu0 %v1037_v30  ;;  %v924_v31 = vld [vmem:[%s1179_s15 + $0xc0] sm:$0xf]  ;;  %v980_v32 = vld [vmem:[%s1179_s15 + $0xcc] sm:$0xf0]  ;;  %v978_v33 = vld [vmem:[%s1179_s15 + $0xc4] sm:$0xf] }
  0x3a   : > { %344 = vperm.xlu1 %1011, %v330_v28   ;;  %334 = vperm.xlu0 %1010, %v328_v29   ;;  %v925_v34 = vor.u32 %v980_v32, %v924_v31  ;;  %v926_v35 = vld [vmem:[%s1179_s15 + $0xd0] sm:$0xf0]  ;;  %v981_v37 = vld [vmem:[%s1179_s15 + $0xd4] sm:$0xf0]  ;;  %v979_v40 = vld [vmem:[%s1179_s15 + $0xcc] sm:$0xf] }
  0x3b   : > { %1012 = vset.pattern.permute.xlu2 %v1037_v30  ;;  %v929_v38 = vor.u32 %v978_v33, %v926_v35  ;;  %v933_v39 = vor.u32 %v981_v37, %v932_v36  ;;  %v934_v41 = vld [vmem:[%s1179_s15 + $0xd8] sm:$0xf0]  ;;  %v908_v42 = vld [vmem:[%s1179_s15 + $0xa0] sm:$0xf]  ;;  %v976_v44 = vld [vmem:[%s1179_s15 + $0xac] sm:$0xf0] }
  0x3c   : > { %510 = vmatpush.bf16.msra.mxu0 %v925_v34  ;;  %v937_v43 = vor.u32 %v979_v40, %v934_v41  ;;  %v974_v45 = vld [vmem:[%s1179_s15 + $0xa4] sm:$0xf]  ;;  %v910_v46 = vld [vmem:[%s1179_s15 + $0xb0] sm:$0xf0]  ;;  %v909_v47 = vor.u32 %v976_v44, %v908_v42  ;;  %v916_v49 = vld [vmem:[%s1179_s15 + $0xa8] sm:$0xf] }
  0x3d   : > { %529 = vmatpush.bf16.msra.mxu1 %v929_v38  ;;  %548 = vmatpush.bf16.msra.mxu2 %v933_v39  ;;  %v913_v48 = vor.u32 %v974_v45, %v910_v46  ;;  %v977_v50 = vld [vmem:[%s1179_s15 + $0xb4] sm:$0xf0]  ;;  %v975_v51 = vld [vmem:[%s1179_s15 + $0xac] sm:$0xf]  ;;  %v918_v53 = vld [vmem:[%s1179_s15 + $0xb8] sm:$0xf0] }
  0x3e   : > { %567 = vmatpush.bf16.msra.mxu3 %v937_v43  ;;  %v917_v52 = vor.u32 %v977_v50, %v916_v49  ;;  %v892_v54 = vld [vmem:[%s1179_s15 + $0x80] sm:$0xf]  ;;  %v972_v55 = vld [vmem:[%s1179_s15 + $0x8c] sm:$0xf0]  ;;  %v921_v56 = vor.u32 %v975_v51, %v918_v53  ;;  %v970_v57 = vld [vmem:[%s1179_s15 + $0x84] sm:$0xf] }
  0x3f   : > { %v894_v58 = vld [vmem:[%s1179_s15 + $0x90] sm:$0xf0]  ;;  %v900_v59 = vld [vmem:[%s1179_s15 + $0x88] sm:$0xf]  ;;  %v893_v60 = vor.u32 %v972_v55, %v892_v54  ;;  %v973_v61 = vld [vmem:[%s1179_s15 + $0x94] sm:$0xf0] }
  0x40   : > { %511 = vmatpush.bf16.msra.mxu0 %v909_v47  ;;  %v971_v62 = vld [vmem:[%s1179_s15 + $0x8c] sm:$0xf]  ;;  %v902_v63 = vld [vmem:[%s1179_s15 + $0x98] sm:$0xf0]  ;;  %v897_v0 = vor.u32 %v970_v57, %v894_v58  ;;  %v901_v1 = vor.u32 %v973_v61, %v900_v59  ;;  %v876_v2 = vld [vmem:[%s1179_s15 + $0x60] sm:$0xf] }
  0x41   : > { %530 = vmatpush.bf16.msra.mxu1 %v913_v48  ;;  %549 = vmatpush.bf16.msra.mxu2 %v917_v52  ;;  %v968_v3 = vld [vmem:[%s1179_s15 + $0x6c] sm:$0xf0]  ;;  %v966_v4 = vld [vmem:[%s1179_s15 + $0x64] sm:$0xf]  ;;  %v905_v5 = vor.u32 %v971_v62, %v902_v63  ;;  %v878_v6 = vld [vmem:[%s1179_s15 + $0x70] sm:$0xf0] }
  0x42   : > { %568 = vmatpush.bf16.msra.mxu3 %v921_v56  ;;  %v884_v7 = vld [vmem:[%s1179_s15 + $0x68] sm:$0xf]  ;;  %v969_v8 = vld [vmem:[%s1179_s15 + $0x74] sm:$0xf0]  ;;  %v967_v9 = vld [vmem:[%s1179_s15 + $0x6c] sm:$0xf]  ;;  %v877_v11 = vor.u32 %v968_v3, %v876_v2  ;;  %v881_v12 = vor.u32 %v966_v4, %v878_v6 }
  0x43   : > { %v886_v10 = vld [vmem:[%s1179_s15 + $0x78] sm:$0xf0]  ;;  %v885_v13 = vor.u32 %v969_v8, %v884_v7  ;;  %v860_v14 = vld [vmem:[%s1179_s15 + $0x40] sm:$0xf]  ;;  %v964_v15 = vld [vmem:[%s1179_s15 + $0x4c] sm:$0xf0] }
  0x44   : > { %512 = vmatpush.bf16.msra.mxu0 %v893_v60  ;;  %v962_v16 = vld [vmem:[%s1179_s15 + $0x44] sm:$0xf]  ;;  %v889_v17 = vor.u32 %v967_v9, %v886_v10  ;;  %v862_v18 = vld [vmem:[%s1179_s15 + $0x50] sm:$0xf0]  ;;  %v868_v19 = vld [vmem:[%s1179_s15 + $0x48] sm:$0xf]  ;;  %v861_v23 = vor.u32 %v964_v15, %v860_v14 }
  0x45   : > { %531 = vmatpush.bf16.msra.mxu1 %v897_v0  ;;  %550 = vmatpush.bf16.msra.mxu2 %v901_v1  ;;  %v965_v20 = vld [vmem:[%s1179_s15 + $0x54] sm:$0xf0]  ;;  %v963_v21 = vld [vmem:[%s1179_s15 + $0x4c] sm:$0xf]  ;;  %v870_v22 = vld [vmem:[%s1179_s15 + $0x58] sm:$0xf0]  ;;  %v865_v24 = vor.u32 %v962_v16, %v862_v18 }
  0x46   : > { %569 = vmatpush.bf16.msra.mxu3 %v905_v5  ;;  %v869_v25 = vor.u32 %v965_v20, %v868_v19  ;;  %v844_v26 = vld [vmem:[%s1179_s15 + $0x20] sm:$0xf]  ;;  %v960_v27 = vld [vmem:[%s1179_s15 + $0x2c] sm:$0xf0]  ;;  %v958_v28 = vld [vmem:[%s1179_s15 + $0x24] sm:$0xf]  ;;  %v873_v29 = vor.u32 %v963_v21, %v870_v22 }
  0x47   : > { %v846_v30 = vld [vmem:[%s1179_s15 + $0x30] sm:$0xf0]  ;;  %v852_v31 = vld [vmem:[%s1179_s15 + $0x28] sm:$0xf]  ;;  %v961_v32 = vld [vmem:[%s1179_s15 + $0x34] sm:$0xf0]  ;;  %v845_v36 = vor.u32 %v960_v27, %v844_v26 }
  0x48   : > { %513 = vmatpush.bf16.msra.mxu0 %v877_v11  ;;  %v959_v33 = vld [vmem:[%s1179_s15 + $0x2c] sm:$0xf]  ;;  %v854_v34 = vld [vmem:[%s1179_s15 + $0x38] sm:$0xf0]  ;;  %v828_v37 = vld [vmem:[%s1179_s15] sm:$0xf]  ;;  %v849_v39 = vor.u32 %v958_v28, %v846_v30  ;;  %v853_v40 = vor.u32 %v961_v32, %v852_v31 }
  0x49   : > { %532 = vmatpush.bf16.msra.mxu1 %v881_v12  ;;  %551 = vmatpush.bf16.msra.mxu2 %v885_v13  ;;  %v331_v35 = vld [vmem:[%s1360_s2 + $0x18] sm:$0xff]  ;;  %v329_v38 = vld [vmem:[%s1360_s2 + $0x8] sm:$0xff]  ;;  %v956_v41 = vld [vmem:[%s1179_s15 + $0xc] sm:$0xf0]  ;;  %v857_v44 = vor.u32 %v959_v33, %v854_v34  ;;  %s982_s18 = sshll.u32 (%p1098_p5), %s810_s21, 5 }
  0x4a   : > { %570 = vmatpush.bf16.msra.mxu3 %v889_v17  ;;  %349 = vperm.xlu1 %1011, %v331_v35   ;;  %v954_v42 = vld [vmem:[%s1179_s15 + $0x4] sm:$0xf]  ;;  %v830_v45 = vld [vmem:[%s1179_s15 + $0x10] sm:$0xf0]  ;;  %v836_v46 = vld [vmem:[%s1179_s15 + $0x8] sm:$0xf]  ;;  %v829_v50 = vor.u32 %v956_v41, %v828_v37  ;;  %s706_s26 = scalar_lea.vmem (%p1098_p5), %s1363_s5, %s982_s18 }
  0x4b   : > { %v601_v43 = vld [vmem:[%s1361_s3] sm:$0xff]  ;;  %v957_v47 = vld [vmem:[%s1179_s15 + $0x14] sm:$0xf0]  ;;  %339 = vperm.xlu0 %1010, %v329_v38   ;;  %v955_v48 = vld [vmem:[%s1179_s15 + $0xc] sm:$0xf]  ;;  %v833_v51 = vor.u32 %v954_v42, %v830_v45 }
  0x4c   : > { %514 = vmatpush.bf16.msra.mxu0 %v861_v23  ;;  %v838_v49 = vld [vmem:[%s1179_s15 + $0x18] sm:$0xf0]  ;;  %607 = vperm.xlu2 %1012, %v601_v43   ;;  %v837_v52 = vor.u32 %v957_v47, %v836_v46  ;;  %v952_v55 = vld [vmem:[%s1358_s0] sm:$0xff]  ;;  %v603_v56 = vld [vmem:[%s1361_s3 + $0x10] sm:$0xff] }
  0x4d   : > { %533 = vmatpush.bf16.msra.mxu1 %v865_v24  ;;  %552 = vmatpush.bf16.msra.mxu2 %v869_v25  ;;  %v604_v53 = vld [vmem:[%s1361_s3 + $0x18] sm:$0xff]  ;;  %v841_v54 = vor.u32 %v955_v48, %v838_v49  ;;  %v602_v57 = vld [vmem:[%s1361_s3 + $0x8] sm:$0xff]  ;;  %v643_v58 = vld [vmem:[%s1362_s4 + $0x10] sm:$0xff] }
  0x4e   : > { %571 = vmatpush.bf16.msra.mxu3 %v873_v29  ;;  %v642_v59 = vld [vmem:[%s1362_s4 + $0x8] sm:$0xff]  ;;  %v641_v60 = vld [vmem:[%s1362_s4] sm:$0xff]  ;;  %v644_v62 = vld [vmem:[%s1362_s4 + $0x18] sm:$0xff] }
  0x4f   : > { %v953_v61 = vld [vmem:[%s1358_s0 + $0x8] sm:$0xff] }
  0x50   : > { %515 = vmatpush.bf16.msra.mxu0 %v845_v36 }
  0x51   : > { %534 = vmatpush.bf16.msra.mxu1 %v849_v39  ;;  %553 = vmatpush.bf16.msra.mxu2 %v853_v40 }
  0x52   : > { %572 = vmatpush.bf16.msra.mxu3 %v857_v44  ;;  %622 = vperm.xlu1 %1011, %v604_v53  }
  0x53   : > { %617 = vperm.xlu0 %1010, %v603_v56  }
  0x54   : > { %516 = vmatpush.bf16.msra.mxu0 %v829_v50  ;;  %612 = vperm.xlu2 %1012, %v602_v57  }
  0x55   : > { %535 = vmatpush.bf16.msra.mxu1 %v833_v51  ;;  %554 = vmatpush.bf16.msra.mxu2 %v837_v52 }
  0x56   : > { %573 = vmatpush.bf16.msra.mxu3 %v841_v54 }
  0x57   : > { %938 = vmatmul.msk.bf16.vlgmr.msra.gmra.mxu0 %vm502_vm0, %v952_v55 }
  0x58   : > { %940 = vmatmul.msk.bf16.vlgmr.msra.gmra.mxu1 %vm502_vm0, %v952_v55  ;;  %942 = vmatmul.msk.bf16.vlgmr.msra.gmra.mxu2 %vm502_vm0, %v952_v55 }
  0x59   : > { %944 = vmatmul.msk.bf16.vlgmr.msra.gmra.mxu3 %vm502_vm0, %v952_v55 }
  0x5a   : > { %657 = vperm.xlu1 %1011, %v643_v58  }
  0x5b   : > { %652 = vperm.xlu0 %1010, %v642_v59  }
  0x5c   : > { %647 = vperm.xlu2 %1012, %v641_v60  }
  0x64   : > { %662 = vperm.xlu2 %1012, %v644_v62  }
  0x67   : > { %939 = vmatmul.msk.bf16.gmra.mxu0 %vm502_vm0, %v953_v61 }
  0x68   : > { %941 = vmatmul.msk.bf16.gmra.mxu1 %vm502_vm0, %v953_v61  ;;  %943 = vmatmul.msk.bf16.gmra.mxu2 %vm502_vm0, %v953_v61 }
  0x69   : > { %945 = vmatmul.msk.bf16.gmra.mxu3 %vm502_vm0, %v953_v61 }
  0xa6   : > { %v608_v0 = vpop.permute.xlu2 %607 }
  0xac   : > { %v335_v63 = vpop.permute.xlu0 %334  ;;  %v1281_v1 = vpop.permute.xlu1 %344 }
  0xae   : > { %v613_v3 = vpop.permute.xlu2 %612 }
  0xb6   : > { %v648_v14 = vpop.permute.xlu2 %647 }
  0xbc   : > { %v1283_v7 = vpop.permute.xlu1 %349 }
  0xbd   : > { %v340_v2 = vpop.permute.xlu0 %339 }
  0xc4   : > { %v1293_v28 = vpop.permute.xlu1 %622 }
  0xc5   : > { %v1287_v11 = vpop.permute.xlu0 %617 }
  0xcc   : > { %v658_v54 = vpop.permute.xlu1 %657 }
  0xcd   : > { %v653_v35 = vpop.permute.xlu0 %652 }
  0xd4   : > { %v518_v4 = vpop.f32.mrf.mxu0 }
  0xd5   : > { %v519_v5 = vadd.f32 %v518_v4, %v335_v63  ;;  %v537_v6 = vpop.f32.mrf.mxu1 }
  0xd6   : > { %v538_v8 = vadd.f32 %v537_v6, %v335_v63 }
  0xd7   : > { %v585_v9 = vmax.f32 %v519_v5, 0.0 }
  0xd8   : > { %v586_v10 = vmax.f32 %v538_v8, 0.0 }
  0xd9   : > { %v625_v12 = vmul.f32 %v608_v0, %v585_v9 }
  0xda   : > { %v626_v13 = vmul.f32 %v608_v0, %v586_v10 }
  0xdb   : > { %v665_v15 = vadd.f32 %v648_v14, %v625_v12  ;;  %v556_v16 = vpop.f32.mrf.mxu2 }
  0xdc   : > { %v666_v17 = vadd.f32 %v648_v14, %v626_v13  ;;  %v557_v18 = vadd.f32 %v556_v16, %v335_v63  ;;  %v575_v19 = vpop.f32.mrf.mxu3  ;;  %v520_v20 = vpop.f32.mrf.mxu0 }
  0xdd   : > { %681 = vst [vmem:[%s1289_s6] sm:$0xff] %v665_v15  ;;  %v576_v21 = vadd.f32 %v575_v19, %v335_v63  ;;  %v521_v22 = vadd.f32 %v520_v20, %v340_v2  ;;  %v539_v23 = vpop.f32.mrf.mxu1  ;;  %v663_v13 = vpop.permute.xlu2 %662 }
  0xde   : > { %682 = vst [vmem:[%s1289_s6 + $0x8] sm:$0xff] %v666_v17  ;;  %v587_v24 = vmax.f32 %v557_v18, 0.0  ;;  %v540_v25 = vadd.f32 %v539_v23, %v340_v2 }
  0xdf   : > { %v588_v26 = vmax.f32 %v576_v21, 0.0  ;;  %v589_v27 = vmax.f32 %v521_v22, 0.0 }
  0xe0   : > { %v627_v29 = vmul.f32 %v608_v0, %v587_v24  ;;  %v590_v30 = vmax.f32 %v540_v25, 0.0 }
  0xe1   : > { %v628_v31 = vmul.f32 %v608_v0, %v588_v26  ;;  %v629_v32 = vmul.f32 %v613_v3, %v589_v27 }
  0xe2   : > { %v667_v33 = vadd.f32 %v648_v14, %v627_v29  ;;  %v630_v34 = vmul.f32 %v613_v3, %v590_v30 }
  0xe3   : > { %v668_v36 = vadd.f32 %v648_v14, %v628_v31  ;;  %v669_v37 = vadd.f32 %v653_v35, %v629_v32  ;;  %v558_v38 = vpop.f32.mrf.mxu2 }
  0xe4   : > { %683 = vst [vmem:[%s1289_s6 + $0x10] sm:$0xff] %v667_v33  ;;  %v670_v39 = vadd.f32 %v653_v35, %v630_v34  ;;  %v559_v40 = vadd.f32 %v558_v38, %v340_v2  ;;  %v577_v41 = vpop.f32.mrf.mxu3  ;;  %v523_v42 = vpop.f32.mrf.mxu0 }
  0xe5   : > { %684 = vst [vmem:[%s1289_s6 + $0x18] sm:$0xff] %v668_v36  ;;  %v578_v43 = vadd.f32 %v577_v41, %v340_v2  ;;  %v524_v44 = vadd.f32 %v523_v42, %v1281_v1  ;;  %v542_v45 = vpop.f32.mrf.mxu1 }
  0xe6   : > { %685 = vst [vmem:[%s1289_s6 + $0x20] sm:$0xff] %v669_v37  ;;  %v591_v46 = vmax.f32 %v559_v40, 0.0  ;;  %v543_v47 = vadd.f32 %v542_v45, %v1281_v1 }
  0xe7   : > { %686 = vst [vmem:[%s1289_s6 + $0x28] sm:$0xff] %v670_v39  ;;  %v592_v48 = vmax.f32 %v578_v43, 0.0  ;;  %v593_v49 = vmax.f32 %v524_v44, 0.0 }
  0xe8   : > { %v631_v50 = vmul.f32 %v613_v3, %v591_v46  ;;  %v594_v51 = vmax.f32 %v543_v47, 0.0 }
  0xe9   : > { %v632_v52 = vmul.f32 %v613_v3, %v592_v48  ;;  %v633_v53 = vmul.f32 %v1287_v11, %v593_v49 }
  0xea   : > { %v671_v55 = vadd.f32 %v653_v35, %v631_v50  ;;  %v634_v56 = vmul.f32 %v1287_v11, %v594_v51 }
  0xeb   : > { %v672_v57 = vadd.f32 %v653_v35, %v632_v52  ;;  %v673_v58 = vadd.f32 %v658_v54, %v633_v53  ;;  %v561_v59 = vpop.f32.mrf.mxu2  ;;  %v723_v29 = vld [vmem:[%s1289_s6 + $0x10] sm:$0xff] (%p1098_p5) }
  0xec   : > { %687 = vst [vmem:[%s1289_s6 + $0x30] sm:$0xff] %v671_v55  ;;  %v674_v60 = vadd.f32 %v658_v54, %v634_v56  ;;  %v562_v61 = vadd.f32 %v561_v59, %v1281_v1  ;;  %v580_v62 = vpop.f32.mrf.mxu3  ;;  %v525_v63 = vpop.f32.mrf.mxu0  ;;  %v725_v30 = vld [vmem:[%s1289_s6 + $0x18] sm:$0xff] (%p1098_p5) }
  0xed   : > { %688 = vst [vmem:[%s1289_s6 + $0x38] sm:$0xff] %v672_v57  ;;  %v581_v0 = vadd.f32 %v580_v62, %v1281_v1  ;;  %v526_v2 = vadd.f32 %v525_v63, %v1283_v7  ;;  %v544_v3 = vpop.f32.mrf.mxu1  ;;  %v727_v31 = vld [vmem:[%s1289_s6 + $0x20] sm:$0xff] (%p1098_p5) }
  0xee   : > { %689 = vst [vmem:[%s1289_s6 + $0x40] sm:$0xff] %v673_v58  ;;  %v595_v4 = vmax.f32 %v562_v61, 0.0  ;;  %v545_v5 = vadd.f32 %v544_v3, %v1283_v7  ;;  %v729_v32 = vld [vmem:[%s1289_s6 + $0x28] sm:$0xff] (%p1098_p5) }
  0xef   : > { %690 = vst [vmem:[%s1289_s6 + $0x48] sm:$0xff] %v674_v60  ;;  %v596_v6 = vmax.f32 %v581_v0, 0.0  ;;  %v597_v8 = vmax.f32 %v526_v2, 0.0 }
  0xf0   : > { %v635_v9 = vmul.f32 %v1287_v11, %v595_v4  ;;  %v598_v10 = vmax.f32 %v545_v5, 0.0  ;;  %724 = vst [vmem:[%s706_s26 + $0x10] sm:$0xff] (%p1098_p5), %v723_v29 }
  0xf1   : > { %v636_v12 = vmul.f32 %v1287_v11, %v596_v6  ;;  %v637_v1 = vmul.f32 %v1293_v28, %v597_v8  ;;  %726 = vst [vmem:[%s706_s26 + $0x18] sm:$0xff] (%p1098_p5), %v725_v30 }
  0xf2   : > { %v675_v14 = vadd.f32 %v658_v54, %v635_v9  ;;  %v638_v15 = vmul.f32 %v1293_v28, %v598_v10  ;;  %728 = vst [vmem:[%s706_s26 + $0x80] sm:$0xff] (%p1098_p5), %v727_v31 }
  0xf3   : > { %v676_v16 = vadd.f32 %v658_v54, %v636_v12  ;;  %v677_v17 = vadd.f32 %v663_v13, %v637_v1  ;;  %v563_v18 = vpop.f32.mrf.mxu2  ;;  %v731_v33 = vld [vmem:[%s1289_s6 + $0x30] sm:$0xff] (%p1098_p5)  ;;  %730 = vst [vmem:[%s706_s26 + $0x88] sm:$0xff] (%p1098_p5), %v729_v32 }
  0xf4   : > { %691 = vst [vmem:[%s1289_s6 + $0x50] sm:$0xff] %v675_v14  ;;  %v678_v19 = vadd.f32 %v663_v13, %v638_v15  ;;  %v564_v20 = vadd.f32 %v563_v18, %v1283_v7  ;;  %v582_v21 = vpop.f32.mrf.mxu3  ;;  %v733_v34 = vld [vmem:[%s1289_s6 + $0x38] sm:$0xff] (%p1098_p5) }
  0xf5   : > { %692 = vst [vmem:[%s1289_s6 + $0x58] sm:$0xff] %v676_v16  ;;  %v583_v11 = vadd.f32 %v582_v21, %v1283_v7  ;;  %v719_v7 = vld [vmem:[%s1289_s6] sm:$0xff] (%p1098_p5) }
  0xf6   : > { %693 = vst [vmem:[%s1289_s6 + $0x60] sm:$0xff] %v677_v17  ;;  %v599_v22 = vmax.f32 %v564_v20, 0.0  ;;  %v735_v35 = vld [vmem:[%s1289_s6 + $0x40] sm:$0xff] (%p1098_p5)  ;;  %v737_v36 = vld [vmem:[%s1289_s6 + $0x48] sm:$0xff] (%p1098_p5) }
  0xf7   : > { %694 = vst [vmem:[%s1289_s6 + $0x68] sm:$0xff] %v678_v19  ;;  %v600_v23 = vmax.f32 %v583_v11, 0.0 }
  0xf8   : > { %v639_v24 = vmul.f32 %v1293_v28, %v599_v22  ;;  %720 = vst [vmem:[%s706_s26] sm:$0xff] (%p1098_p5), %v719_v7 }
  0xf9   : > { %v640_v25 = vmul.f32 %v1293_v28, %v600_v23  ;;  %703 = sbr.rel (!%p1098_p5) target bundleno = 262 (0x106), region = 67  ;;  %v721_v28 = vld [vmem:[%s1289_s6 + $0x8] sm:$0xff] (%p1098_p5)  ;;  %732 = vst [vmem:[%s706_s26 + $0x90] sm:$0xff] (%p1098_p5), %v731_v33 }
  0xfa   : > { %v679_v26 = vadd.f32 %v663_v13, %v639_v24  ;;  %722 = vst [vmem:[%s706_s26 + $0x8] sm:$0xff] (%p1098_p5), %v721_v28 }
  0xfb   : > { %v680_v27 = vadd.f32 %v663_v13, %v640_v25  ;;  %734 = vst [vmem:[%s706_s26 + $0x98] sm:$0xff] (%p1098_p5), %v733_v34  ;;  %v739_v37 = vld [vmem:[%s1289_s6 + $0x50] sm:$0xff] (%p1098_p5) }
  0xfc   : > { %695 = vst [vmem:[%s1289_s6 + $0x70] sm:$0xff] %v679_v26  ;;  %v741_v38 = vld [vmem:[%s1289_s6 + $0x58] sm:$0xff] (%p1098_p5) }
  0xfd   : > { %696 = vst [vmem:[%s1289_s6 + $0x78] sm:$0xff] %v680_v27  ;;  %v743_v39 = vld [vmem:[%s1289_s6 + $0x60] sm:$0xff] (%p1098_p5) }
  0xfe   : > { %736 = vst [vmem:[%s706_s26 + $0x100] sm:$0xff] %v735_v35  ;;  %v745_v40 = vld [vmem:[%s1289_s6 + $0x68] sm:$0xff] }
  0xff   : > { %738 = vst [vmem:[%s706_s26 + $0x108] sm:$0xff] %v737_v36 }
 0x100   : > { %740 = vst [vmem:[%s706_s26 + $0x110] sm:$0xff] %v739_v37 }
 0x101   : > { %742 = vst [vmem:[%s706_s26 + $0x118] sm:$0xff] %v741_v38 }
 0x102   : > { %744 = vst [vmem:[%s706_s26 + $0x180] sm:$0xff] %v743_v39 }
 0x103   : > { %v747_v41 = vld [vmem:[%s1289_s6 + $0x70] sm:$0xff]  ;;  %746 = vst [vmem:[%s706_s26 + $0x188] sm:$0xff] %v745_v40 }
 0x104   : > { %v749_v42 = vld [vmem:[%s1289_s6 + $0x78] sm:$0xff]  ;;  %748 = vst [vmem:[%s706_s26 + $0x190] sm:$0xff] %v747_v41 }
 0x105   : > { %750 = vst [vmem:[%s706_s26 + $0x198] sm:$0xff] %v749_v42 }
 0x106 PF: > { %p12_p10 = scmp.ge.s32.totalorder %s1085_s22, 6   ;;  %s1365_s18 = smov %s1031_s19 }
 0x107   : > { %s1366_s19 = smov %s1096_s25  ;;  %s1367_s20 = smov %s1085_s22 }
 0x108   :  { %14 = sbr.rel (!%p12_p10) target bundleno = 2 (0x2), region = 121 }

// kernel: forward.6
= control target key start
LH: loop header
LB: loop body
LE: loop exit
PB: predicated region body
PF: predicated region fallthrough
CT: control target
= control target key end

     0   :  { %s5417_s18 = smov 0   ;;  %s5419_s19 = smov 0   ;;  %s7994_s0 = inlined_call_operand.vmem [shape: bf16[32,864], index: 0, kind: input, shape index: {}]   ;;  %s7995_s1 = inlined_call_operand.vmem [shape: bf16[864,3456], index: 1, kind: input, shape index: {}]   ;;  %s7996_s2 = inlined_call_operand.vmem [shape: f32[32,1], index: 2, kind: input, shape index: {}]   ;;  %s7997_s3 = inlined_call_operand.vmem [shape: f32[32,1], index: 3, kind: input, shape index: {}]   ;;  %s7998_s4 = inlined_call_operand.vmem [shape: f32[32,1], index: 4, kind: input, shape index: {}]   ;;  %s7999_s5 = inlined_call_operand.vmem [shape: f32[32,3456], index: 5, kind: output, shape index: {}]  }
   0x1   :  { %s5421_s20 = smov 0  }
   0x2 LB: > { %s5433_s21 = sadd.s32 4294967295, %s5284_s20   ;;  %s5436_s22 = sadd.s32 1, %s5284_s20   ;;  %s5284_s20 = sphi %s5421_s20, %s8028_s20   ;;  %s5280_s19 = sphi %s5419_s19, %s8027_s19   ;;  %s5276_s18 = sphi %s5417_s18, %s8026_s18  }
   0x3   : > { %s40_s23 = ssub.s32 %s5284_s20, %s5436_s22  ;;  %s43_s24 = sadd.s32 1, %s5280_s19 }
   0x4   : > { %p41_p0 = scmp.eq.s32.totalorder %s40_s23, 0  ;;  %p50_p1 = scmp.ne.s32.totalorder %s5280_s19, %s5276_s18 }
   0x5   : > { %p51_p2 = scmp.eq.s32.totalorder %s5284_s20, 0  ;;  %p143_p3 = scmp.eq.s32.totalorder %s5433_s21, 6 }
   0x6   : > { %s5446_s25 = scalar_select %p41_p0, %s5280_s19, %s43_s24  }
   0x7   : > { %p52_p4 = por %p51_p2, %p50_p1  ;;  %p5448_p5 = por %p143_p3, %p50_p1 }
   0x8   : > { %p3727_p6 = scmp.ge.s32.totalorder %s5284_s20, 7 }
   0xa   : > { %177 = sbr.rel (%p3727_p6) target bundleno = 501 (0x1f5), region = 32 }
   0xf   : > { %180 = sbr.rel (!%p52_p4) target bundleno = 501 (0x1f5), region = 36  ;;  %s182_s27 = sand.u32 (%p52_p4), 1, %s5280_s19  }
  0x10   : > { %s3728_s28 = sshll.u32 (%p52_p4), %s5284_s20, 2  ;;  %s4940_s29 = smul.u32 (%p52_p4), 1728, %s182_s27 }
  0x11   : > { %s186_s30 = ssub.s32 (%p52_p4), 27, %s3728_s28  ;;  %s4704_s6 = sshll.u32 (%p52_p4), %s5284_s20, 4 }
  0x12   : > { %p187_p7 = scmp.lt.s32.totalorder (%p52_p4), %s186_s30, 4  ;;  %s5459_s9 = scalar_lea.vmem (%p52_p4), %s7995_s1, %s4704_s6  }
  0x13   : > { %s5463_s12 = scalar_lea.vmem (%p52_p4), [#allocation2], %s4940_s29  }
  0x14   : > { %s8030_s30 = smov (!%p187_p7, %s186_s30), 4 }
  0x15   : > { %s189_s10 = smul.u32 432, %s8030_s30  ;;  %s5461_s11 = sshll.u32 %s8030_s30, 2 }
  0x17   : > { %p3732_p8 = scmp.eq.s32.totalorder %s189_s10, 0 }
  0x18   : > { %p197_p9 = scmp.lt.u32.totalorder (!%p3732_p8), %s5461_s11, 8 }
  0x19   : > { %196 = sbr.rel (%p3732_p8) target bundleno = 501 (0x1f5), region = 40 }
  0x1e   : > { %200 = sbr.rel (%p197_p9) target bundleno = 385 (0x181), region = 44  ;;  %s5467_s13 = sand.u32 (!%p197_p9), 7, %s5461_s11  }
  0x1f   : > { %p431_p10 = scmp.eq.s32.totalorder (!%p197_p9), %s5467_s13, 0  ;;  %p3733_p11 = scmp.ne.s32.totalorder (!%p197_p9), %s5467_s13, 0 }
  0x23   : > { %434 = sbr.rel (%p3733_p11) target bundleno = 154 (0x9a), region = 59  ;;  %s5472_s14 = sshrl.u32 (!%p3733_p11), %s5461_s11, 3 }
  0x24   : > { %p3734_p12 = scmp.le.s32.totalorder (!%p3733_p11), %s5472_s14, 0 }
  0x28   : > { %3625 = sbr.rel (%p3734_p12) target bundleno = 154 (0x9a), region = 215  ;;  %s8001_s15 = smov (!%p3734_p12), %s5463_s12 }
  0x29   : > { %s8002_s16 = smov (!%p3734_p12), %s5459_s9  ;;  %s5481_s17 = smov (!%p3734_p12), 0  }
  0x2a   : > { %s5483_s23 = smov (!%p3734_p12), 0  }
  0x2d LB: >> { %v445_v0 = vld [vmem:[%s5292_s16] sm:$0xff]  ;;  %v447_v1 = vld [vmem:[%s5292_s16 + $0x6c] sm:$0xff]  ;;  %v449_v2 = vld [vmem:[%s5292_s16 + $0xd8] sm:$0xff]  ;;  %s661_s24 = sadd.s32 1, %s5296_s17  ;;  %s439_s23 = sadd.s32 1, %s5300_s23   ;;  %s5300_s23 = sphi %s5483_s23, %s439_s23   ;;  %s5296_s17 = sphi %s5481_s17, %s8005_s17   ;;  %s5292_s16 = sphi %s8002_s16, %s8004_s16   ;;  %s5288_s15 = sphi %s8001_s15, %s8003_s15  }
  0x2e   : >> { %446 = vst [vmem:[%s5288_s15] sm:$0xff] %v445_v0  ;;  %v451_v3 = vld [vmem:[%s5292_s16 + $0x144] sm:$0xff]  ;;  %p662_p13 = scmp.ge.s32.totalorder %s661_s24, %s5472_s14  ;;  %v453_v4 = vld [vmem:[%s5292_s16 + $0x1b0] sm:$0xff]  ;;  %v455_v5 = vld [vmem:[%s5292_s16 + $0x21c] sm:$0xff]  ;;  %p438_p0 = scmp.ge.s32.totalorder %s439_s23, %s5472_s14 }
  0x2f   : >> { %448 = vst [vmem:[%s5288_s15 + $0x10] sm:$0xff] %v447_v1  ;;  %v457_v6 = vld [vmem:[%s5292_s16 + $0x288] sm:$0xff]  ;;  %v459_v7 = vld [vmem:[%s5292_s16 + $0x2f4] sm:$0xff]  ;;  %v461_v8 = vld [vmem:[%s5292_s16 + $0x360] sm:$0xff] }
  0x30   : >> { %450 = vst [vmem:[%s5288_s15 + $0x20] sm:$0xff] %v449_v2  ;;  %s8032_s24 = smov (%p662_p13, %s661_s24), 0  ;;  %v463_v9 = vld [vmem:[%s5292_s16 + $0x3cc] sm:$0xff]  ;;  %v465_v10 = vld [vmem:[%s5292_s16 + $0x438] sm:$0xff]  ;;  %v467_v11 = vld [vmem:[%s5292_s16 + $0x4a4] sm:$0xff] }
  0x31   : >> { %452 = vst [vmem:[%s5288_s15 + $0x30] sm:$0xff] %v451_v3  ;;  %s3735_s27 = sshll.u32 %s8032_s24, 3  ;;  %v469_v12 = vld [vmem:[%s5292_s16 + $0x510] sm:$0xff]  ;;  %v471_v13 = vld [vmem:[%s5292_s16 + $0x57c] sm:$0xff]  ;;  %v473_v14 = vld [vmem:[%s5292_s16 + $0x5e8] sm:$0xff]  ;;  %s8005_s17 = smov %s8032_s24 }
  0x32   : >> { %454 = vst [vmem:[%s5288_s15 + $0x40] sm:$0xff] %v453_v4  ;;  %s5515_s28 = scalar_lea.vmem %s5459_s9, %s3735_s27   ;;  %s5518_s29 = scalar_lea.vmem %s5463_s12, %s3735_s27 [#allocation2]   ;;  %v475_v15 = vld [vmem:[%s5292_s16 + $0x654] sm:$0xff]  ;;  %v477_v16 = vld [vmem:[%s5292_s16 + $0x6c0] sm:$0xff]  ;;  %v479_v17 = vld [vmem:[%s5292_s16 + $0x72c] sm:$0xff] }
  0x33   : >> { %456 = vst [vmem:[%s5288_s15 + $0x50] sm:$0xff] %v455_v5  ;;  %v481_v18 = vld [vmem:[%s5292_s16 + $0x798] sm:$0xff]  ;;  %v483_v19 = vld [vmem:[%s5292_s16 + $0x804] sm:$0xff]  ;;  %v485_v20 = vld [vmem:[%s5292_s16 + $0x870] sm:$0xff] }
  0x34   : >> { %458 = vst [vmem:[%s5288_s15 + $0x60] sm:$0xff] %v457_v6  ;;  %v487_v21 = vld [vmem:[%s5292_s16 + $0x8dc] sm:$0xff]  ;;  %v489_v22 = vld [vmem:[%s5292_s16 + $0x948] sm:$0xff]  ;;  %v491_v23 = vld [vmem:[%s5292_s16 + $0x9b4] sm:$0xff] }
  0x35   : >> { %460 = vst [vmem:[%s5288_s15 + $0x70] sm:$0xff] %v459_v7  ;;  %v493_v24 = vld [vmem:[%s5292_s16 + $0xa20] sm:$0xff]  ;;  %v495_v25 = vld [vmem:[%s5292_s16 + $0xa8c] sm:$0xff]  ;;  %v497_v26 = vld [vmem:[%s5292_s16 + $0xaf8] sm:$0xff] }
  0x36   : >> { %462 = vst [vmem:[%s5288_s15 + $0x80] sm:$0xff] %v461_v8  ;;  %v499_v27 = vld [vmem:[%s5292_s16 + $0xb64] sm:$0xff]  ;;  %v501_v28 = vld [vmem:[%s5292_s16 + $0xbd0] sm:$0xff]  ;;  %v503_v29 = vld [vmem:[%s5292_s16 + $0xc3c] sm:$0xff] }
  0x37   : >> { %464 = vst [vmem:[%s5288_s15 + $0x90] sm:$0xff] %v463_v9  ;;  %v505_v30 = vld [vmem:[%s5292_s16 + $0xca8] sm:$0xff]  ;;  %v507_v31 = vld [vmem:[%s5292_s16 + $0xd14] sm:$0xff]  ;;  %v509_v32 = vld [vmem:[%s5292_s16 + $0xd80] sm:$0xff] }
  0x38   : >> { %466 = vst [vmem:[%s5288_s15 + $0xa0] sm:$0xff] %v465_v10  ;;  %v511_v33 = vld [vmem:[%s5292_s16 + $0xdec] sm:$0xff]  ;;  %v513_v34 = vld [vmem:[%s5292_s16 + $0xe58] sm:$0xff]  ;;  %v515_v35 = vld [vmem:[%s5292_s16 + $0xec4] sm:$0xff] }
  0x39   : >> { %468 = vst [vmem:[%s5288_s15 + $0xb0] sm:$0xff] %v467_v11  ;;  %v517_v36 = vld [vmem:[%s5292_s16 + $0xf30] sm:$0xff]  ;;  %v519_v37 = vld [vmem:[%s5292_s16 + $0xf9c] sm:$0xff]  ;;  %v521_v38 = vld [vmem:[%s5292_s16 + $0x1008] sm:$0xff] }
  0x3a   : >> { %470 = vst [vmem:[%s5288_s15 + $0xc0] sm:$0xff] %v469_v12  ;;  %v523_v39 = vld [vmem:[%s5292_s16 + $0x1074] sm:$0xff]  ;;  %v525_v40 = vld [vmem:[%s5292_s16 + $0x10e0] sm:$0xff]  ;;  %v527_v41 = vld [vmem:[%s5292_s16 + $0x114c] sm:$0xff] }
  0x3b   : >> { %472 = vst [vmem:[%s5288_s15 + $0xd0] sm:$0xff] %v471_v13  ;;  %v529_v42 = vld [vmem:[%s5292_s16 + $0x11b8] sm:$0xff]  ;;  %v531_v43 = vld [vmem:[%s5292_s16 + $0x1224] sm:$0xff]  ;;  %v533_v44 = vld [vmem:[%s5292_s16 + $0x1290] sm:$0xff] }
  0x3c   : >> { %474 = vst [vmem:[%s5288_s15 + $0xe0] sm:$0xff] %v473_v14  ;;  %v535_v45 = vld [vmem:[%s5292_s16 + $0x12fc] sm:$0xff]  ;;  %v537_v46 = vld [vmem:[%s5292_s16 + $0x1368] sm:$0xff]  ;;  %v539_v47 = vld [vmem:[%s5292_s16 + $0x13d4] sm:$0xff] }
  0x3d   : >> { %476 = vst [vmem:[%s5288_s15 + $0xf0] sm:$0xff] %v475_v15  ;;  %v541_v48 = vld [vmem:[%s5292_s16 + $0x1440] sm:$0xff]  ;;  %v543_v49 = vld [vmem:[%s5292_s16 + $0x14ac] sm:$0xff]  ;;  %v545_v50 = vld [vmem:[%s5292_s16 + $0x1518] sm:$0xff] }
  0x3e   : >> { %478 = vst [vmem:[%s5288_s15 + $0x100] sm:$0xff] %v477_v16  ;;  %v547_v51 = vld [vmem:[%s5292_s16 + $0x1584] sm:$0xff]  ;;  %v549_v52 = vld [vmem:[%s5292_s16 + $0x15f0] sm:$0xff]  ;;  %v551_v53 = vld [vmem:[%s5292_s16 + $0x165c] sm:$0xff] }
  0x3f   : >> { %480 = vst [vmem:[%s5288_s15 + $0x110] sm:$0xff] %v479_v17  ;;  %v553_v54 = vld [vmem:[%s5292_s16 + $0x16c8] sm:$0xff]  ;;  %v555_v55 = vld [vmem:[%s5292_s16 + $0x1734] sm:$0xff]  ;;  %v557_v56 = vld [vmem:[%s5292_s16 + $0x17a0] sm:$0xff] }
  0x40   : >> { %482 = vst [vmem:[%s5288_s15 + $0x120] sm:$0xff] %v481_v18  ;;  %v559_v57 = vld [vmem:[%s5292_s16 + $0x180c] sm:$0xff]  ;;  %v561_v58 = vld [vmem:[%s5292_s16 + $0x1878] sm:$0xff]  ;;  %v563_v59 = vld [vmem:[%s5292_s16 + $0x18e4] sm:$0xff] }
  0x41   : >> { %484 = vst [vmem:[%s5288_s15 + $0x130] sm:$0xff] %v483_v19  ;;  %v565_v60 = vld [vmem:[%s5292_s16 + $0x1950] sm:$0xff]  ;;  %v567_v61 = vld [vmem:[%s5292_s16 + $0x19bc] sm:$0xff]  ;;  %v569_v62 = vld [vmem:[%s5292_s16 + $0x1a28] sm:$0xff] }
  0x42   : >> { %486 = vst [vmem:[%s5288_s15 + $0x140] sm:$0xff] %v485_v20  ;;  %v571_v63 = vld [vmem:[%s5292_s16 + $0x1a94] sm:$0xff]  ;;  %v573_v0 = vld [vmem:[%s5292_s16 + $0x1b00] sm:$0xff]  ;;  %v575_v1 = vld [vmem:[%s5292_s16 + $0x1b6c] sm:$0xff] }
  0x43   : >> { %488 = vst [vmem:[%s5288_s15 + $0x150] sm:$0xff] %v487_v21  ;;  %v577_v2 = vld [vmem:[%s5292_s16 + $0x1bd8] sm:$0xff]  ;;  %v579_v3 = vld [vmem:[%s5292_s16 + $0x1c44] sm:$0xff]  ;;  %v581_v4 = vld [vmem:[%s5292_s16 + $0x1cb0] sm:$0xff] }
  0x44   : >> { %490 = vst [vmem:[%s5288_s15 + $0x160] sm:$0xff] %v489_v22  ;;  %v583_v5 = vld [vmem:[%s5292_s16 + $0x1d1c] sm:$0xff]  ;;  %v585_v6 = vld [vmem:[%s5292_s16 + $0x1d88] sm:$0xff]  ;;  %v587_v7 = vld [vmem:[%s5292_s16 + $0x1df4] sm:$0xff] }
  0x45   : >> { %492 = vst [vmem:[%s5288_s15 + $0x170] sm:$0xff] %v491_v23  ;;  %v589_v8 = vld [vmem:[%s5292_s16 + $0x1e60] sm:$0xff]  ;;  %v591_v9 = vld [vmem:[%s5292_s16 + $0x1ecc] sm:$0xff]  ;;  %v593_v10 = vld [vmem:[%s5292_s16 + $0x1f38] sm:$0xff] }
  0x46   : >> { %494 = vst [vmem:[%s5288_s15 + $0x180] sm:$0xff] %v493_v24  ;;  %v595_v11 = vld [vmem:[%s5292_s16 + $0x1fa4] sm:$0xff]  ;;  %v597_v12 = vld [vmem:[%s5292_s16 + $0x2010] sm:$0xff]  ;;  %v599_v13 = vld [vmem:[%s5292_s16 + $0x207c] sm:$0xff] }
  0x47   : >> { %496 = vst [vmem:[%s5288_s15 + $0x190] sm:$0xff] %v495_v25  ;;  %v601_v14 = vld [vmem:[%s5292_s16 + $0x20e8] sm:$0xff]  ;;  %v603_v15 = vld [vmem:[%s5292_s16 + $0x2154] sm:$0xff]  ;;  %v605_v16 = vld [vmem:[%s5292_s16 + $0x21c0] sm:$0xff] }
  0x48   : >> { %498 = vst [vmem:[%s5288_s15 + $0x1a0] sm:$0xff] %v497_v26  ;;  %v607_v17 = vld [vmem:[%s5292_s16 + $0x222c] sm:$0xff]  ;;  %v609_v18 = vld [vmem:[%s5292_s16 + $0x2298] sm:$0xff]  ;;  %v611_v19 = vld [vmem:[%s5292_s16 + $0x2304] sm:$0xff] }
  0x49   : >> { %500 = vst [vmem:[%s5288_s15 + $0x1b0] sm:$0xff] %v499_v27  ;;  %v613_v20 = vld [vmem:[%s5292_s16 + $0x2370] sm:$0xff]  ;;  %v615_v21 = vld [vmem:[%s5292_s16 + $0x23dc] sm:$0xff]  ;;  %v617_v22 = vld [vmem:[%s5292_s16 + $0x2448] sm:$0xff] }
  0x4a   : >> { %502 = vst [vmem:[%s5288_s15 + $0x1c0] sm:$0xff] %v501_v28  ;;  %v619_v23 = vld [vmem:[%s5292_s16 + $0x24b4] sm:$0xff]  ;;  %v621_v24 = vld [vmem:[%s5292_s16 + $0x2520] sm:$0xff]  ;;  %v623_v25 = vld [vmem:[%s5292_s16 + $0x258c] sm:$0xff] }
  0x4b   : >> { %504 = vst [vmem:[%s5288_s15 + $0x1d0] sm:$0xff] %v503_v29  ;;  %v625_v26 = vld [vmem:[%s5292_s16 + $0x25f8] sm:$0xff]  ;;  %v627_v27 = vld [vmem:[%s5292_s16 + $0x2664] sm:$0xff]  ;;  %v629_v28 = vld [vmem:[%s5292_s16 + $0x26d0] sm:$0xff] }
  0x4c   : >> { %506 = vst [vmem:[%s5288_s15 + $0x1e0] sm:$0xff] %v505_v30  ;;  %v631_v29 = vld [vmem:[%s5292_s16 + $0x273c] sm:$0xff]  ;;  %v633_v30 = vld [vmem:[%s5292_s16 + $0x27a8] sm:$0xff] }
  0x4d   : >> { %508 = vst [vmem:[%s5288_s15 + $0x1f0] sm:$0xff] %v507_v31  ;;  %v635_v31 = vld [vmem:[%s5292_s16 + $0x2814] sm:$0xff] }
  0x4e   : >> { %510 = vst [vmem:[%s5288_s15 + $0x200] sm:$0xff] %v509_v32  ;;  %v637_v32 = vld [vmem:[%s5292_s16 + $0x2880] sm:$0xff] }
  0x4f   : >> { %512 = vst [vmem:[%s5288_s15 + $0x210] sm:$0xff] %v511_v33  ;;  %v639_v33 = vld [vmem:[%s5292_s16 + $0x28ec] sm:$0xff] }
  0x50   : >> { %514 = vst [vmem:[%s5288_s15 + $0x220] sm:$0xff] %v513_v34  ;;  %v641_v34 = vld [vmem:[%s5292_s16 + $0x2958] sm:$0xff] }
  0x51   : >> { %516 = vst [vmem:[%s5288_s15 + $0x230] sm:$0xff] %v515_v35  ;;  %v643_v35 = vld [vmem:[%s5292_s16 + $0x29c4] sm:$0xff] }
  0x52   : >> { %518 = vst [vmem:[%s5288_s15 + $0x240] sm:$0xff] %v517_v36  ;;  %v645_v36 = vld [vmem:[%s5292_s16 + $0x2a30] sm:$0xff] }
  0x53   : >> { %520 = vst [vmem:[%s5288_s15 + $0x250] sm:$0xff] %v519_v37  ;;  %v647_v37 = vld [vmem:[%s5292_s16 + $0x2a9c] sm:$0xff] }
  0x54   : >> { %522 = vst [vmem:[%s5288_s15 + $0x260] sm:$0xff] %v521_v38  ;;  %v649_v38 = vld [vmem:[%s5292_s16 + $0x2b08] sm:$0xff] }
  0x55   : >> { %524 = vst [vmem:[%s5288_s15 + $0x270] sm:$0xff] %v523_v39  ;;  %v651_v39 = vld [vmem:[%s5292_s16 + $0x2b74] sm:$0xff] }
  0x56   : >> { %526 = vst [vmem:[%s5288_s15 + $0x280] sm:$0xff] %v525_v40  ;;  %v653_v40 = vld [vmem:[%s5292_s16 + $0x2be0] sm:$0xff] }
  0x57   : >> { %528 = vst [vmem:[%s5288_s15 + $0x290] sm:$0xff] %v527_v41  ;;  %v655_v41 = vld [vmem:[%s5292_s16 + $0x2c4c] sm:$0xff] }
  0x58   : >> { %530 = vst [vmem:[%s5288_s15 + $0x2a0] sm:$0xff] %v529_v42  ;;  %v657_v42 = vld [vmem:[%s5292_s16 + $0x2cb8] sm:$0xff] }
  0x59   : >> { %532 = vst [vmem:[%s5288_s15 + $0x2b0] sm:$0xff] %v531_v43  ;;  %v659_v43 = vld [vmem:[%s5292_s16 + $0x2d24] sm:$0xff]  ;;  %s8004_s16 = smov %s5515_s28 }
  0x5a   : >> { %534 = vst [vmem:[%s5288_s15 + $0x2c0] sm:$0xff] %v533_v44 }
  0x5b   : >> { %536 = vst [vmem:[%s5288_s15 + $0x2d0] sm:$0xff] %v535_v45 }
  0x5c   : >> { %538 = vst [vmem:[%s5288_s15 + $0x2e0] sm:$0xff] %v537_v46 }
  0x5d   : >> { %540 = vst [vmem:[%s5288_s15 + $0x2f0] sm:$0xff] %v539_v47 }
  0x5e   : >> { %542 = vst [vmem:[%s5288_s15 + $0x300] sm:$0xff] %v541_v48 }
  0x5f   : >> { %544 = vst [vmem:[%s5288_s15 + $0x310] sm:$0xff] %v543_v49 }
  0x60   : >> { %546 = vst [vmem:[%s5288_s15 + $0x320] sm:$0xff] %v545_v50 }
  0x61   : >> { %548 = vst [vmem:[%s5288_s15 + $0x330] sm:$0xff] %v547_v51 }
  0x62   : >> { %550 = vst [vmem:[%s5288_s15 + $0x340] sm:$0xff] %v549_v52 }
  0x63   : >> { %552 = vst [vmem:[%s5288_s15 + $0x350] sm:$0xff] %v551_v53 }
  0x64   : >> { %554 = vst [vmem:[%s5288_s15 + $0x360] sm:$0xff] %v553_v54 }
  0x65   : >> { %556 = vst [vmem:[%s5288_s15 + $0x370] sm:$0xff] %v555_v55 }
  0x66   : >> { %558 = vst [vmem:[%s5288_s15 + $0x380] sm:$0xff] %v557_v56 }
  0x67   : >> { %560 = vst [vmem:[%s5288_s15 + $0x390] sm:$0xff] %v559_v57 }
  0x68   : >> { %562 = vst [vmem:[%s5288_s15 + $0x3a0] sm:$0xff] %v561_v58 }
  0x69   : >> { %564 = vst [vmem:[%s5288_s15 + $0x3b0] sm:$0xff] %v563_v59 }
  0x6a   : >> { %566 = vst [vmem:[%s5288_s15 + $0x3c0] sm:$0xff] %v565_v60 }
  0x6b   : >> { %568 = vst [vmem:[%s5288_s15 + $0x3d0] sm:$0xff] %v567_v61 }
  0x6c   : >> { %570 = vst [vmem:[%s5288_s15 + $0x3e0] sm:$0xff] %v569_v62 }
  0x6d   : >> { %572 = vst [vmem:[%s5288_s15 + $0x3f0] sm:$0xff] %v571_v63 }
  0x6e   : >> { %574 = vst [vmem:[%s5288_s15 + $0x400] sm:$0xff] %v573_v0 }
  0x6f   : >> { %576 = vst [vmem:[%s5288_s15 + $0x410] sm:$0xff] %v575_v1 }
  0x70   : >> { %578 = vst [vmem:[%s5288_s15 + $0x420] sm:$0xff] %v577_v2 }
  0x71   : >> { %580 = vst [vmem:[%s5288_s15 + $0x430] sm:$0xff] %v579_v3 }
  0x72   : >> { %582 = vst [vmem:[%s5288_s15 + $0x440] sm:$0xff] %v581_v4 }
  0x73   : >> { %584 = vst [vmem:[%s5288_s15 + $0x450] sm:$0xff] %v583_v5 }
  0x74   : >> { %586 = vst [vmem:[%s5288_s15 + $0x460] sm:$0xff] %v585_v6 }
  0x75   : >> { %588 = vst [vmem:[%s5288_s15 + $0x470] sm:$0xff] %v587_v7 }
  0x76   : >> { %590 = vst [vmem:[%s5288_s15 + $0x480] sm:$0xff] %v589_v8 }
  0x77   : >> { %592 = vst [vmem:[%s5288_s15 + $0x490] sm:$0xff] %v591_v9 }
  0x78   : >> { %594 = vst [vmem:[%s5288_s15 + $0x4a0] sm:$0xff] %v593_v10 }
  0x79   : >> { %596 = vst [vmem:[%s5288_s15 + $0x4b0] sm:$0xff] %v595_v11 }
  0x7a   : >> { %598 = vst [vmem:[%s5288_s15 + $0x4c0] sm:$0xff] %v597_v12 }
  0x7b   : >> { %600 = vst [vmem:[%s5288_s15 + $0x4d0] sm:$0xff] %v599_v13 }
  0x7c   : >> { %602 = vst [vmem:[%s5288_s15 + $0x4e0] sm:$0xff] %v601_v14 }
  0x7d   : >> { %604 = vst [vmem:[%s5288_s15 + $0x4f0] sm:$0xff] %v603_v15 }
  0x7e   : >> { %606 = vst [vmem:[%s5288_s15 + $0x500] sm:$0xff] %v605_v16 }
  0x7f   : >> { %608 = vst [vmem:[%s5288_s15 + $0x510] sm:$0xff] %v607_v17 }
  0x80   : >> { %610 = vst [vmem:[%s5288_s15 + $0x520] sm:$0xff] %v609_v18 }
  0x81   : >> { %612 = vst [vmem:[%s5288_s15 + $0x530] sm:$0xff] %v611_v19 }
  0x82   : >> { %614 = vst [vmem:[%s5288_s15 + $0x540] sm:$0xff] %v613_v20 }
  0x83   : >> { %616 = vst [vmem:[%s5288_s15 + $0x550] sm:$0xff] %v615_v21 }
  0x84   : >> { %618 = vst [vmem:[%s5288_s15 + $0x560] sm:$0xff] %v617_v22 }
  0x85   : >> { %620 = vst [vmem:[%s5288_s15 + $0x570] sm:$0xff] %v619_v23 }
  0x86   : >> { %622 = vst [vmem:[%s5288_s15 + $0x580] sm:$0xff] %v621_v24 }
  0x87   : >> { %624 = vst [vmem:[%s5288_s15 + $0x590] sm:$0xff] %v623_v25 }
  0x88   : >> { %626 = vst [vmem:[%s5288_s15 + $0x5a0] sm:$0xff] %v625_v26 }
  0x89   : >> { %628 = vst [vmem:[%s5288_s15 + $0x5b0] sm:$0xff] %v627_v27 }
  0x8a   : >> { %630 = vst [vmem:[%s5288_s15 + $0x5c0] sm:$0xff] %v629_v28 }
  0x8b   : >> { %632 = vst [vmem:[%s5288_s15 + $0x5d0] sm:$0xff] %v631_v29 }
  0x8c   : >> { %634 = vst [vmem:[%s5288_s15 + $0x5e0] sm:$0xff] %v633_v30 }
  0x8d   : >> { %636 = vst [vmem:[%s5288_s15 + $0x5f0] sm:$0xff] %v635_v31 }
  0x8e   : >> { %638 = vst [vmem:[%s5288_s15 + $0x600] sm:$0xff] %v637_v32 }
  0x8f   : >> { %640 = vst [vmem:[%s5288_s15 + $0x610] sm:$0xff] %v639_v33 }
  0x90   : >> { %642 = vst [vmem:[%s5288_s15 + $0x620] sm:$0xff] %v641_v34 }
  0x91   : >> { %644 = vst [vmem:[%s5288_s15 + $0x630] sm:$0xff] %v643_v35 }
  0x92   : >> { %646 = vst [vmem:[%s5288_s15 + $0x640] sm:$0xff] %v645_v36 }
  0x93   : >> { %648 = vst [vmem:[%s5288_s15 + $0x650] sm:$0xff] %v647_v37 }
  0x94   : >> { %650 = vst [vmem:[%s5288_s15 + $0x660] sm:$0xff] %v649_v38 }
  0x95   : >> { %652 = vst [vmem:[%s5288_s15 + $0x670] sm:$0xff] %v651_v39  ;;  %441 = sbr.rel (!%p438_p0) target bundleno = 45 (0x2d), region = 221 }
  0x96   : >> { %654 = vst [vmem:[%s5288_s15 + $0x680] sm:$0xff] %v653_v40 }
  0x97   : >> { %656 = vst [vmem:[%s5288_s15 + $0x690] sm:$0xff] %v655_v41 }
  0x98   : >> { %658 = vst [vmem:[%s5288_s15 + $0x6a0] sm:$0xff] %v657_v42 }
  0x99   : >> { %660 = vst [vmem:[%s5288_s15 + $0x6b0] sm:$0xff] %v659_v43  ;;  %s8003_s15 = smov %s5518_s29 }
  0x9a PF: > { %670 = sbr.rel (%p431_p10) target bundleno = 385 (0x181), region = 70  ;;  %s672_s30 = ssub.s32 (!%p431_p10), %s5461_s11, %s5467_s13 }
  0x9b   : > { %s5739_s6 = sshrl.u32 (!%p431_p10), %s5461_s11, 3  ;;  %s5742_s7 = scalar_lea.vmem (!%p431_p10), %s5459_s9, %s672_s30 }
  0x9c   : > { %s5745_s8 = scalar_lea.vmem (!%p431_p10), %s5463_s12, %s672_s30 [#allocation2]  ;;  %p3737_p1 = scmp.le.s32.totalorder (!%p431_p10), %s5739_s6, 0 }
  0x9f   : > { %3639 = sbr.rel (%p3737_p1) target bundleno = 273 (0x111), region = 226  ;;  %s8006_s10 = smov (!%p3737_p1), %s5463_s12 }
  0xa0   : > { %s8007_s14 = smov (!%p3737_p1), %s5459_s9  ;;  %s5754_s15 = smov (!%p3737_p1), 0  }
  0xa1   : > { %s5756_s16 = smov (!%p3737_p1), 0  }
  0xa4 LB: >> { %v686_v44 = vld [vmem:[%s5308_s14] sm:$0xff]  ;;  %v688_v45 = vld [vmem:[%s5308_s14 + $0x6c] sm:$0xff]  ;;  %v690_v46 = vld [vmem:[%s5308_s14 + $0xd8] sm:$0xff]  ;;  %s902_s17 = sadd.s32 1, %s5312_s15  ;;  %s680_s16 = sadd.s32 1, %s5316_s16   ;;  %s5316_s16 = sphi %s5756_s16, %s680_s16   ;;  %s5312_s15 = sphi %s5754_s15, %s8010_s15   ;;  %s5308_s14 = sphi %s8007_s14, %s8009_s14   ;;  %s5304_s10 = sphi %s8006_s10, %s8008_s10  }
  0xa5   : >> { %687 = vst [vmem:[%s5304_s10] sm:$0xff] %v686_v44  ;;  %v692_v47 = vld [vmem:[%s5308_s14 + $0x144] sm:$0xff]  ;;  %p903_p2 = scmp.ge.s32.totalorder %s902_s17, %s5739_s6  ;;  %v694_v48 = vld [vmem:[%s5308_s14 + $0x1b0] sm:$0xff]  ;;  %v696_v49 = vld [vmem:[%s5308_s14 + $0x21c] sm:$0xff]  ;;  %p679_p3 = scmp.ge.s32.totalorder %s680_s16, %s5739_s6 }
  0xa6   : >> { %689 = vst [vmem:[%s5304_s10 + $0x10] sm:$0xff] %v688_v45  ;;  %v698_v50 = vld [vmem:[%s5308_s14 + $0x288] sm:$0xff]  ;;  %v700_v51 = vld [vmem:[%s5308_s14 + $0x2f4] sm:$0xff]  ;;  %v702_v52 = vld [vmem:[%s5308_s14 + $0x360] sm:$0xff] }
  0xa7   : >> { %691 = vst [vmem:[%s5304_s10 + $0x20] sm:$0xff] %v690_v46  ;;  %s8034_s17 = smov (%p903_p2, %s902_s17), 0  ;;  %v704_v53 = vld [vmem:[%s5308_s14 + $0x3cc] sm:$0xff]  ;;  %v706_v54 = vld [vmem:[%s5308_s14 + $0x438] sm:$0xff]  ;;  %v708_v55 = vld [vmem:[%s5308_s14 + $0x4a4] sm:$0xff] }
  0xa8   : >> { %693 = vst [vmem:[%s5304_s10 + $0x30] sm:$0xff] %v692_v47  ;;  %s3738_s23 = sshll.u32 %s8034_s17, 3  ;;  %v710_v56 = vld [vmem:[%s5308_s14 + $0x510] sm:$0xff]  ;;  %v712_v57 = vld [vmem:[%s5308_s14 + $0x57c] sm:$0xff]  ;;  %v714_v58 = vld [vmem:[%s5308_s14 + $0x5e8] sm:$0xff]  ;;  %s8010_s15 = smov %s8034_s17 }
  0xa9   : >> { %695 = vst [vmem:[%s5304_s10 + $0x40] sm:$0xff] %v694_v48  ;;  %s5788_s24 = scalar_lea.vmem %s5459_s9, %s3738_s23   ;;  %s5791_s27 = scalar_lea.vmem %s5463_s12, %s3738_s23 [#allocation2]   ;;  %v716_v59 = vld [vmem:[%s5308_s14 + $0x654] sm:$0xff]  ;;  %v718_v60 = vld [vmem:[%s5308_s14 + $0x6c0] sm:$0xff]  ;;  %v720_v61 = vld [vmem:[%s5308_s14 + $0x72c] sm:$0xff] }
  0xaa   : >> { %697 = vst [vmem:[%s5304_s10 + $0x50] sm:$0xff] %v696_v49  ;;  %v722_v62 = vld [vmem:[%s5308_s14 + $0x798] sm:$0xff]  ;;  %v724_v63 = vld [vmem:[%s5308_s14 + $0x804] sm:$0xff]  ;;  %v726_v0 = vld [vmem:[%s5308_s14 + $0x870] sm:$0xff] }
  0xab   : >> { %699 = vst [vmem:[%s5304_s10 + $0x60] sm:$0xff] %v698_v50  ;;  %v728_v1 = vld [vmem:[%s5308_s14 + $0x8dc] sm:$0xff]  ;;  %v730_v2 = vld [vmem:[%s5308_s14 + $0x948] sm:$0xff]  ;;  %v732_v3 = vld [vmem:[%s5308_s14 + $0x9b4] sm:$0xff] }
  0xac   : >> { %701 = vst [vmem:[%s5304_s10 + $0x70] sm:$0xff] %v700_v51  ;;  %v734_v4 = vld [vmem:[%s5308_s14 + $0xa20] sm:$0xff]  ;;  %v736_v5 = vld [vmem:[%s5308_s14 + $0xa8c] sm:$0xff]  ;;  %v738_v6 = vld [vmem:[%s5308_s14 + $0xaf8] sm:$0xff] }
  0xad   : >> { %703 = vst [vmem:[%s5304_s10 + $0x80] sm:$0xff] %v702_v52  ;;  %v740_v7 = vld [vmem:[%s5308_s14 + $0xb64] sm:$0xff]  ;;  %v742_v8 = vld [vmem:[%s5308_s14 + $0xbd0] sm:$0xff]  ;;  %v744_v9 = vld [vmem:[%s5308_s14 + $0xc3c] sm:$0xff] }
  0xae   : >> { %705 = vst [vmem:[%s5304_s10 + $0x90] sm:$0xff] %v704_v53  ;;  %v746_v10 = vld [vmem:[%s5308_s14 + $0xca8] sm:$0xff]  ;;  %v748_v11 = vld [vmem:[%s5308_s14 + $0xd14] sm:$0xff]  ;;  %v750_v12 = vld [vmem:[%s5308_s14 + $0xd80] sm:$0xff] }
  0xaf   : >> { %707 = vst [vmem:[%s5304_s10 + $0xa0] sm:$0xff] %v706_v54  ;;  %v752_v13 = vld [vmem:[%s5308_s14 + $0xdec] sm:$0xff]  ;;  %v754_v14 = vld [vmem:[%s5308_s14 + $0xe58] sm:$0xff]  ;;  %v756_v15 = vld [vmem:[%s5308_s14 + $0xec4] sm:$0xff] }
  0xb0   : >> { %709 = vst [vmem:[%s5304_s10 + $0xb0] sm:$0xff] %v708_v55  ;;  %v758_v16 = vld [vmem:[%s5308_s14 + $0xf30] sm:$0xff]  ;;  %v760_v17 = vld [vmem:[%s5308_s14 + $0xf9c] sm:$0xff]  ;;  %v762_v18 = vld [vmem:[%s5308_s14 + $0x1008] sm:$0xff] }
  0xb1   : >> { %711 = vst [vmem:[%s5304_s10 + $0xc0] sm:$0xff] %v710_v56  ;;  %v764_v19 = vld [vmem:[%s5308_s14 + $0x1074] sm:$0xff]  ;;  %v766_v20 = vld [vmem:[%s5308_s14 + $0x10e0] sm:$0xff]  ;;  %v768_v21 = vld [vmem:[%s5308_s14 + $0x114c] sm:$0xff] }
  0xb2   : >> { %713 = vst [vmem:[%s5304_s10 + $0xd0] sm:$0xff] %v712_v57  ;;  %v770_v22 = vld [vmem:[%s5308_s14 + $0x11b8] sm:$0xff]  ;;  %v772_v23 = vld [vmem:[%s5308_s14 + $0x1224] sm:$0xff]  ;;  %v774_v24 = vld [vmem:[%s5308_s14 + $0x1290] sm:$0xff] }
  0xb3   : >> { %715 = vst [vmem:[%s5304_s10 + $0xe0] sm:$0xff] %v714_v58  ;;  %v776_v25 = vld [vmem:[%s5308_s14 + $0x12fc] sm:$0xff]  ;;  %v778_v26 = vld [vmem:[%s5308_s14 + $0x1368] sm:$0xff]  ;;  %v780_v27 = vld [vmem:[%s5308_s14 + $0x13d4] sm:$0xff] }
  0xb4   : >> { %717 = vst [vmem:[%s5304_s10 + $0xf0] sm:$0xff] %v716_v59  ;;  %v782_v28 = vld [vmem:[%s5308_s14 + $0x1440] sm:$0xff]  ;;  %v784_v29 = vld [vmem:[%s5308_s14 + $0x14ac] sm:$0xff]  ;;  %v786_v30 = vld [vmem:[%s5308_s14 + $0x1518] sm:$0xff] }
  0xb5   : >> { %719 = vst [vmem:[%s5304_s10 + $0x100] sm:$0xff] %v718_v60  ;;  %v788_v31 = vld [vmem:[%s5308_s14 + $0x1584] sm:$0xff]  ;;  %v790_v32 = vld [vmem:[%s5308_s14 + $0x15f0] sm:$0xff]  ;;  %v792_v33 = vld [vmem:[%s5308_s14 + $0x165c] sm:$0xff] }
  0xb6   : >> { %721 = vst [vmem:[%s5304_s10 + $0x110] sm:$0xff] %v720_v61  ;;  %v794_v34 = vld [vmem:[%s5308_s14 + $0x16c8] sm:$0xff]  ;;  %v796_v35 = vld [vmem:[%s5308_s14 + $0x1734] sm:$0xff]  ;;  %v798_v36 = vld [vmem:[%s5308_s14 + $0x17a0] sm:$0xff] }
  0xb7   : >> { %723 = vst [vmem:[%s5304_s10 + $0x120] sm:$0xff] %v722_v62  ;;  %v800_v37 = vld [vmem:[%s5308_s14 + $0x180c] sm:$0xff]  ;;  %v802_v38 = vld [vmem:[%s5308_s14 + $0x1878] sm:$0xff]  ;;  %v804_v39 = vld [vmem:[%s5308_s14 + $0x18e4] sm:$0xff] }
  0xb8   : >> { %725 = vst [vmem:[%s5304_s10 + $0x130] sm:$0xff] %v724_v63  ;;  %v806_v40 = vld [vmem:[%s5308_s14 + $0x1950] sm:$0xff]  ;;  %v808_v41 = vld [vmem:[%s5308_s14 + $0x19bc] sm:$0xff]  ;;  %v810_v42 = vld [vmem:[%s5308_s14 + $0x1a28] sm:$0xff] }
  0xb9   : >> { %727 = vst [vmem:[%s5304_s10 + $0x140] sm:$0xff] %v726_v0  ;;  %v812_v43 = vld [vmem:[%s5308_s14 + $0x1a94] sm:$0xff]  ;;  %v814_v44 = vld [vmem:[%s5308_s14 + $0x1b00] sm:$0xff]  ;;  %v816_v45 = vld [vmem:[%s5308_s14 + $0x1b6c] sm:$0xff] }
  0xba   : >> { %729 = vst [vmem:[%s5304_s10 + $0x150] sm:$0xff] %v728_v1  ;;  %v818_v46 = vld [vmem:[%s5308_s14 + $0x1bd8] sm:$0xff]  ;;  %v820_v47 = vld [vmem:[%s5308_s14 + $0x1c44] sm:$0xff]  ;;  %v822_v48 = vld [vmem:[%s5308_s14 + $0x1cb0] sm:$0xff] }
  0xbb   : >> { %731 = vst [vmem:[%s5304_s10 + $0x160] sm:$0xff] %v730_v2  ;;  %v824_v49 = vld [vmem:[%s5308_s14 + $0x1d1c] sm:$0xff]  ;;  %v826_v50 = vld [vmem:[%s5308_s14 + $0x1d88] sm:$0xff]  ;;  %v828_v51 = vld [vmem:[%s5308_s14 + $0x1df4] sm:$0xff] }
  0xbc   : >> { %733 = vst [vmem:[%s5304_s10 + $0x170] sm:$0xff] %v732_v3  ;;  %v830_v52 = vld [vmem:[%s5308_s14 + $0x1e60] sm:$0xff]  ;;  %v832_v53 = vld [vmem:[%s5308_s14 + $0x1ecc] sm:$0xff]  ;;  %v834_v54 = vld [vmem:[%s5308_s14 + $0x1f38] sm:$0xff] }
  0xbd   : >> { %735 = vst [vmem:[%s5304_s10 + $0x180] sm:$0xff] %v734_v4  ;;  %v836_v55 = vld [vmem:[%s5308_s14 + $0x1fa4] sm:$0xff]  ;;  %v838_v56 = vld [vmem:[%s5308_s14 + $0x2010] sm:$0xff]  ;;  %v840_v57 = vld [vmem:[%s5308_s14 + $0x207c] sm:$0xff] }
  0xbe   : >> { %737 = vst [vmem:[%s5304_s10 + $0x190] sm:$0xff] %v736_v5  ;;  %v842_v58 = vld [vmem:[%s5308_s14 + $0x20e8] sm:$0xff]  ;;  %v844_v59 = vld [vmem:[%s5308_s14 + $0x2154] sm:$0xff]  ;;  %v846_v60 = vld [vmem:[%s5308_s14 + $0x21c0] sm:$0xff] }
  0xbf   : >> { %739 = vst [vmem:[%s5304_s10 + $0x1a0] sm:$0xff] %v738_v6  ;;  %v848_v61 = vld [vmem:[%s5308_s14 + $0x222c] sm:$0xff]  ;;  %v850_v62 = vld [vmem:[%s5308_s14 + $0x2298] sm:$0xff]  ;;  %v852_v63 = vld [vmem:[%s5308_s14 + $0x2304] sm:$0xff] }
  0xc0   : >> { %741 = vst [vmem:[%s5304_s10 + $0x1b0] sm:$0xff] %v740_v7  ;;  %v854_v0 = vld [vmem:[%s5308_s14 + $0x2370] sm:$0xff]  ;;  %v856_v1 = vld [vmem:[%s5308_s14 + $0x23dc] sm:$0xff]  ;;  %v858_v2 = vld [vmem:[%s5308_s14 + $0x2448] sm:$0xff] }
  0xc1   : >> { %743 = vst [vmem:[%s5304_s10 + $0x1c0] sm:$0xff] %v742_v8  ;;  %v860_v3 = vld [vmem:[%s5308_s14 + $0x24b4] sm:$0xff]  ;;  %v862_v4 = vld [vmem:[%s5308_s14 + $0x2520] sm:$0xff]  ;;  %v864_v5 = vld [vmem:[%s5308_s14 + $0x258c] sm:$0xff] }
  0xc2   : >> { %745 = vst [vmem:[%s5304_s10 + $0x1d0] sm:$0xff] %v744_v9  ;;  %v866_v6 = vld [vmem:[%s5308_s14 + $0x25f8] sm:$0xff]  ;;  %v868_v7 = vld [vmem:[%s5308_s14 + $0x2664] sm:$0xff]  ;;  %v870_v8 = vld [vmem:[%s5308_s14 + $0x26d0] sm:$0xff] }
  0xc3   : >> { %747 = vst [vmem:[%s5304_s10 + $0x1e0] sm:$0xff] %v746_v10  ;;  %v872_v9 = vld [vmem:[%s5308_s14 + $0x273c] sm:$0xff]  ;;  %v874_v10 = vld [vmem:[%s5308_s14 + $0x27a8] sm:$0xff] }
  0xc4   : >> { %749 = vst [vmem:[%s5304_s10 + $0x1f0] sm:$0xff] %v748_v11  ;;  %v876_v11 = vld [vmem:[%s5308_s14 + $0x2814] sm:$0xff] }
  0xc5   : >> { %751 = vst [vmem:[%s5304_s10 + $0x200] sm:$0xff] %v750_v12  ;;  %v878_v12 = vld [vmem:[%s5308_s14 + $0x2880] sm:$0xff] }
  0xc6   : >> { %753 = vst [vmem:[%s5304_s10 + $0x210] sm:$0xff] %v752_v13  ;;  %v880_v13 = vld [vmem:[%s5308_s14 + $0x28ec] sm:$0xff] }
  0xc7   : >> { %755 = vst [vmem:[%s5304_s10 + $0x220] sm:$0xff] %v754_v14  ;;  %v882_v14 = vld [vmem:[%s5308_s14 + $0x2958] sm:$0xff] }
  0xc8   : >> { %757 = vst [vmem:[%s5304_s10 + $0x230] sm:$0xff] %v756_v15  ;;  %v884_v15 = vld [vmem:[%s5308_s14 + $0x29c4] sm:$0xff] }
  0xc9   : >> { %759 = vst [vmem:[%s5304_s10 + $0x240] sm:$0xff] %v758_v16  ;;  %v886_v16 = vld [vmem:[%s5308_s14 + $0x2a30] sm:$0xff] }
  0xca   : >> { %761 = vst [vmem:[%s5304_s10 + $0x250] sm:$0xff] %v760_v17  ;;  %v888_v17 = vld [vmem:[%s5308_s14 + $0x2a9c] sm:$0xff] }
  0xcb   : >> { %763 = vst [vmem:[%s5304_s10 + $0x260] sm:$0xff] %v762_v18  ;;  %v890_v18 = vld [vmem:[%s5308_s14 + $0x2b08] sm:$0xff] }
  0xcc   : >> { %765 = vst [vmem:[%s5304_s10 + $0x270] sm:$0xff] %v764_v19  ;;  %v892_v19 = vld [vmem:[%s5308_s14 + $0x2b74] sm:$0xff] }
  0xcd   : >> { %767 = vst [vmem:[%s5304_s10 + $0x280] sm:$0xff] %v766_v20  ;;  %v894_v20 = vld [vmem:[%s5308_s14 + $0x2be0] sm:$0xff] }
  0xce   : >> { %769 = vst [vmem:[%s5304_s10 + $0x290] sm:$0xff] %v768_v21  ;;  %v896_v21 = vld [vmem:[%s5308_s14 + $0x2c4c] sm:$0xff] }
  0xcf   : >> { %771 = vst [vmem:[%s5304_s10 + $0x2a0] sm:$0xff] %v770_v22  ;;  %v898_v22 = vld [vmem:[%s5308_s14 + $0x2cb8] sm:$0xff] }
  0xd0   : >> { %773 = vst [vmem:[%s5304_s10 + $0x2b0] sm:$0xff] %v772_v23  ;;  %v900_v23 = vld [vmem:[%s5308_s14 + $0x2d24] sm:$0xff]  ;;  %s8009_s14 = smov %s5788_s24 }
  0xd1   : >> { %775 = vst [vmem:[%s5304_s10 + $0x2c0] sm:$0xff] %v774_v24 }
  0xd2   : >> { %777 = vst [vmem:[%s5304_s10 + $0x2d0] sm:$0xff] %v776_v25 }
  0xd3   : >> { %779 = vst [vmem:[%s5304_s10 + $0x2e0] sm:$0xff] %v778_v26 }
  0xd4   : >> { %781 = vst [vmem:[%s5304_s10 + $0x2f0] sm:$0xff] %v780_v27 }
  0xd5   : >> { %783 = vst [vmem:[%s5304_s10 + $0x300] sm:$0xff] %v782_v28 }
  0xd6   : >> { %785 = vst [vmem:[%s5304_s10 + $0x310] sm:$0xff] %v784_v29 }
  0xd7   : >> { %787 = vst [vmem:[%s5304_s10 + $0x320] sm:$0xff] %v786_v30 }
  0xd8   : >> { %789 = vst [vmem:[%s5304_s10 + $0x330] sm:$0xff] %v788_v31 }
  0xd9   : >> { %791 = vst [vmem:[%s5304_s10 + $0x340] sm:$0xff] %v790_v32 }
  0xda   : >> { %793 = vst [vmem:[%s5304_s10 + $0x350] sm:$0xff] %v792_v33 }
  0xdb   : >> { %795 = vst [vmem:[%s5304_s10 + $0x360] sm:$0xff] %v794_v34 }
  0xdc   : >> { %797 = vst [vmem:[%s5304_s10 + $0x370] sm:$0xff] %v796_v35 }
  0xdd   : >> { %799 = vst [vmem:[%s5304_s10 + $0x380] sm:$0xff] %v798_v36 }
  0xde   : >> { %801 = vst [vmem:[%s5304_s10 + $0x390] sm:$0xff] %v800_v37 }
  0xdf   : >> { %803 = vst [vmem:[%s5304_s10 + $0x3a0] sm:$0xff] %v802_v38 }
  0xe0   : >> { %805 = vst [vmem:[%s5304_s10 + $0x3b0] sm:$0xff] %v804_v39 }
  0xe1   : >> { %807 = vst [vmem:[%s5304_s10 + $0x3c0] sm:$0xff] %v806_v40 }
  0xe2   : >> { %809 = vst [vmem:[%s5304_s10 + $0x3d0] sm:$0xff] %v808_v41 }
  0xe3   : >> { %811 = vst [vmem:[%s5304_s10 + $0x3e0] sm:$0xff] %v810_v42 }
  0xe4   : >> { %813 = vst [vmem:[%s5304_s10 + $0x3f0] sm:$0xff] %v812_v43 }
  0xe5   : >> { %815 = vst [vmem:[%s5304_s10 + $0x400] sm:$0xff] %v814_v44 }
  0xe6   : >> { %817 = vst [vmem:[%s5304_s10 + $0x410] sm:$0xff] %v816_v45 }
  0xe7   : >> { %819 = vst [vmem:[%s5304_s10 + $0x420] sm:$0xff] %v818_v46 }
  0xe8   : >> { %821 = vst [vmem:[%s5304_s10 + $0x430] sm:$0xff] %v820_v47 }
  0xe9   : >> { %823 = vst [vmem:[%s5304_s10 + $0x440] sm:$0xff] %v822_v48 }
  0xea   : >> { %825 = vst [vmem:[%s5304_s10 + $0x450] sm:$0xff] %v824_v49 }
  0xeb   : >> { %827 = vst [vmem:[%s5304_s10 + $0x460] sm:$0xff] %v826_v50 }
  0xec   : >> { %829 = vst [vmem:[%s5304_s10 + $0x470] sm:$0xff] %v828_v51 }
  0xed   : >> { %831 = vst [vmem:[%s5304_s10 + $0x480] sm:$0xff] %v830_v52 }
  0xee   : >> { %833 = vst [vmem:[%s5304_s10 + $0x490] sm:$0xff] %v832_v53 }
  0xef   : >> { %835 = vst [vmem:[%s5304_s10 + $0x4a0] sm:$0xff] %v834_v54 }
  0xf0   : >> { %837 = vst [vmem:[%s5304_s10 + $0x4b0] sm:$0xff] %v836_v55 }
  0xf1   : >> { %839 = vst [vmem:[%s5304_s10 + $0x4c0] sm:$0xff] %v838_v56 }
  0xf2   : >> { %841 = vst [vmem:[%s5304_s10 + $0x4d0] sm:$0xff] %v840_v57 }
  0xf3   : >> { %843 = vst [vmem:[%s5304_s10 + $0x4e0] sm:$0xff] %v842_v58 }
  0xf4   : >> { %845 = vst [vmem:[%s5304_s10 + $0x4f0] sm:$0xff] %v844_v59 }
  0xf5   : >> { %847 = vst [vmem:[%s5304_s10 + $0x500] sm:$0xff] %v846_v60 }
  0xf6   : >> { %849 = vst [vmem:[%s5304_s10 + $0x510] sm:$0xff] %v848_v61 }
  0xf7   : >> { %851 = vst [vmem:[%s5304_s10 + $0x520] sm:$0xff] %v850_v62 }
  0xf8   : >> { %853 = vst [vmem:[%s5304_s10 + $0x530] sm:$0xff] %v852_v63 }
  0xf9   : >> { %855 = vst [vmem:[%s5304_s10 + $0x540] sm:$0xff] %v854_v0 }
  0xfa   : >> { %857 = vst [vmem:[%s5304_s10 + $0x550] sm:$0xff] %v856_v1 }
  0xfb   : >> { %859 = vst [vmem:[%s5304_s10 + $0x560] sm:$0xff] %v858_v2 }
  0xfc   : >> { %861 = vst [vmem:[%s5304_s10 + $0x570] sm:$0xff] %v860_v3 }
  0xfd   : >> { %863 = vst [vmem:[%s5304_s10 + $0x580] sm:$0xff] %v862_v4 }
  0xfe   : >> { %865 = vst [vmem:[%s5304_s10 + $0x590] sm:$0xff] %v864_v5 }
  0xff   : >> { %867 = vst [vmem:[%s5304_s10 + $0x5a0] sm:$0xff] %v866_v6 }
 0x100   : >> { %869 = vst [vmem:[%s5304_s10 + $0x5b0] sm:$0xff] %v868_v7 }
 0x101   : >> { %871 = vst [vmem:[%s5304_s10 + $0x5c0] sm:$0xff] %v870_v8 }
 0x102   : >> { %873 = vst [vmem:[%s5304_s10 + $0x5d0] sm:$0xff] %v872_v9 }
 0x103   : >> { %875 = vst [vmem:[%s5304_s10 + $0x5e0] sm:$0xff] %v874_v10 }
 0x104   : >> { %877 = vst [vmem:[%s5304_s10 + $0x5f0] sm:$0xff] %v876_v11 }
 0x105   : >> { %879 = vst [vmem:[%s5304_s10 + $0x600] sm:$0xff] %v878_v12 }
 0x106   : >> { %881 = vst [vmem:[%s5304_s10 + $0x610] sm:$0xff] %v880_v13 }
 0x107   : >> { %883 = vst [vmem:[%s5304_s10 + $0x620] sm:$0xff] %v882_v14 }
 0x108   : >> { %885 = vst [vmem:[%s5304_s10 + $0x630] sm:$0xff] %v884_v15 }
 0x109   : >> { %887 = vst [vmem:[%s5304_s10 + $0x640] sm:$0xff] %v886_v16 }
 0x10a   : >> { %889 = vst [vmem:[%s5304_s10 + $0x650] sm:$0xff] %v888_v17 }
 0x10b   : >> { %891 = vst [vmem:[%s5304_s10 + $0x660] sm:$0xff] %v890_v18 }
 0x10c   : >> { %893 = vst [vmem:[%s5304_s10 + $0x670] sm:$0xff] %v892_v19  ;;  %682 = sbr.rel (!%p679_p3) target bundleno = 164 (0xa4), region = 232 }
 0x10d   : >> { %895 = vst [vmem:[%s5304_s10 + $0x680] sm:$0xff] %v894_v20 }
 0x10e   : >> { %897 = vst [vmem:[%s5304_s10 + $0x690] sm:$0xff] %v896_v21 }
 0x10f   : >> { %899 = vst [vmem:[%s5304_s10 + $0x6a0] sm:$0xff] %v898_v22 }
 0x110   : >> { %901 = vst [vmem:[%s5304_s10 + $0x6b0] sm:$0xff] %v900_v23  ;;  %s8008_s10 = smov %s5791_s27 }
 0x111 PF: > { %s5382_s28 = smov 1  }
 0x112   : > { %s909_s29 = sshll.u32 %s5382_s28, %s5467_s13 }
 0x113   : > { %s6008_s30 = sadd.s32 4294967295, %s909_s29 }
 0x114   : > { %v919_v24 = vld [vmem:[%s5742_s7] sm:%s6008_s30]  ;;  %v921_v25 = vld [vmem:[%s5742_s7 + $0x6c] sm:%s6008_s30] }
 0x115   : > { %920 = vst [vmem:[%s5745_s8] sm:%s6008_s30] %v919_v24  ;;  %v923_v26 = vld [vmem:[%s5742_s7 + $0xd8] sm:%s6008_s30] }
 0x116   : > { %922 = vst [vmem:[%s5745_s8 + $0x10] sm:%s6008_s30] %v921_v25  ;;  %v925_v27 = vld [vmem:[%s5742_s7 + $0x144] sm:%s6008_s30] }
 0x117   : > { %924 = vst [vmem:[%s5745_s8 + $0x20] sm:%s6008_s30] %v923_v26  ;;  %v927_v28 = vld [vmem:[%s5742_s7 + $0x1b0] sm:%s6008_s30] }
 0x118   : > { %926 = vst [vmem:[%s5745_s8 + $0x30] sm:%s6008_s30] %v925_v27  ;;  %v929_v29 = vld [vmem:[%s5742_s7 + $0x21c] sm:%s6008_s30] }
 0x119   : > { %928 = vst [vmem:[%s5745_s8 + $0x40] sm:%s6008_s30] %v927_v28  ;;  %v931_v30 = vld [vmem:[%s5742_s7 + $0x288] sm:%s6008_s30] }
 0x11a   : > { %930 = vst [vmem:[%s5745_s8 + $0x50] sm:%s6008_s30] %v929_v29  ;;  %v933_v31 = vld [vmem:[%s5742_s7 + $0x2f4] sm:%s6008_s30] }
 0x11b   : > { %932 = vst [vmem:[%s5745_s8 + $0x60] sm:%s6008_s30] %v931_v30  ;;  %v935_v32 = vld [vmem:[%s5742_s7 + $0x360] sm:%s6008_s30] }
 0x11c   : > { %934 = vst [vmem:[%s5745_s8 + $0x70] sm:%s6008_s30] %v933_v31  ;;  %v937_v33 = vld [vmem:[%s5742_s7 + $0x3cc] sm:%s6008_s30] }
 0x11d   : > { %936 = vst [vmem:[%s5745_s8 + $0x80] sm:%s6008_s30] %v935_v32  ;;  %v939_v34 = vld [vmem:[%s5742_s7 + $0x438] sm:%s6008_s30] }
 0x11e   : > { %938 = vst [vmem:[%s5745_s8 + $0x90] sm:%s6008_s30] %v937_v33  ;;  %v941_v35 = vld [vmem:[%s5742_s7 + $0x4a4] sm:%s6008_s30] }
 0x11f   : > { %940 = vst [vmem:[%s5745_s8 + $0xa0] sm:%s6008_s30] %v939_v34  ;;  %v943_v36 = vld [vmem:[%s5742_s7 + $0x510] sm:%s6008_s30] }
 0x120   : > { %942 = vst [vmem:[%s5745_s8 + $0xb0] sm:%s6008_s30] %v941_v35  ;;  %v945_v37 = vld [vmem:[%s5742_s7 + $0x57c] sm:%s6008_s30] }
 0x121   : > { %944 = vst [vmem:[%s5745_s8 + $0xc0] sm:%s6008_s30] %v943_v36  ;;  %v947_v38 = vld [vmem:[%s5742_s7 + $0x5e8] sm:%s6008_s30] }
 0x122   : > { %946 = vst [vmem:[%s5745_s8 + $0xd0] sm:%s6008_s30] %v945_v37  ;;  %v949_v39 = vld [vmem:[%s5742_s7 + $0x654] sm:%s6008_s30] }
 0x123   : > { %948 = vst [vmem:[%s5745_s8 + $0xe0] sm:%s6008_s30] %v947_v38  ;;  %v951_v40 = vld [vmem:[%s5742_s7 + $0x6c0] sm:%s6008_s30] }
 0x124   : > { %950 = vst [vmem:[%s5745_s8 + $0xf0] sm:%s6008_s30] %v949_v39  ;;  %v953_v41 = vld [vmem:[%s5742_s7 + $0x72c] sm:%s6008_s30] }
 0x125   : > { %952 = vst [vmem:[%s5745_s8 + $0x100] sm:%s6008_s30] %v951_v40  ;;  %v955_v42 = vld [vmem:[%s5742_s7 + $0x798] sm:%s6008_s30] }
 0x126   : > { %954 = vst [vmem:[%s5745_s8 + $0x110] sm:%s6008_s30] %v953_v41  ;;  %v957_v43 = vld [vmem:[%s5742_s7 + $0x804] sm:%s6008_s30] }
 0x127   : > { %956 = vst [vmem:[%s5745_s8 + $0x120] sm:%s6008_s30] %v955_v42  ;;  %v959_v44 = vld [vmem:[%s5742_s7 + $0x870] sm:%s6008_s30] }
 0x128   : > { %958 = vst [vmem:[%s5745_s8 + $0x130] sm:%s6008_s30] %v957_v43  ;;  %v961_v45 = vld [vmem:[%s5742_s7 + $0x8dc] sm:%s6008_s30] }
 0x129   : > { %960 = vst [vmem:[%s5745_s8 + $0x140] sm:%s6008_s30] %v959_v44  ;;  %v963_v46 = vld [vmem:[%s5742_s7 + $0x948] sm:%s6008_s30] }
 0x12a   : > { %962 = vst [vmem:[%s5745_s8 + $0x150] sm:%s6008_s30] %v961_v45  ;;  %v965_v47 = vld [vmem:[%s5742_s7 + $0x9b4] sm:%s6008_s30] }
 0x12b   : > { %964 = vst [vmem:[%s5745_s8 + $0x160] sm:%s6008_s30] %v963_v46  ;;  %v967_v48 = vld [vmem:[%s5742_s7 + $0xa20] sm:%s6008_s30] }
 0x12c   : > { %966 = vst [vmem:[%s5745_s8 + $0x170] sm:%s6008_s30] %v965_v47  ;;  %v969_v49 = vld [vmem:[%s5742_s7 + $0xa8c] sm:%s6008_s30] }
 0x12d   : > { %968 = vst [vmem:[%s5745_s8 + $0x180] sm:%s6008_s30] %v967_v48  ;;  %v971_v50 = vld [vmem:[%s5742_s7 + $0xaf8] sm:%s6008_s30] }
 0x12e   : > { %970 = vst [vmem:[%s5745_s8 + $0x190] sm:%s6008_s30] %v969_v49  ;;  %v973_v51 = vld [vmem:[%s5742_s7 + $0xb64] sm:%s6008_s30] }
 0x12f   : > { %972 = vst [vmem:[%s5745_s8 + $0x1a0] sm:%s6008_s30] %v971_v50  ;;  %v975_v52 = vld [vmem:[%s5742_s7 + $0xbd0] sm:%s6008_s30] }
 0x130   : > { %974 = vst [vmem:[%s5745_s8 + $0x1b0] sm:%s6008_s30] %v973_v51  ;;  %v977_v53 = vld [vmem:[%s5742_s7 + $0xc3c] sm:%s6008_s30] }
 0x131   : > { %976 = vst [vmem:[%s5745_s8 + $0x1c0] sm:%s6008_s30] %v975_v52  ;;  %v979_v54 = vld [vmem:[%s5742_s7 + $0xca8] sm:%s6008_s30] }
 0x132   : > { %978 = vst [vmem:[%s5745_s8 + $0x1d0] sm:%s6008_s30] %v977_v53  ;;  %v981_v55 = vld [vmem:[%s5742_s7 + $0xd14] sm:%s6008_s30] }
 0x133   : > { %980 = vst [vmem:[%s5745_s8 + $0x1e0] sm:%s6008_s30] %v979_v54  ;;  %v983_v56 = vld [vmem:[%s5742_s7 + $0xd80] sm:%s6008_s30] }
 0x134   : > { %982 = vst [vmem:[%s5745_s8 + $0x1f0] sm:%s6008_s30] %v981_v55  ;;  %v985_v57 = vld [vmem:[%s5742_s7 + $0xdec] sm:%s6008_s30] }
 0x135   : > { %984 = vst [vmem:[%s5745_s8 + $0x200] sm:%s6008_s30] %v983_v56  ;;  %v987_v58 = vld [vmem:[%s5742_s7 + $0xe58] sm:%s6008_s30] }
 0x136   : > { %986 = vst [vmem:[%s5745_s8 + $0x210] sm:%s6008_s30] %v985_v57  ;;  %v989_v59 = vld [vmem:[%s5742_s7 + $0xec4] sm:%s6008_s30] }
 0x137   : > { %988 = vst [vmem:[%s5745_s8 + $0x220] sm:%s6008_s30] %v987_v58  ;;  %v991_v60 = vld [vmem:[%s5742_s7 + $0xf30] sm:%s6008_s30] }
 0x138   : > { %990 = vst [vmem:[%s5745_s8 + $0x230] sm:%s6008_s30] %v989_v59  ;;  %v993_v61 = vld [vmem:[%s5742_s7 + $0xf9c] sm:%s6008_s30] }
 0x139   : > { %992 = vst [vmem:[%s5745_s8 + $0x240] sm:%s6008_s30] %v991_v60  ;;  %v995_v62 = vld [vmem:[%s5742_s7 + $0x1008] sm:%s6008_s30] }
 0x13a   : > { %994 = vst [vmem:[%s5745_s8 + $0x250] sm:%s6008_s30] %v993_v61  ;;  %v997_v63 = vld [vmem:[%s5742_s7 + $0x1074] sm:%s6008_s30] }
 0x13b   : > { %996 = vst [vmem:[%s5745_s8 + $0x260] sm:%s6008_s30] %v995_v62  ;;  %v999_v0 = vld [vmem:[%s5742_s7 + $0x10e0] sm:%s6008_s30] }
 0x13c   : > { %998 = vst [vmem:[%s5745_s8 + $0x270] sm:%s6008_s30] %v997_v63  ;;  %v1001_v1 = vld [vmem:[%s5742_s7 + $0x114c] sm:%s6008_s30] }
 0x13d   : > { %1000 = vst [vmem:[%s5745_s8 + $0x280] sm:%s6008_s30] %v999_v0  ;;  %v1003_v2 = vld [vmem:[%s5742_s7 + $0x11b8] sm:%s6008_s30] }
 0x13e   : > { %1002 = vst [vmem:[%s5745_s8 + $0x290] sm:%s6008_s30] %v1001_v1  ;;  %v1005_v3 = vld [vmem:[%s5742_s7 + $0x1224] sm:%s6008_s30] }
 0x13f   : > { %1004 = vst [vmem:[%s5745_s8 + $0x2a0] sm:%s6008_s30] %v1003_v2  ;;  %v1007_v4 = vld [vmem:[%s5742_s7 + $0x1290] sm:%s6008_s30] }
 0x140   : > { %1006 = vst [vmem:[%s5745_s8 + $0x2b0] sm:%s6008_s30] %v1005_v3  ;;  %v1009_v5 = vld [vmem:[%s5742_s7 + $0x12fc] sm:%s6008_s30] }
 0x141   : > { %1008 = vst [vmem:[%s5745_s8 + $0x2c0] sm:%s6008_s30] %v1007_v4  ;;  %v1011_v6 = vld [vmem:[%s5742_s7 + $0x1368] sm:%s6008_s30] }
 0x142   : > { %1010 = vst [vmem:[%s5745_s8 + $0x2d0] sm:%s6008_s30] %v1009_v5  ;;  %v1013_v7 = vld [vmem:[%s5742_s7 + $0x13d4] sm:%s6008_s30] }
 0x143   : > { %1012 = vst [vmem:[%s5745_s8 + $0x2e0] sm:%s6008_s30] %v1011_v6  ;;  %v1015_v8 = vld [vmem:[%s5742_s7 + $0x1440] sm:%s6008_s30] }
 0x144   : > { %1014 = vst [vmem:[%s5745_s8 + $0x2f0] sm:%s6008_s30] %v1013_v7  ;;  %v1017_v9 = vld [vmem:[%s5742_s7 + $0x14ac] sm:%s6008_s30] }
 0x145   : > { %1016 = vst [vmem:[%s5745_s8 + $0x300] sm:%s6008_s30] %v1015_v8  ;;  %v1019_v10 = vld [vmem:[%s5742_s7 + $0x1518] sm:%s6008_s30] }
 0x146   : > { %1018 = vst [vmem:[%s5745_s8 + $0x310] sm:%s6008_s30] %v1017_v9  ;;  %v1021_v11 = vld [vmem:[%s5742_s7 + $0x1584] sm:%s6008_s30] }
 0x147   : > { %1020 = vst [vmem:[%s5745_s8 + $0x320] sm:%s6008_s30] %v1019_v10  ;;  %v1023_v12 = vld [vmem:[%s5742_s7 + $0x15f0] sm:%s6008_s30] }
 0x148   : > { %1022 = vst [vmem:[%s5745_s8 + $0x330] sm:%s6008_s30] %v1021_v11  ;;  %v1025_v13 = vld [vmem:[%s5742_s7 + $0x165c] sm:%s6008_s30] }
 0x149   : > { %1024 = vst [vmem:[%s5745_s8 + $0x340] sm:%s6008_s30] %v1023_v12  ;;  %v1027_v14 = vld [vmem:[%s5742_s7 + $0x16c8] sm:%s6008_s30] }
 0x14a   : > { %1026 = vst [vmem:[%s5745_s8 + $0x350] sm:%s6008_s30] %v1025_v13  ;;  %v1029_v15 = vld [vmem:[%s5742_s7 + $0x1734] sm:%s6008_s30] }
 0x14b   : > { %1028 = vst [vmem:[%s5745_s8 + $0x360] sm:%s6008_s30] %v1027_v14  ;;  %v1031_v16 = vld [vmem:[%s5742_s7 + $0x17a0] sm:%s6008_s30] }
 0x14c   : > { %1030 = vst [vmem:[%s5745_s8 + $0x370] sm:%s6008_s30] %v1029_v15  ;;  %v1033_v17 = vld [vmem:[%s5742_s7 + $0x180c] sm:%s6008_s30] }
 0x14d   : > { %1032 = vst [vmem:[%s5745_s8 + $0x380] sm:%s6008_s30] %v1031_v16  ;;  %v1035_v18 = vld [vmem:[%s5742_s7 + $0x1878] sm:%s6008_s30] }
 0x14e   : > { %1034 = vst [vmem:[%s5745_s8 + $0x390] sm:%s6008_s30] %v1033_v17  ;;  %v1037_v19 = vld [vmem:[%s5742_s7 + $0x18e4] sm:%s6008_s30] }
 0x14f   : > { %1036 = vst [vmem:[%s5745_s8 + $0x3a0] sm:%s6008_s30] %v1035_v18  ;;  %v1039_v20 = vld [vmem:[%s5742_s7 + $0x1950] sm:%s6008_s30] }
 0x150   : > { %1038 = vst [vmem:[%s5745_s8 + $0x3b0] sm:%s6008_s30] %v1037_v19  ;;  %v1041_v21 = vld [vmem:[%s5742_s7 + $0x19bc] sm:%s6008_s30] }
 0x151   : > { %1040 = vst [vmem:[%s5745_s8 + $0x3c0] sm:%s6008_s30] %v1039_v20  ;;  %v1043_v22 = vld [vmem:[%s5742_s7 + $0x1a28] sm:%s6008_s30] }
 0x152   : > { %1042 = vst [vmem:[%s5745_s8 + $0x3d0] sm:%s6008_s30] %v1041_v21  ;;  %v1045_v23 = vld [vmem:[%s5742_s7 + $0x1a94] sm:%s6008_s30] }
 0x153   : > { %1044 = vst [vmem:[%s5745_s8 + $0x3e0] sm:%s6008_s30] %v1043_v22  ;;  %v1047_v24 = vld [vmem:[%s5742_s7 + $0x1b00] sm:%s6008_s30] }
 0x154   : > { %1046 = vst [vmem:[%s5745_s8 + $0x3f0] sm:%s6008_s30] %v1045_v23  ;;  %v1049_v25 = vld [vmem:[%s5742_s7 + $0x1b6c] sm:%s6008_s30] }
 0x155   : > { %1048 = vst [vmem:[%s5745_s8 + $0x400] sm:%s6008_s30] %v1047_v24  ;;  %v1051_v26 = vld [vmem:[%s5742_s7 + $0x1bd8] sm:%s6008_s30] }
 0x156   : > { %1050 = vst [vmem:[%s5745_s8 + $0x410] sm:%s6008_s30] %v1049_v25  ;;  %v1053_v27 = vld [vmem:[%s5742_s7 + $0x1c44] sm:%s6008_s30] }
 0x157   : > { %1052 = vst [vmem:[%s5745_s8 + $0x420] sm:%s6008_s30] %v1051_v26  ;;  %v1055_v28 = vld [vmem:[%s5742_s7 + $0x1cb0] sm:%s6008_s30] }
 0x158   : > { %1054 = vst [vmem:[%s5745_s8 + $0x430] sm:%s6008_s30] %v1053_v27  ;;  %v1057_v29 = vld [vmem:[%s5742_s7 + $0x1d1c] sm:%s6008_s30] }
 0x159   : > { %1056 = vst [vmem:[%s5745_s8 + $0x440] sm:%s6008_s30] %v1055_v28  ;;  %v1059_v30 = vld [vmem:[%s5742_s7 + $0x1d88] sm:%s6008_s30] }
 0x15a   : > { %1058 = vst [vmem:[%s5745_s8 + $0x450] sm:%s6008_s30] %v1057_v29  ;;  %v1061_v31 = vld [vmem:[%s5742_s7 + $0x1df4] sm:%s6008_s30] }
 0x15b   : > { %1060 = vst [vmem:[%s5745_s8 + $0x460] sm:%s6008_s30] %v1059_v30  ;;  %v1063_v32 = vld [vmem:[%s5742_s7 + $0x1e60] sm:%s6008_s30] }
 0x15c   : > { %1062 = vst [vmem:[%s5745_s8 + $0x470] sm:%s6008_s30] %v1061_v31  ;;  %v1065_v33 = vld [vmem:[%s5742_s7 + $0x1ecc] sm:%s6008_s30] }
 0x15d   : > { %1064 = vst [vmem:[%s5745_s8 + $0x480] sm:%s6008_s30] %v1063_v32  ;;  %v1067_v34 = vld [vmem:[%s5742_s7 + $0x1f38] sm:%s6008_s30] }
 0x15e   : > { %1066 = vst [vmem:[%s5745_s8 + $0x490] sm:%s6008_s30] %v1065_v33  ;;  %v1069_v35 = vld [vmem:[%s5742_s7 + $0x1fa4] sm:%s6008_s30] }
 0x15f   : > { %1068 = vst [vmem:[%s5745_s8 + $0x4a0] sm:%s6008_s30] %v1067_v34  ;;  %v1071_v36 = vld [vmem:[%s5742_s7 + $0x2010] sm:%s6008_s30] }
 0x160   : > { %1070 = vst [vmem:[%s5745_s8 + $0x4b0] sm:%s6008_s30] %v1069_v35  ;;  %v1073_v37 = vld [vmem:[%s5742_s7 + $0x207c] sm:%s6008_s30] }
 0x161   : > { %1072 = vst [vmem:[%s5745_s8 + $0x4c0] sm:%s6008_s30] %v1071_v36  ;;  %v1075_v38 = vld [vmem:[%s5742_s7 + $0x20e8] sm:%s6008_s30] }
 0x162   : > { %1074 = vst [vmem:[%s5745_s8 + $0x4d0] sm:%s6008_s30] %v1073_v37  ;;  %v1077_v39 = vld [vmem:[%s5742_s7 + $0x2154] sm:%s6008_s30] }
 0x163   : > { %1076 = vst [vmem:[%s5745_s8 + $0x4e0] sm:%s6008_s30] %v1075_v38  ;;  %v1079_v40 = vld [vmem:[%s5742_s7 + $0x21c0] sm:%s6008_s30] }
 0x164   : > { %1078 = vst [vmem:[%s5745_s8 + $0x4f0] sm:%s6008_s30] %v1077_v39  ;;  %v1081_v41 = vld [vmem:[%s5742_s7 + $0x222c] sm:%s6008_s30] }
 0x165   : > { %1080 = vst [vmem:[%s5745_s8 + $0x500] sm:%s6008_s30] %v1079_v40  ;;  %v1083_v42 = vld [vmem:[%s5742_s7 + $0x2298] sm:%s6008_s30] }
 0x166   : > { %1082 = vst [vmem:[%s5745_s8 + $0x510] sm:%s6008_s30] %v1081_v41  ;;  %v1085_v43 = vld [vmem:[%s5742_s7 + $0x2304] sm:%s6008_s30] }
 0x167   : > { %1084 = vst [vmem:[%s5745_s8 + $0x520] sm:%s6008_s30] %v1083_v42  ;;  %v1087_v44 = vld [vmem:[%s5742_s7 + $0x2370] sm:%s6008_s30] }
 0x168   : > { %1086 = vst [vmem:[%s5745_s8 + $0x530] sm:%s6008_s30] %v1085_v43  ;;  %v1089_v45 = vld [vmem:[%s5742_s7 + $0x23dc] sm:%s6008_s30] }
 0x169   : > { %1088 = vst [vmem:[%s5745_s8 + $0x540] sm:%s6008_s30] %v1087_v44  ;;  %v1091_v46 = vld [vmem:[%s5742_s7 + $0x2448] sm:%s6008_s30] }
 0x16a   : > { %1090 = vst [vmem:[%s5745_s8 + $0x550] sm:%s6008_s30] %v1089_v45  ;;  %v1093_v47 = vld [vmem:[%s5742_s7 + $0x24b4] sm:%s6008_s30] }
 0x16b   : > { %1092 = vst [vmem:[%s5745_s8 + $0x560] sm:%s6008_s30] %v1091_v46  ;;  %v1095_v48 = vld [vmem:[%s5742_s7 + $0x2520] sm:%s6008_s30] }
 0x16c   : > { %1094 = vst [vmem:[%s5745_s8 + $0x570] sm:%s6008_s30] %v1093_v47  ;;  %v1097_v49 = vld [vmem:[%s5742_s7 + $0x258c] sm:%s6008_s30] }
 0x16d   : > { %1096 = vst [vmem:[%s5745_s8 + $0x580] sm:%s6008_s30] %v1095_v48  ;;  %v1099_v50 = vld [vmem:[%s5742_s7 + $0x25f8] sm:%s6008_s30] }
 0x16e   : > { %1098 = vst [vmem:[%s5745_s8 + $0x590] sm:%s6008_s30] %v1097_v49  ;;  %v1101_v51 = vld [vmem:[%s5742_s7 + $0x2664] sm:%s6008_s30] }
 0x16f   : > { %1100 = vst [vmem:[%s5745_s8 + $0x5a0] sm:%s6008_s30] %v1099_v50  ;;  %v1103_v52 = vld [vmem:[%s5742_s7 + $0x26d0] sm:%s6008_s30] }
 0x170   : > { %1102 = vst [vmem:[%s5745_s8 + $0x5b0] sm:%s6008_s30] %v1101_v51  ;;  %v1105_v53 = vld [vmem:[%s5742_s7 + $0x273c] sm:%s6008_s30] }
 0x171   : > { %1104 = vst [vmem:[%s5745_s8 + $0x5c0] sm:%s6008_s30] %v1103_v52  ;;  %v1107_v54 = vld [vmem:[%s5742_s7 + $0x27a8] sm:%s6008_s30] }
 0x172   : > { %1106 = vst [vmem:[%s5745_s8 + $0x5d0] sm:%s6008_s30] %v1105_v53  ;;  %v1109_v55 = vld [vmem:[%s5742_s7 + $0x2814] sm:%s6008_s30] }
 0x173   : > { %1108 = vst [vmem:[%s5745_s8 + $0x5e0] sm:%s6008_s30] %v1107_v54  ;;  %v1111_v56 = vld [vmem:[%s5742_s7 + $0x2880] sm:%s6008_s30] }
 0x174   : > { %1110 = vst [vmem:[%s5745_s8 + $0x5f0] sm:%s6008_s30] %v1109_v55  ;;  %v1113_v57 = vld [vmem:[%s5742_s7 + $0x28ec] sm:%s6008_s30] }
 0x175   : > { %1112 = vst [vmem:[%s5745_s8 + $0x600] sm:%s6008_s30] %v1111_v56  ;;  %v1115_v58 = vld [vmem:[%s5742_s7 + $0x2958] sm:%s6008_s30] }
 0x176   : > { %1114 = vst [vmem:[%s5745_s8 + $0x610] sm:%s6008_s30] %v1113_v57  ;;  %v1117_v59 = vld [vmem:[%s5742_s7 + $0x29c4] sm:%s6008_s30] }
 0x177   : > { %1116 = vst [vmem:[%s5745_s8 + $0x620] sm:%s6008_s30] %v1115_v58  ;;  %v1119_v60 = vld [vmem:[%s5742_s7 + $0x2a30] sm:%s6008_s30] }
 0x178   : > { %1118 = vst [vmem:[%s5745_s8 + $0x630] sm:%s6008_s30] %v1117_v59  ;;  %v1121_v61 = vld [vmem:[%s5742_s7 + $0x2a9c] sm:%s6008_s30] }
 0x179   : > { %1120 = vst [vmem:[%s5745_s8 + $0x640] sm:%s6008_s30] %v1119_v60  ;;  %v1123_v62 = vld [vmem:[%s5742_s7 + $0x2b08] sm:%s6008_s30] }
 0x17a   : > { %1122 = vst [vmem:[%s5745_s8 + $0x650] sm:%s6008_s30] %v1121_v61  ;;  %v1125_v63 = vld [vmem:[%s5742_s7 + $0x2b74] sm:%s6008_s30] }
 0x17b   : > { %1124 = vst [vmem:[%s5745_s8 + $0x660] sm:%s6008_s30] %v1123_v62  ;;  %v1127_v0 = vld [vmem:[%s5742_s7 + $0x2be0] sm:%s6008_s30] }
 0x17c   : > { %1126 = vst [vmem:[%s5745_s8 + $0x670] sm:%s6008_s30] %v1125_v63  ;;  %v1129_v1 = vld [vmem:[%s5742_s7 + $0x2c4c] sm:%s6008_s30] }
 0x17d   : > { %1128 = vst [vmem:[%s5745_s8 + $0x680] sm:%s6008_s30] %v1127_v0  ;;  %v1131_v2 = vld [vmem:[%s5742_s7 + $0x2cb8] sm:%s6008_s30] }
 0x17e   : > { %1130 = vst [vmem:[%s5745_s8 + $0x690] sm:%s6008_s30] %v1129_v1  ;;  %v1133_v3 = vld [vmem:[%s5742_s7 + $0x2d24] sm:%s6008_s30] }
 0x17f   : > { %1132 = vst [vmem:[%s5745_s8 + $0x6a0] sm:%s6008_s30] %v1131_v2 }
 0x180   : > { %1134 = vst [vmem:[%s5745_s8 + $0x6b0] sm:%s6008_s30] %v1133_v3 }
 0x181 PF: > { %p3741_p4 = scmp.ge.u32.totalorder %s5461_s11, 8 }
 0x182   : > { %s5383_s13 = smov (!%p3741_p4), 1  }
 0x183   : > { %203 = sbr.rel (%p3741_p4) target bundleno = 501 (0x1f5), region = 48  ;;  %s204_s6 = sshll.u32 (!%p3741_p4), %s5383_s13, %s5461_s11 }
 0x184   : > { %s6444_s7 = sadd.s32 (!%p3741_p4), 4294967295, %s204_s6 }
 0x188   : > { %v214_v4 = vld [vmem:[%s5459_s9] sm:%s6444_s7]  ;;  %v216_v5 = vld [vmem:[%s5459_s9 + $0x6c] sm:%s6444_s7] }
 0x189   : > { %215 = vst [vmem:[%s5463_s12] sm:%s6444_s7] %v214_v4  ;;  %v218_v6 = vld [vmem:[%s5459_s9 + $0xd8] sm:%s6444_s7] }
 0x18a   : > { %217 = vst [vmem:[%s5463_s12 + $0x10] sm:%s6444_s7] %v216_v5  ;;  %v220_v7 = vld [vmem:[%s5459_s9 + $0x144] sm:%s6444_s7] }
 0x18b   : > { %219 = vst [vmem:[%s5463_s12 + $0x20] sm:%s6444_s7] %v218_v6  ;;  %v222_v8 = vld [vmem:[%s5459_s9 + $0x1b0] sm:%s6444_s7] }
 0x18c   : > { %221 = vst [vmem:[%s5463_s12 + $0x30] sm:%s6444_s7] %v220_v7  ;;  %v224_v9 = vld [vmem:[%s5459_s9 + $0x21c] sm:%s6444_s7] }
 0x18d   : > { %223 = vst [vmem:[%s5463_s12 + $0x40] sm:%s6444_s7] %v222_v8  ;;  %v226_v10 = vld [vmem:[%s5459_s9 + $0x288] sm:%s6444_s7] }
 0x18e   : > { %225 = vst [vmem:[%s5463_s12 + $0x50] sm:%s6444_s7] %v224_v9  ;;  %v228_v11 = vld [vmem:[%s5459_s9 + $0x2f4] sm:%s6444_s7] }
 0x18f   : > { %227 = vst [vmem:[%s5463_s12 + $0x60] sm:%s6444_s7] %v226_v10  ;;  %v230_v12 = vld [vmem:[%s5459_s9 + $0x360] sm:%s6444_s7] }
 0x190   : > { %229 = vst [vmem:[%s5463_s12 + $0x70] sm:%s6444_s7] %v228_v11  ;;  %v232_v13 = vld [vmem:[%s5459_s9 + $0x3cc] sm:%s6444_s7] }
 0x191   : > { %231 = vst [vmem:[%s5463_s12 + $0x80] sm:%s6444_s7] %v230_v12  ;;  %v234_v14 = vld [vmem:[%s5459_s9 + $0x438] sm:%s6444_s7] }
 0x192   : > { %233 = vst [vmem:[%s5463_s12 + $0x90] sm:%s6444_s7] %v232_v13  ;;  %v236_v15 = vld [vmem:[%s5459_s9 + $0x4a4] sm:%s6444_s7] }
 0x193   : > { %235 = vst [vmem:[%s5463_s12 + $0xa0] sm:%s6444_s7] %v234_v14  ;;  %v238_v16 = vld [vmem:[%s5459_s9 + $0x510] sm:%s6444_s7] }
 0x194   : > { %237 = vst [vmem:[%s5463_s12 + $0xb0] sm:%s6444_s7] %v236_v15  ;;  %v240_v17 = vld [vmem:[%s5459_s9 + $0x57c] sm:%s6444_s7] }
 0x195   : > { %239 = vst [vmem:[%s5463_s12 + $0xc0] sm:%s6444_s7] %v238_v16  ;;  %v242_v18 = vld [vmem:[%s5459_s9 + $0x5e8] sm:%s6444_s7] }
 0x196   : > { %241 = vst [vmem:[%s5463_s12 + $0xd0] sm:%s6444_s7] %v240_v17  ;;  %v244_v19 = vld [vmem:[%s5459_s9 + $0x654] sm:%s6444_s7] }
 0x197   : > { %243 = vst [vmem:[%s5463_s12 + $0xe0] sm:%s6444_s7] %v242_v18  ;;  %v246_v20 = vld [vmem:[%s5459_s9 + $0x6c0] sm:%s6444_s7] }
 0x198   : > { %245 = vst [vmem:[%s5463_s12 + $0xf0] sm:%s6444_s7] %v244_v19  ;;  %v248_v21 = vld [vmem:[%s5459_s9 + $0x72c] sm:%s6444_s7] }
 0x199   : > { %247 = vst [vmem:[%s5463_s12 + $0x100] sm:%s6444_s7] %v246_v20  ;;  %v250_v22 = vld [vmem:[%s5459_s9 + $0x798] sm:%s6444_s7] }
 0x19a   : > { %249 = vst [vmem:[%s5463_s12 + $0x110] sm:%s6444_s7] %v248_v21  ;;  %v252_v23 = vld [vmem:[%s5459_s9 + $0x804] sm:%s6444_s7] }
 0x19b   : > { %251 = vst [vmem:[%s5463_s12 + $0x120] sm:%s6444_s7] %v250_v22  ;;  %v254_v24 = vld [vmem:[%s5459_s9 + $0x870] sm:%s6444_s7] }
 0x19c   : > { %253 = vst [vmem:[%s5463_s12 + $0x130] sm:%s6444_s7] %v252_v23  ;;  %v256_v25 = vld [vmem:[%s5459_s9 + $0x8dc] sm:%s6444_s7] }
 0x19d   : > { %255 = vst [vmem:[%s5463_s12 + $0x140] sm:%s6444_s7] %v254_v24  ;;  %v258_v26 = vld [vmem:[%s5459_s9 + $0x948] sm:%s6444_s7] }
 0x19e   : > { %257 = vst [vmem:[%s5463_s12 + $0x150] sm:%s6444_s7] %v256_v25  ;;  %v260_v27 = vld [vmem:[%s5459_s9 + $0x9b4] sm:%s6444_s7] }
 0x19f   : > { %259 = vst [vmem:[%s5463_s12 + $0x160] sm:%s6444_s7] %v258_v26  ;;  %v262_v28 = vld [vmem:[%s5459_s9 + $0xa20] sm:%s6444_s7] }
 0x1a0   : > { %261 = vst [vmem:[%s5463_s12 + $0x170] sm:%s6444_s7] %v260_v27  ;;  %v264_v29 = vld [vmem:[%s5459_s9 + $0xa8c] sm:%s6444_s7] }
 0x1a1   : > { %263 = vst [vmem:[%s5463_s12 + $0x180] sm:%s6444_s7] %v262_v28  ;;  %v266_v30 = vld [vmem:[%s5459_s9 + $0xaf8] sm:%s6444_s7] }
 0x1a2   : > { %265 = vst [vmem:[%s5463_s12 + $0x190] sm:%s6444_s7] %v264_v29  ;;  %v268_v31 = vld [vmem:[%s5459_s9 + $0xb64] sm:%s6444_s7] }
 0x1a3   : > { %267 = vst [vmem:[%s5463_s12 + $0x1a0] sm:%s6444_s7] %v266_v30  ;;  %v270_v32 = vld [vmem:[%s5459_s9 + $0xbd0] sm:%s6444_s7] }
 0x1a4   : > { %269 = vst [vmem:[%s5463_s12 + $0x1b0] sm:%s6444_s7] %v268_v31  ;;  %v272_v33 = vld [vmem:[%s5459_s9 + $0xc3c] sm:%s6444_s7] }
 0x1a5   : > { %271 = vst [vmem:[%s5463_s12 + $0x1c0] sm:%s6444_s7] %v270_v32  ;;  %v274_v34 = vld [vmem:[%s5459_s9 + $0xca8] sm:%s6444_s7] }
 0x1a6   : > { %273 = vst [vmem:[%s5463_s12 + $0x1d0] sm:%s6444_s7] %v272_v33  ;;  %v276_v35 = vld [vmem:[%s5459_s9 + $0xd14] sm:%s6444_s7] }
 0x1a7   : > { %275 = vst [vmem:[%s5463_s12 + $0x1e0] sm:%s6444_s7] %v274_v34  ;;  %v278_v36 = vld [vmem:[%s5459_s9 + $0xd80] sm:%s6444_s7] }
 0x1a8   : > { %277 = vst [vmem:[%s5463_s12 + $0x1f0] sm:%s6444_s7] %v276_v35  ;;  %v280_v37 = vld [vmem:[%s5459_s9 + $0xdec] sm:%s6444_s7] }
 0x1a9   : > { %279 = vst [vmem:[%s5463_s12 + $0x200] sm:%s6444_s7] %v278_v36  ;;  %v282_v38 = vld [vmem:[%s5459_s9 + $0xe58] sm:%s6444_s7] }
 0x1aa   : > { %281 = vst [vmem:[%s5463_s12 + $0x210] sm:%s6444_s7] %v280_v37  ;;  %v284_v39 = vld [vmem:[%s5459_s9 + $0xec4] sm:%s6444_s7] }
 0x1ab   : > { %283 = vst [vmem:[%s5463_s12 + $0x220] sm:%s6444_s7] %v282_v38  ;;  %v286_v40 = vld [vmem:[%s5459_s9 + $0xf30] sm:%s6444_s7] }
 0x1ac   : > { %285 = vst [vmem:[%s5463_s12 + $0x230] sm:%s6444_s7] %v284_v39  ;;  %v288_v41 = vld [vmem:[%s5459_s9 + $0xf9c] sm:%s6444_s7] }
 0x1ad   : > { %287 = vst [vmem:[%s5463_s12 + $0x240] sm:%s6444_s7] %v286_v40  ;;  %v290_v42 = vld [vmem:[%s5459_s9 + $0x1008] sm:%s6444_s7] }
 0x1ae   : > { %289 = vst [vmem:[%s5463_s12 + $0x250] sm:%s6444_s7] %v288_v41  ;;  %v292_v43 = vld [vmem:[%s5459_s9 + $0x1074] sm:%s6444_s7] }
 0x1af   : > { %291 = vst [vmem:[%s5463_s12 + $0x260] sm:%s6444_s7] %v290_v42  ;;  %v294_v44 = vld [vmem:[%s5459_s9 + $0x10e0] sm:%s6444_s7] }
 0x1b0   : > { %293 = vst [vmem:[%s5463_s12 + $0x270] sm:%s6444_s7] %v292_v43  ;;  %v296_v45 = vld [vmem:[%s5459_s9 + $0x114c] sm:%s6444_s7] }
 0x1b1   : > { %295 = vst [vmem:[%s5463_s12 + $0x280] sm:%s6444_s7] %v294_v44  ;;  %v298_v46 = vld [vmem:[%s5459_s9 + $0x11b8] sm:%s6444_s7] }
 0x1b2   : > { %297 = vst [vmem:[%s5463_s12 + $0x290] sm:%s6444_s7] %v296_v45  ;;  %v300_v47 = vld [vmem:[%s5459_s9 + $0x1224] sm:%s6444_s7] }
 0x1b3   : > { %299 = vst [vmem:[%s5463_s12 + $0x2a0] sm:%s6444_s7] %v298_v46  ;;  %v302_v48 = vld [vmem:[%s5459_s9 + $0x1290] sm:%s6444_s7] }
 0x1b4   : > { %301 = vst [vmem:[%s5463_s12 + $0x2b0] sm:%s6444_s7] %v300_v47  ;;  %v304_v49 = vld [vmem:[%s5459_s9 + $0x12fc] sm:%s6444_s7] }
 0x1b5   : > { %303 = vst [vmem:[%s5463_s12 + $0x2c0] sm:%s6444_s7] %v302_v48  ;;  %v306_v50 = vld [vmem:[%s5459_s9 + $0x1368] sm:%s6444_s7] }
 0x1b6   : > { %305 = vst [vmem:[%s5463_s12 + $0x2d0] sm:%s6444_s7] %v304_v49  ;;  %v308_v51 = vld [vmem:[%s5459_s9 + $0x13d4] sm:%s6444_s7] }
 0x1b7   : > { %307 = vst [vmem:[%s5463_s12 + $0x2e0] sm:%s6444_s7] %v306_v50  ;;  %v310_v52 = vld [vmem:[%s5459_s9 + $0x1440] sm:%s6444_s7] }
 0x1b8   : > { %309 = vst [vmem:[%s5463_s12 + $0x2f0] sm:%s6444_s7] %v308_v51  ;;  %v312_v53 = vld [vmem:[%s5459_s9 + $0x14ac] sm:%s6444_s7] }
 0x1b9   : > { %311 = vst [vmem:[%s5463_s12 + $0x300] sm:%s6444_s7] %v310_v52  ;;  %v314_v54 = vld [vmem:[%s5459_s9 + $0x1518] sm:%s6444_s7] }
 0x1ba   : > { %313 = vst [vmem:[%s5463_s12 + $0x310] sm:%s6444_s7] %v312_v53  ;;  %v316_v55 = vld [vmem:[%s5459_s9 + $0x1584] sm:%s6444_s7] }
 0x1bb   : > { %315 = vst [vmem:[%s5463_s12 + $0x320] sm:%s6444_s7] %v314_v54  ;;  %v318_v56 = vld [vmem:[%s5459_s9 + $0x15f0] sm:%s6444_s7] }
 0x1bc   : > { %317 = vst [vmem:[%s5463_s12 + $0x330] sm:%s6444_s7] %v316_v55  ;;  %v320_v57 = vld [vmem:[%s5459_s9 + $0x165c] sm:%s6444_s7] }
 0x1bd   : > { %319 = vst [vmem:[%s5463_s12 + $0x340] sm:%s6444_s7] %v318_v56  ;;  %v322_v58 = vld [vmem:[%s5459_s9 + $0x16c8] sm:%s6444_s7] }
 0x1be   : > { %321 = vst [vmem:[%s5463_s12 + $0x350] sm:%s6444_s7] %v320_v57  ;;  %v324_v59 = vld [vmem:[%s5459_s9 + $0x1734] sm:%s6444_s7] }
 0x1bf   : > { %323 = vst [vmem:[%s5463_s12 + $0x360] sm:%s6444_s7] %v322_v58  ;;  %v326_v60 = vld [vmem:[%s5459_s9 + $0x17a0] sm:%s6444_s7] }
 0x1c0   : > { %325 = vst [vmem:[%s5463_s12 + $0x370] sm:%s6444_s7] %v324_v59  ;;  %v328_v61 = vld [vmem:[%s5459_s9 + $0x180c] sm:%s6444_s7] }
 0x1c1   : > { %327 = vst [vmem:[%s5463_s12 + $0x380] sm:%s6444_s7] %v326_v60  ;;  %v330_v62 = vld [vmem:[%s5459_s9 + $0x1878] sm:%s6444_s7] }
 0x1c2   : > { %329 = vst [vmem:[%s5463_s12 + $0x390] sm:%s6444_s7] %v328_v61  ;;  %v332_v63 = vld [vmem:[%s5459_s9 + $0x18e4] sm:%s6444_s7] }
 0x1c3   : > { %331 = vst [vmem:[%s5463_s12 + $0x3a0] sm:%s6444_s7] %v330_v62  ;;  %v334_v0 = vld [vmem:[%s5459_s9 + $0x1950] sm:%s6444_s7] }
 0x1c4   : > { %333 = vst [vmem:[%s5463_s12 + $0x3b0] sm:%s6444_s7] %v332_v63  ;;  %v336_v1 = vld [vmem:[%s5459_s9 + $0x19bc] sm:%s6444_s7] }
 0x1c5   : > { %335 = vst [vmem:[%s5463_s12 + $0x3c0] sm:%s6444_s7] %v334_v0  ;;  %v338_v2 = vld [vmem:[%s5459_s9 + $0x1a28] sm:%s6444_s7] }
 0x1c6   : > { %337 = vst [vmem:[%s5463_s12 + $0x3d0] sm:%s6444_s7] %v336_v1  ;;  %v340_v3 = vld [vmem:[%s5459_s9 + $0x1a94] sm:%s6444_s7] }
 0x1c7   : > { %339 = vst [vmem:[%s5463_s12 + $0x3e0] sm:%s6444_s7] %v338_v2  ;;  %v342_v4 = vld [vmem:[%s5459_s9 + $0x1b00] sm:%s6444_s7] }
 0x1c8   : > { %341 = vst [vmem:[%s5463_s12 + $0x3f0] sm:%s6444_s7] %v340_v3  ;;  %v344_v5 = vld [vmem:[%s5459_s9 + $0x1b6c] sm:%s6444_s7] }
 0x1c9   : > { %343 = vst [vmem:[%s5463_s12 + $0x400] sm:%s6444_s7] %v342_v4  ;;  %v346_v6 = vld [vmem:[%s5459_s9 + $0x1bd8] sm:%s6444_s7] }
 0x1ca   : > { %345 = vst [vmem:[%s5463_s12 + $0x410] sm:%s6444_s7] %v344_v5  ;;  %v348_v7 = vld [vmem:[%s5459_s9 + $0x1c44] sm:%s6444_s7] }
 0x1cb   : > { %347 = vst [vmem:[%s5463_s12 + $0x420] sm:%s6444_s7] %v346_v6  ;;  %v350_v8 = vld [vmem:[%s5459_s9 + $0x1cb0] sm:%s6444_s7] }
 0x1cc   : > { %349 = vst [vmem:[%s5463_s12 + $0x430] sm:%s6444_s7] %v348_v7  ;;  %v352_v9 = vld [vmem:[%s5459_s9 + $0x1d1c] sm:%s6444_s7] }
 0x1cd   : > { %351 = vst [vmem:[%s5463_s12 + $0x440] sm:%s6444_s7] %v350_v8  ;;  %v354_v10 = vld [vmem:[%s5459_s9 + $0x1d88] sm:%s6444_s7] }
 0x1ce   : > { %353 = vst [vmem:[%s5463_s12 + $0x450] sm:%s6444_s7] %v352_v9  ;;  %v356_v11 = vld [vmem:[%s5459_s9 + $0x1df4] sm:%s6444_s7] }
 0x1cf   : > { %355 = vst [vmem:[%s5463_s12 + $0x460] sm:%s6444_s7] %v354_v10  ;;  %v358_v12 = vld [vmem:[%s5459_s9 + $0x1e60] sm:%s6444_s7] }
 0x1d0   : > { %357 = vst [vmem:[%s5463_s12 + $0x470] sm:%s6444_s7] %v356_v11  ;;  %v360_v13 = vld [vmem:[%s5459_s9 + $0x1ecc] sm:%s6444_s7] }
 0x1d1   : > { %359 = vst [vmem:[%s5463_s12 + $0x480] sm:%s6444_s7] %v358_v12  ;;  %v362_v14 = vld [vmem:[%s5459_s9 + $0x1f38] sm:%s6444_s7] }
 0x1d2   : > { %361 = vst [vmem:[%s5463_s12 + $0x490] sm:%s6444_s7] %v360_v13  ;;  %v364_v15 = vld [vmem:[%s5459_s9 + $0x1fa4] sm:%s6444_s7] }
 0x1d3   : > { %363 = vst [vmem:[%s5463_s12 + $0x4a0] sm:%s6444_s7] %v362_v14  ;;  %v366_v16 = vld [vmem:[%s5459_s9 + $0x2010] sm:%s6444_s7] }
 0x1d4   : > { %365 = vst [vmem:[%s5463_s12 + $0x4b0] sm:%s6444_s7] %v364_v15  ;;  %v368_v17 = vld [vmem:[%s5459_s9 + $0x207c] sm:%s6444_s7] }
 0x1d5   : > { %367 = vst [vmem:[%s5463_s12 + $0x4c0] sm:%s6444_s7] %v366_v16  ;;  %v370_v18 = vld [vmem:[%s5459_s9 + $0x20e8] sm:%s6444_s7] }
 0x1d6   : > { %369 = vst [vmem:[%s5463_s12 + $0x4d0] sm:%s6444_s7] %v368_v17  ;;  %v372_v19 = vld [vmem:[%s5459_s9 + $0x2154] sm:%s6444_s7] }
 0x1d7   : > { %371 = vst [vmem:[%s5463_s12 + $0x4e0] sm:%s6444_s7] %v370_v18  ;;  %v374_v20 = vld [vmem:[%s5459_s9 + $0x21c0] sm:%s6444_s7] }
 0x1d8   : > { %373 = vst [vmem:[%s5463_s12 + $0x4f0] sm:%s6444_s7] %v372_v19  ;;  %v376_v21 = vld [vmem:[%s5459_s9 + $0x222c] sm:%s6444_s7] }
 0x1d9   : > { %375 = vst [vmem:[%s5463_s12 + $0x500] sm:%s6444_s7] %v374_v20  ;;  %v378_v22 = vld [vmem:[%s5459_s9 + $0x2298] sm:%s6444_s7] }
 0x1da   : > { %377 = vst [vmem:[%s5463_s12 + $0x510] sm:%s6444_s7] %v376_v21  ;;  %v380_v23 = vld [vmem:[%s5459_s9 + $0x2304] sm:%s6444_s7] }
 0x1db   : > { %379 = vst [vmem:[%s5463_s12 + $0x520] sm:%s6444_s7] %v378_v22  ;;  %v382_v24 = vld [vmem:[%s5459_s9 + $0x2370] sm:%s6444_s7] }
 0x1dc   : > { %381 = vst [vmem:[%s5463_s12 + $0x530] sm:%s6444_s7] %v380_v23  ;;  %v384_v25 = vld [vmem:[%s5459_s9 + $0x23dc] sm:%s6444_s7] }
 0x1dd   : > { %383 = vst [vmem:[%s5463_s12 + $0x540] sm:%s6444_s7] %v382_v24  ;;  %v386_v26 = vld [vmem:[%s5459_s9 + $0x2448] sm:%s6444_s7] }
 0x1de   : > { %385 = vst [vmem:[%s5463_s12 + $0x550] sm:%s6444_s7] %v384_v25  ;;  %v388_v27 = vld [vmem:[%s5459_s9 + $0x24b4] sm:%s6444_s7] }
 0x1df   : > { %387 = vst [vmem:[%s5463_s12 + $0x560] sm:%s6444_s7] %v386_v26  ;;  %v390_v28 = vld [vmem:[%s5459_s9 + $0x2520] sm:%s6444_s7] }
 0x1e0   : > { %389 = vst [vmem:[%s5463_s12 + $0x570] sm:%s6444_s7] %v388_v27  ;;  %v392_v29 = vld [vmem:[%s5459_s9 + $0x258c] sm:%s6444_s7] }
 0x1e1   : > { %391 = vst [vmem:[%s5463_s12 + $0x580] sm:%s6444_s7] %v390_v28  ;;  %v394_v30 = vld [vmem:[%s5459_s9 + $0x25f8] sm:%s6444_s7] }
 0x1e2   : > { %393 = vst [vmem:[%s5463_s12 + $0x590] sm:%s6444_s7] %v392_v29  ;;  %v396_v31 = vld [vmem:[%s5459_s9 + $0x2664] sm:%s6444_s7] }
 0x1e3   : > { %395 = vst [vmem:[%s5463_s12 + $0x5a0] sm:%s6444_s7] %v394_v30  ;;  %v398_v32 = vld [vmem:[%s5459_s9 + $0x26d0] sm:%s6444_s7] }
 0x1e4   : > { %397 = vst [vmem:[%s5463_s12 + $0x5b0] sm:%s6444_s7] %v396_v31  ;;  %v400_v33 = vld [vmem:[%s5459_s9 + $0x273c] sm:%s6444_s7] }
 0x1e5   : > { %399 = vst [vmem:[%s5463_s12 + $0x5c0] sm:%s6444_s7] %v398_v32  ;;  %v402_v34 = vld [vmem:[%s5459_s9 + $0x27a8] sm:%s6444_s7] }
 0x1e6   : > { %401 = vst [vmem:[%s5463_s12 + $0x5d0] sm:%s6444_s7] %v400_v33  ;;  %v404_v35 = vld [vmem:[%s5459_s9 + $0x2814] sm:%s6444_s7] }
 0x1e7   : > { %403 = vst [vmem:[%s5463_s12 + $0x5e0] sm:%s6444_s7] %v402_v34  ;;  %v406_v36 = vld [vmem:[%s5459_s9 + $0x2880] sm:%s6444_s7] }
 0x1e8   : > { %405 = vst [vmem:[%s5463_s12 + $0x5f0] sm:%s6444_s7] %v404_v35  ;;  %v408_v37 = vld [vmem:[%s5459_s9 + $0x28ec] sm:%s6444_s7] }
 0x1e9   : > { %407 = vst [vmem:[%s5463_s12 + $0x600] sm:%s6444_s7] %v406_v36  ;;  %v410_v38 = vld [vmem:[%s5459_s9 + $0x2958] sm:%s6444_s7] }
 0x1ea   : > { %409 = vst [vmem:[%s5463_s12 + $0x610] sm:%s6444_s7] %v408_v37  ;;  %v412_v39 = vld [vmem:[%s5459_s9 + $0x29c4] sm:%s6444_s7] }
 0x1eb   : > { %411 = vst [vmem:[%s5463_s12 + $0x620] sm:%s6444_s7] %v410_v38  ;;  %v414_v40 = vld [vmem:[%s5459_s9 + $0x2a30] sm:%s6444_s7] }
 0x1ec   : > { %413 = vst [vmem:[%s5463_s12 + $0x630] sm:%s6444_s7] %v412_v39  ;;  %v416_v41 = vld [vmem:[%s5459_s9 + $0x2a9c] sm:%s6444_s7] }
 0x1ed   : > { %415 = vst [vmem:[%s5463_s12 + $0x640] sm:%s6444_s7] %v414_v40  ;;  %v418_v42 = vld [vmem:[%s5459_s9 + $0x2b08] sm:%s6444_s7] }
 0x1ee   : > { %417 = vst [vmem:[%s5463_s12 + $0x650] sm:%s6444_s7] %v416_v41  ;;  %v420_v43 = vld [vmem:[%s5459_s9 + $0x2b74] sm:%s6444_s7] }
 0x1ef   : > { %419 = vst [vmem:[%s5463_s12 + $0x660] sm:%s6444_s7] %v418_v42  ;;  %v422_v44 = vld [vmem:[%s5459_s9 + $0x2be0] sm:%s6444_s7] }
 0x1f0   : > { %421 = vst [vmem:[%s5463_s12 + $0x670] sm:%s6444_s7] %v420_v43  ;;  %v424_v45 = vld [vmem:[%s5459_s9 + $0x2c4c] sm:%s6444_s7] }
 0x1f1   : > { %423 = vst [vmem:[%s5463_s12 + $0x680] sm:%s6444_s7] %v422_v44  ;;  %v426_v46 = vld [vmem:[%s5459_s9 + $0x2cb8] sm:%s6444_s7] }
 0x1f2   : > { %425 = vst [vmem:[%s5463_s12 + $0x690] sm:%s6444_s7] %v424_v45  ;;  %v428_v47 = vld [vmem:[%s5459_s9 + $0x2d24] sm:%s6444_s7] }
 0x1f3   : > { %427 = vst [vmem:[%s5463_s12 + $0x6a0] sm:%s6444_s7] %v426_v46 }
 0x1f4   : > { %429 = vst [vmem:[%s5463_s12 + $0x6b0] sm:%s6444_s7] %v428_v47 }
 0x1f5 PF: > { %p3743_p6 = scmp.ge.s32.totalorder %s5284_s20, 1  ;;  %p1137_p7 = scmp.lt.s32.totalorder %s5284_s20, 8 }
 0x1f7   : > { %p1138_p8 = pnand %p3743_p6, %p1137_p7 }
 0x1f8   : > { %s1144_s11 = sand.u32 (!%p1138_p8), 1, %s5276_s18  }
 0x1f9   : > { %1141 = sbr.rel (%p1138_p8) target bundleno = 1065 (0x429), region = 88  ;;  %s3744_s30 = sshll.u32 (!%p1138_p8), %s1144_s11, 7 }
 0x1fa   : > { %s4941_s8 = smul.u32 (!%p1138_p8), 1728, %s1144_s11  ;;  %s7587_s18 = scalar_lea.vmem (!%p1138_p8), [#allocation3], %s3744_s30  }
 0x1fc   : > { %s6883_s10 = scalar_lea.vmem (!%p1138_p8), [#allocation2], %s4941_s8 }
 0x1fe   : > { %v3915_v48 = vld [vmem:[%s6883_s10 + $0xe0] sm:$0xf]  ;;  %v4749_v49 = vld [vmem:[%s6883_s10 + $0xec] sm:$0xf0]  ;;  %vm2587_vm0 = vcmask 785408   ;;  %s4674_s11 = sshll.u32 (%p5448_p5), %s5433_s21, 2 }
 0x1ff   : > { %v4043_v50 = vld [vmem:[%s6883_s10 + $0x1e0] sm:$0xf]  ;;  %v3916_v51 = vor.u32 %v4749_v49, %v3915_v48  ;;  %v4781_v52 = vld [vmem:[%s6883_s10 + $0x1ec] sm:$0xf0]  ;;  %s3246_s13 = ssub.s32 (%p5448_p5), 27, %s4674_s11 }
 0x200   : > { %v4171_v53 = vld [vmem:[%s6883_s10 + $0x2e0] sm:$0xf]  ;;  %v4813_v54 = vld [vmem:[%s6883_s10 + $0x2ec] sm:$0xf0]  ;;  %v4044_v55 = vor.u32 %v4781_v52, %v4043_v50  ;;  %p3247_p9 = scmp.lt.s32.totalorder (%p5448_p5), %s3246_s13, 4 }
 0x201   : > { %v4172_v56 = vor.u32 %v4813_v54, %v4171_v53  ;;  %v4299_v57 = vld [vmem:[%s6883_s10 + $0x3e0] sm:$0xf]  ;;  %v4845_v58 = vld [vmem:[%s6883_s10 + $0x3ec] sm:$0xf0]  ;;  %2594 = vmatpush.bf16.msra.mxu0 %v3916_v51 }
 0x202   : > { %v3899_v59 = vld [vmem:[%s6883_s10 + $0xc0] sm:$0xf]  ;;  %v4300_v60 = vor.u32 %v4845_v58, %v4299_v57  ;;  %v4745_v61 = vld [vmem:[%s6883_s10 + $0xcc] sm:$0xf0]  ;;  %2613 = vmatpush.bf16.msra.mxu1 %v4044_v55 }
 0x203   : > { %v4027_v62 = vld [vmem:[%s6883_s10 + $0x1c0] sm:$0xf]  ;;  %v4777_v63 = vld [vmem:[%s6883_s10 + $0x1cc] sm:$0xf0]  ;;  %2632 = vmatpush.bf16.msra.mxu2 %v4172_v56  ;;  %v3900_v0 = vor.u32 %v4745_v61, %v3899_v59 }
 0x204   : > { %v4028_v1 = vor.u32 %v4777_v63, %v4027_v62  ;;  %v4155_v2 = vld [vmem:[%s6883_s10 + $0x2c0] sm:$0xf]  ;;  %v4809_v3 = vld [vmem:[%s6883_s10 + $0x2cc] sm:$0xf0]  ;;  %2651 = vmatpush.bf16.msra.mxu3 %v4300_v60 }
 0x205   : > { %v4283_v4 = vld [vmem:[%s6883_s10 + $0x3c0] sm:$0xf]  ;;  %v4156_v5 = vor.u32 %v4809_v3, %v4155_v2  ;;  %v4841_v6 = vld [vmem:[%s6883_s10 + $0x3cc] sm:$0xf0]  ;;  %2595 = vmatpush.bf16.msra.mxu0 %v3900_v0 }
 0x206   : > { %v3883_v7 = vld [vmem:[%s6883_s10 + $0xa0] sm:$0xf]  ;;  %v4741_v8 = vld [vmem:[%s6883_s10 + $0xac] sm:$0xf0]  ;;  %v4284_v9 = vor.u32 %v4841_v6, %v4283_v4  ;;  %2614 = vmatpush.bf16.msra.mxu1 %v4028_v1 }
 0x207   : > { %v4011_v10 = vld [vmem:[%s6883_s10 + $0x1a0] sm:$0xf]  ;;  %v4773_v11 = vld [vmem:[%s6883_s10 + $0x1ac] sm:$0xf0]  ;;  %v3884_v13 = vor.u32 %v4741_v8, %v3883_v7  ;;  %2633 = vmatpush.bf16.msra.mxu2 %v4156_v5 }
 0x208   : > { %v4139_v12 = vld [vmem:[%s6883_s10 + $0x2a0] sm:$0xf]  ;;  %v4805_v14 = vld [vmem:[%s6883_s10 + $0x2ac] sm:$0xf0]  ;;  %v4012_v17 = vor.u32 %v4773_v11, %v4011_v10  ;;  %2652 = vmatpush.bf16.msra.mxu3 %v4284_v9 }
 0x209   : > { %v4267_v15 = vld [vmem:[%s6883_s10 + $0x3a0] sm:$0xf]  ;;  %v4837_v16 = vld [vmem:[%s6883_s10 + $0x3ac] sm:$0xf0]  ;;  %v4140_v18 = vor.u32 %v4805_v14, %v4139_v12  ;;  %2596 = vmatpush.bf16.msra.mxu0 %v3884_v13  ;;  %v4708_v13 = vld [vmem:[%s7994_s0 + $0x18] sm:$0xf0] }
 0x20a   : > { %v3867_v19 = vld [vmem:[%s6883_s10 + $0x80] sm:$0xf]  ;;  %v4737_v20 = vld [vmem:[%s6883_s10 + $0x8c] sm:$0xf0]  ;;  %v4268_v22 = vor.u32 %v4837_v16, %v4267_v15  ;;  %2615 = vmatpush.bf16.msra.mxu1 %v4012_v17  ;;  %v4705_v14 = vld [vmem:[%s7994_s0 + $0x4] sm:$0xf] }
 0x20b   : > { %v3995_v21 = vld [vmem:[%s6883_s10 + $0x180] sm:$0xf]  ;;  %v4769_v23 = vld [vmem:[%s6883_s10 + $0x18c] sm:$0xf0]  ;;  %v3868_v28 = vor.u32 %v4737_v20, %v3867_v19  ;;  %2634 = vmatpush.bf16.msra.mxu2 %v4140_v18  ;;  %v3755_v19 = vld [vmem:[%s7994_s0 + $0x8] sm:$0xf] }
 0x20c   : > { %v4123_v24 = vld [vmem:[%s6883_s10 + $0x280] sm:$0xf]  ;;  %v4801_v25 = vld [vmem:[%s6883_s10 + $0x28c] sm:$0xf0]  ;;  %v3996_v29 = vor.u32 %v4769_v23, %v3995_v21  ;;  %2653 = vmatpush.bf16.msra.mxu3 %v4268_v22 }
 0x20d   : > { %v4251_v26 = vld [vmem:[%s6883_s10 + $0x380] sm:$0xf]  ;;  %v4833_v27 = vld [vmem:[%s6883_s10 + $0x38c] sm:$0xf0]  ;;  %v4124_v30 = vor.u32 %v4801_v25, %v4123_v24  ;;  %2597 = vmatpush.bf16.msra.mxu0 %v3868_v28  ;;  %v4709_v24 = vld [vmem:[%s7994_s0 + $0x20] sm:$0xf0] }
 0x20e   : > { %v3851_v31 = vld [vmem:[%s6883_s10 + $0x60] sm:$0xf]  ;;  %v4733_v32 = vld [vmem:[%s6883_s10 + $0x6c] sm:$0xf0]  ;;  %v4252_v34 = vor.u32 %v4833_v27, %v4251_v26  ;;  %2616 = vmatpush.bf16.msra.mxu1 %v3996_v29  ;;  %v4706_v25 = vld [vmem:[%s7994_s0 + $0xc] sm:$0xf] }
 0x20f   : > { %v3979_v33 = vld [vmem:[%s6883_s10 + $0x160] sm:$0xf]  ;;  %v4765_v35 = vld [vmem:[%s6883_s10 + $0x16c] sm:$0xf0]  ;;  %v3852_v40 = vor.u32 %v4733_v32, %v3851_v31  ;;  %2635 = vmatpush.bf16.msra.mxu2 %v4124_v30  ;;  %v3757_v26 = vld [vmem:[%s7994_s0 + $0x24] sm:$0xf0] }
 0x210   : > { %v4107_v36 = vld [vmem:[%s6883_s10 + $0x260] sm:$0xf]  ;;  %v4797_v37 = vld [vmem:[%s6883_s10 + $0x26c] sm:$0xf0]  ;;  %v3980_v41 = vor.u32 %v4765_v35, %v3979_v33  ;;  %2654 = vmatpush.bf16.msra.mxu3 %v4252_v34  ;;  %v4747_v31 = vld [vmem:[%s6883_s10 + $0xe4] sm:$0xf] }
 0x211   : > { %v4235_v38 = vld [vmem:[%s6883_s10 + $0x360] sm:$0xf]  ;;  %v4829_v39 = vld [vmem:[%s6883_s10 + $0x36c] sm:$0xf0]  ;;  %v4108_v42 = vor.u32 %v4797_v37, %v4107_v36  ;;  %2598 = vmatpush.bf16.msra.mxu0 %v3852_v40  ;;  %v3917_v34 = vld [vmem:[%s6883_s10 + $0xf0] sm:$0xf0] }
 0x212   : > { %v3835_v43 = vld [vmem:[%s6883_s10 + $0x40] sm:$0xf]  ;;  %v4729_v44 = vld [vmem:[%s6883_s10 + $0x4c] sm:$0xf0]  ;;  %v4236_v46 = vor.u32 %v4829_v39, %v4235_v38  ;;  %2617 = vmatpush.bf16.msra.mxu1 %v3980_v41  ;;  %v6987_v38 = vor.u32 %v4709_v24, %v3755_v19  ;;  %v6991_v41 = vor.u32 %v4706_v25, %v3757_v26  ;;  %v1414_v25 = vld [vmem:[%s7996_s2 + $0x8] sm:$0xff] }
 0x213   : > { %v3963_v45 = vld [vmem:[%s6883_s10 + $0x140] sm:$0xf]  ;;  %v4761_v47 = vld [vmem:[%s6883_s10 + $0x14c] sm:$0xf0]  ;;  %v3836_v52 = vor.u32 %v4729_v44, %v3835_v43  ;;  %2636 = vmatpush.bf16.msra.mxu2 %v4108_v42  ;;  %v3920_v43 = vor.u32 %v4747_v31, %v3917_v34 }
 0x214   : > { %v4091_v48 = vld [vmem:[%s6883_s10 + $0x240] sm:$0xf]  ;;  %v4793_v49 = vld [vmem:[%s6883_s10 + $0x24c] sm:$0xf0]  ;;  %v3964_v53 = vor.u32 %v4761_v47, %v3963_v45  ;;  %2655 = vmatpush.bf16.msra.mxu3 %v4236_v46  ;;  %v4743_v46 = vld [vmem:[%s6883_s10 + $0xc4] sm:$0xf] }
 0x215   : > { %v4219_v50 = vld [vmem:[%s6883_s10 + $0x340] sm:$0xf]  ;;  %v4825_v51 = vld [vmem:[%s6883_s10 + $0x34c] sm:$0xf0]  ;;  %v4092_v54 = vor.u32 %v4793_v49, %v4091_v48  ;;  %2599 = vmatpush.bf16.msra.mxu0 %v3836_v52  ;;  %v3901_v49 = vld [vmem:[%s6883_s10 + $0xd0] sm:$0xf0] }
 0x216   : > { %v3819_v55 = vld [vmem:[%s6883_s10 + $0x20] sm:$0xf]  ;;  %v4725_v56 = vld [vmem:[%s6883_s10 + $0x2c] sm:$0xf0]  ;;  %v4220_v58 = vor.u32 %v4825_v51, %v4219_v50  ;;  %2618 = vmatpush.bf16.msra.mxu1 %v3964_v53 }
 0x217   : > { %v3947_v57 = vld [vmem:[%s6883_s10 + $0x120] sm:$0xf]  ;;  %v4757_v59 = vld [vmem:[%s6883_s10 + $0x12c] sm:$0xf0]  ;;  %v3820_v1 = vor.u32 %v4725_v56, %v3819_v55  ;;  %2637 = vmatpush.bf16.msra.mxu2 %v4092_v54  ;;  %v3904_v56 = vor.u32 %v4743_v46, %v3901_v49 }
 0x218   : > { %v4075_v60 = vld [vmem:[%s6883_s10 + $0x220] sm:$0xf]  ;;  %v4789_v61 = vld [vmem:[%s6883_s10 + $0x22c] sm:$0xf0]  ;;  %v3948_v5 = vor.u32 %v4757_v59, %v3947_v57  ;;  %2656 = vmatpush.bf16.msra.mxu3 %v4220_v58  ;;  %v4739_v59 = vld [vmem:[%s6883_s10 + $0xa4] sm:$0xf] }
 0x219   : > { %v4203_v62 = vld [vmem:[%s6883_s10 + $0x320] sm:$0xf]  ;;  %v4821_v63 = vld [vmem:[%s6883_s10 + $0x32c] sm:$0xf0]  ;;  %v4076_v6 = vor.u32 %v4789_v61, %v4075_v60  ;;  %2600 = vmatpush.bf16.msra.mxu0 %v3820_v1 }
 0x21a   : > { %v3803_v0 = vld [vmem:[%s6883_s10] sm:$0xf]  ;;  %v4721_v2 = vld [vmem:[%s6883_s10 + $0xc] sm:$0xf0]  ;;  %v4204_v10 = vor.u32 %v4821_v63, %v4203_v62  ;;  %2619 = vmatpush.bf16.msra.mxu1 %v3948_v5  ;;  %v3885_v62 = vld [vmem:[%s6883_s10 + $0xb0] sm:$0xf0] }
 0x21b   : > { %v3931_v3 = vld [vmem:[%s6883_s10 + $0x100] sm:$0xf]  ;;  %v4753_v4 = vld [vmem:[%s6883_s10 + $0x10c] sm:$0xf0]  ;;  %v3804_v18 = vor.u32 %v4721_v2, %v3803_v0  ;;  %2638 = vmatpush.bf16.msra.mxu2 %v4076_v6  ;;  %v5384_v63 = vmov 0  }
 0x21c   : > { %v4059_v7 = vld [vmem:[%s6883_s10 + $0x200] sm:$0xf]  ;;  %v4785_v8 = vld [vmem:[%s6883_s10 + $0x20c] sm:$0xf0]  ;;  %v3932_v22 = vor.u32 %v4753_v4, %v3931_v3  ;;  %2657 = vmatpush.bf16.msra.mxu3 %v4204_v10  ;;  %5163 = vset.pattern.permute.xlu0 %v5384_v63  ;;  %v3775_v10 = vld [vmem:[%s7994_s0 + $0x38] sm:$0xf] }
 0x21d   : > { %v4187_v9 = vld [vmem:[%s6883_s10 + $0x300] sm:$0xf]  ;;  %v4817_v11 = vld [vmem:[%s6883_s10 + $0x30c] sm:$0xf0]  ;;  %v4060_v23 = vor.u32 %v4785_v8, %v4059_v7  ;;  %2601 = vmatpush.bf16.msra.mxu0 %v3804_v18  ;;  %5164 = vset.pattern.permute.xlu1 %v5384_v63  ;;  %v4735_v7 = vld [vmem:[%s6883_s10 + $0x84] sm:$0xf]  ;;  %v3888_v8 = vor.u32 %v4739_v59, %v3885_v62 }
 0x21e   : > { %v3747_v12 = vld [vmem:[%s7994_s0] sm:$0xf]  ;;  %v4933_v17 = vld [vmem:[%s6883_s10 + $0x6ac] sm:$0xf0]  ;;  %v4188_v27 = vor.u32 %v4817_v11, %v4187_v9  ;;  %2620 = vmatpush.bf16.msra.mxu1 %v3932_v22  ;;  %5165 = vset.pattern.permute.xlu2 %v5384_v63  ;;  %v3869_v9 = vld [vmem:[%s6883_s10 + $0x90] sm:$0xf0] }
 0x21f   : > { %v3749_v15 = vld [vmem:[%s7994_s0 + $0x1c] sm:$0xf0]  ;;  %v4909_v21 = vld [vmem:[%s6883_s10 + $0x5ec] sm:$0xf0]  ;;  %v6980_v32 = vor.u32 %v4708_v13, %v3747_v12  ;;  %2639 = vmatpush.bf16.msra.mxu2 %v4060_v23  ;;  %v4715_v11 = vld [vmem:[%s7994_s0 + $0x50] sm:$0xf0] }
 0x220   : > { %v4651_v16 = vld [vmem:[%s6883_s10 + $0x6a0] sm:$0xf]  ;;  %v4877_v30 = vld [vmem:[%s6883_s10 + $0x4ec] sm:$0xf0]  ;;  %v6985_v37 = vor.u32 %v4705_v14, %v3749_v15  ;;  %2658 = vmatpush.bf16.msra.mxu3 %v4188_v27  ;;  %v4712_v14 = vld [vmem:[%s7994_s0 + $0x3c] sm:$0xf]  ;;  %v3872_v27 = vor.u32 %v4735_v7, %v3869_v9 }
 0x221   : > { %v4555_v20 = vld [vmem:[%s6883_s10 + $0x5e0] sm:$0xf]  ;;  %v4652_v28 = vor.u32 %v4933_v17, %v4651_v16  ;;  %v4929_v36 = vld [vmem:[%s6883_s10 + $0x68c] sm:$0xf0]  ;;  %2602 = vmatmul.bf16.vlgmr.msra.gmra.mxu0 %v6980_v32  ;;  %v3777_v15 = vld [vmem:[%s7994_s0 + $0x54] sm:$0xf0] }
 0x222   : > { %v4427_v29 = vld [vmem:[%s6883_s10 + $0x4e0] sm:$0xf]  ;;  %v4556_v33 = vor.u32 %v4909_v21, %v4555_v20  ;;  %v4905_v40 = vld [vmem:[%s6883_s10 + $0x5cc] sm:$0xf0]  ;;  %2621 = vmatmul.bf16.vlgmr.msra.gmra.mxu1 %v6985_v37  ;;  %2640 = vmatmul.bf16.vlgmr.msra.gmra.mxu2 %v6987_v38  ;;  %v4716_v17 = vld [vmem:[%s7994_s0 + $0x58] sm:$0xf0] }
 0x223   : > { %v4635_v35 = vld [vmem:[%s6883_s10 + $0x680] sm:$0xf]  ;;  %v4428_v42 = vor.u32 %v4877_v30, %v4427_v29  ;;  %2710 = vmatpush.bf16.msrb.mxu2 %v4652_v28  ;;  %v4873_v45 = vld [vmem:[%s6883_s10 + $0x4cc] sm:$0xf0]  ;;  %2659 = vmatmul.bf16.vlgmr.msra.gmra.mxu3 %v6991_v41  ;;  %v4713_v20 = vld [vmem:[%s7994_s0 + $0x44] sm:$0xf] }
 0x224   : > { %v4539_v39 = vld [vmem:[%s6883_s10 + $0x5c0] sm:$0xf]  ;;  %v4636_v47 = vor.u32 %v4929_v36, %v4635_v35  ;;  %2689 = vmatpush.bf16.msrb.mxu1 %v4556_v33  ;;  %v4925_v51 = vld [vmem:[%s6883_s10 + $0x66c] sm:$0xf0]  ;;  %2727 = vmatpush.bf16.msrb.mxu3 %v3920_v43  ;;  %v4731_v30 = vld [vmem:[%s6883_s10 + $0x64] sm:$0xf]  ;;  %v7057_v33 = vor.u32 %v4715_v11, %v3775_v10 }
 0x225   : > { %v4411_v44 = vld [vmem:[%s6883_s10 + $0x4c0] sm:$0xf]  ;;  %v4540_v48 = vor.u32 %v4905_v40, %v4539_v39  ;;  %v4901_v53 = vld [vmem:[%s6883_s10 + $0x5ac] sm:$0xf0]  ;;  %2670 = vmatpush.bf16.msrb.mxu0 %v4428_v42  ;;  %v3853_v35 = vld [vmem:[%s6883_s10 + $0x70] sm:$0xf0]  ;;  %v7062_v40 = vor.u32 %v4712_v14, %v3777_v15 }
 0x226   : > { %v4619_v50 = vld [vmem:[%s6883_s10 + $0x660] sm:$0xf]  ;;  %v4412_v54 = vor.u32 %v4873_v45, %v4411_v44  ;;  %v4869_v58 = vld [vmem:[%s6883_s10 + $0x4ac] sm:$0xf0]  ;;  %v4269_v9 = vld [vmem:[%s6883_s10 + $0x3b0] sm:$0xf0] }
 0x227   : > { %v4523_v52 = vld [vmem:[%s6883_s10 + $0x5a0] sm:$0xf]  ;;  %2711 = vmatpush.bf16.msrb.mxu2 %v4636_v47  ;;  %v4620_v60 = vor.u32 %v4925_v51, %v4619_v50  ;;  %v4921_v1 = vld [vmem:[%s6883_s10 + $0x64c] sm:$0xf0]  ;;  %v3856_v47 = vor.u32 %v4731_v30, %v3853_v35  ;;  %v4843_v51 = vld [vmem:[%s6883_s10 + $0x3e4] sm:$0xf] }
 0x228   : > { %v1413_v55 = vld [vmem:[%s7996_s2] sm:$0xff]  ;;  %2690 = vmatpush.bf16.msrb.mxu1 %v4540_v48  ;;  %v4524_v61 = vor.u32 %v4901_v53, %v4523_v52  ;;  %v4897_v3 = vld [vmem:[%s6883_s10 + $0x58c] sm:$0xf0]  ;;  %2728 = vmatpush.bf16.msrb.mxu3 %v3904_v56  ;;  %v4707_v30 = vld [vmem:[%s7994_s0 + $0x14] sm:$0xf] }
 0x229   : > { %v4395_v57 = vld [vmem:[%s6883_s10 + $0x4a0] sm:$0xf]  ;;  %1419 = vperm.xlu0 %5163, %v1413_v55   ;;  %2671 = vmatpush.bf16.msrb.mxu0 %v4412_v54  ;;  %v4865_v6 = vld [vmem:[%s6883_s10 + $0x48c] sm:$0xf0]  ;;  %v4727_v53 = vld [vmem:[%s6883_s10 + $0x44] sm:$0xf] }
 0x22a   : > { %v4603_v0 = vld [vmem:[%s6883_s10 + $0x640] sm:$0xf]  ;;  %v4396_v4 = vor.u32 %v4869_v58, %v4395_v57  ;;  %v4917_v19 = vld [vmem:[%s6883_s10 + $0x62c] sm:$0xf0]  ;;  %v3837_v54 = vld [vmem:[%s6883_s10 + $0x50] sm:$0xf0] }
 0x22b   : > { %v4507_v2 = vld [vmem:[%s6883_s10 + $0x580] sm:$0xf]  ;;  %2712 = vmatpush.bf16.msrb.mxu2 %v4620_v60  ;;  %v4604_v12 = vor.u32 %v4921_v1, %v4603_v0  ;;  %v4893_v22 = vld [vmem:[%s6883_s10 + $0x56c] sm:$0xf0]  ;;  %v4301_v55 = vld [vmem:[%s6883_s10 + $0x3f0] sm:$0xf0]  ;;  %v3840_v62 = vor.u32 %v4727_v53, %v3837_v54 }
 0x22c   : > { %v4379_v5 = vld [vmem:[%s6883_s10 + $0x480] sm:$0xf]  ;;  %2691 = vmatpush.bf16.msrb.mxu1 %v4524_v61  ;;  %v4508_v13 = vor.u32 %v4897_v3, %v4507_v2  ;;  %v1415_v26 = vld [vmem:[%s7996_s2 + $0x10] sm:$0xff]  ;;  %2729 = vmatpush.bf16.msrb.mxu3 %v3888_v8  ;;  %v4304_v58 = vor.u32 %v4843_v51, %v4301_v55  ;;  %v1416_v60 = vld [vmem:[%s7996_s2 + $0x18] sm:$0xff] }
 0x22d   : > { %v3783_v16 = vld [vmem:[%s7994_s0 + $0x40] sm:$0xf]  ;;  %2672 = vmatpush.bf16.msrb.mxu0 %v4396_v4  ;;  %v4380_v23 = vor.u32 %v4865_v6, %v4379_v5  ;;  %v4861_v29 = vld [vmem:[%s6883_s10 + $0x46c] sm:$0xf0]  ;;  %1429 = vperm.xlu1 %5164, %v1415_v26   ;;  %v4839_v61 = vld [vmem:[%s6883_s10 + $0x3c4] sm:$0xf] }
 0x22e   : > { %v4587_v18 = vld [vmem:[%s6883_s10 + $0x620] sm:$0xf]  ;;  %v4913_v39 = vld [vmem:[%s6883_s10 + $0x60c] sm:$0xf0]  ;;  %v7064_v42 = vor.u32 %v4716_v17, %v3783_v16  ;;  %v4285_v1 = vld [vmem:[%s6883_s10 + $0x3d0] sm:$0xf0] }
 0x22f   : > { %v4491_v21 = vld [vmem:[%s6883_s10 + $0x560] sm:$0xf]  ;;  %2713 = vmatpush.bf16.msrb.mxu2 %v4604_v12  ;;  %v4588_v31 = vor.u32 %v4917_v19, %v4587_v18  ;;  %v4889_v44 = vld [vmem:[%s6883_s10 + $0x54c] sm:$0xf0]  ;;  %v4723_v3 = vld [vmem:[%s6883_s10 + $0x24] sm:$0xf]  ;;  %v4288_v6 = vor.u32 %v4839_v61, %v4285_v1 }
 0x230   : > { %v3785_v24 = vld [vmem:[%s7994_s0 + $0x5c] sm:$0xf0]  ;;  %2692 = vmatpush.bf16.msrb.mxu1 %v4508_v13  ;;  %v4492_v34 = vor.u32 %v4893_v22, %v4491_v21  ;;  %2730 = vmatpush.bf16.msrb.mxu3 %v3872_v27  ;;  %v4857_v49 = vld [vmem:[%s6883_s10 + $0x44c] sm:$0xf0]  ;;  %v3821_v4 = vld [vmem:[%s6883_s10 + $0x30] sm:$0xf0] }
 0x231   : > { %v4363_v28 = vld [vmem:[%s6883_s10 + $0x460] sm:$0xf]  ;;  %1424 = vperm.xlu0 %5163, %v1414_v25   ;;  %2673 = vmatpush.bf16.msrb.mxu0 %v4380_v23  ;;  %v7068_v45 = vor.u32 %v4713_v20, %v3785_v24  ;;  %v4885_v57 = vld [vmem:[%s6883_s10 + $0x52c] sm:$0xf0]  ;;  %v4835_v8 = vld [vmem:[%s6883_s10 + $0x3a4] sm:$0xf]  ;;  %v3824_v14 = vor.u32 %v4723_v3, %v3821_v4 }
 0x232   : > { %v4571_v36 = vld [vmem:[%s6883_s10 + $0x600] sm:$0xf]  ;;  %v4364_v46 = vor.u32 %v4861_v29, %v4363_v28  ;;  %2607 = vmatmul.bf16.gmra.mxu0 %v7057_v33  ;;  %2626 = vmatmul.bf16.gmra.mxu1 %v7062_v40  ;;  %v4853_v0 = vld [vmem:[%s6883_s10 + $0x42c] sm:$0xf0]  ;;  %v4811_v12 = vld [vmem:[%s6883_s10 + $0x2e4] sm:$0xf]  ;;  %v4272_v24 = vor.u32 %v4835_v8, %v4269_v9 }
 0x233   : > { %v4475_v43 = vld [vmem:[%s6883_s10 + $0x540] sm:$0xf]  ;;  %2714 = vmatpush.bf16.msrb.mxu2 %v4588_v31  ;;  %v4572_v50 = vor.u32 %v4913_v39, %v4571_v36  ;;  %2664 = vmatmul.bf16.gmra.mxu3 %v7068_v45  ;;  %v4881_v7 = vld [vmem:[%s6883_s10 + $0x50c] sm:$0xf0]  ;;  %v4173_v13 = vld [vmem:[%s6883_s10 + $0x2f0] sm:$0xf0] }
 0x234   : > { %v4347_v48 = vld [vmem:[%s6883_s10 + $0x440] sm:$0xf]  ;;  %2693 = vmatpush.bf16.msrb.mxu1 %v4492_v34  ;;  %v4476_v52 = vor.u32 %v4889_v44, %v4475_v43  ;;  %2645 = vmatmul.bf16.gmra.mxu2 %v7064_v42  ;;  %v4849_v15 = vld [vmem:[%s6883_s10 + $0x40c] sm:$0xf0]  ;;  %v4719_v16 = vld [vmem:[%s6883_s10 + $0x4] sm:$0xf]  ;;  %v4176_v25 = vor.u32 %v4811_v12, %v4173_v13 }
 0x235   : > { %v4459_v56 = vld [vmem:[%s6883_s10 + $0x520] sm:$0xf]  ;;  %2674 = vmatpush.bf16.msrb.mxu0 %v4364_v46  ;;  %v4348_v59 = vor.u32 %v4857_v49, %v4347_v48  ;;  %2731 = vmatpush.bf16.msrb.mxu3 %v3856_v47  ;;  %v3805_v17 = vld [vmem:[%s6883_s10 + $0x10] sm:$0xf0]  ;;  %v3763_v19 = vld [vmem:[%s7994_s0 + $0x10] sm:$0xf] }
 0x236   : > { %v4331_v63 = vld [vmem:[%s6883_s10 + $0x420] sm:$0xf]  ;;  %v4460_v2 = vor.u32 %v4885_v57, %v4459_v56  ;;  %1434 = vperm.xlu1 %5164, %v1416_v60   ;;  %v4710_v20 = vld [vmem:[%s7994_s0 + $0x28] sm:$0xf0]  ;;  %v4779_v21 = vld [vmem:[%s6883_s10 + $0x1e4] sm:$0xf]  ;;  %v3808_v35 = vor.u32 %v4719_v16, %v3805_v17 }
 0x237   : > { %2715 = vmatpush.bf16.msrb.mxu2 %v4572_v50  ;;  %v4443_v5 = vld [vmem:[%s6883_s10 + $0x500] sm:$0xf]  ;;  %v4332_v10 = vor.u32 %v4853_v0, %v4331_v63  ;;  %v4045_v22 = vld [vmem:[%s6883_s10 + $0x1f0] sm:$0xf0]  ;;  %v4875_v23 = vld [vmem:[%s6883_s10 + $0x4e4] sm:$0xf]  ;;  %v7130_v51 = vor.u32 %v4710_v20, %v3763_v19 }
 0x238   : > { %2694 = vmatpush.bf16.msrb.mxu1 %v4476_v52  ;;  %v4315_v11 = vld [vmem:[%s6883_s10 + $0x400] sm:$0xf]  ;;  %v4444_v18 = vor.u32 %v4881_v7, %v4443_v5  ;;  %v4429_v26 = vld [vmem:[%s6883_s10 + $0x4f0] sm:$0xf0]  ;;  %v4831_v27 = vld [vmem:[%s6883_s10 + $0x384] sm:$0xf]  ;;  %v4048_v39 = vor.u32 %v4779_v21, %v4045_v22 }
 0x239   : > { %2675 = vmatpush.bf16.msrb.mxu0 %v4348_v59  ;;  %2732 = vmatpush.bf16.msrb.mxu3 %v3840_v62  ;;  %v4253_v28 = vld [vmem:[%s6883_s10 + $0x390] sm:$0xf0]  ;;  %v4316_v29 = vor.u32 %v4849_v15, %v4315_v11  ;;  %v3765_v31 = vld [vmem:[%s7994_s0 + $0x2c] sm:$0xf0]  ;;  %v3771_v34 = vld [vmem:[%s7994_s0 + $0x18] sm:$0xf]  ;;  %v4432_v46 = vor.u32 %v4875_v23, %v4429_v26 }
 0x23a   : > { %v4711_v36 = vld [vmem:[%s7994_s0 + $0x30] sm:$0xf0]  ;;  %v4775_v43 = vld [vmem:[%s6883_s10 + $0x1c4] sm:$0xf]  ;;  %v4256_v50 = vor.u32 %v4831_v27, %v4253_v28  ;;  %v7132_v52 = vor.u32 %v4707_v30, %v3765_v31  ;;  %v4714_v27 = vld [vmem:[%s7994_s0 + $0x4c] sm:$0xf] }
 0x23b   : > { %2784 = vmatpush.bf16.msra.mxu2 %v4304_v58  ;;  %v4029_v44 = vld [vmem:[%s6883_s10 + $0x1d0] sm:$0xf0]  ;;  %v4807_v47 = vld [vmem:[%s6883_s10 + $0x2c4] sm:$0xf]  ;;  %v7137_v56 = vor.u32 %v4711_v36, %v3771_v34  ;;  %v3145_v31 = vld [vmem:[%s7997_s3 + $0x18] sm:$0xff] }
 0x23c   : > { %2695 = vmatpush.bf16.msrb.mxu1 %v4460_v2  ;;  %v4157_v48 = vld [vmem:[%s6883_s10 + $0x2d0] sm:$0xf0]  ;;  %v4871_v49 = vld [vmem:[%s6883_s10 + $0x4c4] sm:$0xf]  ;;  %v4032_v57 = vor.u32 %v4775_v43, %v4029_v44  ;;  %v3799_v43 = vld [vmem:[%s7994_s0 + $0x50] sm:$0xf] }
 0x23d   : > { %2676 = vmatpush.bf16.msrb.mxu0 %v4332_v10  ;;  %2733 = vmatpush.bf16.msrb.mxu3 %v3824_v14  ;;  %v4413_v53 = vld [vmem:[%s6883_s10 + $0x4d0] sm:$0xf0]  ;;  %v4827_v54 = vld [vmem:[%s6883_s10 + $0x364] sm:$0xf]  ;;  %v4160_v58 = vor.u32 %v4807_v47, %v4157_v48  ;;  %v3183_v44 = vld [vmem:[%s7998_s4 + $0x8] sm:$0xff] }
 0x23e   : > { %v4237_v55 = vld [vmem:[%s6883_s10 + $0x370] sm:$0xf0]  ;;  %v4771_v59 = vld [vmem:[%s6883_s10 + $0x1a4] sm:$0xf]  ;;  %v4416_v61 = vor.u32 %v4871_v49, %v4413_v53  ;;  %3163 = vperm.xlu1 %5164, %v3145_v31  }
 0x23f   : > { %2785 = vmatpush.bf16.msra.mxu2 %v4288_v6  ;;  %v4013_v60 = vld [vmem:[%s6883_s10 + $0x1b0] sm:$0xf0]  ;;  %v4803_v62 = vld [vmem:[%s6883_s10 + $0x2a4] sm:$0xf]  ;;  %v4240_v1 = vor.u32 %v4827_v54, %v4237_v55 }
 0x240   : > { %2696 = vmatpush.bf16.msrb.mxu1 %v4444_v18  ;;  %v4141_v63 = vld [vmem:[%s6883_s10 + $0x2b0] sm:$0xf0]  ;;  %v4867_v0 = vld [vmem:[%s6883_s10 + $0x4a4] sm:$0xf]  ;;  %v4016_v6 = vor.u32 %v4771_v59, %v4013_v60 }
 0x241   : > { %2677 = vmatpush.bf16.msrb.mxu0 %v4316_v29  ;;  %2734 = vmatpush.bf16.msrb.mxu3 %v3808_v35  ;;  %v4397_v2 = vld [vmem:[%s6883_s10 + $0x4b0] sm:$0xf0]  ;;  %v4823_v3 = vld [vmem:[%s6883_s10 + $0x344] sm:$0xf]  ;;  %v4144_v7 = vor.u32 %v4803_v62, %v4141_v63  ;;  %v3923_v62 = vld [vmem:[%s6883_s10 + $0xe8] sm:$0xf] }
 0x242   : > { %v4221_v4 = vld [vmem:[%s6883_s10 + $0x350] sm:$0xf0]  ;;  %v4767_v8 = vld [vmem:[%s6883_s10 + $0x184] sm:$0xf]  ;;  %v4400_v10 = vor.u32 %v4867_v0, %v4397_v2  ;;  %v4750_v63 = vld [vmem:[%s6883_s10 + $0xf4] sm:$0xf0] }
 0x243   : > { %2786 = vmatpush.bf16.msra.mxu2 %v4272_v24  ;;  %2697 = vmatmul.bf16.vlgmr.msrb.gmra.mxu1 %v7132_v52  ;;  %v3144_v5 = vld [vmem:[%s7997_s3 + $0x10] sm:$0xff]  ;;  %v4799_v11 = vld [vmem:[%s6883_s10 + $0x284] sm:$0xf]  ;;  %v4224_v14 = vor.u32 %v4823_v3, %v4221_v4 }
 0x244   : > { %2765 = vmatpush.bf16.msra.mxu1 %v4176_v25  ;;  %2678 = vmatmul.bf16.vlgmr.msrb.gmra.mxu0 %v7130_v51  ;;  %v3997_v9 = vld [vmem:[%s6883_s10 + $0x190] sm:$0xf0]  ;;  %v4863_v13 = vld [vmem:[%s6883_s10 + $0x484] sm:$0xf]  ;;  %v3791_v25 = vld [vmem:[%s7994_s0 + $0x48] sm:$0xf] }
 0x245   : > { %2746 = vmatpush.bf16.msra.mxu0 %v4048_v39  ;;  %2803 = vmatpush.bf16.msra.mxu3 %v4432_v46  ;;  %v4125_v12 = vld [vmem:[%s6883_s10 + $0x290] sm:$0xf0]  ;;  %v4819_v16 = vld [vmem:[%s6883_s10 + $0x324] sm:$0xf]  ;;  %v4000_v19 = vor.u32 %v4767_v8, %v3997_v9  ;;  %v3793_v39 = vld [vmem:[%s7994_s0 + $0x64] sm:$0xf0]  ;;  %v3924_v9 = vor.u32 %v4750_v63, %v3923_v62 }
 0x246   : > { %4665 = vmatmul.msk.bf16.vlgmr.msrb.gmra.mxu2 %vm2587_vm0, %v7137_v56  ;;  %2735 = vmatmul.bf16.vlgmr.msrb.gmra.mxu3 %v6980_v32  ;;  %v4381_v15 = vld [vmem:[%s6883_s10 + $0x490] sm:$0xf0]  ;;  %v4763_v18 = vld [vmem:[%s6883_s10 + $0x164] sm:$0xf]  ;;  %v4128_v20 = vor.u32 %v4799_v11, %v4125_v12  ;;  %v4718_v46 = vld [vmem:[%s7994_s0 + $0x68] sm:$0xf0]  ;;  %v7205_v60 = vor.u32 %v4714_v27, %v3793_v39 }
 0x247   : > { %2787 = vmatpush.bf16.msra.mxu2 %v4256_v50  ;;  %3158 = vperm.xlu0 %5163, %v3144_v5   ;;  %v4205_v17 = vld [vmem:[%s6883_s10 + $0x330] sm:$0xf0]  ;;  %v4795_v22 = vld [vmem:[%s6883_s10 + $0x264] sm:$0xf]  ;;  %v4384_v24 = vor.u32 %v4863_v13, %v4381_v15  ;;  %v7210_v0 = vor.u32 %v4718_v46, %v3799_v43  ;;  %v3907_v11 = vld [vmem:[%s6883_s10 + $0xc8] sm:$0xf] }
 0x248   : > { %2766 = vmatpush.bf16.msra.mxu1 %v4160_v58  ;;  %v3981_v21 = vld [vmem:[%s6883_s10 + $0x170] sm:$0xf0]  ;;  %v3142_v23 = vld [vmem:[%s7997_s3] sm:$0xff]  ;;  %v4208_v30 = vor.u32 %v4819_v16, %v4205_v17  ;;  %v4746_v12 = vld [vmem:[%s6883_s10 + $0xd4] sm:$0xf0] }
 0x249   : > { %2747 = vmatpush.bf16.msra.mxu0 %v4032_v57  ;;  %2804 = vmatpush.bf16.msra.mxu3 %v4416_v61  ;;  %v4717_v26 = vld [vmem:[%s7994_s0 + $0x60] sm:$0xf0]  ;;  %v4109_v28 = vld [vmem:[%s6883_s10 + $0x270] sm:$0xf0]  ;;  %v3984_v47 = vor.u32 %v4763_v18, %v3981_v21  ;;  %v3143_v13 = vld [vmem:[%s7997_s3 + $0x8] sm:$0xff] }
 0x24a   : > { %v4859_v29 = vld [vmem:[%s6883_s10 + $0x464] sm:$0xf]  ;;  %v4365_v34 = vld [vmem:[%s6883_s10 + $0x470] sm:$0xf0]  ;;  %3148 = vperm.xlu2 %5165, %v3142_v23   ;;  %v4112_v48 = vor.u32 %v4795_v22, %v4109_v28  ;;  %v7203_v59 = vor.u32 %v4717_v26, %v3791_v25  ;;  %v4051_v27 = vld [vmem:[%s6883_s10 + $0x1e8] sm:$0xf] }
 0x24b   : > { %2788 = vmatpush.bf16.msra.mxu2 %v4240_v1  ;;  %v4815_v35 = vld [vmem:[%s6883_s10 + $0x304] sm:$0xf]  ;;  %v4189_v36 = vld [vmem:[%s6883_s10 + $0x310] sm:$0xf0]  ;;  %v4368_v53 = vor.u32 %v4859_v29, %v4365_v34  ;;  %v4782_v28 = vld [vmem:[%s6883_s10 + $0x1f4] sm:$0xf0] }
 0x24c   : > { %2767 = vmatpush.bf16.msra.mxu1 %v4144_v7  ;;  %v4759_v49 = vld [vmem:[%s6883_s10 + $0x144] sm:$0xf]  ;;  %v3965_v50 = vld [vmem:[%s6883_s10 + $0x150] sm:$0xf0]  ;;  %v4192_v58 = vor.u32 %v4815_v35, %v4189_v36  ;;  %v3891_v35 = vld [vmem:[%s6883_s10 + $0xa8] sm:$0xf] }
 0x24d   : > { %2748 = vmatpush.bf16.msra.mxu0 %v4016_v6  ;;  %2805 = vmatpush.bf16.msra.mxu3 %v4400_v10  ;;  %v4791_v54 = vld [vmem:[%s6883_s10 + $0x244] sm:$0xf]  ;;  %v4093_v55 = vld [vmem:[%s6883_s10 + $0x250] sm:$0xf0]  ;;  %v3968_v1 = vor.u32 %v4759_v49, %v3965_v50  ;;  %v4742_v36 = vld [vmem:[%s6883_s10 + $0xb4] sm:$0xf0] }
 0x24e   : > { %v4855_v57 = vld [vmem:[%s6883_s10 + $0x444] sm:$0xf]  ;;  %v4349_v61 = vld [vmem:[%s6883_s10 + $0x450] sm:$0xf0]  ;;  %v4096_v2 = vor.u32 %v4791_v54, %v4093_v55  ;;  %v3892_v49 = vor.u32 %v4742_v36, %v3891_v35  ;;  %v4035_v50 = vld [vmem:[%s6883_s10 + $0x1c8] sm:$0xf] }
 0x24f   : > { %2789 = vmatpush.bf16.msra.mxu2 %v4224_v14  ;;  %3193 = vperm.xlu0 %5163, %v3183_v44   ;;  %v4755_v3 = vld [vmem:[%s6883_s10 + $0x124] sm:$0xf]  ;;  %v3949_v4 = vld [vmem:[%s6883_s10 + $0x130] sm:$0xf0]  ;;  %v4352_v5 = vor.u32 %v4855_v57, %v4349_v61  ;;  %v4052_v44 = vor.u32 %v4782_v28, %v4051_v27  ;;  %v3875_v63 = vld [vmem:[%s6883_s10 + $0x88] sm:$0xf] }
 0x250   : > { %2768 = vmatpush.bf16.msra.mxu1 %v4128_v20  ;;  %v4787_v6 = vld [vmem:[%s6883_s10 + $0x224] sm:$0xf]  ;;  %v4077_v7 = vld [vmem:[%s6883_s10 + $0x230] sm:$0xf0]  ;;  %v3952_v15 = vor.u32 %v4755_v3, %v3949_v4  ;;  %v4019_v3 = vld [vmem:[%s6883_s10 + $0x1a8] sm:$0xf] }
 0x251   : > { %2749 = vmatpush.bf16.msra.mxu0 %v4000_v19  ;;  %2806 = vmatpush.bf16.msra.mxu3 %v4384_v24  ;;  %v4851_v8 = vld [vmem:[%s6883_s10 + $0x424] sm:$0xf]  ;;  %v4333_v10 = vld [vmem:[%s6883_s10 + $0x430] sm:$0xf0]  ;;  %v4080_v16 = vor.u32 %v4787_v6, %v4077_v7  ;;  %v3908_v24 = vor.u32 %v4746_v12, %v3907_v11  ;;  %v4774_v4 = vld [vmem:[%s6883_s10 + $0x1b4] sm:$0xf0] }
 0x252   : > { %v3184_v14 = vld [vmem:[%s7998_s4 + $0x10] sm:$0xff]  ;;  %v4751_v17 = vld [vmem:[%s6883_s10 + $0x104] sm:$0xf]  ;;  %v4336_v20 = vor.u32 %v4851_v8, %v4333_v10  ;;  %3153 = vperm.xlu2 %5165, %v3143_v13   ;;  %v3859_v12 = vld [vmem:[%s6883_s10 + $0x68] sm:$0xf] }
 0x253   : > { %2790 = vmatpush.bf16.msra.mxu2 %v4208_v30  ;;  %2702 = vmatmul.bf16.gmra.mxu1 %v7205_v60  ;;  %v3933_v18 = vld [vmem:[%s6883_s10 + $0x110] sm:$0xf0]  ;;  %v4783_v19 = vld [vmem:[%s6883_s10 + $0x204] sm:$0xf]  ;;  %v4734_v13 = vld [vmem:[%s6883_s10 + $0x74] sm:$0xf0] }
 0x254   : > { %2769 = vmatpush.bf16.msra.mxu1 %v4112_v48  ;;  %2683 = vmatmul.bf16.gmra.mxu0 %v7203_v59  ;;  %v4061_v21 = vld [vmem:[%s6883_s10 + $0x210] sm:$0xf0]  ;;  %v4847_v22 = vld [vmem:[%s6883_s10 + $0x404] sm:$0xf]  ;;  %v3936_v31 = vor.u32 %v4751_v17, %v3933_v18  ;;  %v3987_v28 = vld [vmem:[%s6883_s10 + $0x168] sm:$0xf] }
 0x255   : > { %2750 = vmatpush.bf16.msra.mxu0 %v3984_v47  ;;  %2807 = vmatpush.bf16.msra.mxu3 %v4368_v53  ;;  %v4317_v23 = vld [vmem:[%s6883_s10 + $0x410] sm:$0xf0]  ;;  %v4907_v25 = vld [vmem:[%s6883_s10 + $0x5e4] sm:$0xf]  ;;  %v4064_v34 = vor.u32 %v4783_v19, %v4061_v21  ;;  %v4778_v53 = vld [vmem:[%s6883_s10 + $0x1d4] sm:$0xf0] }
 0x256   : > { %4666 = vmatmul.msk.bf16.gmra.mxu2 %vm2587_vm0, %v7210_v0  ;;  %2740 = vmatmul.bf16.gmra.mxu3 %v7057_v33  ;;  %v4557_v26 = vld [vmem:[%s6883_s10 + $0x5f0] sm:$0xf0]  ;;  %v4931_v29 = vld [vmem:[%s6883_s10 + $0x6a4] sm:$0xf]  ;;  %v4320_v39 = vor.u32 %v4847_v22, %v4317_v23 }
 0x257   : > { %2791 = vmatpush.bf16.msra.mxu2 %v4192_v58  ;;  %3198 = vperm.xlu1 %5164, %v3184_v14   ;;  %v4653_v30 = vld [vmem:[%s6883_s10 + $0x6b0] sm:$0xf0]  ;;  %v4560_v43 = vor.u32 %v4907_v25, %v4557_v26  ;;  %v4903_v47 = vld [vmem:[%s6883_s10 + $0x5c4] sm:$0xf]  ;;  %v4020_v14 = vor.u32 %v4774_v4, %v4019_v3  ;;  %v4730_v25 = vld [vmem:[%s6883_s10 + $0x54] sm:$0xf0] }
 0x258   : > { %2770 = vmatpush.bf16.msra.mxu1 %v4096_v2  ;;  %v4656_v46 = vor.u32 %v4931_v29, %v4653_v30  ;;  %v4541_v48 = vld [vmem:[%s6883_s10 + $0x5d0] sm:$0xf0]  ;;  %v3182_v54 = vld [vmem:[%s7998_s4] sm:$0xff]  ;;  %v4036_v2 = vor.u32 %v4778_v53, %v4035_v50  ;;  %v3185_v26 = vld [vmem:[%s7998_s4 + $0x18] sm:$0xff] }
 0x259   : > { %2751 = vmatpush.bf16.msra.mxu0 %v3968_v1  ;;  %2808 = vmatpush.bf16.msra.mxu3 %v4352_v5  ;;  %v4544_v55 = vor.u32 %v4903_v47, %v4541_v48  ;;  %v4899_v57 = vld [vmem:[%s6883_s10 + $0x5a4] sm:$0xf]  ;;  %v4637_v61 = vld [vmem:[%s6883_s10 + $0x690] sm:$0xf0]  ;;  %v4738_v1 = vld [vmem:[%s6883_s10 + $0x94] sm:$0xf0] }
 0x25a   : > { %v4927_v58 = vld [vmem:[%s6883_s10 + $0x684] sm:$0xf]  ;;  %v4525_v62 = vld [vmem:[%s6883_s10 + $0x5b0] sm:$0xf0]  ;;  %3188 = vperm.xlu2 %5165, %v3182_v54   ;;  %v3876_v7 = vor.u32 %v4738_v1, %v3875_v63  ;;  %v4766_v29 = vld [vmem:[%s6883_s10 + $0x174] sm:$0xf0] }
 0x25b   : > { %2860 = vmatpush.bf16.msrb.mxu2 %v3924_v9  ;;  %v4640_v5 = vor.u32 %v4927_v58, %v4637_v61  ;;  %v4528_v6 = vor.u32 %v4899_v57, %v4525_v62  ;;  %v4895_v8 = vld [vmem:[%s6883_s10 + $0x584] sm:$0xf]  ;;  %v4621_v10 = vld [vmem:[%s6883_s10 + $0x670] sm:$0xf0]  ;;  %v3988_v47 = vor.u32 %v4766_v29, %v3987_v28  ;;  %v3971_v48 = vld [vmem:[%s6883_s10 + $0x148] sm:$0xf] }
 0x25c   : > { %2771 = vmatpush.bf16.msra.mxu1 %v4080_v16  ;;  %v4923_v9 = vld [vmem:[%s6883_s10 + $0x664] sm:$0xf]  ;;  %v4509_v11 = vld [vmem:[%s6883_s10 + $0x590] sm:$0xf0]  ;;  %v4770_v16 = vld [vmem:[%s6883_s10 + $0x194] sm:$0xf0] }
 0x25d   : > { %2752 = vmatpush.bf16.msra.mxu0 %v3952_v15  ;;  %2809 = vmatpush.bf16.msra.mxu3 %v4336_v20  ;;  %v4003_v15 = vld [vmem:[%s6883_s10 + $0x188] sm:$0xf]  ;;  %v4624_v17 = vor.u32 %v4923_v9, %v4621_v10  ;;  %v4891_v18 = vld [vmem:[%s6883_s10 + $0x564] sm:$0xf]  ;;  %v4512_v19 = vor.u32 %v4895_v8, %v4509_v11  ;;  %v3860_v20 = vor.u32 %v4734_v13, %v3859_v12  ;;  %v4493_v21 = vld [vmem:[%s6883_s10 + $0x570] sm:$0xf0] }
 0x25e   : > { %v4919_v22 = vld [vmem:[%s6883_s10 + $0x644] sm:$0xf]  ;;  %v4605_v23 = vld [vmem:[%s6883_s10 + $0x650] sm:$0xf0]  ;;  %v4004_v27 = vor.u32 %v4770_v16, %v4003_v15  ;;  %v3811_v62 = vld [vmem:[%s6883_s10 + $0x8] sm:$0xf] }
 0x25f   : > { %2861 = vmatpush.bf16.msrb.mxu2 %v3908_v24  ;;  %v3843_v24 = vld [vmem:[%s6883_s10 + $0x48] sm:$0xf]  ;;  %v4608_v30 = vor.u32 %v4919_v22, %v4605_v23  ;;  %v4887_v35 = vld [vmem:[%s6883_s10 + $0x544] sm:$0xf]  ;;  %v4461_v57 = vld [vmem:[%s6883_s10 + $0x530] sm:$0xf0] }
 0x260   : > { %2772 = vmatpush.bf16.msra.mxu1 %v4064_v34  ;;  %v3844_v34 = vor.u32 %v4730_v25, %v3843_v24  ;;  %v4915_v36 = vld [vmem:[%s6883_s10 + $0x624] sm:$0xf]  ;;  %v4573_v61 = vld [vmem:[%s6883_s10 + $0x610] sm:$0xf0]  ;;  %v4722_v63 = vld [vmem:[%s6883_s10 + $0x14] sm:$0xf0] }
 0x261   : > { %2753 = vmatpush.bf16.msra.mxu0 %v3936_v31  ;;  %2810 = vmatpush.bf16.msra.mxu3 %v4320_v39  ;;  %v4496_v31 = vor.u32 %v4891_v18, %v4493_v21  ;;  %v4589_v39 = vld [vmem:[%s6883_s10 + $0x630] sm:$0xf0]  ;;  %v4883_v50 = vld [vmem:[%s6883_s10 + $0x524] sm:$0xf]  ;;  %v4435_v1 = vld [vmem:[%s6883_s10 + $0x4e8] sm:$0xf]  ;;  %v3812_v10 = vor.u32 %v4722_v63, %v3811_v62 }
 0x262   : > { %3203 = vperm.xlu2 %5165, %v3185_v26   ;;  %v4592_v53 = vor.u32 %v4915_v36, %v4589_v39  ;;  %v4911_v58 = vld [vmem:[%s6883_s10 + $0x604] sm:$0xf]  ;;  %v4307_v3 = vld [vmem:[%s6883_s10 + $0x3e8] sm:$0xf]  ;;  %v4846_v4 = vld [vmem:[%s6883_s10 + $0x3f4] sm:$0xf0] }
 0x263   : > { %2862 = vmatpush.bf16.msrb.mxu2 %v3892_v49  ;;  %2773 = vmatmul.bf16.vlgmr.msra.gmra.mxu1 %v6987_v38  ;;  %v4762_v49 = vld [vmem:[%s6883_s10 + $0x154] sm:$0xf0]  ;;  %v3955_v8 = vld [vmem:[%s6883_s10 + $0x128] sm:$0xf]  ;;  %v4879_v11 = vld [vmem:[%s6883_s10 + $0x504] sm:$0xf]  ;;  %v4308_v15 = vor.u32 %v4846_v4, %v4307_v3 }
 0x264   : > { %2843 = vmatpush.bf16.msrb.mxu1 %v4656_v46  ;;  %2754 = vmatmul.bf16.vlgmr.msra.gmra.mxu0 %v6985_v37  ;;  %v4726_v46 = vld [vmem:[%s6883_s10 + $0x34] sm:$0xf0]  ;;  %v4445_v12 = vld [vmem:[%s6883_s10 + $0x510] sm:$0xf0]  ;;  %v3939_v23 = vld [vmem:[%s6883_s10 + $0x108] sm:$0xf] }
 0x265   : > { %2822 = vmatpush.bf16.msrb.mxu0 %v4560_v43  ;;  %2879 = vmatpush.bf16.msrb.mxu3 %v4052_v44  ;;  %v4477_v43 = vld [vmem:[%s6883_s10 + $0x550] sm:$0xf0]  ;;  %v3827_v44 = vld [vmem:[%s6883_s10 + $0x28] sm:$0xf]  ;;  %v4758_v9 = vld [vmem:[%s6883_s10 + $0x134] sm:$0xf0]  ;;  %v4448_v22 = vor.u32 %v4879_v11, %v4445_v12 }
 0x266   : > { %2792 = vmatmul.bf16.vlgmr.msra.gmra.mxu2 %v6991_v41  ;;  %2811 = vmatmul.bf16.vlgmr.msra.gmra.mxu3 %v7130_v51  ;;  %v4480_v54 = vor.u32 %v4887_v35, %v4477_v43  ;;  %v4814_v16 = vld [vmem:[%s6883_s10 + $0x2f4] sm:$0xf0]  ;;  %v4563_v26 = vld [vmem:[%s6883_s10 + $0x5e8] sm:$0xf] }
 0x267   : > { %2863 = vmatpush.bf16.msrb.mxu2 %v3876_v7  ;;  %v4464_v7 = vor.u32 %v4883_v50, %v4461_v57  ;;  %v4874_v18 = vld [vmem:[%s6883_s10 + $0x4d4] sm:$0xf0]  ;;  %v4163_v29 = vld [vmem:[%s6883_s10 + $0x2c8] sm:$0xf] }
 0x268   : > { %2844 = vmatpush.bf16.msrb.mxu1 %v4640_v5  ;;  %v3972_v5 = vor.u32 %v4762_v49, %v3971_v48  ;;  %v4842_v21 = vld [vmem:[%s6883_s10 + $0x3d4] sm:$0xf0]  ;;  %v4275_v39 = vld [vmem:[%s6883_s10 + $0x3a8] sm:$0xf] }
 0x269   : > { %2823 = vmatpush.bf16.msrb.mxu0 %v4544_v55  ;;  %2880 = vmatpush.bf16.msrb.mxu3 %v4036_v2  ;;  %v3828_v55 = vor.u32 %v4726_v46, %v3827_v44  ;;  %v4878_v2 = vld [vmem:[%s6883_s10 + $0x4f4] sm:$0xf0]  ;;  %v4531_v57 = vld [vmem:[%s6883_s10 + $0x5a8] sm:$0xf] }
 0x26a   : > { %v4436_v13 = vor.u32 %v4878_v2, %v4435_v1  ;;  %v4754_v24 = vld [vmem:[%s6883_s10 + $0x114] sm:$0xf0]  ;;  %v4259_v63 = vld [vmem:[%s6883_s10 + $0x388] sm:$0xf] }
 0x26b   : > { %2864 = vmatpush.bf16.msrb.mxu2 %v3860_v20  ;;  %v4291_v20 = vld [vmem:[%s6883_s10 + $0x3c8] sm:$0xf]  ;;  %v4870_v35 = vld [vmem:[%s6883_s10 + $0x4b4] sm:$0xf0]  ;;  %v3940_v36 = vor.u32 %v4754_v24, %v3939_v23 }
 0x26c   : > { %2845 = vmatpush.bf16.msrb.mxu1 %v4624_v17  ;;  %v4419_v17 = vld [vmem:[%s6883_s10 + $0x4c8] sm:$0xf]  ;;  %v4838_v43 = vld [vmem:[%s6883_s10 + $0x3b4] sm:$0xf0] }
 0x26d   : > { %2824 = vmatpush.bf16.msrb.mxu0 %v4528_v6  ;;  %2881 = vmatpush.bf16.msrb.mxu3 %v4020_v14  ;;  %v4576_v6 = vor.u32 %v4911_v58, %v4573_v61  ;;  %v4179_v14 = vld [vmem:[%s6883_s10 + $0x2e8] sm:$0xf]  ;;  %v4420_v28 = vor.u32 %v4874_v18, %v4419_v17  ;;  %v4906_v48 = vld [vmem:[%s6883_s10 + $0x5d4] sm:$0xf0]  ;;  %v4276_v50 = vor.u32 %v4838_v43, %v4275_v39 }
 0x26e   : > { %v4180_v25 = vor.u32 %v4814_v16, %v4179_v14  ;;  %v4387_v58 = vld [vmem:[%s6883_s10 + $0x488] sm:$0xf]  ;;  %v4866_v61 = vld [vmem:[%s6883_s10 + $0x494] sm:$0xf0] }
 0x26f   : > { %2865 = vmatpush.bf16.msrb.mxu2 %v3844_v34  ;;  %v4403_v34 = vld [vmem:[%s6883_s10 + $0x4a8] sm:$0xf]  ;;  %v4902_v62 = vld [vmem:[%s6883_s10 + $0x5b4] sm:$0xf0]  ;;  %v4388_v3 = vor.u32 %v4866_v61, %v4387_v58 }
 0x270   : > { %2846 = vmatpush.bf16.msrb.mxu1 %v4608_v30  ;;  %v4810_v30 = vld [vmem:[%s6883_s10 + $0x2d4] sm:$0xf0]  ;;  %v4404_v49 = vor.u32 %v4870_v35, %v4403_v34  ;;  %v4131_v4 = vld [vmem:[%s6883_s10 + $0x288] sm:$0xf] }
 0x271   : > { %2825 = vmatpush.bf16.msrb.mxu0 %v4512_v19  ;;  %2882 = vmatpush.bf16.msrb.mxu3 %v4004_v27  ;;  %v3956_v19 = vor.u32 %v4758_v9, %v3955_v8  ;;  %v4910_v27 = vld [vmem:[%s6883_s10 + $0x5f4] sm:$0xf0]  ;;  %v4164_v46 = vor.u32 %v4810_v30, %v4163_v29  ;;  %v4515_v8 = vld [vmem:[%s6883_s10 + $0x588] sm:$0xf] }
 0x272   : > { %v4564_v44 = vor.u32 %v4910_v27, %v4563_v26  ;;  %v4834_v1 = vld [vmem:[%s6883_s10 + $0x394] sm:$0xf0]  ;;  %v4371_v9 = vld [vmem:[%s6883_s10 + $0x468] sm:$0xf] }
 0x273   : > { %2866 = vmatpush.bf16.msrb.mxu2 %v3828_v55  ;;  %2778 = vmatmul.bf16.gmra.mxu1 %v7064_v42  ;;  %v4898_v11 = vld [vmem:[%s6883_s10 + $0x594] sm:$0xf0]  ;;  %v4243_v12 = vld [vmem:[%s6883_s10 + $0x368] sm:$0xf] }
 0x274   : > { %2847 = vmatpush.bf16.msrb.mxu1 %v4592_v53  ;;  %2759 = vmatmul.bf16.gmra.mxu0 %v7062_v40  ;;  %v4147_v53 = vld [vmem:[%s6883_s10 + $0x2a8] sm:$0xf]  ;;  %v4798_v17 = vld [vmem:[%s6883_s10 + $0x274] sm:$0xf0]  ;;  %v4516_v18 = vor.u32 %v4898_v11, %v4515_v8 }
 0x275   : > { %2826 = vmatpush.bf16.msrb.mxu0 %v4496_v31  ;;  %2883 = vmatpush.bf16.msrb.mxu3 %v3988_v47  ;;  %v4292_v31 = vor.u32 %v4842_v21, %v4291_v20  ;;  %v4547_v47 = vld [vmem:[%s6883_s10 + $0x5c8] sm:$0xf]  ;;  %v4894_v23 = vld [vmem:[%s6883_s10 + $0x574] sm:$0xf0] }
 0x276   : > { %2797 = vmatmul.bf16.gmra.mxu2 %v7068_v45  ;;  %2816 = vmatmul.bf16.gmra.mxu3 %v7203_v59  ;;  %v4548_v55 = vor.u32 %v4906_v48, %v4547_v47  ;;  %v4115_v16 = vld [vmem:[%s6883_s10 + $0x268] sm:$0xf]  ;;  %v4794_v29 = vld [vmem:[%s6883_s10 + $0x254] sm:$0xf0] }
 0x277   : > { %2867 = vmatpush.bf16.msrb.mxu2 %v3812_v10  ;;  %v4862_v10 = vld [vmem:[%s6883_s10 + $0x474] sm:$0xf0]  ;;  %v4499_v20 = vld [vmem:[%s6883_s10 + $0x568] sm:$0xf]  ;;  %v4116_v26 = vor.u32 %v4798_v17, %v4115_v16  ;;  %v4181_v17 = vld [vmem:[%s6883_s10 + $0x2f8] sm:$0xf0] }
 0x278   : > { %2848 = vmatpush.bf16.msrb.mxu1 %v4576_v6  ;;  %v4532_v6 = vor.u32 %v4902_v62, %v4531_v57  ;;  %v4355_v21 = vld [vmem:[%s6883_s10 + $0x448] sm:$0xf]  ;;  %v4500_v30 = vor.u32 %v4894_v23, %v4499_v20  ;;  %v4890_v39 = vld [vmem:[%s6883_s10 + $0x554] sm:$0xf0] }
 0x279   : > { %2827 = vmatpush.bf16.msrb.mxu0 %v4480_v54  ;;  %2884 = vmatpush.bf16.msrb.mxu3 %v3972_v5  ;;  %v4806_v54 = vld [vmem:[%s6883_s10 + $0x2b4] sm:$0xf0]  ;;  %v4227_v24 = vld [vmem:[%s6883_s10 + $0x348] sm:$0xf] }
 0x27a   : > { %v4148_v2 = vor.u32 %v4806_v54, %v4147_v53  ;;  %v4802_v5 = vld [vmem:[%s6883_s10 + $0x294] sm:$0xf0]  ;;  %v4483_v34 = vld [vmem:[%s6883_s10 + $0x548] sm:$0xf] }
 0x27b   : > { %2936 = vmatpush.bf16.msra.mxu2 %v4436_v13  ;;  %v4830_v13 = vld [vmem:[%s6883_s10 + $0x374] sm:$0xf0]  ;;  %v4132_v14 = vor.u32 %v4802_v5, %v4131_v4  ;;  %v4339_v35 = vld [vmem:[%s6883_s10 + $0x428] sm:$0xf]  ;;  %v4484_v53 = vor.u32 %v4890_v39, %v4483_v34  ;;  %v4772_v34 = vld [vmem:[%s6883_s10 + $0x1ac] sm:$0xf] }
 0x27c   : > { %2917 = vmatpush.bf16.msra.mxu1 %v4308_v15  ;;  %v4372_v15 = vor.u32 %v4862_v10, %v4371_v9  ;;  %v4211_v43 = vld [vmem:[%s6883_s10 + $0x328] sm:$0xf]  ;;  %v4850_v58 = vld [vmem:[%s6883_s10 + $0x414] sm:$0xf0]  ;;  %v3893_v39 = vld [vmem:[%s6883_s10 + $0xb8] sm:$0xf0] }
 0x27d   : > { %2828 = vmatpush.bf16.msrb.mxu0 %v4464_v7  ;;  %2885 = vmatpush.bf16.msrb.mxu3 %v3956_v19  ;;  %v4260_v7 = vor.u32 %v4834_v1, %v4259_v63  ;;  %v4244_v19 = vor.u32 %v4830_v13, %v4243_v12  ;;  %v4083_v48 = vld [vmem:[%s6883_s10 + $0x228] sm:$0xf]  ;;  %v4818_v62 = vld [vmem:[%s6883_s10 + $0x314] sm:$0xf0]  ;;  %v4780_v63 = vld [vmem:[%s6883_s10 + $0x1ec] sm:$0xf] }
 0x27e   : > { %v4323_v57 = vld [vmem:[%s6883_s10 + $0x408] sm:$0xf]  ;;  %v4053_v1 = vld [vmem:[%s6883_s10 + $0x1f8] sm:$0xf0]  ;;  %v4786_v8 = vld [vmem:[%s6883_s10 + $0x214] sm:$0xf0] }
 0x27f   : > { %2937 = vmatpush.bf16.msra.mxu2 %v4420_v28  ;;  %v4099_v28 = vld [vmem:[%s6883_s10 + $0x248] sm:$0xf]  ;;  %v4324_v5 = vor.u32 %v4850_v58, %v4323_v57  ;;  %v4882_v11 = vld [vmem:[%s6883_s10 + $0x514] sm:$0xf0]  ;;  %v4056_v12 = vor.u32 %v4780_v63, %v4053_v1  ;;  %v4736_v58 = vld [vmem:[%s6883_s10 + $0x8c] sm:$0xf] }
 0x280   : > { %2918 = vmatpush.bf16.msra.mxu1 %v4292_v31  ;;  %v4195_v61 = vld [vmem:[%s6883_s10 + $0x308] sm:$0xf]  ;;  %v4934_v16 = vld [vmem:[%s6883_s10 + $0x6b4] sm:$0xf0] }
 0x281   : > { %2829 = vmatpush.bf16.msrb.mxu0 %v4448_v22  ;;  %2886 = vmatpush.bf16.msrb.mxu3 %v3940_v36  ;;  %v4858_v22 = vld [vmem:[%s6883_s10 + $0x454] sm:$0xf0]  ;;  %v4196_v9 = vor.u32 %v4818_v62, %v4195_v61  ;;  %v4451_v10 = vld [vmem:[%s6883_s10 + $0x508] sm:$0xf]  ;;  %v3877_v62 = vld [vmem:[%s6883_s10 + $0x98] sm:$0xf0] }
 0x282   : > { %v4356_v27 = vor.u32 %v4858_v22, %v4355_v21  ;;  %v4854_v36 = vld [vmem:[%s6883_s10 + $0x434] sm:$0xf0]  ;;  %v4744_v21 = vld [vmem:[%s6883_s10 + $0xcc] sm:$0xf]  ;;  %v3909_v22 = vld [vmem:[%s6883_s10 + $0xd8] sm:$0xf0]  ;;  %v4452_v23 = vor.u32 %v4882_v11, %v4451_v10 }
 0x283   : > { %2938 = vmatpush.bf16.msra.mxu2 %v4404_v49  ;;  %4667 = vmatmul.msk.bf16.vlgmr.msrb.gmra.mxu1 %vm2587_vm0, %v7137_v56  ;;  %v4340_v47 = vor.u32 %v4854_v36, %v4339_v35  ;;  %v4790_v49 = vld [vmem:[%s6883_s10 + $0x234] sm:$0xf0]  ;;  %v4021_v35 = vld [vmem:[%s6883_s10 + $0x1b8] sm:$0xf0]  ;;  %v4740_v36 = vld [vmem:[%s6883_s10 + $0xac] sm:$0xf] }
 0x284   : > { %2919 = vmatpush.bf16.msra.mxu1 %v4276_v50  ;;  %2830 = vmatmul.bf16.vlgmr.msrb.gmra.mxu0 %v7132_v52  ;;  %v4467_v50 = vld [vmem:[%s6883_s10 + $0x528] sm:$0xf]  ;;  %v4084_v4 = vor.u32 %v4790_v49, %v4083_v48  ;;  %v4926_v48 = vld [vmem:[%s6883_s10 + $0x674] sm:$0xf0]  ;;  %v3896_v49 = vor.u32 %v4740_v36, %v3893_v39  ;;  %v4732_v10 = vld [vmem:[%s6883_s10 + $0x6c] sm:$0xf] }
 0x285   : > { %2898 = vmatpush.bf16.msra.mxu0 %v4180_v25  ;;  %2955 = vmatpush.bf16.msra.mxu3 %v4564_v44  ;;  %v4826_v25 = vld [vmem:[%s6883_s10 + $0x354] sm:$0xf0]  ;;  %v4611_v63 = vld [vmem:[%s6883_s10 + $0x648] sm:$0xf]  ;;  %v4792_v39 = vld [vmem:[%s6883_s10 + $0x24c] sm:$0xf] }
 0x286   : > { %2868 = vmatmul.bf16.vlgmr.msrb.gmra.mxu2 %v6980_v32  ;;  %2887 = vmatmul.bf16.vlgmr.msrb.gmra.mxu3 %v6985_v37  ;;  %v4228_v31 = vor.u32 %v4826_v25, %v4227_v24  ;;  %v4822_v44 = vld [vmem:[%s6883_s10 + $0x334] sm:$0xf0] }
 0x287   : > { %2939 = vmatpush.bf16.msra.mxu2 %v4388_v3  ;;  %v4212_v54 = vor.u32 %v4822_v44, %v4211_v43  ;;  %v3925_v3 = vld [vmem:[%s6883_s10 + $0xf8] sm:$0xf0]  ;;  %v4922_v1 = vld [vmem:[%s6883_s10 + $0x654] sm:$0xf0] }
 0x288   : > { %2920 = vmatpush.bf16.msra.mxu1 %v4260_v7  ;;  %v4612_v11 = vor.u32 %v4922_v1, %v4611_v63 }
 0x289   : > { %2899 = vmatpush.bf16.msra.mxu0 %v4164_v46  ;;  %2956 = vmatpush.bf16.msra.mxu3 %v4548_v55  ;;  %v4100_v46 = vor.u32 %v4794_v29, %v4099_v28  ;;  %v4886_v55 = vld [vmem:[%s6883_s10 + $0x534] sm:$0xf0]  ;;  %v4643_v28 = vld [vmem:[%s6883_s10 + $0x688] sm:$0xf] }
 0x28a   : > { %v4468_v7 = vor.u32 %v4886_v55, %v4467_v50  ;;  %v4930_v29 = vld [vmem:[%s6883_s10 + $0x694] sm:$0xf0]  ;;  %v4804_v50 = vld [vmem:[%s6883_s10 + $0x2ac] sm:$0xf]  ;;  %v4005_v55 = vld [vmem:[%s6883_s10 + $0x198] sm:$0xf0] }
 0x28b   : > { %2940 = vmatpush.bf16.msra.mxu2 %v4372_v15  ;;  %v4659_v15 = vld [vmem:[%s6883_s10 + $0x6a8] sm:$0xf]  ;;  %v4644_v43 = vor.u32 %v4930_v29, %v4643_v28  ;;  %v4914_v29 = vld [vmem:[%s6883_s10 + $0x614] sm:$0xf0] }
 0x28c   : > { %2921 = vmatpush.bf16.msra.mxu1 %v4244_v19  ;;  %v4037_v19 = vld [vmem:[%s6883_s10 + $0x1d8] sm:$0xf0]  ;;  %v4660_v24 = vor.u32 %v4934_v16, %v4659_v15  ;;  %v4579_v28 = vld [vmem:[%s6883_s10 + $0x608] sm:$0xf] }
 0x28d   : > { %2900 = vmatpush.bf16.msra.mxu0 %v4148_v2  ;;  %2957 = vmatpush.bf16.msra.mxu3 %v4532_v6  ;;  %v4748_v2 = vld [vmem:[%s6883_s10 + $0xec] sm:$0xf]  ;;  %v4067_v6 = vld [vmem:[%s6883_s10 + $0x208] sm:$0xf] }
 0x28e   : > { %v3928_v13 = vor.u32 %v4748_v2, %v3925_v3  ;;  %v4068_v20 = vor.u32 %v4786_v8, %v4067_v6  ;;  %v4133_v6 = vld [vmem:[%s6883_s10 + $0x298] sm:$0xf0]  ;;  %v4764_v8 = vld [vmem:[%s6883_s10 + $0x16c] sm:$0xf] }
 0x28f   : > { %2941 = vmatpush.bf16.msra.mxu2 %v4356_v27  ;;  %v4808_v27 = vld [vmem:[%s6883_s10 + $0x2cc] sm:$0xf] }
 0x290   : > { %2922 = vmatpush.bf16.msra.mxu1 %v4228_v31  ;;  %v4165_v31 = vld [vmem:[%s6883_s10 + $0x2d8] sm:$0xf0] }
 0x291   : > { %2901 = vmatpush.bf16.msra.mxu0 %v4132_v14  ;;  %2958 = vmatpush.bf16.msra.mxu3 %v4516_v18  ;;  %v4812_v14 = vld [vmem:[%s6883_s10 + $0x2ec] sm:$0xf]  ;;  %v4168_v44 = vor.u32 %v4808_v27, %v4165_v31  ;;  %v3845_v27 = vld [vmem:[%s6883_s10 + $0x58] sm:$0xf0] }
 0x292   : > { %v4776_v18 = vld [vmem:[%s6883_s10 + $0x1cc] sm:$0xf]  ;;  %v4184_v25 = vor.u32 %v4812_v14, %v4181_v17  ;;  %v4918_v14 = vld [vmem:[%s6883_s10 + $0x634] sm:$0xf0] }
 0x293   : > { %2942 = vmatpush.bf16.msra.mxu2 %v4340_v47  ;;  %4668 = vmatmul.msk.bf16.gmra.mxu1 %vm2587_vm0, %v7210_v0  ;;  %v4627_v47 = vld [vmem:[%s6883_s10 + $0x668] sm:$0xf]  ;;  %v4796_v17 = vld [vmem:[%s6883_s10 + $0x26c] sm:$0xf] }
 0x294   : > { %2923 = vmatpush.bf16.msra.mxu1 %v4212_v54  ;;  %2835 = vmatmul.bf16.gmra.mxu0 %v7205_v60  ;;  %v4768_v54 = vld [vmem:[%s6883_s10 + $0x18c] sm:$0xf]  ;;  %v4628_v57 = vor.u32 %v4926_v48, %v4627_v47  ;;  %v3957_v47 = vld [vmem:[%s6883_s10 + $0x138] sm:$0xf0]  ;;  %v4580_v48 = vor.u32 %v4914_v29, %v4579_v28 }
 0x295   : > { %2902 = vmatpush.bf16.msra.mxu0 %v4116_v26  ;;  %2959 = vmatpush.bf16.msra.mxu3 %v4500_v30  ;;  %v4040_v26 = vor.u32 %v4776_v18, %v4037_v19  ;;  %v3912_v30 = vor.u32 %v4744_v21, %v3909_v22  ;;  %v4117_v18 = vld [vmem:[%s6883_s10 + $0x278] sm:$0xf0]  ;;  %v4760_v21 = vld [vmem:[%s6883_s10 + $0x14c] sm:$0xf] }
 0x296   : > { %2873 = vmatmul.bf16.gmra.mxu2 %v7057_v33  ;;  %2892 = vmatmul.bf16.gmra.mxu3 %v7062_v40  ;;  %v3973_v22 = vld [vmem:[%s6883_s10 + $0x158] sm:$0xf0]  ;;  %v4844_v31 = vld [vmem:[%s6883_s10 + $0x3ec] sm:$0xf] }
 0x297   : > { %2943 = vmatpush.bf16.msra.mxu2 %v4324_v5  ;;  %v4800_v5 = vld [vmem:[%s6883_s10 + $0x28c] sm:$0xf]  ;;  %v3976_v36 = vor.u32 %v4760_v21, %v3973_v22  ;;  %v4069_v21 = vld [vmem:[%s6883_s10 + $0x218] sm:$0xf0] }
 0x298   : > { %2924 = vmatpush.bf16.msra.mxu1 %v4196_v9  ;;  %v3989_v9 = vld [vmem:[%s6883_s10 + $0x178] sm:$0xf0]  ;;  %v4136_v15 = vor.u32 %v4800_v5, %v4133_v6  ;;  %v4904_v28 = vld [vmem:[%s6883_s10 + $0x5cc] sm:$0xf] }
 0x299   : > { %2903 = vmatpush.bf16.msra.mxu0 %v4100_v46  ;;  %2960 = vmatpush.bf16.msra.mxu3 %v4484_v53  ;;  %v4024_v46 = vor.u32 %v4772_v34, %v4021_v35  ;;  %v4149_v53 = vld [vmem:[%s6883_s10 + $0x2b8] sm:$0xf0]  ;;  %v3992_v16 = vor.u32 %v4764_v8, %v3989_v9  ;;  %v4120_v35 = vor.u32 %v4796_v17, %v4117_v18  ;;  %v4908_v8 = vld [vmem:[%s6883_s10 + $0x5ec] sm:$0xf] }
 0x29a   : > { %v4152_v3 = vor.u32 %v4804_v50, %v4149_v53  ;;  %v4309_v34 = vld [vmem:[%s6883_s10 + $0x3f8] sm:$0xf0]  ;;  %v4784_v18 = vld [vmem:[%s6883_s10 + $0x20c] sm:$0xf] }
 0x29b   : > { %3012 = vmatpush.bf16.msrb.mxu2 %v4056_v12  ;;  %v3861_v12 = vld [vmem:[%s6883_s10 + $0x78] sm:$0xf0]  ;;  %v4312_v53 = vor.u32 %v4844_v31, %v4309_v34  ;;  %v4872_v34 = vld [vmem:[%s6883_s10 + $0x4cc] sm:$0xf] }
 0x29c   : > { %2993 = vmatpush.bf16.msrb.mxu1 %v3928_v13  ;;  %v4595_v13 = vld [vmem:[%s6883_s10 + $0x628] sm:$0xf]  ;;  %v3829_v50 = vld [vmem:[%s6883_s10 + $0x38] sm:$0xf0] }
 0x29d   : > { %2904 = vmatpush.bf16.msra.mxu0 %v4084_v4  ;;  %2961 = vmatpush.bf16.msra.mxu3 %v4468_v7  ;;  %v4008_v4 = vor.u32 %v4768_v54, %v4005_v55  ;;  %v3880_v7 = vor.u32 %v4736_v58, %v3877_v62  ;;  %v4085_v58 = vld [vmem:[%s6883_s10 + $0x238] sm:$0xf0]  ;;  %v4752_v62 = vld [vmem:[%s6883_s10 + $0x10c] sm:$0xf] }
 0x29e   : > { %v7408_v61 = vpop.f32.mrf.mxu0  ;;  %v3813_v5 = vld [vmem:[%s6883_s10 + $0x18] sm:$0xf0] }
 0x29f   : > { %3013 = vmatpush.bf16.msrb.mxu2 %v4040_v26  ;;  %v7413_v2 = vpop.f32.mrf.mxu1  ;;  %v4565_v9 = vld [vmem:[%s6883_s10 + $0x5f8] sm:$0xf0] }
 0x2a0   : > { %2994 = vmatpush.bf16.msrb.mxu1 %v3912_v30  ;;  %v4568_v22 = vor.u32 %v4908_v8, %v4565_v9  ;;  %v4549_v29 = vld [vmem:[%s6883_s10 + $0x5d8] sm:$0xf0]  ;;  %v4832_v8 = vld [vmem:[%s6883_s10 + $0x38c] sm:$0xf] }
 0x2a1   : > { %2905 = vmatpush.bf16.msra.mxu0 %v4068_v20  ;;  %2962 = vmatpush.bf16.msra.mxu3 %v4452_v23  ;;  %v3864_v20 = vor.u32 %v4732_v10, %v3861_v12  ;;  %v4728_v23 = vld [vmem:[%s6883_s10 + $0x4c] sm:$0xf]  ;;  %v4261_v9 = vld [vmem:[%s6883_s10 + $0x398] sm:$0xf0] }
 0x2a2   : > { %v4876_v10 = vld [vmem:[%s6883_s10 + $0x4ec] sm:$0xf] }
 0x2a3   : > { %3014 = vmatpush.bf16.msrb.mxu2 %v4024_v46  ;;  %2925 = vmatmul.bf16.vlgmr.msra.gmra.mxu1 %v6991_v41  ;;  %v4756_v46 = vld [vmem:[%s6883_s10 + $0x12c] sm:$0xf] }
 0x2a4   : > { %2995 = vmatpush.bf16.msrb.mxu1 %v3896_v49  ;;  %2906 = vmatmul.bf16.vlgmr.msra.gmra.mxu0 %v6987_v38  ;;  %v4724_v49 = vld [vmem:[%s6883_s10 + $0x2c] sm:$0xf]  ;;  %v3960_v55 = vor.u32 %v4756_v46, %v3957_v47  ;;  %v7491_v47 = vpop.permute.xlu2 %3148 }
 0x2a5   : > { %2976 = vmatpush.bf16.msrb.mxu0 %v4660_v24  ;;  %3031 = vmatpush.bf16.msrb.mxu3 %v4184_v25  ;;  %v7429_v19 = vpop.f32.mrf.mxu2  ;;  %v4596_v24 = vor.u32 %v4918_v14, %v4595_v13  ;;  %v3832_v1 = vor.u32 %v4724_v49, %v3829_v50  ;;  %v4437_v13 = vld [vmem:[%s6883_s10 + $0x4f8] sm:$0xf0]  ;;  %v4840_v14 = vld [vmem:[%s6883_s10 + $0x3cc] sm:$0xf] }
 0x2a6   : > { %2944 = vmatmul.bf16.vlgmr.msra.gmra.mxu2 %v7130_v51  ;;  %2963 = vmatmul.bf16.vlgmr.msra.gmra.mxu3 %v7132_v52  ;;  %v7434_v25 = vpop.f32.mrf.mxu3  ;;  %v7436_v26 = vpop.f32.mrf.mxu0  ;;  %v4900_v49 = vld [vmem:[%s6883_s10 + $0x5ac] sm:$0xf]  ;;  %v4533_v50 = vld [vmem:[%s6883_s10 + $0x5b8] sm:$0xf0] }
 0x2a7   : > { %3015 = vmatpush.bf16.msrb.mxu2 %v4008_v4  ;;  %v7441_v30 = vpop.f32.mrf.mxu1  ;;  %v4720_v4 = vld [vmem:[%s6883_s10 + $0xc] sm:$0xf] }
 0x2a8   : > { %2996 = vmatpush.bf16.msrb.mxu1 %v3880_v7 }
 0x2a9   : > { %2977 = vmatpush.bf16.msrb.mxu0 %v4644_v43  ;;  %3032 = vmatpush.bf16.msrb.mxu3 %v4168_v44  ;;  %v3848_v43 = vor.u32 %v4728_v23, %v3845_v27  ;;  %v4101_v44 = vld [vmem:[%s6883_s10 + $0x258] sm:$0xf0]  ;;  %v4932_v23 = vld [vmem:[%s6883_s10 + $0x6ac] sm:$0xf]  ;;  %v4440_v27 = vor.u32 %v4876_v10, %v4437_v13  ;;  %v4536_v13 = vor.u32 %v4900_v49, %v4533_v50 }
 0x2aa   : > { %v4104_v54 = vor.u32 %v4792_v39, %v4101_v44  ;;  %v4836_v39 = vld [vmem:[%s6883_s10 + $0x3ac] sm:$0xf]  ;;  %v4072_v44 = vor.u32 %v4784_v18, %v4069_v21 }
 0x2ab   : > { %3016 = vmatpush.bf16.msrb.mxu2 %v3992_v16  ;;  %v4924_v18 = vld [vmem:[%s6883_s10 + $0x66c] sm:$0xf] }
 0x2ac   : > { %2997 = vmatpush.bf16.msrb.mxu1 %v3864_v20  ;;  %v3816_v20 = vor.u32 %v4720_v4, %v3813_v5  ;;  %v4405_v5 = vld [vmem:[%s6883_s10 + $0x4b8] sm:$0xf0]  ;;  %v7533_v50 = vpop.permute.xlu2 %3153 }
 0x2ad   : > { %2978 = vmatpush.bf16.msrb.mxu0 %v4628_v57  ;;  %3033 = vmatpush.bf16.msrb.mxu3 %v4152_v3  ;;  %v4788_v57 = vld [vmem:[%s6883_s10 + $0x22c] sm:$0xf]  ;;  %v7454_v63 = vpop.f32.mrf.mxu2  ;;  %v3941_v3 = vld [vmem:[%s6883_s10 + $0x118] sm:$0xf0] }
 0x2ae   : > { %v7459_v6 = vpop.f32.mrf.mxu3  ;;  %v4088_v16 = vor.u32 %v4788_v57, %v4085_v58  ;;  %v3944_v17 = vor.u32 %v4752_v62, %v3941_v3  ;;  %v4928_v57 = vld [vmem:[%s6883_s10 + $0x68c] sm:$0xf]  ;;  %v4645_v58 = vld [vmem:[%s6883_s10 + $0x698] sm:$0xf0] }
 0x2af   : > { %3017 = vmatpush.bf16.msrb.mxu2 %v3976_v36  ;;  %v7461_v7 = vpop.f32.mrf.mxu0  ;;  %v7468_v12 = vpop.f32.mrf.mxu1  ;;  %v4421_v36 = vld [vmem:[%s6883_s10 + $0x4d8] sm:$0xf0] }
 0x2b0   : > { %2998 = vmatpush.bf16.msrb.mxu1 %v3848_v43  ;;  %v4277_v43 = vld [vmem:[%s6883_s10 + $0x3b8] sm:$0xf0] }
 0x2b1   : > { %2979 = vmatpush.bf16.msrb.mxu0 %v4612_v11  ;;  %3034 = vmatpush.bf16.msrb.mxu3 %v4136_v15  ;;  %v7466_v11 = vpop.permute.xlu0 %1419  ;;  %v4293_v15 = vld [vmem:[%s6883_s10 + $0x3d8] sm:$0xf0]  ;;  %v4280_v62 = vor.u32 %v4836_v39, %v4277_v43  ;;  %v4920_v39 = vld [vmem:[%s6883_s10 + $0x64c] sm:$0xf] }
 0x2b2   : > { %v4296_v31 = vor.u32 %v4840_v14, %v4293_v15  ;;  %v4648_v14 = vor.u32 %v4928_v57, %v4645_v58  ;;  %v4896_v15 = vld [vmem:[%s6883_s10 + $0x58c] sm:$0xf]  ;;  %v4613_v43 = vld [vmem:[%s6883_s10 + $0x658] sm:$0xf0] }
 0x2b3   : > { %3018 = vmatpush.bf16.msrb.mxu2 %v3960_v55  ;;  %2930 = vmatmul.bf16.gmra.mxu1 %v7068_v45  ;;  %v4424_v55 = vor.u32 %v4872_v34, %v4421_v36  ;;  %v4828_v34 = vld [vmem:[%s6883_s10 + $0x36c] sm:$0xf] }
 0x2b4   : > { %2999 = vmatpush.bf16.msrb.mxu1 %v3832_v1  ;;  %2911 = vmatmul.bf16.gmra.mxu0 %v7064_v42  ;;  %v4868_v1 = vld [vmem:[%s6883_s10 + $0x4ac] sm:$0xf] }
 0x2b5   : > { %2980 = vmatpush.bf16.msrb.mxu0 %v4596_v24  ;;  %3035 = vmatpush.bf16.msrb.mxu3 %v4120_v35  ;;  %v4661_v24 = vld [vmem:[%s6883_s10 + $0x6b8] sm:$0xf0]  ;;  %v2604_v35 = vadd.f32 %v7408_v61, %v7466_v11  ;;  %v4860_v58 = vld [vmem:[%s6883_s10 + $0x46c] sm:$0xf] }
 0x2b6   : > { %2949 = vmatmul.bf16.gmra.mxu2 %v7203_v59  ;;  %2968 = vmatmul.bf16.gmra.mxu3 %v7205_v60  ;;  %v4664_v61 = vor.u32 %v4932_v23, %v4661_v24  ;;  %v4864_v23 = vld [vmem:[%s6883_s10 + $0x48c] sm:$0xf]  ;;  %v4389_v24 = vld [vmem:[%s6883_s10 + $0x498] sm:$0xf0] }
 0x2b7   : > { %3019 = vmatpush.bf16.msrb.mxu2 %v3944_v17  ;;  %v7489_v46 = vpop.f32.mrf.mxu2  ;;  %v2623_v3 = vadd.f32 %v7413_v2, %v2604_v35  ;;  %v7503_v4 = vpop.f32.mrf.mxu1  ;;  %v4408_v2 = vor.u32 %v4868_v1, %v4405_v5  ;;  %v4264_v17 = vor.u32 %v4832_v8, %v4261_v9  ;;  %v4245_v35 = vld [vmem:[%s6883_s10 + $0x378] sm:$0xf0]  ;;  %v4616_v5 = vor.u32 %v4920_v39, %v4613_v43  ;;  %v4824_v8 = vld [vmem:[%s6883_s10 + $0x34c] sm:$0xf] }
 0x2b8   : > { %3000 = vmatpush.bf16.msrb.mxu1 %v3816_v20  ;;  %v4629_v20 = vld [vmem:[%s6883_s10 + $0x678] sm:$0xf0]  ;;  %v4248_v57 = vor.u32 %v4828_v34, %v4245_v35 }
 0x2b9   : > { %2981 = vmatpush.bf16.msrb.mxu0 %v4580_v48  ;;  %3036 = vmatpush.bf16.msrb.mxu3 %v4104_v54  ;;  %v4552_v48 = vor.u32 %v4904_v28, %v4549_v29  ;;  %v7497_v54 = vpop.f32.mrf.mxu0  ;;  %v7508_v10 = vpop.permute.xlu0 %1424  ;;  %v2642_v21 = vadd.f32 %v7429_v19, %v2623_v3  ;;  %v4632_v29 = vor.u32 %v4924_v18, %v4629_v20  ;;  %v4229_v9 = vld [vmem:[%s6883_s10 + $0x358] sm:$0xf0] }
 0x2ba   : > { %v7524_v19 = vpop.permute.xlu1 %1429  ;;  %v4357_v18 = vld [vmem:[%s6883_s10 + $0x458] sm:$0xf0] }
 0x2bb   : > { %3088 = vmatpush.bf16.msra.mxu2 %v4568_v22  ;;  %v2606_v22 = vadd.f32 %v7436_v26, %v7508_v10  ;;  %v4501_v26 = vld [vmem:[%s6883_s10 + $0x578] sm:$0xf0] }
 0x2bc   : > { %3069 = vmatpush.bf16.msra.mxu1 %v4440_v27 }
 0x2bd   : > { %3050 = vmatpush.bf16.msra.mxu0 %v4312_v53  ;;  %3037 = vmatpush.bf16.msrb.mxu3 %v4088_v16  ;;  %v7495_v53 = vpop.f32.mrf.mxu3  ;;  %v4517_v16 = vld [vmem:[%s6883_s10 + $0x598] sm:$0xf0]  ;;  %v2625_v49 = vadd.f32 %v7441_v30, %v2606_v22  ;;  %v4820_v22 = vld [vmem:[%s6883_s10 + $0x32c] sm:$0xf] }
 0x2be   : > { %v4520_v28 = vor.u32 %v4896_v15, %v4517_v16  ;;  %v4485_v30 = vld [vmem:[%s6883_s10 + $0x558] sm:$0xf0]  ;;  %v4232_v16 = vor.u32 %v4824_v8, %v4229_v9 }
 0x2bf   : > { %3089 = vmatpush.bf16.msra.mxu2 %v4552_v48  ;;  %v7519_v27 = vpop.f32.mrf.mxu2  ;;  %v2644_v15 = vadd.f32 %v7454_v63, %v2625_v49  ;;  %v4852_v49 = vld [vmem:[%s6883_s10 + $0x42c] sm:$0xf] }
 0x2c0   : > { %3070 = vmatpush.bf16.msra.mxu1 %v4424_v55  ;;  %v2698_v48 = vpop.f32.mrf.mxu1  ;;  %v4392_v55 = vor.u32 %v4864_v23, %v4389_v24  ;;  %v4213_v23 = vld [vmem:[%s6883_s10 + $0x338] sm:$0xf0] }
 0x2c1   : > { %3051 = vmatpush.bf16.msra.mxu0 %v4296_v31  ;;  %3038 = vmatpush.bf16.msrb.mxu3 %v4072_v44  ;;  %v4892_v31 = vld [vmem:[%s6883_s10 + $0x56c] sm:$0xf]  ;;  %v2661_v44 = vadd.f32 %v7434_v25, %v2642_v21  ;;  %v4469_v24 = vld [vmem:[%s6883_s10 + $0x538] sm:$0xf0] }
 0x2c2   : > { %v4504_v3 = vor.u32 %v4892_v31, %v4501_v26  ;;  %v4888_v25 = vld [vmem:[%s6883_s10 + $0x54c] sm:$0xf]  ;;  %v2663_v31 = vadd.f32 %v7459_v6, %v2644_v15  ;;  %v7563_v43 = vpop.permute.xlu1 %1434 }
 0x2c3   : > { %3090 = vmatpush.bf16.msra.mxu2 %v4536_v13  ;;  %3001 = vmatmul.bf16.vlgmr.msrb.gmra.mxu1 %v6980_v32  ;;  %v4916_v13 = vld [vmem:[%s6883_s10 + $0x62c] sm:$0xf]  ;;  %v4488_v63 = vor.u32 %v4888_v25, %v4485_v30  ;;  %v4453_v25 = vld [vmem:[%s6883_s10 + $0x518] sm:$0xf0]  ;;  %v2611_v30 = vadd.f32 %v7497_v54, %v7563_v43 }
 0x2c4   : > { %3071 = vmatpush.bf16.msra.mxu1 %v4408_v2  ;;  %4669 = vmatmul.msk.bf16.vlgmr.msrb.gmra.mxu0 %vm2587_vm0, %v7137_v56  ;;  %v2609_v2 = vadd.f32 %v7461_v7, %v7524_v19  ;;  %v4884_v21 = vld [vmem:[%s6883_s10 + $0x52c] sm:$0xf] }
 0x2c5   : > { %3109 = vmatpush.bf16.msra.mxu3 %v4664_v61  ;;  %3052 = vmatpush.bf16.msra.mxu0 %v4280_v62  ;;  %v7526_v36 = vpop.f32.mrf.mxu3  ;;  %v2679_v61 = vpop.f32.mrf.mxu0  ;;  %v4373_v62 = vld [vmem:[%s6883_s10 + $0x478] sm:$0xf0] }
 0x2c6   : > { %v2680_v1 = vadd.f32 %v2679_v61, %v2661_v44  ;;  %3020 = vmatmul.bf16.vlgmr.msrb.gmra.mxu2 %v6985_v37  ;;  %3039 = vmatmul.bf16.vlgmr.msrb.gmra.mxu3 %v6987_v38  ;;  %v4376_v32 = vor.u32 %v4860_v58, %v4373_v62  ;;  %v2628_v34 = vadd.f32 %v7468_v12, %v2609_v2  ;;  %v7565_v44 = vpop.permute.xlu0 %3158  ;;  %v4816_v58 = vld [vmem:[%s6883_s10 + $0x30c] sm:$0xf]  ;;  %v4197_v62 = vld [vmem:[%s6883_s10 + $0x318] sm:$0xf0] }
 0x2c7   : > { %3091 = vmatpush.bf16.msra.mxu2 %v4520_v28  ;;  %v4912_v28 = vld [vmem:[%s6883_s10 + $0x60c] sm:$0xf]  ;;  %v4472_v12 = vor.u32 %v4884_v21, %v4469_v24 }
 0x2c8   : > { %3072 = vmatpush.bf16.msra.mxu1 %v4392_v55  ;;  %v2699_v20 = vadd.f32 %v2698_v48, %v2680_v1  ;;  %v2700_v39 = vpop.f32.mrf.mxu1  ;;  %v4216_v48 = vor.u32 %v4820_v22, %v4213_v23  ;;  %v4341_v55 = vld [vmem:[%s6883_s10 + $0x438] sm:$0xf0]  ;;  %v2647_v8 = vadd.f32 %v7489_v46, %v2628_v34  ;;  %v2630_v23 = vadd.f32 %v7503_v4, %v2611_v30 }
 0x2c9   : > { %3110 = vmatpush.bf16.msra.mxu3 %v4648_v14  ;;  %3053 = vmatpush.bf16.msra.mxu0 %v4264_v17  ;;  %v4597_v14 = vld [vmem:[%s6883_s10 + $0x638] sm:$0xf0]  ;;  %v4856_v17 = vld [vmem:[%s6883_s10 + $0x44c] sm:$0xf]  ;;  %v2717_v37 = vpop.f32.mrf.mxu2 }
 0x2ca   : > { %v4600_v7 = vor.u32 %v4916_v13, %v4597_v14  ;;  %v2718_v35 = vadd.f32 %v2717_v37, %v2699_v20  ;;  %v4360_v61 = vor.u32 %v4856_v17, %v4357_v18  ;;  %v4344_v13 = vor.u32 %v4852_v49, %v4341_v55  ;;  %v4325_v17 = vld [vmem:[%s6883_s10 + $0x418] sm:$0xf0] }
 0x2cb   : > { %3092 = vmatpush.bf16.msra.mxu2 %v4504_v3  ;;  %v7573_v3 = vpop.permute.xlu2 %3188  ;;  %v4200_v14 = vor.u32 %v4816_v58, %v4197_v62  ;;  %v2666_v46 = vadd.f32 %v7495_v53, %v2647_v8 }
 0x2cc   : > { %3073 = vmatpush.bf16.msra.mxu1 %v4376_v32  ;;  %v3126_v6 = vmax.f32 %v2718_v35, 0.0 }
 0x2cd   : > { %3111 = vmatpush.bf16.msra.mxu3 %v4632_v29  ;;  %3054 = vmatpush.bf16.msra.mxu0 %v4248_v57  ;;  %v7556_v38 = vpop.f32.mrf.mxu3  ;;  %v4581_v29 = vld [vmem:[%s6883_s10 + $0x618] sm:$0xf0]  ;;  %v2681_v26 = vpop.f32.mrf.mxu0 }
 0x2ce   : > { %v2682_v57 = vadd.f32 %v2681_v26, %v2663_v31  ;;  %v4584_v1 = vor.u32 %v4912_v28, %v4581_v29  ;;  %v3166_v9 = vmul.f32 %v7491_v47, %v3126_v6  ;;  %v7596_v53 = vpop.permute.xlu0 %3193  ;;  %v2649_v28 = vadd.f32 %v7519_v27, %v2630_v23 }
 0x2cf   : > { %3093 = vmatpush.bf16.msra.mxu2 %v4488_v63 }
 0x2d0   : > { %3074 = vmatpush.bf16.msra.mxu1 %v4360_v61  ;;  %v2701_v15 = vadd.f32 %v2700_v39, %v2682_v57  ;;  %v3206_v2 = vadd.f32 %v7573_v3, %v3166_v9  ;;  %v2703_v21 = vpop.f32.mrf.mxu1  ;;  %v2668_v26 = vadd.f32 %v7526_v36, %v2649_v28 }
 0x2d1   : > { %3112 = vmatpush.bf16.msra.mxu3 %v4616_v5  ;;  %3055 = vmatpush.bf16.msra.mxu0 %v4232_v16  ;;  %v4880_v5 = vld [vmem:[%s6883_s10 + $0x50c] sm:$0xf]  ;;  %v2719_v18 = vpop.f32.mrf.mxu2 }
 0x2d2   : > { %v4456_v32 = vor.u32 %v4880_v5, %v4453_v25  ;;  %v4848_v16 = vld [vmem:[%s6883_s10 + $0x40c] sm:$0xf]  ;;  %3222 = vst [vmem:[%s7587_s18] sm:$0xff] %v3206_v2  ;;  %v2720_v54 = vadd.f32 %v2719_v18, %v2701_v15  ;;  %v2737_v2 = vadd.f32 %v7556_v38, %v7466_v11  ;;  %s4935_s10 = sshll.u32 (%p5448_p5), %s5433_s21, 5 }
 0x2d3   : > { %3094 = vmatpush.bf16.msra.mxu2 %v4472_v12  ;;  %v4328_v22 = vor.u32 %v4848_v16, %v4325_v17  ;;  %3006 = vmatmul.bf16.gmra.mxu1 %v7057_v33  ;;  %s7682_s8 = scalar_lea.vmem (%p5448_p5), %s7999_s5, %s4935_s10  }
 0x2d4   : > { %3075 = vmatpush.bf16.msra.mxu1 %v4344_v13  ;;  %v3130_v37 = vmax.f32 %v2720_v54, 0.0  ;;  %4670 = vmatmul.msk.bf16.gmra.mxu0 %vm2587_vm0, %v7210_v0 }
 0x2d5   : > { %3113 = vmatpush.bf16.msra.mxu3 %v4600_v7  ;;  %3056 = vmatpush.bf16.msra.mxu0 %v4216_v48  ;;  %v7584_v20 = vpop.f32.mrf.mxu3  ;;  %v2684_v63 = vpop.f32.mrf.mxu0 }
 0x2d6   : > { %v7590_v7 = vpop.permute.xlu1 %3163  ;;  %v2685_v24 = vadd.f32 %v2684_v63, %v2666_v46  ;;  %v3170_v29 = vmul.f32 %v7533_v50, %v3130_v37  ;;  %3025 = vmatmul.bf16.gmra.mxu2 %v7062_v40  ;;  %3044 = vmatmul.bf16.gmra.mxu3 %v7064_v42  ;;  %v2739_v46 = vadd.f32 %v7584_v20, %v7508_v10 }
 0x2d7   : > { %3095 = vmatpush.bf16.msra.mxu2 %v4456_v32 }
 0x2d8   : > { %3076 = vmatpush.bf16.msra.mxu1 %v4328_v22  ;;  %v2704_v4 = vadd.f32 %v2703_v21, %v2685_v24  ;;  %v3210_v31 = vadd.f32 %v7596_v53, %v3170_v29  ;;  %v2705_v61 = vpop.f32.mrf.mxu1 }
 0x2d9   : > { %3114 = vmatpush.bf16.msra.mxu3 %v4584_v1  ;;  %3057 = vmatpush.bf16.msra.mxu0 %v4200_v14  ;;  %v2722_v34 = vpop.f32.mrf.mxu2  ;;  %v7612_v1 = vpop.permute.xlu2 %3203 }
 0x2da   : > { %3226 = vst [vmem:[%s7587_s18 + $0x20] sm:$0xff] %v3210_v31  ;;  %v2723_v33 = vadd.f32 %v2722_v34, %v2704_v4 }
 0x2dc   : > { %v3134_v27 = vmax.f32 %v2723_v33, 0.0 }
 0x2dd   : > { %v2741_v35 = vpop.f32.mrf.mxu3  ;;  %v2686_v39 = vpop.f32.mrf.mxu0 }
 0x2de   : > { %v2687_v48 = vadd.f32 %v2686_v39, %v2668_v26  ;;  %v7605_v49 = vpop.permute.xlu1 %3198  ;;  %v3174_v40 = vmul.f32 %v7565_v44, %v3134_v27 }
 0x2e0   : > { %v2706_v42 = vadd.f32 %v2705_v61, %v2687_v48  ;;  %v3214_v55 = vadd.f32 %v7605_v49, %v3174_v40  ;;  %v2774_v36 = vpop.f32.mrf.mxu1 }
 0x2e1   : > { %v2724_v6 = vpop.f32.mrf.mxu2 }
 0x2e2   : > { %3230 = vst [vmem:[%s7587_s18 + $0x40] sm:$0xff] %v3214_v55  ;;  %v2725_v12 = vadd.f32 %v2724_v6, %v2706_v42 }
 0x2e3   : > { %3077 = vmatmul.bf16.vlgmr.msra.gmra.mxu1 %v7130_v51 }
 0x2e4   : > { %v3138_v62 = vmax.f32 %v2725_v12, 0.0  ;;  %3058 = vmatmul.bf16.vlgmr.msra.gmra.mxu0 %v6991_v41 }
 0x2e5   : > { %v2743_v57 = vpop.f32.mrf.mxu3  ;;  %v2755_v58 = vpop.f32.mrf.mxu0 }
 0x2e6   : > { %v3178_v5 = vmul.f32 %v7590_v7, %v3138_v62  ;;  %3096 = vmatmul.bf16.vlgmr.msra.gmra.mxu2 %v7132_v52  ;;  %4671 = vmatmul.msk.bf16.vlgmr.msra.gmra.mxu3 %vm2587_vm0, %v7137_v56  ;;  %v2756_v52 = vadd.f32 %v2755_v58, %v2737_v2  ;;  %v2744_v48 = vadd.f32 %v2743_v57, %v7563_v43 }
 0x2e8   : > { %v3218_v25 = vadd.f32 %v7612_v1, %v3178_v5  ;;  %v2776_v13 = vpop.f32.mrf.mxu1  ;;  %v2775_v18 = vadd.f32 %v2774_v36, %v2756_v52 }
 0x2e9   : > { %v2793_v8 = vpop.f32.mrf.mxu2 }
 0x2ea   : > { %3234 = vst [vmem:[%s7587_s18 + $0x60] sm:$0xff] %v3218_v25  ;;  %v2794_v54 = vadd.f32 %v2793_v8, %v2775_v18 }
 0x2ed   : > { %v2812_v9 = vpop.f32.mrf.mxu3  ;;  %v2757_v30 = vpop.f32.mrf.mxu0 }
 0x2ee   : > { %v2758_v38 = vadd.f32 %v2757_v30, %v2739_v46  ;;  %v2813_v63 = vadd.f32 %v2812_v9, %v2794_v54 }
 0x2f0   : > { %v2779_v51 = vpop.f32.mrf.mxu1 }
 0x2f1   : > { %v2795_v14 = vpop.f32.mrf.mxu2 }
 0x2f3   : > { %3082 = vmatmul.bf16.gmra.mxu1 %v7203_v59 }
 0x2f4   : > { %3063 = vmatmul.bf16.gmra.mxu0 %v7068_v45 }
 0x2f5   : > { %v2814_v41 = vpop.f32.mrf.mxu3  ;;  %v2760_v15 = vpop.f32.mrf.mxu0 }
 0x2f6   : > { %3101 = vmatmul.bf16.gmra.mxu2 %v7205_v60  ;;  %4672 = vmatmul.msk.bf16.gmra.mxu3 %vm2587_vm0, %v7210_v0  ;;  %v2777_v60 = vadd.f32 %v2776_v13, %v2758_v38  ;;  %v2742_v0 = vadd.f32 %v2741_v35, %v7524_v19 }
 0x2f8   : > { %v2781_v17 = vpop.f32.mrf.mxu1  ;;  %v2796_v37 = vadd.f32 %v2795_v14, %v2777_v60  ;;  %v2761_v28 = vadd.f32 %v2760_v15, %v2742_v0 }
 0x2f9   : > { %v2798_v56 = vpop.f32.mrf.mxu2 }
 0x2fa   : > { %v2815_v4 = vadd.f32 %v2814_v41, %v2796_v37  ;;  %v2780_v39 = vadd.f32 %v2779_v51, %v2761_v28 }
 0x2fc   : > { %v2799_v35 = vadd.f32 %v2798_v56, %v2780_v39 }
 0x2fd   : > { %v2817_v32 = vpop.f32.mrf.mxu3  ;;  %v2762_v16 = vpop.f32.mrf.mxu0 }
 0x2fe   : > { %v2763_v42 = vadd.f32 %v2762_v16, %v2744_v48  ;;  %v2818_v6 = vadd.f32 %v2817_v32, %v2799_v35 }
 0x300   : > { %v2850_v22 = vpop.f32.mrf.mxu1  ;;  %v2782_v25 = vadd.f32 %v2781_v17, %v2763_v42 }
 0x301   : > { %v2800_v45 = vpop.f32.mrf.mxu2 }
 0x302   : > { %v2801_v30 = vadd.f32 %v2800_v45, %v2782_v25 }
 0x305   : > { %v2819_v21 = vpop.f32.mrf.mxu3  ;;  %v2831_v59 = vpop.f32.mrf.mxu0 }
 0x306   : > { %v2832_v23 = vadd.f32 %v2831_v59, %v2813_v63  ;;  %v2820_v14 = vadd.f32 %v2819_v21, %v2801_v30 }
 0x308   : > { %v2851_v24 = vadd.f32 %v2850_v22, %v2832_v23  ;;  %v2852_v33 = vpop.f32.mrf.mxu1 }
 0x309   : > { %v2869_v20 = vpop.f32.mrf.mxu2 }
 0x30a   : > { %v3127_v29 = vmax.f32 %v2851_v24, 0.0  ;;  %v2870_v23 = vadd.f32 %v2869_v20, %v7466_v11 }
 0x30c   : > { %v3167_v31 = vmul.f32 %v7491_v47, %v3127_v29 }
 0x30d   : > { %v2888_v34 = vpop.f32.mrf.mxu3  ;;  %v2833_v26 = vpop.f32.mrf.mxu0 }
 0x30e   : > { %v3207_v61 = vadd.f32 %v7573_v3, %v3167_v31  ;;  %v2834_v27 = vadd.f32 %v2833_v26, %v2815_v4  ;;  %v2889_v29 = vadd.f32 %v2888_v34, %v2870_v23 }
 0x310   : > { %3223 = vst [vmem:[%s7587_s18 + $0x8] sm:$0xff] %v3207_v61  ;;  %v2853_v40 = vadd.f32 %v2852_v33, %v2834_v27  ;;  %v2855_v5 = vpop.f32.mrf.mxu1 }
 0x311   : > { %v2871_v58 = vpop.f32.mrf.mxu2 }
 0x312   : > { %v3131_v55 = vmax.f32 %v2853_v40, 0.0  ;;  %v2872_v31 = vadd.f32 %v2871_v58, %v7508_v10 }
 0x314   : > { %v3171_v12 = vmul.f32 %v7533_v50, %v3131_v55 }
 0x315   : > { %v2890_v36 = vpop.f32.mrf.mxu3  ;;  %v2836_v62 = vpop.f32.mrf.mxu0 }
 0x316   : > { %v3211_v8 = vadd.f32 %v7596_v53, %v3171_v12  ;;  %v2837_v9 = vadd.f32 %v2836_v62, %v2818_v6  ;;  %v2891_v48 = vadd.f32 %v2890_v36, %v2872_v31 }
 0x318   : > { %3227 = vst [vmem:[%s7587_s18 + $0x28] sm:$0xff] %v3211_v8  ;;  %v2856_v57 = vadd.f32 %v2855_v5, %v2837_v9  ;;  %v2857_v52 = vpop.f32.mrf.mxu1 }
 0x319   : > { %v2874_v15 = vpop.f32.mrf.mxu2 }
 0x31a   : > { %v3135_v13 = vmax.f32 %v2856_v57, 0.0  ;;  %v2875_v42 = vadd.f32 %v2874_v15, %v7524_v19 }
 0x31c   : > { %v3175_v41 = vmul.f32 %v7565_v44, %v3135_v13 }
 0x31d   : > { %v2893_v51 = vpop.f32.mrf.mxu3  ;;  %v2838_v2 = vpop.f32.mrf.mxu0 }
 0x31e   : > { %v3215_v56 = vadd.f32 %v7605_v49, %v3175_v41  ;;  %v2839_v32 = vadd.f32 %v2838_v2, %v2820_v14  ;;  %v2894_v25 = vadd.f32 %v2893_v51, %v2875_v42 }
 0x320   : > { %3231 = vst [vmem:[%s7587_s18 + $0x48] sm:$0xff] %v3215_v56  ;;  %v2858_v16 = vadd.f32 %v2857_v52, %v2839_v32  ;;  %v2926_v63 = vpop.f32.mrf.mxu1 }
 0x321   : > { %v2876_v46 = vpop.f32.mrf.mxu2 }
 0x322   : > { %v3139_v17 = vmax.f32 %v2858_v16, 0.0  ;;  %v2877_v36 = vadd.f32 %v2876_v46, %v7563_v43 }
 0x324   : > { %v3179_v18 = vmul.f32 %v7590_v7, %v3139_v17 }
 0x325   : > { %v2895_v54 = vpop.f32.mrf.mxu3  ;;  %v2907_v38 = vpop.f32.mrf.mxu0 }
 0x326   : > { %v3219_v45 = vadd.f32 %v7612_v1, %v3179_v18  ;;  %v2908_v4 = vadd.f32 %v2907_v38, %v2889_v29  ;;  %v2896_v32 = vadd.f32 %v2895_v54, %v2877_v36 }
 0x328   : > { %3235 = vst [vmem:[%s7587_s18 + $0x68] sm:$0xff] %v3219_v45  ;;  %v2928_v60 = vpop.f32.mrf.mxu1  ;;  %v2927_v27 = vadd.f32 %v2926_v63, %v2908_v4 }
 0x329   : > { %v2945_v21 = vpop.f32.mrf.mxu2 }
 0x32a   : > { %v2946_v35 = vadd.f32 %v2945_v21, %v2927_v27 }
 0x32d   : > { %v2964_v59 = vpop.f32.mrf.mxu3  ;;  %v2909_v22 = vpop.f32.mrf.mxu0 }
 0x32e   : > { %v2910_v40 = vadd.f32 %v2909_v22, %v2891_v48  ;;  %v2965_v55 = vadd.f32 %v2964_v59, %v2946_v35 }
 0x330   : > { %v2931_v28 = vpop.f32.mrf.mxu1  ;;  %v2929_v34 = vadd.f32 %v2928_v60, %v2910_v40 }
 0x331   : > { %v2947_v0 = vpop.f32.mrf.mxu2 }
 0x332   : > { %v2948_v58 = vadd.f32 %v2947_v0, %v2929_v34 }
 0x335   : > { %v2966_v37 = vpop.f32.mrf.mxu3  ;;  %v2912_v24 = vpop.f32.mrf.mxu0 }
 0x336   : > { %v2913_v9 = vadd.f32 %v2912_v24, %v2894_v25  ;;  %v2967_v57 = vadd.f32 %v2966_v37, %v2948_v58 }
 0x338   : > { %v2933_v61 = vpop.f32.mrf.mxu1  ;;  %v2932_v52 = vadd.f32 %v2931_v28, %v2913_v9 }
 0x339   : > { %v2950_v26 = vpop.f32.mrf.mxu2 }
 0x33a   : > { %v2951_v51 = vadd.f32 %v2950_v26, %v2932_v52 }
 0x33d   : > { %v2969_v33 = vpop.f32.mrf.mxu3  ;;  %v2914_v39 = vpop.f32.mrf.mxu0 }
 0x33e   : > { %v2915_v17 = vadd.f32 %v2914_v39, %v2896_v32  ;;  %v2970_v38 = vadd.f32 %v2969_v33, %v2951_v51 }
 0x340   : > { %v3002_v62 = vpop.f32.mrf.mxu1  ;;  %v2934_v22 = vadd.f32 %v2933_v61, %v2915_v17 }
 0x341   : > { %v2952_v20 = vpop.f32.mrf.mxu2  ;;  %v3003_v4 = vadd.f32 %v3002_v62, %v7466_v11 }
 0x342   : > { %v2953_v23 = vadd.f32 %v2952_v20, %v2934_v22 }
 0x345   : > { %v2971_v6 = vpop.f32.mrf.mxu3  ;;  %v2983_v12 = vpop.f32.mrf.mxu0 }
 0x346   : > { %v2984_v5 = vadd.f32 %v2983_v12, %v2965_v55  ;;  %v2972_v37 = vadd.f32 %v2971_v6, %v2953_v23 }
 0x348   : > { %v3128_v8 = vmax.f32 %v2984_v5, 0.0  ;;  %v3004_v2 = vpop.f32.mrf.mxu1 }
 0x349   : > { %v3021_v14 = vpop.f32.mrf.mxu2  ;;  %v3005_v6 = vadd.f32 %v3004_v2, %v7508_v10 }
 0x34a   : > { %v3168_v30 = vmul.f32 %v7491_v47, %v3128_v8  ;;  %v3022_v61 = vadd.f32 %v3021_v14, %v3003_v4 }
 0x34c   : > { %v3208_v13 = vadd.f32 %v7573_v3, %v3168_v30 }
 0x34d   : > { %v3040_v41 = vpop.f32.mrf.mxu3  ;;  %v2985_v15 = vpop.f32.mrf.mxu0 }
 0x34e   : > { %3224 = vst [vmem:[%s7587_s18 + $0x10] sm:$0xff] %v3208_v13  ;;  %v2986_v56 = vadd.f32 %v2985_v15, %v2967_v57  ;;  %v3041_v42 = vadd.f32 %v3040_v41, %v3022_v61 }
 0x350   : > { %v3132_v16 = vmax.f32 %v2986_v56, 0.0  ;;  %v3007_v59 = vpop.f32.mrf.mxu1 }
 0x351   : > { %v3023_v63 = vpop.f32.mrf.mxu2  ;;  %v3008_v58 = vadd.f32 %v3007_v59, %v7524_v19 }
 0x352   : > { %v3172_v18 = vmul.f32 %v7533_v50, %v3132_v16  ;;  %v3024_v11 = vadd.f32 %v3023_v63, %v3005_v6 }
 0x354   : > { %v3212_v46 = vadd.f32 %v7596_v53, %v3172_v18 }
 0x355   : > { %v3042_v45 = vpop.f32.mrf.mxu3  ;;  %v2988_v21 = vpop.f32.mrf.mxu0 }
 0x356   : > { %3228 = vst [vmem:[%s7587_s18 + $0x30] sm:$0xff] %v3212_v46  ;;  %v2989_v60 = vadd.f32 %v2988_v21, %v2970_v38  ;;  %v3043_v25 = vadd.f32 %v3042_v45, %v3024_v11 }
 0x358   : > { %v3136_v0 = vmax.f32 %v2989_v60, 0.0  ;;  %v3009_v26 = vpop.f32.mrf.mxu1 }
 0x359   : > { %v3026_v28 = vpop.f32.mrf.mxu2  ;;  %v3010_v19 = vadd.f32 %v3009_v26, %v7563_v43 }
 0x35a   : > { %v3176_v54 = vmul.f32 %v7565_v44, %v3136_v0  ;;  %v3027_v13 = vadd.f32 %v3026_v28, %v3008_v58 }
 0x35c   : > { %v3216_v24 = vadd.f32 %v7605_v49, %v3176_v54 }
 0x35d   : > { %v3045_v29 = vpop.f32.mrf.mxu3  ;;  %v2990_v31 = vpop.f32.mrf.mxu0 }
 0x35e   : > { %3232 = vst [vmem:[%s7587_s18 + $0x50] sm:$0xff] %v3216_v24  ;;  %v2991_v33 = vadd.f32 %v2990_v31, %v2972_v37  ;;  %v3046_v52 = vadd.f32 %v3045_v29, %v3027_v13 }
 0x360   : > { %v3140_v39 = vmax.f32 %v2991_v33, 0.0  ;;  %v3078_v20 = vpop.f32.mrf.mxu1 }
 0x361   : > { %v3028_v35 = vpop.f32.mrf.mxu2 }
 0x362   : > { %v3180_v27 = vmul.f32 %v7590_v7, %v3140_v39  ;;  %v3029_v38 = vadd.f32 %v3028_v35, %v3010_v19 }
 0x364   : > { %v3220_v48 = vadd.f32 %v7612_v1, %v3180_v27 }
 0x365   : > { %v3047_v40 = vpop.f32.mrf.mxu3  ;;  %v3059_v55 = vpop.f32.mrf.mxu0 }
 0x366   : > { %3236 = vst [vmem:[%s7587_s18 + $0x70] sm:$0xff] %v3220_v48  ;;  %v3060_v12 = vadd.f32 %v3059_v55, %v3041_v42  ;;  %v3048_v59 = vadd.f32 %v3047_v40, %v3029_v38 }
 0x368   : > { %v3079_v62 = vadd.f32 %v3078_v20, %v3060_v12  ;;  %v3080_v30 = vpop.f32.mrf.mxu1 }
 0x369   : > { %v3097_v34 = vpop.f32.mrf.mxu2 }
 0x36a   : > { %v3098_v8 = vadd.f32 %v3097_v34, %v3079_v62 }
 0x36d   : > { %v3116_v5 = vpop.f32.mrf.mxu3  ;;  %v3061_v9 = vpop.f32.mrf.mxu0 }
 0x36e   : > { %v3117_v36 = vadd.f32 %v3116_v5, %v3098_v8  ;;  %v3062_v57 = vadd.f32 %v3061_v9, %v3043_v25 }
 0x370   : > { %v3129_v14 = vmax.f32 %v3117_v36, 0.0  ;;  %v3081_v15 = vadd.f32 %v3080_v30, %v3062_v57  ;;  %v3083_v18 = vpop.f32.mrf.mxu1 }
 0x371   : > { %v3099_v10 = vpop.f32.mrf.mxu2 }
 0x372   : > { %v3169_v41 = vmul.f32 %v7491_v47, %v3129_v14  ;;  %v3100_v32 = vadd.f32 %v3099_v10, %v3081_v15 }
 0x374   : > { %v3209_v56 = vadd.f32 %v7573_v3, %v3169_v41 }
 0x375   : > { %v3118_v2 = vpop.f32.mrf.mxu3  ;;  %v3064_v51 = vpop.f32.mrf.mxu0 }
 0x376   : > { %3225 = vst [vmem:[%s7587_s18 + $0x18] sm:$0xff] %v3209_v56  ;;  %v3119_v16 = vadd.f32 %v3118_v2, %v3100_v32  ;;  %v3065_v17 = vadd.f32 %v3064_v51, %v3046_v52 }
 0x378   : > { %v3133_v46 = vmax.f32 %v3119_v16, 0.0  ;;  %v3084_v47 = vadd.f32 %v3083_v18, %v3065_v17  ;;  %v3085_v54 = vpop.f32.mrf.mxu1 }
 0x379   : > { %v3102_v45 = vpop.f32.mrf.mxu2 }
 0x37a   : > { %v3173_v63 = vmul.f32 %v7533_v50, %v3133_v46  ;;  %v3103_v22 = vadd.f32 %v3102_v45, %v3084_v47 }
 0x37c   : > { %v3213_v3 = vadd.f32 %v7596_v53, %v3173_v63 }
 0x37d   : > { %v3121_v21 = vpop.f32.mrf.mxu3  ;;  %v3066_v60 = vpop.f32.mrf.mxu0 }
 0x37e   : > { %3229 = vst [vmem:[%s7587_s18 + $0x38] sm:$0xff] %v3213_v3  ;;  %v3122_v43 = vadd.f32 %v3121_v21, %v3103_v22  ;;  %v3067_v23 = vadd.f32 %v3066_v60, %v3048_v59 }
 0x380   : > { %v3137_v0 = vmax.f32 %v3122_v43, 0.0  ;;  %v3086_v24 = vadd.f32 %v3085_v54, %v3067_v23 }
 0x381   : > { %v3104_v28 = vpop.f32.mrf.mxu2 }
 0x382   : > { %v3177_v37 = vmul.f32 %v7565_v44, %v3137_v0  ;;  %v3105_v29 = vadd.f32 %v3104_v28, %v3086_v24 }
 0x384   : > { %v3217_v50 = vadd.f32 %v7605_v49, %v3177_v37 }
 0x385   : > { %v3123_v4 = vpop.f32.mrf.mxu3 }
 0x386   : > { %3233 = vst [vmem:[%s7587_s18 + $0x58] sm:$0xff] %v3217_v50  ;;  %v3124_v31 = vadd.f32 %v3123_v4, %v3105_v29 }
 0x388   : > { %v3141_v26 = vmax.f32 %v3124_v31, 0.0 }
 0x38a   : > { %v3181_v53 = vmul.f32 %v7590_v7, %v3141_v26  ;;  %3244 = sbr.rel (!%p5448_p5) target bundleno = 1065 (0x429), region = 96 }
 0x38c   : > { %v3221_v33 = vadd.f32 %v7612_v1, %v3181_v53 }
 0x38e   : > { %3237 = vst [vmem:[%s7587_s18 + $0x78] sm:$0xff] %v3221_v33 }
 0x38f   : > { %s8036_s13 = smov (!%p3247_p9, %s3246_s13), 4 }
 0x390   : > { %s4675_s20 = sshll.u32 %s8036_s13, 5  ;;  %s7684_s9 = sshll.u32 %s8036_s13, 3 }
 0x391   : > { %p4679_p10 = scmp.eq.s32.totalorder %s4675_s20, 0 }
 0x392   : > { %p3257_p11 = scmp.lt.u32.totalorder (!%p4679_p10), %s7684_s9, 8 }
 0x393   : > { %3256 = sbr.rel (%p4679_p10) target bundleno = 1065 (0x429), region = 100 }
 0x398   : > { %3260 = sbr.rel (%p3257_p11) target bundleno = 1053 (0x41d), region = 104  ;;  %s7688_s26 = sand.u32 (!%p3257_p11), 7, %s7684_s9  }
 0x399   : > { %p3283_p5 = scmp.eq.s32.totalorder (!%p3257_p11), %s7688_s26, 0  ;;  %p4680_p12 = scmp.ne.s32.totalorder (!%p3257_p11), %s7688_s26, 0 }
 0x39d   : > { %3286 = sbr.rel (%p4680_p12) target bundleno = 985 (0x3d9), region = 119  ;;  %s3287_s21 = sshrl.u32 (!%p4680_p12), %s7684_s9, 3 }
 0x39e   : > { %s7695_s12 = sshrl.u32 (!%p4680_p12), %s3287_s21, 3 }
 0x39f   : > { %p4681_p13 = scmp.le.s32.totalorder (!%p4680_p12), %s7695_s12, 0 }
 0x3a2   : > { %3653 = sbr.rel (%p4681_p13) target bundleno = 968 (0x3c8), region = 237  ;;  %s8011_s14 = smov (!%p4681_p13), %s7682_s8 }
 0x3a3   : > { %s8012_s15 = smov (!%p4681_p13), %s7587_s18  ;;  %s7704_s16 = smov (!%p4681_p13), 0  }
 0x3a4   : > { %s7706_s17 = smov (!%p4681_p13), 0  }
 0x3a7 LB: >> { %v3298_v44 = vld [vmem:[%s5324_s15] sm:$0xff]  ;;  %v3300_v7 = vld [vmem:[%s5324_s15 + $0x8] sm:$0xff]  ;;  %v3302_v49 = vld [vmem:[%s5324_s15 + $0x10] sm:$0xff]  ;;  %s3362_s23 = sadd.s32 1, %s5328_s16  ;;  %s3292_s17 = sadd.s32 1, %s5332_s17   ;;  %s5332_s17 = sphi %s7706_s17, %s3292_s17   ;;  %s5328_s16 = sphi %s7704_s16, %s8015_s16   ;;  %s5324_s15 = sphi %s8012_s15, %s8014_s15   ;;  %s5320_s14 = sphi %s8011_s14, %s8013_s14  }
 0x3a8   : >> { %3299 = vst [vmem:[%s5320_s14] sm:$0xff] %v3298_v44  ;;  %v3304_v1 = vld [vmem:[%s5324_s15 + $0x18] sm:$0xff]  ;;  %p3363_p0 = scmp.ge.s32.totalorder %s3362_s23, %s7695_s12  ;;  %v3306_v39 = vld [vmem:[%s5324_s15 + $0x20] sm:$0xff]  ;;  %v3308_v61 = vld [vmem:[%s5324_s15 + $0x28] sm:$0xff]  ;;  %p3291_p1 = scmp.ge.s32.totalorder %s3292_s17, %s7695_s12 }
 0x3a9   : >> { %3301 = vst [vmem:[%s5320_s14 + $0x8] sm:$0xff] %v3300_v7  ;;  %v3310_v27 = vld [vmem:[%s5324_s15 + $0x30] sm:$0xff]  ;;  %v3312_v48 = vld [vmem:[%s5324_s15 + $0x38] sm:$0xff]  ;;  %v3322_v35 = vld [vmem:[%s5324_s15 + $0x40] sm:$0xff] }
 0x3aa   : >> { %3303 = vst [vmem:[%s5320_s14 + $0x10] sm:$0xff] %v3302_v49  ;;  %s8038_s23 = smov (%p3363_p0, %s3362_s23), 0  ;;  %v3324_v40 = vld [vmem:[%s5324_s15 + $0x48] sm:$0xff]  ;;  %v3326_v42 = vld [vmem:[%s5324_s15 + $0x50] sm:$0xff]  ;;  %v3328_v55 = vld [vmem:[%s5324_s15 + $0x58] sm:$0xff] }
 0x3ab   : >> { %3305 = vst [vmem:[%s5320_s14 + $0x18] sm:$0xff] %v3304_v1  ;;  %s4682_s24 = sshll.u32 %s8038_s23, 6  ;;  %v3338_v20 = vld [vmem:[%s5324_s15 + $0x60] sm:$0xff]  ;;  %v3340_v6 = vld [vmem:[%s5324_s15 + $0x68] sm:$0xff]  ;;  %v3342_v12 = vld [vmem:[%s5324_s15 + $0x70] sm:$0xff]  ;;  %s8015_s16 = smov %s8038_s23 }
 0x3ac   : >> { %3307 = vst [vmem:[%s5320_s14 + $0x20] sm:$0xff] %v3306_v39  ;;  %s7737_s27 = scalar_lea.vmem %s7587_s18, %s4682_s24 [#allocation3]   ;;  %s7740_s28 = scalar_lea.vmem %s7682_s8, %s4682_s24   ;;  %v3344_v11 = vld [vmem:[%s5324_s15 + $0x78] sm:$0xff]  ;;  %v3354_v62 = vld [vmem:[%s5324_s15 + $0x80] sm:$0xff]  ;;  %v3356_v34 = vld [vmem:[%s5324_s15 + $0x88] sm:$0xff] }
 0x3ad   : >> { %3309 = vst [vmem:[%s5320_s14 + $0x28] sm:$0xff] %v3308_v61  ;;  %v3358_v5 = vld [vmem:[%s5324_s15 + $0x90] sm:$0xff]  ;;  %v3360_v25 = vld [vmem:[%s5324_s15 + $0x98] sm:$0xff]  ;;  %s8014_s15 = smov %s7737_s27 }
 0x3ae   : >> { %3311 = vst [vmem:[%s5320_s14 + $0x30] sm:$0xff] %v3310_v27 }
 0x3af   : >> { %3313 = vst [vmem:[%s5320_s14 + $0x38] sm:$0xff] %v3312_v48 }
 0x3b0   : >> { %3315 = vst [vmem:[%s5320_s14 + $0xd8] sm:$0xff] %v3306_v39 }
 0x3b1   : >> { %3317 = vst [vmem:[%s5320_s14 + $0xe0] sm:$0xff] %v3308_v61 }
 0x3b2   : >> { %3319 = vst [vmem:[%s5320_s14 + $0xe8] sm:$0xff] %v3310_v27 }
 0x3b3   : >> { %3321 = vst [vmem:[%s5320_s14 + $0xf0] sm:$0xff] %v3312_v48 }
 0x3b4   : >> { %3323 = vst [vmem:[%s5320_s14 + $0xf8] sm:$0xff] %v3322_v35 }
 0x3b5   : >> { %3325 = vst [vmem:[%s5320_s14 + $0x100] sm:$0xff] %v3324_v40 }
 0x3b6   : >> { %3327 = vst [vmem:[%s5320_s14 + $0x108] sm:$0xff] %v3326_v42 }
 0x3b7   : >> { %3329 = vst [vmem:[%s5320_s14 + $0x110] sm:$0xff] %v3328_v55 }
 0x3b8   : >> { %3331 = vst [vmem:[%s5320_s14 + $0x1b0] sm:$0xff] %v3322_v35 }
 0x3b9   : >> { %3333 = vst [vmem:[%s5320_s14 + $0x1b8] sm:$0xff] %v3324_v40 }
 0x3ba   : >> { %3335 = vst [vmem:[%s5320_s14 + $0x1c0] sm:$0xff] %v3326_v42 }
 0x3bb   : >> { %3337 = vst [vmem:[%s5320_s14 + $0x1c8] sm:$0xff] %v3328_v55 }
 0x3bc   : >> { %3339 = vst [vmem:[%s5320_s14 + $0x1d0] sm:$0xff] %v3338_v20 }
 0x3bd   : >> { %3341 = vst [vmem:[%s5320_s14 + $0x1d8] sm:$0xff] %v3340_v6 }
 0x3be   : >> { %3343 = vst [vmem:[%s5320_s14 + $0x1e0] sm:$0xff] %v3342_v12 }
 0x3bf   : >> { %3345 = vst [vmem:[%s5320_s14 + $0x1e8] sm:$0xff] %v3344_v11 }
 0x3c0   : >> { %3347 = vst [vmem:[%s5320_s14 + $0x288] sm:$0xff] %v3338_v20 }
 0x3c1   : >> { %3349 = vst [vmem:[%s5320_s14 + $0x290] sm:$0xff] %v3340_v6 }
 0x3c2   : >> { %3351 = vst [vmem:[%s5320_s14 + $0x298] sm:$0xff] %v3342_v12 }
 0x3c3   : >> { %3353 = vst [vmem:[%s5320_s14 + $0x2a0] sm:$0xff] %v3344_v11  ;;  %3294 = sbr.rel (!%p3291_p1) target bundleno = 935 (0x3a7), region = 243 }
 0x3c4   : >> { %3355 = vst [vmem:[%s5320_s14 + $0x2a8] sm:$0xff] %v3354_v62 }
 0x3c5   : >> { %3357 = vst [vmem:[%s5320_s14 + $0x2b0] sm:$0xff] %v3356_v34 }
 0x3c6   : >> { %3359 = vst [vmem:[%s5320_s14 + $0x2b8] sm:$0xff] %v3358_v5 }
 0x3c7   : >> { %3361 = vst [vmem:[%s5320_s14 + $0x2c0] sm:$0xff] %v3360_v25  ;;  %s8013_s14 = smov %s7740_s28 }
 0x3c8 PF: > { %s7795_s29 = sand.u32 7, %s3287_s21   ;;  %s4936_s30 = sshll.u32 %s7695_s12, 6 }
 0x3c9   : > { %s7799_s11 = scalar_lea.vmem %s7587_s18, %s4936_s30 [#allocation3]   ;;  %s7802_s10 = scalar_lea.vmem %s7682_s8, %s4936_s30  }
 0x3ca   : > { %p4687_p2 = scmp.le.s32.totalorder %s7795_s29, 0 }
 0x3cb   : > { %s8016_s13 = smov (!%p4687_p2), %s7802_s10  ;;  %s8017_s6 = smov (!%p4687_p2), %s7799_s11 }
 0x3cc   : > { %3667 = sbr.rel (%p4687_p2) target bundleno = 985 (0x3d9), region = 248  ;;  %s7811_s7 = smov (!%p4687_p2), 0  }
 0x3cd   : > { %s5346_s20 = smov (!%p4687_p2), 0  }
 0x3d1 LB: >> { %v3385_v58 = vld [vmem:[%s5340_s6] sm:$0xff]  ;;  %s3393_s21 = sadd.s32 1, %s5344_s7  ;;  %s3379_s20 = sadd.s32 1, %s5348_s20   ;;  %s5348_s20 = sphi %s5346_s20, %s3379_s20   ;;  %s5344_s7 = sphi %s7811_s7, %s8018_s7   ;;  %s5340_s6 = sphi %s8017_s6, %s3398_s6   ;;  %s5336_s13 = sphi %s8016_s13, %s3399_s13  }
 0x3d2   : >> { %v3387_v8 = vld [vmem:[%s5340_s6 + $0x20] sm:$0xff]  ;;  %3386 = vst [vmem:[%s5336_s13] sm:$0xff] %v3385_v58  ;;  %p3394_p3 = scmp.ge.s32.totalorder %s3393_s21, %s7795_s29  ;;  %p3378_p4 = scmp.ge.s32.totalorder %s3379_s20, %s7795_s29 }
 0x3d3   : >> { %v3389_v9 = vld [vmem:[%s5340_s6 + $0x40] sm:$0xff]  ;;  %3388 = vst [vmem:[%s5336_s13 + $0xd8] sm:$0xff] %v3387_v8 }
 0x3d4   : >> { %v3391_v30 = vld [vmem:[%s5340_s6 + $0x60] sm:$0xff]  ;;  %3390 = vst [vmem:[%s5336_s13 + $0x1b0] sm:$0xff] %v3389_v9  ;;  %s8040_s21 = smov (%p3394_p3, %s3393_s21), 0  ;;  %3381 = sbr.rel (!%p3378_p4) target bundleno = 977 (0x3d1), region = 254 }
 0x3d5   : >> { %3392 = vst [vmem:[%s5336_s13 + $0x288] sm:$0xff] %v3391_v30  ;;  %s4688_s12 = sshll.u32 %s8040_s21, 3  ;;  %s8018_s7 = smov %s8040_s21 }
 0x3d6   : >> { %s3398_s6 = scalar_lea.vmem %s7799_s11, %s4688_s12 [#allocation3]   ;;  %s3399_s13 = scalar_lea.vmem %s7802_s10, %s4688_s12  }
 0x3d9 PF: > { %3402 = sbr.rel (%p3283_p5) target bundleno = 1053 (0x41d), region = 137  ;;  %s3404_s14 = ssub.s32 (!%p3283_p5), %s7684_s9, %s7688_s26 }
 0x3da   : > { %s3408_s15 = sshrl.u32 (!%p3283_p5), %s7684_s9, 3  ;;  %s7832_s16 = scalar_lea.vmem (!%p3283_p5), %s7587_s18, %s3404_s14 [#allocation3] }
 0x3db   : > { %s7835_s17 = scalar_lea.vmem (!%p3283_p5), %s7682_s8, %s3404_s14  ;;  %s7839_s23 = sshrl.u32 (!%p3283_p5), %s3408_s15, 3 }
 0x3dc   : > { %p4690_p6 = scmp.le.s32.totalorder (!%p3283_p5), %s7839_s23, 0 }
 0x3de   : > { %3681 = sbr.rel (%p4690_p6) target bundleno = 1028 (0x404), region = 259  ;;  %s8019_s24 = smov (!%p4690_p6), %s7682_s8 }
 0x3df   : > { %s8020_s27 = smov (!%p4690_p6), %s7587_s18  ;;  %s7848_s28 = smov (!%p4690_p6), 0  }
 0x3e0   : > { %s7850_s29 = smov (!%p4690_p6), 0  }
 0x3e3 LB: >> { %v3419_v36 = vld [vmem:[%s5356_s27] sm:$0xff]  ;;  %v3421_v57 = vld [vmem:[%s5356_s27 + $0x8] sm:$0xff]  ;;  %v3423_v13 = vld [vmem:[%s5356_s27 + $0x10] sm:$0xff]  ;;  %s3483_s30 = sadd.s32 1, %s5360_s28  ;;  %s3413_s29 = sadd.s32 1, %s5364_s29   ;;  %s5364_s29 = sphi %s7850_s29, %s3413_s29   ;;  %s5360_s28 = sphi %s7848_s28, %s8023_s28   ;;  %s5356_s27 = sphi %s8020_s27, %s8022_s27   ;;  %s5352_s24 = sphi %s8019_s24, %s8021_s24  }
 0x3e4   : >> { %3420 = vst [vmem:[%s5352_s24] sm:$0xff] %v3419_v36  ;;  %v3425_v14 = vld [vmem:[%s5356_s27 + $0x18] sm:$0xff]  ;;  %p3484_p7 = scmp.ge.s32.totalorder %s3483_s30, %s7839_s23  ;;  %v3427_v41 = vld [vmem:[%s5356_s27 + $0x20] sm:$0xff]  ;;  %v3429_v15 = vld [vmem:[%s5356_s27 + $0x28] sm:$0xff]  ;;  %p3412_p8 = scmp.ge.s32.totalorder %s3413_s29, %s7839_s23 }
 0x3e5   : >> { %3422 = vst [vmem:[%s5352_s24 + $0x8] sm:$0xff] %v3421_v57  ;;  %v3431_v10 = vld [vmem:[%s5356_s27 + $0x30] sm:$0xff]  ;;  %v3433_v2 = vld [vmem:[%s5356_s27 + $0x38] sm:$0xff]  ;;  %v3443_v52 = vld [vmem:[%s5356_s27 + $0x40] sm:$0xff] }
 0x3e6   : >> { %3424 = vst [vmem:[%s5352_s24 + $0x10] sm:$0xff] %v3423_v13  ;;  %s8042_s30 = smov (%p3484_p7, %s3483_s30), 0  ;;  %v3445_v56 = vld [vmem:[%s5356_s27 + $0x48] sm:$0xff]  ;;  %v3447_v32 = vld [vmem:[%s5356_s27 + $0x50] sm:$0xff]  ;;  %v3449_v51 = vld [vmem:[%s5356_s27 + $0x58] sm:$0xff] }
 0x3e7   : >> { %3426 = vst [vmem:[%s5352_s24 + $0x18] sm:$0xff] %v3425_v14  ;;  %s4691_s11 = sshll.u32 %s8042_s30, 6  ;;  %v3459_v19 = vld [vmem:[%s5356_s27 + $0x60] sm:$0xff]  ;;  %v3461_v16 = vld [vmem:[%s5356_s27 + $0x68] sm:$0xff]  ;;  %v3463_v17 = vld [vmem:[%s5356_s27 + $0x70] sm:$0xff]  ;;  %s8023_s28 = smov %s8042_s30 }
 0x3e8   : >> { %3428 = vst [vmem:[%s5352_s24 + $0x20] sm:$0xff] %v3427_v41  ;;  %s7881_s10 = scalar_lea.vmem %s7587_s18, %s4691_s11 [#allocation3]   ;;  %s7884_s13 = scalar_lea.vmem %s7682_s8, %s4691_s11   ;;  %v3465_v18 = vld [vmem:[%s5356_s27 + $0x78] sm:$0xff]  ;;  %v3475_v38 = vld [vmem:[%s5356_s27 + $0x80] sm:$0xff]  ;;  %v3477_v46 = vld [vmem:[%s5356_s27 + $0x88] sm:$0xff] }
 0x3e9   : >> { %3430 = vst [vmem:[%s5352_s24 + $0x28] sm:$0xff] %v3429_v15  ;;  %v3479_v63 = vld [vmem:[%s5356_s27 + $0x90] sm:$0xff]  ;;  %v3481_v47 = vld [vmem:[%s5356_s27 + $0x98] sm:$0xff]  ;;  %s8022_s27 = smov %s7881_s10 }
 0x3ea   : >> { %3432 = vst [vmem:[%s5352_s24 + $0x30] sm:$0xff] %v3431_v10 }
 0x3eb   : >> { %3434 = vst [vmem:[%s5352_s24 + $0x38] sm:$0xff] %v3433_v2 }
 0x3ec   : >> { %3436 = vst [vmem:[%s5352_s24 + $0xd8] sm:$0xff] %v3427_v41 }
 0x3ed   : >> { %3438 = vst [vmem:[%s5352_s24 + $0xe0] sm:$0xff] %v3429_v15 }
 0x3ee   : >> { %3440 = vst [vmem:[%s5352_s24 + $0xe8] sm:$0xff] %v3431_v10 }
 0x3ef   : >> { %3442 = vst [vmem:[%s5352_s24 + $0xf0] sm:$0xff] %v3433_v2 }
 0x3f0   : >> { %3444 = vst [vmem:[%s5352_s24 + $0xf8] sm:$0xff] %v3443_v52 }
 0x3f1   : >> { %3446 = vst [vmem:[%s5352_s24 + $0x100] sm:$0xff] %v3445_v56 }
 0x3f2   : >> { %3448 = vst [vmem:[%s5352_s24 + $0x108] sm:$0xff] %v3447_v32 }
 0x3f3   : >> { %3450 = vst [vmem:[%s5352_s24 + $0x110] sm:$0xff] %v3449_v51 }
 0x3f4   : >> { %3452 = vst [vmem:[%s5352_s24 + $0x1b0] sm:$0xff] %v3443_v52 }
 0x3f5   : >> { %3454 = vst [vmem:[%s5352_s24 + $0x1b8] sm:$0xff] %v3445_v56 }
 0x3f6   : >> { %3456 = vst [vmem:[%s5352_s24 + $0x1c0] sm:$0xff] %v3447_v32 }
 0x3f7   : >> { %3458 = vst [vmem:[%s5352_s24 + $0x1c8] sm:$0xff] %v3449_v51 }
 0x3f8   : >> { %3460 = vst [vmem:[%s5352_s24 + $0x1d0] sm:$0xff] %v3459_v19 }
 0x3f9   : >> { %3462 = vst [vmem:[%s5352_s24 + $0x1d8] sm:$0xff] %v3461_v16 }
 0x3fa   : >> { %3464 = vst [vmem:[%s5352_s24 + $0x1e0] sm:$0xff] %v3463_v17 }
 0x3fb   : >> { %3466 = vst [vmem:[%s5352_s24 + $0x1e8] sm:$0xff] %v3465_v18 }
 0x3fc   : >> { %3468 = vst [vmem:[%s5352_s24 + $0x288] sm:$0xff] %v3459_v19 }
 0x3fd   : >> { %3470 = vst [vmem:[%s5352_s24 + $0x290] sm:$0xff] %v3461_v16 }
 0x3fe   : >> { %3472 = vst [vmem:[%s5352_s24 + $0x298] sm:$0xff] %v3463_v17 }
 0x3ff   : >> { %3474 = vst [vmem:[%s5352_s24 + $0x2a0] sm:$0xff] %v3465_v18  ;;  %3415 = sbr.rel (!%p3412_p8) target bundleno = 995 (0x3e3), region = 265 }
 0x400   : >> { %3476 = vst [vmem:[%s5352_s24 + $0x2a8] sm:$0xff] %v3475_v38 }
 0x401   : >> { %3478 = vst [vmem:[%s5352_s24 + $0x2b0] sm:$0xff] %v3477_v46 }
 0x402   : >> { %3480 = vst [vmem:[%s5352_s24 + $0x2b8] sm:$0xff] %v3479_v63 }
 0x403   : >> { %3482 = vst [vmem:[%s5352_s24 + $0x2c0] sm:$0xff] %v3481_v47  ;;  %s8021_s24 = smov %s7884_s13 }
 0x404 PF: > { %s7939_s6 = sand.u32 7, %s3408_s15   ;;  %s4938_s7 = sshll.u32 %s7839_s23, 6 }
 0x405   : > { %s7943_s20 = scalar_lea.vmem %s7587_s18, %s4938_s7 [#allocation3]   ;;  %s7946_s21 = scalar_lea.vmem %s7682_s8, %s4938_s7  }
 0x406   : > { %p4696_p9 = scmp.le.s32.totalorder %s7939_s6, 0 }
 0x407   : > { %s8024_s12 = smov (!%p4696_p9), %s7946_s21  ;;  %s8025_s14 = smov (!%p4696_p9), %s7943_s20 }
 0x408   : > { %3695 = sbr.rel (%p4696_p9) target bundleno = 1045 (0x415), region = 270  ;;  %s5374_s24 = smov (!%p4696_p9), 0  }
 0x409   : > { %s5378_s27 = smov (!%p4696_p9), 0  }
 0x40d LB: >> { %v3506_v45 = vld [vmem:[%s5372_s14] sm:$0xff]  ;;  %s3514_s15 = sadd.s32 1, %s5376_s24  ;;  %s3500_s27 = sadd.s32 1, %s5380_s27   ;;  %s5380_s27 = sphi %s5378_s27, %s3500_s27   ;;  %s5376_s24 = sphi %s5374_s24, %s5375_s24   ;;  %s5372_s14 = sphi %s8025_s14, %s3519_s14   ;;  %s5368_s12 = sphi %s8024_s12, %s3520_s12  }
 0x40e   : >> { %v3508_v21 = vld [vmem:[%s5372_s14 + $0x20] sm:$0xff]  ;;  %3507 = vst [vmem:[%s5368_s12] sm:$0xff] %v3506_v45  ;;  %p3515_p10 = scmp.ge.s32.totalorder %s3514_s15, %s7939_s6  ;;  %p3499_p11 = scmp.ge.s32.totalorder %s3500_s27, %s7939_s6 }
 0x40f   : >> { %v3510_v59 = vld [vmem:[%s5372_s14 + $0x40] sm:$0xff]  ;;  %3509 = vst [vmem:[%s5368_s12 + $0xd8] sm:$0xff] %v3508_v21 }
 0x410   : >> { %v3512_v3 = vld [vmem:[%s5372_s14 + $0x60] sm:$0xff]  ;;  %3511 = vst [vmem:[%s5368_s12 + $0x1b0] sm:$0xff] %v3510_v59  ;;  %s8044_s15 = smov (%p3515_p10, %s3514_s15), 0  ;;  %3502 = sbr.rel (!%p3499_p11) target bundleno = 1037 (0x40d), region = 276 }
 0x411   : >> { %3513 = vst [vmem:[%s5368_s12 + $0x288] sm:$0xff] %v3512_v3  ;;  %s4697_s23 = sshll.u32 %s8044_s15, 3  ;;  %s5375_s24 = smov %s8044_s15  }
 0x412   : >> { %s3519_s14 = scalar_lea.vmem %s7943_s20, %s4697_s23 [#allocation3]   ;;  %s3520_s12 = scalar_lea.vmem %s7946_s21, %s4697_s23  }
 0x415 PF: > { %s5385_s28 = smov 1  }
 0x416   : > { %s3521_s29 = sshll.u32 %s5385_s28, %s7688_s26 }
 0x417   : > { %s4699_s30 = sadd.s32 4294967295, %s3521_s29 }
 0x418   : > { %v3531_v22 = vld [vmem:[%s7832_s16] sm:%s4699_s30] }
 0x419   : > { %v3533_v60 = vld [vmem:[%s7832_s16 + $0x20] sm:%s4699_s30]  ;;  %3532 = vst [vmem:[%s7835_s17] sm:%s4699_s30] %v3531_v22 }
 0x41a   : > { %v3535_v43 = vld [vmem:[%s7832_s16 + $0x40] sm:%s4699_s30]  ;;  %3534 = vst [vmem:[%s7835_s17 + $0xd8] sm:%s4699_s30] %v3533_v60 }
 0x41b   : > { %v3537_v23 = vld [vmem:[%s7832_s16 + $0x60] sm:%s4699_s30]  ;;  %3536 = vst [vmem:[%s7835_s17 + $0x1b0] sm:%s4699_s30] %v3535_v43 }
 0x41c   : > { %3538 = vst [vmem:[%s7835_s17 + $0x288] sm:%s4699_s30] %v3537_v23 }
 0x41d PF: > { %p4700_p5 = scmp.ge.u32.totalorder %s7684_s9, 8 }
 0x41e   : > { %s5386_s11 = smov (!%p4700_p5), 1  }
 0x41f   : > { %3263 = sbr.rel (%p4700_p5) target bundleno = 1065 (0x429), region = 108  ;;  %s3264_s26 = sshll.u32 (!%p4700_p5), %s5386_s11, %s7684_s9 }
 0x420   : > { %s4701_s10 = sadd.s32 (!%p4700_p5), 4294967295, %s3264_s26 }
 0x424   : > { %v3274_v0 = vld [vmem:[%s7587_s18] sm:%s4701_s10] }
 0x425   : > { %v3276_v54 = vld [vmem:[%s7587_s18 + $0x20] sm:%s4701_s10]  ;;  %3275 = vst [vmem:[%s7682_s8] sm:%s4701_s10] %v3274_v0 }
 0x426   : > { %v3278_v37 = vld [vmem:[%s7587_s18 + $0x40] sm:%s4701_s10]  ;;  %3277 = vst [vmem:[%s7682_s8 + $0xd8] sm:%s4701_s10] %v3276_v54 }
 0x427   : > { %v3280_v24 = vld [vmem:[%s7587_s18 + $0x60] sm:%s4701_s10]  ;;  %3279 = vst [vmem:[%s7682_s8 + $0x1b0] sm:%s4701_s10] %v3278_v37 }
 0x428   : > { %3281 = vst [vmem:[%s7682_s8 + $0x288] sm:%s4701_s10] %v3280_v24 }
 0x429 PF: > { %p12_p12 = scmp.ge.s32.totalorder %s5436_s22, 9   ;;  %s8026_s18 = smov %s5280_s19 }
 0x42a   : > { %s8027_s19 = smov %s5446_s25  ;;  %s8028_s20 = smov %s5436_s22 }
 0x42b   :  { %14 = sbr.rel (!%p12_p12) target bundleno = 2 (0x2), region = 287 }

// kernel: forward.7
= control target key start
LH: loop header
LB: loop body
LE: loop exit
PB: predicated region body
PF: predicated region fallthrough
CT: control target
= control target key end

     0   :  { %s2622_s18 = smov 0   ;;  %s2624_s19 = smov 0   ;;  %s3373_s0 = inlined_call_operand.vmem [shape: bf16[32,864], index: 0, kind: input, shape index: {}]   ;;  %s3374_s1 = inlined_call_operand.vmem [shape: bf16[864,432], index: 1, kind: input, shape index: {}]   ;;  %s3375_s2 = inlined_call_operand.vmem [shape: f32[32,1], index: 2, kind: input, shape index: {}]   ;;  %s3376_s3 = inlined_call_operand.vmem [shape: f32[32,1], index: 3, kind: input, shape index: {}]   ;;  %s3377_s4 = inlined_call_operand.vmem [shape: f32[32,1], index: 4, kind: input, shape index: {}]   ;;  %s3378_s5 = inlined_call_operand.vmem [shape: f32[32,432], index: 5, kind: output, shape index: {}]  }
   0x1   :  { %s2626_s20 = smov 0  }
   0x2 LB: > { %s1894_s21 = sadd.s32 4294967295, %s2589_s20   ;;  %s2639_s22 = sadd.s32 1, %s2589_s20   ;;  %s2589_s20 = sphi %s2626_s20, %s3382_s20   ;;  %s2585_s19 = sphi %s2624_s19, %s3381_s19   ;;  %s2581_s18 = sphi %s2622_s18, %s3380_s18  }
   0x3   : > { %s40_s23 = ssub.s32 %s2589_s20, %s2639_s22  ;;  %s43_s24 = sadd.s32 1, %s2585_s19 }
   0x4   : > { %p41_p0 = scmp.eq.s32.totalorder %s40_s23, 0  ;;  %p50_p1 = scmp.ne.s32.totalorder %s2585_s19, %s2581_s18 }
   0x5   : > { %p51_p2 = scmp.eq.s32.totalorder %s2589_s20, 0  ;;  %p143_p3 = scmp.eq.s32.totalorder %s1894_s21, 1 }
   0x6   : > { %s2650_s25 = scalar_select %p41_p0, %s2585_s19, %s43_s24  }
   0x7   : > { %p52_p4 = por %p51_p2, %p50_p1  ;;  %p2652_p5 = por %p143_p3, %p50_p1 }
   0x8   : > { %p1897_p6 = scmp.ge.s32.totalorder %s2589_s20, 2 }
   0xa   : > { %177 = sbr.rel (%p1897_p6) target bundleno = 127 (0x7f), region = 32 }
   0xf   : > { %180 = sbr.rel (!%p52_p4) target bundleno = 127 (0x7f), region = 36  ;;  %s182_s27 = sand.u32 (%p52_p4), 1, %s2585_s19  }
  0x10   : > { %s2399_s28 = sshll.u32 (%p52_p4), %s2589_s20, 3  ;;  %s2537_s29 = smul.u32 (%p52_p4), 864, %s182_s27 }
  0x11   : > { %s2662_s7 = scalar_lea.vmem (%p52_p4), %s3374_s1, %s2399_s28 }
  0x12   : > { %v430_v0 = vld [vmem:[%s2662_s7] sm:$0xff] (%p52_p4)  ;;  %v432_v1 = vld [vmem:[%s2662_s7 + $0x10] sm:$0xff] (%p52_p4)  ;;  %s2667_s8 = scalar_lea.vmem (%p52_p4), [#allocation2], %s2537_s29 }
  0x13   : > { %v434_v2 = vld [vmem:[%s2662_s7 + $0x20] sm:$0xff] (%p52_p4)  ;;  %431 = vst [vmem:[%s2667_s8] sm:$0xff] (%p52_p4), %v430_v0  ;;  %v436_v3 = vld [vmem:[%s2662_s7 + $0x30] sm:$0xff] (%p52_p4) }
  0x14   : > { %433 = vst [vmem:[%s2667_s8 + $0x8] sm:$0xff] %v432_v1  ;;  %v438_v4 = vld [vmem:[%s2662_s7 + $0x40] sm:$0xff]  ;;  %v440_v5 = vld [vmem:[%s2662_s7 + $0x50] sm:$0xff] }
  0x15   : > { %435 = vst [vmem:[%s2667_s8 + $0x10] sm:$0xff] %v434_v2  ;;  %v442_v6 = vld [vmem:[%s2662_s7 + $0x60] sm:$0xff]  ;;  %v444_v7 = vld [vmem:[%s2662_s7 + $0x70] sm:$0xff] }
  0x16   : > { %437 = vst [vmem:[%s2667_s8 + $0x18] sm:$0xff] %v436_v3  ;;  %v446_v8 = vld [vmem:[%s2662_s7 + $0x80] sm:$0xff]  ;;  %v448_v9 = vld [vmem:[%s2662_s7 + $0x90] sm:$0xff] }
  0x17   : > { %439 = vst [vmem:[%s2667_s8 + $0x20] sm:$0xff] %v438_v4  ;;  %v450_v10 = vld [vmem:[%s2662_s7 + $0xa0] sm:$0xff]  ;;  %v452_v11 = vld [vmem:[%s2662_s7 + $0xb0] sm:$0xff] }
  0x18   : > { %441 = vst [vmem:[%s2667_s8 + $0x28] sm:$0xff] %v440_v5  ;;  %v454_v12 = vld [vmem:[%s2662_s7 + $0xc0] sm:$0xff]  ;;  %v456_v13 = vld [vmem:[%s2662_s7 + $0xd0] sm:$0xff] }
  0x19   : > { %443 = vst [vmem:[%s2667_s8 + $0x30] sm:$0xff] %v442_v6  ;;  %v458_v14 = vld [vmem:[%s2662_s7 + $0xe0] sm:$0xff]  ;;  %v460_v15 = vld [vmem:[%s2662_s7 + $0xf0] sm:$0xff] }
  0x1a   : > { %445 = vst [vmem:[%s2667_s8 + $0x38] sm:$0xff] %v444_v7  ;;  %v462_v16 = vld [vmem:[%s2662_s7 + $0x100] sm:$0xff]  ;;  %v464_v17 = vld [vmem:[%s2662_s7 + $0x110] sm:$0xff] }
  0x1b   : > { %447 = vst [vmem:[%s2667_s8 + $0x40] sm:$0xff] %v446_v8  ;;  %v466_v18 = vld [vmem:[%s2662_s7 + $0x120] sm:$0xff]  ;;  %v468_v19 = vld [vmem:[%s2662_s7 + $0x130] sm:$0xff] }
  0x1c   : > { %449 = vst [vmem:[%s2667_s8 + $0x48] sm:$0xff] %v448_v9  ;;  %v470_v20 = vld [vmem:[%s2662_s7 + $0x140] sm:$0xff]  ;;  %v472_v21 = vld [vmem:[%s2662_s7 + $0x150] sm:$0xff] }
  0x1d   : > { %451 = vst [vmem:[%s2667_s8 + $0x50] sm:$0xff] %v450_v10  ;;  %v474_v22 = vld [vmem:[%s2662_s7 + $0x160] sm:$0xff]  ;;  %v476_v23 = vld [vmem:[%s2662_s7 + $0x170] sm:$0xff] }
  0x1e   : > { %453 = vst [vmem:[%s2667_s8 + $0x58] sm:$0xff] %v452_v11  ;;  %v478_v24 = vld [vmem:[%s2662_s7 + $0x180] sm:$0xff]  ;;  %v480_v25 = vld [vmem:[%s2662_s7 + $0x190] sm:$0xff] }
  0x1f   : > { %455 = vst [vmem:[%s2667_s8 + $0x60] sm:$0xff] %v454_v12  ;;  %v482_v26 = vld [vmem:[%s2662_s7 + $0x1a0] sm:$0xff]  ;;  %v484_v27 = vld [vmem:[%s2662_s7 + $0x1b0] sm:$0xff] }
  0x20   : > { %457 = vst [vmem:[%s2667_s8 + $0x68] sm:$0xff] %v456_v13  ;;  %v486_v28 = vld [vmem:[%s2662_s7 + $0x1c0] sm:$0xff]  ;;  %v488_v29 = vld [vmem:[%s2662_s7 + $0x1d0] sm:$0xff] }
  0x21   : > { %459 = vst [vmem:[%s2667_s8 + $0x70] sm:$0xff] %v458_v14  ;;  %v490_v30 = vld [vmem:[%s2662_s7 + $0x1e0] sm:$0xff]  ;;  %v492_v31 = vld [vmem:[%s2662_s7 + $0x1f0] sm:$0xff] }
  0x22   : > { %461 = vst [vmem:[%s2667_s8 + $0x78] sm:$0xff] %v460_v15  ;;  %v494_v32 = vld [vmem:[%s2662_s7 + $0x200] sm:$0xff]  ;;  %v496_v33 = vld [vmem:[%s2662_s7 + $0x210] sm:$0xff] }
  0x23   : > { %463 = vst [vmem:[%s2667_s8 + $0x80] sm:$0xff] %v462_v16  ;;  %v498_v34 = vld [vmem:[%s2662_s7 + $0x220] sm:$0xff]  ;;  %v500_v35 = vld [vmem:[%s2662_s7 + $0x230] sm:$0xff] }
  0x24   : > { %465 = vst [vmem:[%s2667_s8 + $0x88] sm:$0xff] %v464_v17  ;;  %v502_v36 = vld [vmem:[%s2662_s7 + $0x240] sm:$0xff]  ;;  %v504_v37 = vld [vmem:[%s2662_s7 + $0x250] sm:$0xff] }
  0x25   : > { %467 = vst [vmem:[%s2667_s8 + $0x90] sm:$0xff] %v466_v18  ;;  %v506_v38 = vld [vmem:[%s2662_s7 + $0x260] sm:$0xff]  ;;  %v508_v39 = vld [vmem:[%s2662_s7 + $0x270] sm:$0xff] }
  0x26   : > { %469 = vst [vmem:[%s2667_s8 + $0x98] sm:$0xff] %v468_v19  ;;  %v510_v40 = vld [vmem:[%s2662_s7 + $0x280] sm:$0xff]  ;;  %v512_v41 = vld [vmem:[%s2662_s7 + $0x290] sm:$0xff] }
  0x27   : > { %471 = vst [vmem:[%s2667_s8 + $0xa0] sm:$0xff] %v470_v20  ;;  %v514_v42 = vld [vmem:[%s2662_s7 + $0x2a0] sm:$0xff]  ;;  %v516_v43 = vld [vmem:[%s2662_s7 + $0x2b0] sm:$0xff] }
  0x28   : > { %473 = vst [vmem:[%s2667_s8 + $0xa8] sm:$0xff] %v472_v21  ;;  %v518_v44 = vld [vmem:[%s2662_s7 + $0x2c0] sm:$0xff]  ;;  %v520_v45 = vld [vmem:[%s2662_s7 + $0x2d0] sm:$0xff] }
  0x29   : > { %475 = vst [vmem:[%s2667_s8 + $0xb0] sm:$0xff] %v474_v22  ;;  %v522_v46 = vld [vmem:[%s2662_s7 + $0x2e0] sm:$0xff]  ;;  %v524_v47 = vld [vmem:[%s2662_s7 + $0x2f0] sm:$0xff] }
  0x2a   : > { %477 = vst [vmem:[%s2667_s8 + $0xb8] sm:$0xff] %v476_v23  ;;  %v526_v48 = vld [vmem:[%s2662_s7 + $0x300] sm:$0xff]  ;;  %v528_v49 = vld [vmem:[%s2662_s7 + $0x310] sm:$0xff] }
  0x2b   : > { %479 = vst [vmem:[%s2667_s8 + $0xc0] sm:$0xff] %v478_v24  ;;  %v530_v50 = vld [vmem:[%s2662_s7 + $0x320] sm:$0xff]  ;;  %v532_v51 = vld [vmem:[%s2662_s7 + $0x330] sm:$0xff] }
  0x2c   : > { %481 = vst [vmem:[%s2667_s8 + $0xc8] sm:$0xff] %v480_v25  ;;  %v534_v52 = vld [vmem:[%s2662_s7 + $0x340] sm:$0xff]  ;;  %v536_v53 = vld [vmem:[%s2662_s7 + $0x350] sm:$0xff] }
  0x2d   : > { %483 = vst [vmem:[%s2667_s8 + $0xd0] sm:$0xff] %v482_v26  ;;  %v538_v54 = vld [vmem:[%s2662_s7 + $0x360] sm:$0xff]  ;;  %v540_v55 = vld [vmem:[%s2662_s7 + $0x370] sm:$0xff] }
  0x2e   : > { %485 = vst [vmem:[%s2667_s8 + $0xd8] sm:$0xff] %v484_v27  ;;  %v542_v56 = vld [vmem:[%s2662_s7 + $0x380] sm:$0xff]  ;;  %v544_v57 = vld [vmem:[%s2662_s7 + $0x390] sm:$0xff] }
  0x2f   : > { %487 = vst [vmem:[%s2667_s8 + $0xe0] sm:$0xff] %v486_v28  ;;  %v546_v58 = vld [vmem:[%s2662_s7 + $0x3a0] sm:$0xff]  ;;  %v548_v59 = vld [vmem:[%s2662_s7 + $0x3b0] sm:$0xff] }
  0x30   : > { %489 = vst [vmem:[%s2667_s8 + $0xe8] sm:$0xff] %v488_v29  ;;  %v550_v60 = vld [vmem:[%s2662_s7 + $0x3c0] sm:$0xff]  ;;  %v552_v61 = vld [vmem:[%s2662_s7 + $0x3d0] sm:$0xff] }
  0x31   : > { %491 = vst [vmem:[%s2667_s8 + $0xf0] sm:$0xff] %v490_v30  ;;  %v554_v62 = vld [vmem:[%s2662_s7 + $0x3e0] sm:$0xff]  ;;  %v556_v63 = vld [vmem:[%s2662_s7 + $0x3f0] sm:$0xff] }
  0x32   : > { %493 = vst [vmem:[%s2667_s8 + $0xf8] sm:$0xff] %v492_v31  ;;  %v558_v0 = vld [vmem:[%s2662_s7 + $0x400] sm:$0xff]  ;;  %v560_v1 = vld [vmem:[%s2662_s7 + $0x410] sm:$0xff] }
  0x33   : > { %495 = vst [vmem:[%s2667_s8 + $0x100] sm:$0xff] %v494_v32  ;;  %v562_v2 = vld [vmem:[%s2662_s7 + $0x420] sm:$0xff]  ;;  %v564_v3 = vld [vmem:[%s2662_s7 + $0x430] sm:$0xff] }
  0x34   : > { %497 = vst [vmem:[%s2667_s8 + $0x108] sm:$0xff] %v496_v33  ;;  %v566_v4 = vld [vmem:[%s2662_s7 + $0x440] sm:$0xff]  ;;  %v568_v5 = vld [vmem:[%s2662_s7 + $0x450] sm:$0xff] }
  0x35   : > { %499 = vst [vmem:[%s2667_s8 + $0x110] sm:$0xff] %v498_v34  ;;  %v570_v6 = vld [vmem:[%s2662_s7 + $0x460] sm:$0xff]  ;;  %v572_v7 = vld [vmem:[%s2662_s7 + $0x470] sm:$0xff] }
  0x36   : > { %501 = vst [vmem:[%s2667_s8 + $0x118] sm:$0xff] %v500_v35  ;;  %v574_v8 = vld [vmem:[%s2662_s7 + $0x480] sm:$0xff]  ;;  %v576_v9 = vld [vmem:[%s2662_s7 + $0x490] sm:$0xff] }
  0x37   : > { %503 = vst [vmem:[%s2667_s8 + $0x120] sm:$0xff] %v502_v36  ;;  %v578_v10 = vld [vmem:[%s2662_s7 + $0x4a0] sm:$0xff]  ;;  %v580_v11 = vld [vmem:[%s2662_s7 + $0x4b0] sm:$0xff] }
  0x38   : > { %505 = vst [vmem:[%s2667_s8 + $0x128] sm:$0xff] %v504_v37  ;;  %v582_v12 = vld [vmem:[%s2662_s7 + $0x4c0] sm:$0xff]  ;;  %v584_v13 = vld [vmem:[%s2662_s7 + $0x4d0] sm:$0xff] }
  0x39   : > { %507 = vst [vmem:[%s2667_s8 + $0x130] sm:$0xff] %v506_v38  ;;  %v586_v14 = vld [vmem:[%s2662_s7 + $0x4e0] sm:$0xff]  ;;  %v588_v15 = vld [vmem:[%s2662_s7 + $0x4f0] sm:$0xff] }
  0x3a   : > { %509 = vst [vmem:[%s2667_s8 + $0x138] sm:$0xff] %v508_v39  ;;  %v590_v16 = vld [vmem:[%s2662_s7 + $0x500] sm:$0xff]  ;;  %v592_v17 = vld [vmem:[%s2662_s7 + $0x510] sm:$0xff] }
  0x3b   : > { %511 = vst [vmem:[%s2667_s8 + $0x140] sm:$0xff] %v510_v40  ;;  %v594_v18 = vld [vmem:[%s2662_s7 + $0x520] sm:$0xff]  ;;  %v596_v19 = vld [vmem:[%s2662_s7 + $0x530] sm:$0xff] }
  0x3c   : > { %513 = vst [vmem:[%s2667_s8 + $0x148] sm:$0xff] %v512_v41  ;;  %v598_v20 = vld [vmem:[%s2662_s7 + $0x540] sm:$0xff]  ;;  %v600_v21 = vld [vmem:[%s2662_s7 + $0x550] sm:$0xff] }
  0x3d   : > { %515 = vst [vmem:[%s2667_s8 + $0x150] sm:$0xff] %v514_v42  ;;  %v602_v22 = vld [vmem:[%s2662_s7 + $0x560] sm:$0xff]  ;;  %v604_v23 = vld [vmem:[%s2662_s7 + $0x570] sm:$0xff] }
  0x3e   : > { %517 = vst [vmem:[%s2667_s8 + $0x158] sm:$0xff] %v516_v43  ;;  %v606_v24 = vld [vmem:[%s2662_s7 + $0x580] sm:$0xff]  ;;  %v608_v25 = vld [vmem:[%s2662_s7 + $0x590] sm:$0xff] }
  0x3f   : > { %519 = vst [vmem:[%s2667_s8 + $0x160] sm:$0xff] %v518_v44  ;;  %v610_v26 = vld [vmem:[%s2662_s7 + $0x5a0] sm:$0xff]  ;;  %v612_v27 = vld [vmem:[%s2662_s7 + $0x5b0] sm:$0xff] }
  0x40   : > { %521 = vst [vmem:[%s2667_s8 + $0x168] sm:$0xff] %v520_v45  ;;  %v614_v28 = vld [vmem:[%s2662_s7 + $0x5c0] sm:$0xff]  ;;  %v616_v29 = vld [vmem:[%s2662_s7 + $0x5d0] sm:$0xff] }
  0x41   : > { %523 = vst [vmem:[%s2667_s8 + $0x170] sm:$0xff] %v522_v46  ;;  %v618_v30 = vld [vmem:[%s2662_s7 + $0x5e0] sm:$0xff]  ;;  %v620_v31 = vld [vmem:[%s2662_s7 + $0x5f0] sm:$0xff] }
  0x42   : > { %525 = vst [vmem:[%s2667_s8 + $0x178] sm:$0xff] %v524_v47  ;;  %v622_v32 = vld [vmem:[%s2662_s7 + $0x600] sm:$0xff]  ;;  %v624_v33 = vld [vmem:[%s2662_s7 + $0x610] sm:$0xff] }
  0x43   : > { %527 = vst [vmem:[%s2667_s8 + $0x180] sm:$0xff] %v526_v48  ;;  %v626_v34 = vld [vmem:[%s2662_s7 + $0x620] sm:$0xff]  ;;  %v628_v35 = vld [vmem:[%s2662_s7 + $0x630] sm:$0xff] }
  0x44   : > { %529 = vst [vmem:[%s2667_s8 + $0x188] sm:$0xff] %v528_v49  ;;  %v630_v36 = vld [vmem:[%s2662_s7 + $0x640] sm:$0xff]  ;;  %v632_v37 = vld [vmem:[%s2662_s7 + $0x650] sm:$0xff] }
  0x45   : > { %531 = vst [vmem:[%s2667_s8 + $0x190] sm:$0xff] %v530_v50  ;;  %v634_v38 = vld [vmem:[%s2662_s7 + $0x660] sm:$0xff]  ;;  %v636_v39 = vld [vmem:[%s2662_s7 + $0x670] sm:$0xff] }
  0x46   : > { %533 = vst [vmem:[%s2667_s8 + $0x198] sm:$0xff] %v532_v51  ;;  %v638_v40 = vld [vmem:[%s2662_s7 + $0x680] sm:$0xff]  ;;  %v640_v41 = vld [vmem:[%s2662_s7 + $0x690] sm:$0xff] }
  0x47   : > { %535 = vst [vmem:[%s2667_s8 + $0x1a0] sm:$0xff] %v534_v52  ;;  %v642_v42 = vld [vmem:[%s2662_s7 + $0x6a0] sm:$0xff]  ;;  %v644_v43 = vld [vmem:[%s2662_s7 + $0x6b0] sm:$0xff] }
  0x48   : > { %537 = vst [vmem:[%s2667_s8 + $0x1a8] sm:$0xff] %v536_v53 }
  0x49   : > { %539 = vst [vmem:[%s2667_s8 + $0x1b0] sm:$0xff] %v538_v54 }
  0x4a   : > { %541 = vst [vmem:[%s2667_s8 + $0x1b8] sm:$0xff] %v540_v55 }
  0x4b   : > { %543 = vst [vmem:[%s2667_s8 + $0x1c0] sm:$0xff] %v542_v56 }
  0x4c   : > { %545 = vst [vmem:[%s2667_s8 + $0x1c8] sm:$0xff] %v544_v57 }
  0x4d   : > { %547 = vst [vmem:[%s2667_s8 + $0x1d0] sm:$0xff] %v546_v58 }
  0x4e   : > { %549 = vst [vmem:[%s2667_s8 + $0x1d8] sm:$0xff] %v548_v59 }
  0x4f   : > { %551 = vst [vmem:[%s2667_s8 + $0x1e0] sm:$0xff] %v550_v60 }
  0x50   : > { %553 = vst [vmem:[%s2667_s8 + $0x1e8] sm:$0xff] %v552_v61 }
  0x51   : > { %555 = vst [vmem:[%s2667_s8 + $0x1f0] sm:$0xff] %v554_v62 }
  0x52   : > { %557 = vst [vmem:[%s2667_s8 + $0x1f8] sm:$0xff] %v556_v63 }
  0x53   : > { %559 = vst [vmem:[%s2667_s8 + $0x200] sm:$0xff] %v558_v0 }
  0x54   : > { %561 = vst [vmem:[%s2667_s8 + $0x208] sm:$0xff] %v560_v1 }
  0x55   : > { %563 = vst [vmem:[%s2667_s8 + $0x210] sm:$0xff] %v562_v2 }
  0x56   : > { %565 = vst [vmem:[%s2667_s8 + $0x218] sm:$0xff] %v564_v3 }
  0x57   : > { %567 = vst [vmem:[%s2667_s8 + $0x220] sm:$0xff] %v566_v4 }
  0x58   : > { %569 = vst [vmem:[%s2667_s8 + $0x228] sm:$0xff] %v568_v5 }
  0x59   : > { %571 = vst [vmem:[%s2667_s8 + $0x230] sm:$0xff] %v570_v6 }
  0x5a   : > { %573 = vst [vmem:[%s2667_s8 + $0x238] sm:$0xff] %v572_v7 }
  0x5b   : > { %575 = vst [vmem:[%s2667_s8 + $0x240] sm:$0xff] %v574_v8 }
  0x5c   : > { %577 = vst [vmem:[%s2667_s8 + $0x248] sm:$0xff] %v576_v9 }
  0x5d   : > { %579 = vst [vmem:[%s2667_s8 + $0x250] sm:$0xff] %v578_v10 }
  0x5e   : > { %581 = vst [vmem:[%s2667_s8 + $0x258] sm:$0xff] %v580_v11 }
  0x5f   : > { %583 = vst [vmem:[%s2667_s8 + $0x260] sm:$0xff] %v582_v12 }
  0x60   : > { %585 = vst [vmem:[%s2667_s8 + $0x268] sm:$0xff] %v584_v13 }
  0x61   : > { %587 = vst [vmem:[%s2667_s8 + $0x270] sm:$0xff] %v586_v14 }
  0x62   : > { %589 = vst [vmem:[%s2667_s8 + $0x278] sm:$0xff] %v588_v15 }
  0x63   : > { %591 = vst [vmem:[%s2667_s8 + $0x280] sm:$0xff] %v590_v16 }
  0x64   : > { %593 = vst [vmem:[%s2667_s8 + $0x288] sm:$0xff] %v592_v17 }
  0x65   : > { %595 = vst [vmem:[%s2667_s8 + $0x290] sm:$0xff] %v594_v18 }
  0x66   : > { %597 = vst [vmem:[%s2667_s8 + $0x298] sm:$0xff] %v596_v19 }
  0x67   : > { %599 = vst [vmem:[%s2667_s8 + $0x2a0] sm:$0xff] %v598_v20 }
  0x68   : > { %601 = vst [vmem:[%s2667_s8 + $0x2a8] sm:$0xff] %v600_v21 }
  0x69   : > { %603 = vst [vmem:[%s2667_s8 + $0x2b0] sm:$0xff] %v602_v22 }
  0x6a   : > { %605 = vst [vmem:[%s2667_s8 + $0x2b8] sm:$0xff] %v604_v23 }
  0x6b   : > { %607 = vst [vmem:[%s2667_s8 + $0x2c0] sm:$0xff] %v606_v24 }
  0x6c   : > { %609 = vst [vmem:[%s2667_s8 + $0x2c8] sm:$0xff] %v608_v25 }
  0x6d   : > { %611 = vst [vmem:[%s2667_s8 + $0x2d0] sm:$0xff] %v610_v26 }
  0x6e   : > { %613 = vst [vmem:[%s2667_s8 + $0x2d8] sm:$0xff] %v612_v27 }
  0x6f   : > { %615 = vst [vmem:[%s2667_s8 + $0x2e0] sm:$0xff] %v614_v28 }
  0x70   : > { %617 = vst [vmem:[%s2667_s8 + $0x2e8] sm:$0xff] %v616_v29 }
  0x71   : > { %619 = vst [vmem:[%s2667_s8 + $0x2f0] sm:$0xff] %v618_v30 }
  0x72   : > { %621 = vst [vmem:[%s2667_s8 + $0x2f8] sm:$0xff] %v620_v31 }
  0x73   : > { %623 = vst [vmem:[%s2667_s8 + $0x300] sm:$0xff] %v622_v32 }
  0x74   : > { %625 = vst [vmem:[%s2667_s8 + $0x308] sm:$0xff] %v624_v33 }
  0x75   : > { %627 = vst [vmem:[%s2667_s8 + $0x310] sm:$0xff] %v626_v34 }
  0x76   : > { %629 = vst [vmem:[%s2667_s8 + $0x318] sm:$0xff] %v628_v35 }
  0x77   : > { %631 = vst [vmem:[%s2667_s8 + $0x320] sm:$0xff] %v630_v36 }
  0x78   : > { %633 = vst [vmem:[%s2667_s8 + $0x328] sm:$0xff] %v632_v37 }
  0x79   : > { %635 = vst [vmem:[%s2667_s8 + $0x330] sm:$0xff] %v634_v38 }
  0x7a   : > { %637 = vst [vmem:[%s2667_s8 + $0x338] sm:$0xff] %v636_v39 }
  0x7b   : > { %639 = vst [vmem:[%s2667_s8 + $0x340] sm:$0xff] %v638_v40 }
  0x7c   : > { %641 = vst [vmem:[%s2667_s8 + $0x348] sm:$0xff] %v640_v41 }
  0x7d   : > { %643 = vst [vmem:[%s2667_s8 + $0x350] sm:$0xff] %v642_v42 }
  0x7e   : > { %645 = vst [vmem:[%s2667_s8 + $0x358] sm:$0xff] %v644_v43 }
  0x7f PF: > { %p1900_p7 = scmp.ge.s32.totalorder %s2589_s20, 1  ;;  %p650_p8 = scmp.lt.s32.totalorder %s2589_s20, 3 }
  0x81   : > { %p651_p9 = pnand %p1900_p7, %p650_p8 }
  0x82   : > { %s657_s9 = sand.u32 (!%p651_p9), 1, %s2581_s18  }
  0x83   : > { %654 = sbr.rel (%p651_p9) target bundleno = 427 (0x1ab), region = 74 }
  0x84   : > { %s2538_s10 = smul.u32 (!%p651_p9), 864, %s657_s9 }
  0x86   : > { %s2887_s11 = scalar_lea.vmem (!%p651_p9), [#allocation2], %s2538_s10 }
  0x88   : > { %v2016_v44 = vld [vmem:[%s2887_s11 + $0x70] sm:$0xf]  ;;  %v2429_v45 = vld [vmem:[%s2887_s11 + $0x74] sm:$0xf0]  ;;  %v2008_v55 = vld [vmem:[%s2887_s11 + $0x60] sm:$0xf] }
  0x89   : > { %v2080_v46 = vld [vmem:[%s2887_s11 + $0xf0] sm:$0xf]  ;;  %v2017_v47 = vor.u32 %v2429_v45, %v2016_v44  ;;  %v2445_v48 = vld [vmem:[%s2887_s11 + $0xf4] sm:$0xf0]  ;;  %v2427_v57 = vld [vmem:[%s2887_s11 + $0x64] sm:$0xf0] }
  0x8a   : > { %v2144_v49 = vld [vmem:[%s2887_s11 + $0x170] sm:$0xf]  ;;  %v2461_v50 = vld [vmem:[%s2887_s11 + $0x174] sm:$0xf0]  ;;  %v2081_v51 = vor.u32 %v2445_v48, %v2080_v46  ;;  %v2072_v58 = vld [vmem:[%s2887_s11 + $0xe0] sm:$0xf]  ;;  %v2009_v60 = vor.u32 %v2427_v57, %v2008_v55 }
  0x8b   : > { %v2145_v52 = vor.u32 %v2461_v50, %v2144_v49  ;;  %v2208_v53 = vld [vmem:[%s2887_s11 + $0x1f0] sm:$0xf]  ;;  %v2477_v54 = vld [vmem:[%s2887_s11 + $0x1f4] sm:$0xf0]  ;;  %1451 = vmatpush.bf16.msra.mxu0 %v2017_v47  ;;  %v2443_v59 = vld [vmem:[%s2887_s11 + $0xe4] sm:$0xf0] }
  0x8c   : > { %v2209_v56 = vor.u32 %v2477_v54, %v2208_v53  ;;  %1470 = vmatpush.bf16.msra.mxu1 %v2081_v51  ;;  %v2073_v61 = vor.u32 %v2443_v59, %v2072_v58  ;;  %v2136_v62 = vld [vmem:[%s2887_s11 + $0x160] sm:$0xf]  ;;  %v2459_v63 = vld [vmem:[%s2887_s11 + $0x164] sm:$0xf0]  ;;  %v2000_v3 = vld [vmem:[%s2887_s11 + $0x50] sm:$0xf] }
  0x8d   : > { %1489 = vmatpush.bf16.msra.mxu2 %v2145_v52  ;;  %v2200_v0 = vld [vmem:[%s2887_s11 + $0x1e0] sm:$0xf]  ;;  %v2137_v1 = vor.u32 %v2459_v63, %v2136_v62  ;;  %v2475_v2 = vld [vmem:[%s2887_s11 + $0x1e4] sm:$0xf0]  ;;  %v2425_v4 = vld [vmem:[%s2887_s11 + $0x54] sm:$0xf0] }
  0x8e   : > { %1508 = vmatpush.bf16.msra.mxu3 %v2209_v56  ;;  %v2201_v5 = vor.u32 %v2475_v2, %v2200_v0  ;;  %v2064_v6 = vld [vmem:[%s2887_s11 + $0xd0] sm:$0xf]  ;;  %v2441_v7 = vld [vmem:[%s2887_s11 + $0xd4] sm:$0xf0]  ;;  %v2001_v9 = vor.u32 %v2425_v4, %v2000_v3  ;;  %v1992_v15 = vld [vmem:[%s2887_s11 + $0x40] sm:$0xf] }
  0x8f   : > { %v2128_v8 = vld [vmem:[%s2887_s11 + $0x150] sm:$0xf]  ;;  %1452 = vmatpush.bf16.msra.mxu0 %v2009_v60  ;;  %v2457_v10 = vld [vmem:[%s2887_s11 + $0x154] sm:$0xf0]  ;;  %v2065_v13 = vor.u32 %v2441_v7, %v2064_v6  ;;  %v2423_v16 = vld [vmem:[%s2887_s11 + $0x44] sm:$0xf0] }
  0x90   : > { %v2192_v11 = vld [vmem:[%s2887_s11 + $0x1d0] sm:$0xf]  ;;  %v2473_v12 = vld [vmem:[%s2887_s11 + $0x1d4] sm:$0xf0]  ;;  %1471 = vmatpush.bf16.msra.mxu1 %v2073_v61  ;;  %v2129_v14 = vor.u32 %v2457_v10, %v2128_v8  ;;  %v2056_v17 = vld [vmem:[%s2887_s11 + $0xc0] sm:$0xf]  ;;  %v1993_v24 = vor.u32 %v2423_v16, %v1992_v15 }
  0x91   : > { %1490 = vmatpush.bf16.msra.mxu2 %v2137_v1  ;;  %v2193_v18 = vor.u32 %v2473_v12, %v2192_v11  ;;  %v2439_v19 = vld [vmem:[%s2887_s11 + $0xc4] sm:$0xf0]  ;;  %v2120_v20 = vld [vmem:[%s2887_s11 + $0x140] sm:$0xf]  ;;  %v1984_v27 = vld [vmem:[%s2887_s11 + $0x30] sm:$0xf] }
  0x92   : > { %1509 = vmatpush.bf16.msra.mxu3 %v2201_v5  ;;  %v2455_v21 = vld [vmem:[%s2887_s11 + $0x144] sm:$0xf0]  ;;  %v2184_v22 = vld [vmem:[%s2887_s11 + $0x1c0] sm:$0xf]  ;;  %v2057_v25 = vor.u32 %v2439_v19, %v2056_v17  ;;  %v2421_v28 = vld [vmem:[%s2887_s11 + $0x34] sm:$0xf0] }
  0x93   : > { %v2471_v23 = vld [vmem:[%s2887_s11 + $0x1c4] sm:$0xf0]  ;;  %1453 = vmatpush.bf16.msra.mxu0 %v2001_v9  ;;  %v2121_v26 = vor.u32 %v2455_v21, %v2120_v20  ;;  %v2048_v29 = vld [vmem:[%s2887_s11 + $0xb0] sm:$0xf]  ;;  %v2437_v31 = vld [vmem:[%s2887_s11 + $0xb4] sm:$0xf0]  ;;  %v1985_v36 = vor.u32 %v2421_v28, %v1984_v27 }
  0x94   : > { %1472 = vmatpush.bf16.msra.mxu1 %v2065_v13  ;;  %v2185_v30 = vor.u32 %v2471_v23, %v2184_v22  ;;  %v2112_v32 = vld [vmem:[%s2887_s11 + $0x130] sm:$0xf]  ;;  %v2453_v33 = vld [vmem:[%s2887_s11 + $0x134] sm:$0xf0]  ;;  %v2049_v37 = vor.u32 %v2437_v31, %v2048_v29  ;;  %v1976_v39 = vld [vmem:[%s2887_s11 + $0x20] sm:$0xf] }
  0x95   : > { %1491 = vmatpush.bf16.msra.mxu2 %v2129_v14  ;;  %v2176_v34 = vld [vmem:[%s2887_s11 + $0x1b0] sm:$0xf]  ;;  %v2469_v35 = vld [vmem:[%s2887_s11 + $0x1b4] sm:$0xf0]  ;;  %v2113_v38 = vor.u32 %v2453_v33, %v2112_v32  ;;  %v2419_v40 = vld [vmem:[%s2887_s11 + $0x24] sm:$0xf0] }
  0x96   : > { %1510 = vmatpush.bf16.msra.mxu3 %v2193_v18  ;;  %v2040_v41 = vld [vmem:[%s2887_s11 + $0xa0] sm:$0xf]  ;;  %v2177_v42 = vor.u32 %v2469_v35, %v2176_v34  ;;  %v2435_v43 = vld [vmem:[%s2887_s11 + $0xa4] sm:$0xf0]  ;;  %v1977_v48 = vor.u32 %v2419_v40, %v1976_v39  ;;  %v1968_v51 = vld [vmem:[%s2887_s11 + $0x10] sm:$0xf] }
  0x97   : > { %1454 = vmatpush.bf16.msra.mxu0 %v1993_v24  ;;  %v2104_v44 = vld [vmem:[%s2887_s11 + $0x120] sm:$0xf]  ;;  %v2451_v45 = vld [vmem:[%s2887_s11 + $0x124] sm:$0xf0]  ;;  %v2041_v49 = vor.u32 %v2435_v43, %v2040_v41  ;;  %v2417_v52 = vld [vmem:[%s2887_s11 + $0x14] sm:$0xf0] }
  0x98   : > { %1473 = vmatpush.bf16.msra.mxu1 %v2057_v25  ;;  %v2168_v46 = vld [vmem:[%s2887_s11 + $0x1a0] sm:$0xf]  ;;  %v2467_v47 = vld [vmem:[%s2887_s11 + $0x1a4] sm:$0xf0]  ;;  %v2105_v50 = vor.u32 %v2451_v45, %v2104_v44  ;;  %v2032_v53 = vld [vmem:[%s2887_s11 + $0x90] sm:$0xf]  ;;  %v1969_v61 = vor.u32 %v2417_v52, %v1968_v51 }
  0x99   : > { %1492 = vmatpush.bf16.msra.mxu2 %v2121_v26  ;;  %v2169_v54 = vor.u32 %v2467_v47, %v2168_v46  ;;  %v2433_v55 = vld [vmem:[%s2887_s11 + $0x94] sm:$0xf0]  ;;  %v2096_v56 = vld [vmem:[%s2887_s11 + $0x110] sm:$0xf]  ;;  %v1960_v60 = vld [vmem:[%s2887_s11] sm:$0xf] }
  0x9a   : > { %1511 = vmatpush.bf16.msra.mxu3 %v2185_v30  ;;  %v2449_v57 = vld [vmem:[%s2887_s11 + $0x114] sm:$0xf0]  ;;  %v2160_v58 = vld [vmem:[%s2887_s11 + $0x190] sm:$0xf]  ;;  %v2415_v62 = vld [vmem:[%s2887_s11 + $0x4] sm:$0xf0]  ;;  %v2033_v1 = vor.u32 %v2433_v55, %v2032_v53 }
  0x9b   : > { %1455 = vmatpush.bf16.msra.mxu0 %v1985_v36  ;;  %v2465_v59 = vld [vmem:[%s2887_s11 + $0x194] sm:$0xf0]  ;;  %v2024_v63 = vld [vmem:[%s2887_s11 + $0x80] sm:$0xf]  ;;  %v2431_v0 = vld [vmem:[%s2887_s11 + $0x84] sm:$0xf0]  ;;  %v2097_v2 = vor.u32 %v2449_v57, %v2096_v56  ;;  %v1961_v14 = vor.u32 %v2415_v62, %v1960_v60 }
  0x9c   : > { %1474 = vmatpush.bf16.msra.mxu1 %v2049_v37  ;;  %v2088_v3 = vld [vmem:[%s2887_s11 + $0x100] sm:$0xf]  ;;  %v2447_v4 = vld [vmem:[%s2887_s11 + $0x104] sm:$0xf0]  ;;  %v2161_v6 = vor.u32 %v2465_v59, %v2160_v58  ;;  %v2403_v9 = vld [vmem:[%s3373_s0 + $0x18] sm:$0xf0]  ;;  %v2025_v18 = vor.u32 %v2431_v0, %v2024_v63 }
  0x9d   : > { %1493 = vmatpush.bf16.msra.mxu2 %v2113_v38  ;;  %v2152_v5 = vld [vmem:[%s2887_s11 + $0x180] sm:$0xf]  ;;  %v2463_v7 = vld [vmem:[%s2887_s11 + $0x184] sm:$0xf0]  ;;  %v2400_v10 = vld [vmem:[%s3373_s0 + $0x4] sm:$0xf]  ;;  %v2089_v19 = vor.u32 %v2447_v4, %v2088_v3 }
  0x9e   : > { %1512 = vmatpush.bf16.msra.mxu3 %v2177_v42  ;;  %v1904_v8 = vld [vmem:[%s3373_s0] sm:$0xf]  ;;  %v2384_v12 = vld [vmem:[%s2887_s11 + $0x350] sm:$0xf]  ;;  %v2521_v13 = vld [vmem:[%s2887_s11 + $0x354] sm:$0xf0]  ;;  %v2153_v23 = vor.u32 %v2463_v7, %v2152_v5 }
  0x9f   : > { %1456 = vmatpush.bf16.msra.mxu0 %v1977_v48  ;;  %v1906_v11 = vld [vmem:[%s3373_s0 + $0x1c] sm:$0xf0]  ;;  %v1912_v15 = vld [vmem:[%s3373_s0 + $0x8] sm:$0xf]  ;;  %v2336_v16 = vld [vmem:[%s2887_s11 + $0x2f0] sm:$0xf]  ;;  %v2385_v24 = vor.u32 %v2521_v13, %v2384_v12  ;;  %v2984_v28 = vor.u32 %v2403_v9, %v1904_v8 }
  0xa0   : > { %1475 = vmatpush.bf16.msra.mxu1 %v2041_v49  ;;  %v2509_v17 = vld [vmem:[%s2887_s11 + $0x2f4] sm:$0xf0]  ;;  %v2404_v20 = vld [vmem:[%s3373_s0 + $0x20] sm:$0xf0]  ;;  %v2401_v21 = vld [vmem:[%s3373_s0 + $0xc] sm:$0xf]  ;;  %v2989_v33 = vor.u32 %v2400_v10, %v1906_v11 }
  0xa1   : > { %1494 = vmatpush.bf16.msra.mxu2 %v2105_v50  ;;  %v1914_v22 = vld [vmem:[%s3373_s0 + $0x24] sm:$0xf0]  ;;  %v2272_v25 = vld [vmem:[%s2887_s11 + $0x270] sm:$0xf]  ;;  %v2493_v26 = vld [vmem:[%s2887_s11 + $0x274] sm:$0xf0]  ;;  %v2337_v29 = vor.u32 %v2509_v17, %v2336_v16  ;;  %v2991_v34 = vor.u32 %v2404_v20, %v1912_v15 }
  0xa2   : > { %1513 = vmatpush.bf16.msra.mxu3 %v2169_v54  ;;  %v2428_v27 = vld [vmem:[%s2887_s11 + $0x74] sm:$0xf]  ;;  %v2018_v30 = vld [vmem:[%s2887_s11 + $0x78] sm:$0xf0]  ;;  %v2376_v31 = vld [vmem:[%s2887_s11 + $0x340] sm:$0xf]  ;;  %v2995_v37 = vor.u32 %v2401_v21, %v1914_v22  ;;  %v2273_v38 = vor.u32 %v2493_v26, %v2272_v25 }
  0xa3   : > { %1457 = vmatpush.bf16.msra.mxu0 %v1969_v61  ;;  %v2519_v32 = vld [vmem:[%s2887_s11 + $0x344] sm:$0xf0]  ;;  %v2328_v35 = vld [vmem:[%s2887_s11 + $0x2e0] sm:$0xf]  ;;  %v2021_v39 = vor.u32 %v2428_v27, %v2018_v30  ;;  %v2426_v42 = vld [vmem:[%s2887_s11 + $0x64] sm:$0xf] }
  0xa4   : > { %1476 = vmatpush.bf16.msra.mxu1 %v2033_v1  ;;  %v2507_v36 = vld [vmem:[%s2887_s11 + $0x2e4] sm:$0xf0]  ;;  %v2264_v40 = vld [vmem:[%s2887_s11 + $0x260] sm:$0xf]  ;;  %v2377_v43 = vor.u32 %v2519_v32, %v2376_v31  ;;  %v2010_v45 = vld [vmem:[%s2887_s11 + $0x68] sm:$0xf0] }
  0xa5   : > { %1495 = vmatpush.bf16.msra.mxu2 %v2097_v2  ;;  %v2491_v41 = vld [vmem:[%s2887_s11 + $0x264] sm:$0xf0]  ;;  %v2329_v44 = vor.u32 %v2507_v36, %v2328_v35  ;;  %v2368_v46 = vld [vmem:[%s2887_s11 + $0x330] sm:$0xf]  ;;  %v2517_v47 = vld [vmem:[%s2887_s11 + $0x334] sm:$0xf0]  ;;  %v2013_v52 = vor.u32 %v2426_v42, %v2010_v45 }
  0xa6   : > { %1514 = vmatpush.bf16.msra.mxu3 %v2161_v6  ;;  %v2320_v48 = vld [vmem:[%s2887_s11 + $0x2d0] sm:$0xf]  ;;  %v2505_v49 = vld [vmem:[%s2887_s11 + $0x2d4] sm:$0xf0]  ;;  %v2265_v50 = vor.u32 %v2491_v41, %v2264_v40  ;;  %v810_v51 = vld [vmem:[%s3375_s2] sm:$0xff]  ;;  %v2369_v56 = vor.u32 %v2517_v47, %v2368_v46  ;;  %v2591_v59 = vmov 0  }
  0xa7   : > { %1458 = vmatpush.bf16.msra.mxu0 %v1961_v14  ;;  %v2256_v53 = vld [vmem:[%s2887_s11 + $0x250] sm:$0xf]  ;;  %v2489_v54 = vld [vmem:[%s2887_s11 + $0x254] sm:$0xf0]  ;;  %v2424_v55 = vld [vmem:[%s2887_s11 + $0x54] sm:$0xf]  ;;  %v2321_v57 = vor.u32 %v2505_v49, %v2320_v48  ;;  %2564 = vset.pattern.permute.xlu0 %v2591_v59 }
  0xa8   : > { %1477 = vmatpush.bf16.msra.mxu1 %v2025_v18  ;;  %v2002_v58 = vld [vmem:[%s2887_s11 + $0x58] sm:$0xf0]  ;;  %v2360_v60 = vld [vmem:[%s2887_s11 + $0x320] sm:$0xf]  ;;  %v2515_v61 = vld [vmem:[%s2887_s11 + $0x324] sm:$0xf0]  ;;  %816 = vperm.xlu0 %2564, %v810_v51   ;;  %v2257_v0 = vor.u32 %v2489_v54, %v2256_v53 }
  0xa9   : > { %1496 = vmatpush.bf16.msra.mxu2 %v2089_v19  ;;  %v2312_v62 = vld [vmem:[%s2887_s11 + $0x2c0] sm:$0xf]  ;;  %v2503_v63 = vld [vmem:[%s2887_s11 + $0x2c4] sm:$0xf0]  ;;  %2565 = vset.pattern.permute.xlu1 %v2591_v59  ;;  %v2422_v3 = vld [vmem:[%s2887_s11 + $0x44] sm:$0xf]  ;;  %v2005_v4 = vor.u32 %v2424_v55, %v2002_v58  ;;  %v2361_v8 = vor.u32 %v2515_v61, %v2360_v60 }
  0xaa   : > { %1515 = vmatpush.bf16.msra.mxu3 %v2153_v23  ;;  %1459 = vmatmul.bf16.vlgmr.msra.gmra.mxu0 %v2984_v28  ;;  %v2248_v1 = vld [vmem:[%s2887_s11 + $0x240] sm:$0xf]  ;;  %v2487_v2 = vld [vmem:[%s2887_s11 + $0x244] sm:$0xf0]  ;;  %v1994_v5 = vld [vmem:[%s2887_s11 + $0x48] sm:$0xf0]  ;;  %v2313_v9 = vor.u32 %v2503_v63, %v2312_v62 }
  0xab   : > { %1478 = vmatmul.bf16.vlgmr.msra.gmra.mxu1 %v2989_v33  ;;  %1527 = vmatpush.bf16.msrb.mxu0 %v2273_v38  ;;  %v1932_v6 = vld [vmem:[%s3373_s0 + $0x38] sm:$0xf]  ;;  %v2410_v7 = vld [vmem:[%s3373_s0 + $0x50] sm:$0xf0]  ;;  %v2407_v10 = vld [vmem:[%s3373_s0 + $0x3c] sm:$0xf]  ;;  %v2249_v19 = vor.u32 %v2487_v2, %v2248_v1  ;;  %v1997_v23 = vor.u32 %v2422_v3, %v1994_v5 }
  0xac   : > { %1546 = vmatpush.bf16.msrb.mxu1 %v2337_v29  ;;  %1497 = vmatmul.bf16.vlgmr.msra.gmra.mxu2 %v2991_v34  ;;  %v1934_v11 = vld [vmem:[%s3373_s0 + $0x54] sm:$0xf0]  ;;  %v1940_v12 = vld [vmem:[%s3373_s0 + $0x40] sm:$0xf]  ;;  %v2411_v13 = vld [vmem:[%s3373_s0 + $0x58] sm:$0xf0]  ;;  %v3061_v29 = vor.u32 %v2410_v7, %v1932_v6 }
  0xad   : > { %1567 = vmatpush.bf16.msrb.mxu2 %v2385_v24  ;;  %1516 = vmatmul.bf16.vlgmr.msra.gmra.mxu3 %v2995_v37  ;;  %v2352_v14 = vld [vmem:[%s2887_s11 + $0x310] sm:$0xf]  ;;  %v2513_v15 = vld [vmem:[%s2887_s11 + $0x314] sm:$0xf0]  ;;  %v2408_v16 = vld [vmem:[%s3373_s0 + $0x44] sm:$0xf]  ;;  %v3066_v36 = vor.u32 %v2407_v10, %v1934_v11  ;;  %v3068_v38 = vor.u32 %v2411_v13, %v1940_v12 }
  0xae   : > { %1584 = vmatpush.bf16.msrb.mxu3 %v2021_v39  ;;  %2566 = vset.pattern.permute.xlu2 %v2591_v59  ;;  %v2304_v17 = vld [vmem:[%s2887_s11 + $0x2b0] sm:$0xf]  ;;  %v2501_v18 = vld [vmem:[%s2887_s11 + $0x2b4] sm:$0xf0]  ;;  %v1942_v20 = vld [vmem:[%s3373_s0 + $0x5c] sm:$0xf0]  ;;  %v2353_v27 = vor.u32 %v2513_v15, %v2352_v14 }
  0xaf   : > { %1528 = vmatpush.bf16.msrb.mxu0 %v2265_v50  ;;  %v811_v21 = vld [vmem:[%s3375_s2 + $0x8] sm:$0xff]  ;;  %v812_v22 = vld [vmem:[%s3375_s2 + $0x10] sm:$0xff]  ;;  %v2485_v25 = vld [vmem:[%s2887_s11 + $0x234] sm:$0xf0]  ;;  %v2305_v30 = vor.u32 %v2501_v18, %v2304_v17  ;;  %v3072_v41 = vor.u32 %v2408_v16, %v1942_v20  ;;  %vm1444_vm0 = vcmask 785408   ;;  %s2522_s18 = sshll.u32 (%p2652_p5), %s1894_s21, 4 }
  0xb0   : > { %1547 = vmatpush.bf16.msrb.mxu1 %v2329_v44  ;;  %v2240_v24 = vld [vmem:[%s2887_s11 + $0x230] sm:$0xf]  ;;  %v2420_v26 = vld [vmem:[%s2887_s11 + $0x34] sm:$0xf]  ;;  %v1986_v31 = vld [vmem:[%s2887_s11 + $0x38] sm:$0xf0]  ;;  %826 = vperm.xlu1 %2565, %v812_v22   ;;  %s1806_s14 = scalar_lea.vmem (%p2652_p5), %s3378_s5, %s2522_s18 }
  0xb1   : > { %1568 = vmatpush.bf16.msrb.mxu2 %v2377_v43  ;;  %v2344_v32 = vld [vmem:[%s2887_s11 + $0x300] sm:$0xf]  ;;  %v2511_v35 = vld [vmem:[%s2887_s11 + $0x304] sm:$0xf0]  ;;  %821 = vperm.xlu0 %2564, %v811_v21   ;;  %v2241_v42 = vor.u32 %v2485_v25, %v2240_v24  ;;  %v1989_v43 = vor.u32 %v2420_v26, %v1986_v31  ;;  %v2476_v47 = vld [vmem:[%s2887_s11 + $0x1f4] sm:$0xf] }
  0xb2   : > { %1585 = vmatpush.bf16.msrb.mxu3 %v2013_v52  ;;  %v2296_v39 = vld [vmem:[%s2887_s11 + $0x2a0] sm:$0xf]  ;;  %v2499_v40 = vld [vmem:[%s2887_s11 + $0x2a4] sm:$0xf0]  ;;  %v2345_v46 = vor.u32 %v2511_v35, %v2344_v32  ;;  %v2418_v49 = vld [vmem:[%s2887_s11 + $0x24] sm:$0xf] }
  0xb3   : > { %1529 = vmatpush.bf16.msrb.mxu0 %v2257_v0  ;;  %v2232_v44 = vld [vmem:[%s2887_s11 + $0x220] sm:$0xf]  ;;  %v2483_v45 = vld [vmem:[%s2887_s11 + $0x224] sm:$0xf0]  ;;  %v2297_v48 = vor.u32 %v2499_v40, %v2296_v39  ;;  %v1978_v50 = vld [vmem:[%s2887_s11 + $0x28] sm:$0xf0] }
  0xb4   : > { %1548 = vmatpush.bf16.msrb.mxu1 %v2321_v57  ;;  %v2210_v51 = vld [vmem:[%s2887_s11 + $0x1f8] sm:$0xf0]  ;;  %v2288_v52 = vld [vmem:[%s2887_s11 + $0x290] sm:$0xf]  ;;  %v2497_v53 = vld [vmem:[%s2887_s11 + $0x294] sm:$0xf0]  ;;  %v2233_v55 = vor.u32 %v2483_v45, %v2232_v44  ;;  %v1981_v58 = vor.u32 %v2418_v49, %v1978_v50 }
  0xb5   : > { %1569 = vmatpush.bf16.msrb.mxu2 %v2369_v56  ;;  %v2213_v54 = vor.u32 %v2476_v47, %v2210_v51  ;;  %v813_v56 = vld [vmem:[%s3375_s2 + $0x18] sm:$0xff]  ;;  %v2474_v57 = vld [vmem:[%s2887_s11 + $0x1e4] sm:$0xf]  ;;  %v2224_v59 = vld [vmem:[%s2887_s11 + $0x210] sm:$0xf]  ;;  %v2289_v62 = vor.u32 %v2497_v53, %v2288_v52 }
  0xb6   : > { %1586 = vmatpush.bf16.msrb.mxu3 %v2005_v4  ;;  %v2481_v60 = vld [vmem:[%s2887_s11 + $0x214] sm:$0xf0]  ;;  %v2202_v61 = vld [vmem:[%s2887_s11 + $0x1e8] sm:$0xf0]  ;;  %v2416_v63 = vld [vmem:[%s2887_s11 + $0x14] sm:$0xf] }
  0xb7   : > { %1530 = vmatpush.bf16.msrb.mxu0 %v2249_v19  ;;  %v1970_v0 = vld [vmem:[%s2887_s11 + $0x18] sm:$0xf0]  ;;  %v2280_v1 = vld [vmem:[%s2887_s11 + $0x280] sm:$0xf]  ;;  %v2205_v2 = vor.u32 %v2474_v57, %v2202_v61  ;;  %v2495_v3 = vld [vmem:[%s2887_s11 + $0x284] sm:$0xf0]  ;;  %v2225_v6 = vor.u32 %v2481_v60, %v2224_v59 }
  0xb8   : > { %1549 = vmatpush.bf16.msrb.mxu1 %v2313_v9  ;;  %831 = vperm.xlu1 %2565, %v813_v56   ;;  %v2472_v4 = vld [vmem:[%s2887_s11 + $0x1d4] sm:$0xf]  ;;  %v2194_v5 = vld [vmem:[%s2887_s11 + $0x1d8] sm:$0xf0]  ;;  %v2216_v7 = vld [vmem:[%s2887_s11 + $0x200] sm:$0xf]  ;;  %v1973_v10 = vor.u32 %v2416_v63, %v1970_v0  ;;  %v2281_v14 = vor.u32 %v2495_v3, %v2280_v1 }
  0xb9   : > { %1570 = vmatpush.bf16.msrb.mxu2 %v2361_v8  ;;  %v2460_v8 = vld [vmem:[%s2887_s11 + $0x174] sm:$0xf]  ;;  %v2146_v9 = vld [vmem:[%s2887_s11 + $0x178] sm:$0xf0]  ;;  %v2479_v11 = vld [vmem:[%s2887_s11 + $0x204] sm:$0xf0]  ;;  %v2197_v20 = vor.u32 %v2472_v4, %v2194_v5 }
  0xba   : > { %1587 = vmatpush.bf16.msrb.mxu3 %v1997_v23  ;;  %1464 = vmatmul.bf16.gmra.mxu0 %v3061_v29  ;;  %v2414_v12 = vld [vmem:[%s2887_s11 + $0x4] sm:$0xf]  ;;  %v1962_v13 = vld [vmem:[%s2887_s11 + $0x8] sm:$0xf0]  ;;  %v1920_v15 = vld [vmem:[%s3373_s0 + $0x10] sm:$0xf]  ;;  %v2149_v21 = vor.u32 %v2460_v8, %v2146_v9  ;;  %v2217_v25 = vor.u32 %v2479_v11, %v2216_v7 }
  0xbb   : > { %1483 = vmatmul.bf16.gmra.mxu1 %v3066_v36  ;;  %1531 = vmatpush.bf16.msrb.mxu0 %v2241_v42  ;;  %v2405_v16 = vld [vmem:[%s3373_s0 + $0x28] sm:$0xf0]  ;;  %v2444_v17 = vld [vmem:[%s2887_s11 + $0xf4] sm:$0xf]  ;;  %v2082_v18 = vld [vmem:[%s2887_s11 + $0xf8] sm:$0xf0]  ;;  %v1965_v31 = vor.u32 %v2414_v12, %v1962_v13 }
  0xbc   : > { %1550 = vmatpush.bf16.msrb.mxu1 %v2305_v30  ;;  %1502 = vmatmul.bf16.gmra.mxu2 %v3068_v38  ;;  %v2492_v19 = vld [vmem:[%s2887_s11 + $0x274] sm:$0xf]  ;;  %v2274_v22 = vld [vmem:[%s2887_s11 + $0x278] sm:$0xf0]  ;;  %v2470_v23 = vld [vmem:[%s2887_s11 + $0x1c4] sm:$0xf]  ;;  %v2085_v35 = vor.u32 %v2444_v17, %v2082_v18  ;;  %v3134_v47 = vor.u32 %v2405_v16, %v1920_v15 }
  0xbd   : > { %1571 = vmatpush.bf16.msrb.mxu2 %v2353_v27  ;;  %1521 = vmatmul.bf16.gmra.mxu3 %v3072_v41  ;;  %v2186_v24 = vld [vmem:[%s2887_s11 + $0x1c8] sm:$0xf0]  ;;  %v2402_v26 = vld [vmem:[%s3373_s0 + $0x14] sm:$0xf]  ;;  %v1922_v27 = vld [vmem:[%s3373_s0 + $0x2c] sm:$0xf0]  ;;  %v2277_v42 = vor.u32 %v2492_v19, %v2274_v22 }
  0xbe   : > { %1588 = vmatpush.bf16.msrb.mxu3 %v1989_v43  ;;  %v1928_v30 = vld [vmem:[%s3373_s0 + $0x18] sm:$0xf]  ;;  %v2406_v32 = vld [vmem:[%s3373_s0 + $0x30] sm:$0xf0]  ;;  %v2442_v39 = vld [vmem:[%s2887_s11 + $0xe4] sm:$0xf] }
  0xbf   : > { %1532 = vmatpush.bf16.msrb.mxu0 %v2233_v55  ;;  %v2074_v40 = vld [vmem:[%s2887_s11 + $0xe8] sm:$0xf0]  ;;  %v2458_v43 = vld [vmem:[%s2887_s11 + $0x164] sm:$0xf]  ;;  %v2468_v50 = vld [vmem:[%s2887_s11 + $0x1b4] sm:$0xf]  ;;  %v3141_v52 = vor.u32 %v2406_v32, %v1928_v30 }
  0xc0   : > { %1551 = vmatpush.bf16.msrb.mxu1 %v2297_v48  ;;  %v2138_v44 = vld [vmem:[%s2887_s11 + $0x168] sm:$0xf0]  ;;  %v2490_v45 = vld [vmem:[%s2887_s11 + $0x264] sm:$0xf]  ;;  %v3136_v48 = vor.u32 %v2402_v26, %v1922_v27  ;;  %v2178_v51 = vld [vmem:[%s2887_s11 + $0x1b8] sm:$0xf0]  ;;  %v2077_v53 = vor.u32 %v2442_v39, %v2074_v40 }
  0xc1   : > { %1572 = vmatpush.bf16.msrb.mxu2 %v2345_v46  ;;  %v2189_v46 = vor.u32 %v2470_v23, %v2186_v24  ;;  %v2266_v49 = vld [vmem:[%s2887_s11 + $0x268] sm:$0xf0]  ;;  %v2440_v55 = vld [vmem:[%s2887_s11 + $0xd4] sm:$0xf]  ;;  %v2066_v56 = vld [vmem:[%s2887_s11 + $0xd8] sm:$0xf0]  ;;  %v2181_v61 = vor.u32 %v2468_v50, %v2178_v51 }
  0xc2   : > { %1589 = vmatpush.bf16.msrb.mxu3 %v1981_v58  ;;  %v2269_v57 = vor.u32 %v2490_v45, %v2266_v49  ;;  %v2456_v58 = vld [vmem:[%s2887_s11 + $0x154] sm:$0xf]  ;;  %v2130_v59 = vld [vmem:[%s2887_s11 + $0x158] sm:$0xf0]  ;;  %v2466_v63 = vld [vmem:[%s2887_s11 + $0x1a4] sm:$0xf] }
  0xc3   : > { %1533 = vmatpush.bf16.msrb.mxu0 %v2225_v6  ;;  %v2488_v60 = vld [vmem:[%s2887_s11 + $0x254] sm:$0xf]  ;;  %v2170_v0 = vld [vmem:[%s2887_s11 + $0x1a8] sm:$0xf0]  ;;  %v2133_v3 = vor.u32 %v2456_v58, %v2130_v59  ;;  %v2438_v4 = vld [vmem:[%s2887_s11 + $0xc4] sm:$0xf] }
  0xc4   : > { %1552 = vmatpush.bf16.msrb.mxu1 %v2289_v62  ;;  %v2258_v62 = vld [vmem:[%s2887_s11 + $0x258] sm:$0xf0]  ;;  %v1727_v1 = vld [vmem:[%s3376_s3 + $0x10] sm:$0xff]  ;;  %v2058_v5 = vld [vmem:[%s2887_s11 + $0xc8] sm:$0xf0]  ;;  %v2173_v9 = vor.u32 %v2466_v63, %v2170_v0 }
  0xc5   : > { %1641 = vmatpush.bf16.msra.mxu2 %v2213_v54  ;;  %v2141_v54 = vor.u32 %v2458_v43, %v2138_v44  ;;  %v2261_v6 = vor.u32 %v2488_v60, %v2258_v62  ;;  %v2454_v7 = vld [vmem:[%s2887_s11 + $0x144] sm:$0xf]  ;;  %v2122_v8 = vld [vmem:[%s2887_s11 + $0x148] sm:$0xf0]  ;;  %1741 = vperm.xlu0 %2564, %v1727_v1   ;;  %v2464_v11 = vld [vmem:[%s2887_s11 + $0x194] sm:$0xf] }
  0xc6   : > { %1590 = vmatpush.bf16.msrb.mxu3 %v1973_v10  ;;  %v2250_v10 = vld [vmem:[%s2887_s11 + $0x248] sm:$0xf0]  ;;  %v2162_v12 = vld [vmem:[%s2887_s11 + $0x198] sm:$0xf0]  ;;  %v2436_v13 = vld [vmem:[%s2887_s11 + $0xb4] sm:$0xf]  ;;  %v2125_v15 = vor.u32 %v2454_v7, %v2122_v8 }
  0xc7   : > { %1534 = vmatpush.bf16.msrb.mxu0 %v2217_v25  ;;  %v2050_v16 = vld [vmem:[%s2887_s11 + $0xb8] sm:$0xf0]  ;;  %v2452_v17 = vld [vmem:[%s2887_s11 + $0x134] sm:$0xf]  ;;  %v1725_v18 = vld [vmem:[%s3376_s3] sm:$0xff]  ;;  %v2165_v25 = vor.u32 %v2464_v11, %v2162_v12 }
  0xc8   : > { %1553 = vmatpush.bf16.msrb.mxu1 %v2281_v14  ;;  %v2061_v14 = vor.u32 %v2438_v4, %v2058_v5  ;;  %v2409_v22 = vld [vmem:[%s3373_s0 + $0x4c] sm:$0xf]  ;;  %v2114_v23 = vld [vmem:[%s2887_s11 + $0x138] sm:$0xf0]  ;;  %v2484_v24 = vld [vmem:[%s2887_s11 + $0x234] sm:$0xf]  ;;  %1731 = vperm.xlu2 %2566, %v1725_v18  }
  0xc9   : > { %1642 = vmatpush.bf16.msra.mxu2 %v2205_v2  ;;  %v2069_v2 = vor.u32 %v2440_v55, %v2066_v56  ;;  %v1728_v26 = vld [vmem:[%s3376_s3 + $0x18] sm:$0xff]  ;;  %v2462_v30 = vld [vmem:[%s2887_s11 + $0x184] sm:$0xf]  ;;  %v1950_v32 = vld [vmem:[%s3373_s0 + $0x64] sm:$0xf0]  ;;  %v2117_v43 = vor.u32 %v2452_v17, %v2114_v23 }
  0xca   : > { %1591 = vmatpush.bf16.msrb.mxu3 %v1965_v31  ;;  %1535 = vmatmul.bf16.vlgmr.msrb.gmra.mxu0 %v3134_v47  ;;  %v2242_v27 = vld [vmem:[%s2887_s11 + $0x238] sm:$0xf0]  ;;  %v2154_v31 = vld [vmem:[%s2887_s11 + $0x188] sm:$0xf0]  ;;  %v2434_v44 = vld [vmem:[%s2887_s11 + $0xa4] sm:$0xf]  ;;  %v3209_v55 = vor.u32 %v2409_v22, %v1950_v32 }
  0xcb   : > { %1603 = vmatpush.bf16.msra.mxu0 %v2085_v35  ;;  %1554 = vmatmul.bf16.vlgmr.msrb.gmra.mxu1 %v3136_v48  ;;  %v1956_v35 = vld [vmem:[%s3373_s0 + $0x50] sm:$0xf]  ;;  %v1758_v39 = vld [vmem:[%s3377_s4 + $0x8] sm:$0xff]  ;;  %v2450_v49 = vld [vmem:[%s2887_s11 + $0x124] sm:$0xf] }
  0xcc   : > { %1622 = vmatpush.bf16.msra.mxu1 %v2149_v21  ;;  %2390 = vmatmul.msk.bf16.vlgmr.msrb.gmra.mxu2 %vm1444_vm0, %v3141_v52  ;;  %v2412_v21 = vld [vmem:[%s3373_s0 + $0x60] sm:$0xf0]  ;;  %v2413_v40 = vld [vmem:[%s3373_s0 + $0x68] sm:$0xf0]  ;;  %v2338_v58 = vld [vmem:[%s2887_s11 + $0x2f8] sm:$0xf0] }
  0xcd   : > { %1643 = vmatpush.bf16.msra.mxu2 %v2197_v20  ;;  %1592 = vmatmul.bf16.vlgmr.msrb.gmra.mxu3 %v2984_v28  ;;  %v2486_v28 = vld [vmem:[%s2887_s11 + $0x244] sm:$0xf]  ;;  %v1948_v20 = vld [vmem:[%s3373_s0 + $0x48] sm:$0xf]  ;;  %v2042_v45 = vld [vmem:[%s2887_s11 + $0xa8] sm:$0xf0]  ;;  %v3214_v59 = vor.u32 %v2413_v40, %v1956_v35 }
  0xce   : > { %1660 = vmatpush.bf16.msra.mxu3 %v2277_v42  ;;  %v2253_v19 = vor.u32 %v2486_v28, %v2250_v10  ;;  %1746 = vperm.xlu1 %2565, %v1728_v26   ;;  %v2053_v42 = vor.u32 %v2436_v13, %v2050_v16  ;;  %v2106_v50 = vld [vmem:[%s2887_s11 + $0x128] sm:$0xf0]  ;;  %v2482_v51 = vld [vmem:[%s2887_s11 + $0x224] sm:$0xf]  ;;  %v2045_v60 = vor.u32 %v2434_v44, %v2042_v45  ;;  %v2432_v62 = vld [vmem:[%s2887_s11 + $0x94] sm:$0xf] }
  0xcf   : > { %1604 = vmatpush.bf16.msra.mxu0 %v2077_v53  ;;  %v2157_v53 = vor.u32 %v2462_v30, %v2154_v31  ;;  %v2234_v56 = vld [vmem:[%s2887_s11 + $0x228] sm:$0xf0]  ;;  %1768 = vperm.xlu0 %2564, %v1758_v39   ;;  %v2034_v63 = vld [vmem:[%s2887_s11 + $0x98] sm:$0xf0]  ;;  %v2448_v1 = vld [vmem:[%s2887_s11 + $0x114] sm:$0xf] }
  0xd0   : > { %1623 = vmatpush.bf16.msra.mxu1 %v2141_v54  ;;  %v3207_v54 = vor.u32 %v2412_v21, %v1948_v20  ;;  %v2237_v0 = vor.u32 %v2482_v51, %v2234_v56  ;;  %v2226_v5 = vld [vmem:[%s2887_s11 + $0x218] sm:$0xf0]  ;;  %v2330_v7 = vld [vmem:[%s2887_s11 + $0x2e8] sm:$0xf0]  ;;  %v1759_v28 = vld [vmem:[%s3377_s4 + $0x10] sm:$0xff] }
  0xd1   : > { %1644 = vmatpush.bf16.msra.mxu2 %v2189_v46  ;;  %v2245_v46 = vor.u32 %v2484_v24, %v2242_v27  ;;  %v1726_v8 = vld [vmem:[%s3376_s3 + $0x8] sm:$0xff]  ;;  %v2430_v11 = vld [vmem:[%s2887_s11 + $0x84] sm:$0xf]  ;;  %v2520_v18 = vld [vmem:[%s2887_s11 + $0x354] sm:$0xf] }
  0xd2   : > { %1661 = vmatpush.bf16.msra.mxu3 %v2269_v57  ;;  %v2508_v57 = vld [vmem:[%s2887_s11 + $0x2f4] sm:$0xf]  ;;  %v2026_v12 = vld [vmem:[%s2887_s11 + $0x88] sm:$0xf0]  ;;  %v2446_v13 = vld [vmem:[%s2887_s11 + $0x104] sm:$0xf]  ;;  %1736 = vperm.xlu2 %2566, %v1726_v8  }
  0xd3   : > { %1605 = vmatpush.bf16.msra.mxu0 %v2069_v2  ;;  %v2098_v2 = vld [vmem:[%s2887_s11 + $0x118] sm:$0xf0]  ;;  %v2341_v4 = vor.u32 %v2508_v57, %v2338_v58  ;;  %v2478_v16 = vld [vmem:[%s2887_s11 + $0x204] sm:$0xf]  ;;  %v2218_v17 = vld [vmem:[%s2887_s11 + $0x208] sm:$0xf0]  ;;  %v2029_v22 = vor.u32 %v2430_v11, %v2026_v12 }
  0xd4   : > { %1624 = vmatpush.bf16.msra.mxu1 %v2133_v3  ;;  %v2480_v3 = vld [vmem:[%s2887_s11 + $0x214] sm:$0xf]  ;;  %v2101_v10 = vor.u32 %v2448_v1, %v2098_v2  ;;  %v2322_v21 = vld [vmem:[%s2887_s11 + $0x2d8] sm:$0xf0]  ;;  %v2221_v24 = vor.u32 %v2478_v16, %v2218_v17  ;;  %v2518_v27 = vld [vmem:[%s2887_s11 + $0x344] sm:$0xf] }
  0xd5   : > { %1645 = vmatpush.bf16.msra.mxu2 %v2181_v61  ;;  %v2109_v61 = vor.u32 %v2450_v49, %v2106_v50  ;;  %v2504_v20 = vld [vmem:[%s2887_s11 + $0x2d4] sm:$0xf]  ;;  %v1757_v30 = vld [vmem:[%s3377_s4] sm:$0xff]  ;;  %v2378_v31 = vld [vmem:[%s2887_s11 + $0x348] sm:$0xf0] }
  0xd6   : > { %1662 = vmatpush.bf16.msra.mxu3 %v2261_v6  ;;  %v2506_v6 = vld [vmem:[%s2887_s11 + $0x2e4] sm:$0xf]  ;;  %1773 = vperm.xlu1 %2565, %v1759_v28   ;;  %v2325_v26 = vor.u32 %v2504_v20, %v2322_v21  ;;  %v2314_v35 = vld [vmem:[%s2887_s11 + $0x2c8] sm:$0xf0]  ;;  %v2381_v39 = vor.u32 %v2518_v27, %v2378_v31  ;;  %v2500_v44 = vld [vmem:[%s2887_s11 + $0x2b4] sm:$0xf] }
  0xd7   : > { %1606 = vmatpush.bf16.msra.mxu0 %v2061_v14  ;;  %v2090_v14 = vld [vmem:[%s2887_s11 + $0x108] sm:$0xf0]  ;;  %v2502_v32 = vld [vmem:[%s2887_s11 + $0x2c4] sm:$0xf]  ;;  %v2306_v45 = vld [vmem:[%s2887_s11 + $0x2b8] sm:$0xf0] }
  0xd8   : > { %1625 = vmatpush.bf16.msra.mxu1 %v2125_v15  ;;  %v2333_v15 = vor.u32 %v2506_v6, %v2330_v7  ;;  %v2093_v23 = vor.u32 %v2446_v13, %v2090_v14  ;;  %v2317_v40 = vor.u32 %v2502_v32, %v2314_v35  ;;  %v2309_v49 = vor.u32 %v2500_v44, %v2306_v45  ;;  %v2514_v50 = vld [vmem:[%s2887_s11 + $0x324] sm:$0xf]  ;;  %v1760_v51 = vld [vmem:[%s3377_s4 + $0x18] sm:$0xff]  ;;  %v2496_v56 = vld [vmem:[%s2887_s11 + $0x294] sm:$0xf] }
  0xd9   : > { %1646 = vmatpush.bf16.msra.mxu2 %v2173_v9  ;;  %v2037_v9 = vor.u32 %v2432_v62, %v2034_v63  ;;  %v2290_v57 = vld [vmem:[%s2887_s11 + $0x298] sm:$0xf0]  ;;  %v2512_v58 = vld [vmem:[%s2887_s11 + $0x314] sm:$0xf]  ;;  %v2494_v63 = vld [vmem:[%s2887_s11 + $0x284] sm:$0xf] }
  0xda   : > { %1663 = vmatpush.bf16.msra.mxu3 %v2253_v19  ;;  %1540 = vmatmul.bf16.gmra.mxu0 %v3207_v54  ;;  %v2386_v19 = vld [vmem:[%s2887_s11 + $0x358] sm:$0xf0]  ;;  %v2510_v1 = vld [vmem:[%s2887_s11 + $0x304] sm:$0xf]  ;;  %v2346_v2 = vld [vmem:[%s2887_s11 + $0x308] sm:$0xf0] }
  0xdb   : > { %1607 = vmatpush.bf16.msra.mxu0 %v2053_v42  ;;  %1559 = vmatmul.bf16.gmra.mxu1 %v3209_v55  ;;  %v2516_v42 = vld [vmem:[%s2887_s11 + $0x334] sm:$0xf] }
  0xdc   : > { %1626 = vmatpush.bf16.msra.mxu1 %v2117_v43  ;;  %2391 = vmatmul.msk.bf16.gmra.mxu2 %vm1444_vm0, %v3214_v59  ;;  %v2370_v43 = vld [vmem:[%s2887_s11 + $0x338] sm:$0xf0] }
  0xdd   : > { %1647 = vmatpush.bf16.msra.mxu2 %v2165_v25  ;;  %1597 = vmatmul.bf16.gmra.mxu3 %v3061_v29  ;;  %v2229_v29 = vor.u32 %v2480_v3, %v2226_v5  ;;  %v2389_v25 = vor.u32 %v2520_v18, %v2386_v19 }
  0xde   : > { %1664 = vmatpush.bf16.msra.mxu3 %v2245_v46  ;;  %1763 = vperm.xlu2 %2566, %v1757_v30   ;;  %v2373_v46 = vor.u32 %v2516_v42, %v2370_v43 }
  0xdf   : > { %1608 = vmatpush.bf16.msra.mxu0 %v2045_v60  ;;  %v2354_v60 = vld [vmem:[%s2887_s11 + $0x318] sm:$0xf0] }
  0xe0   : > { %1627 = vmatpush.bf16.msra.mxu1 %v2109_v61  ;;  %v2293_v61 = vor.u32 %v2496_v56, %v2290_v57  ;;  %v2357_v62 = vor.u32 %v2512_v58, %v2354_v60 }
  0xe1   : > { %1648 = vmatpush.bf16.msra.mxu2 %v2157_v53 }
  0xe2   : > { %1665 = vmatpush.bf16.msra.mxu3 %v2237_v0  ;;  %v2282_v0 = vld [vmem:[%s2887_s11 + $0x288] sm:$0xf0] }
  0xe3   : > { %1609 = vmatpush.bf16.msra.mxu0 %v2037_v9  ;;  %v2285_v3 = vor.u32 %v2494_v63, %v2282_v0 }
  0xe4   : > { %1628 = vmatpush.bf16.msra.mxu1 %v2101_v10 }
  0xe5   : > { %2523 = vmatpush.bf16.msrb.mxu2 %v2341_v4 }
  0xe6   : > { %1666 = vmatpush.bf16.msra.mxu3 %v2229_v29  ;;  %1778 = vperm.xlu2 %2566, %v1760_v51  }
  0xe7   : > { %1610 = vmatpush.bf16.msra.mxu0 %v2029_v22 }
  0xe8   : > { %1629 = vmatpush.bf16.msra.mxu1 %v2093_v23 }
  0xe9   : > { %2524 = vmatpush.bf16.msrb.mxu2 %v2333_v15 }
  0xea   : > { %1667 = vmatpush.bf16.msra.mxu3 %v2221_v24  ;;  %1611 = vmatmul.bf16.vlgmr.msra.gmra.mxu0 %v2989_v33  ;;  %v2362_v33 = vld [vmem:[%s2887_s11 + $0x328] sm:$0xf0] }
  0xeb   : > { %1679 = vmatpush.bf16.msrb.mxu0 %v2341_v4  ;;  %1630 = vmatmul.bf16.vlgmr.msra.gmra.mxu1 %v2991_v34  ;;  %v2498_v34 = vld [vmem:[%s2887_s11 + $0x2a4] sm:$0xf]  ;;  %v2349_v4 = vor.u32 %v2510_v1, %v2346_v2 }
  0xec   : > { %1700 = vmatpush.bf16.msrb.mxu1 %v2389_v25  ;;  %1649 = vmatmul.bf16.vlgmr.msra.gmra.mxu2 %v2995_v37  ;;  %v2298_v37 = vld [vmem:[%s2887_s11 + $0x2a8] sm:$0xf0]  ;;  %s1901_s11 = sshll.u32 %s657_s9, 6 }
  0xed   : > { %2525 = vmatpush.bf16.msrb.mxu2 %v2325_v26  ;;  %1668 = vmatmul.bf16.vlgmr.msra.gmra.mxu3 %v3134_v47  ;;  %v2365_v47 = vor.u32 %v2514_v50, %v2362_v33  ;;  %v2301_v53 = vor.u32 %v2498_v34, %v2298_v37  ;;  %s3311_s12 = scalar_lea.vmem [#allocation3], %s1901_s11 }
  0xee   : > { %2531 = vmatpush.bf16.msrb.mxu3 %v2389_v25 }
  0xef   : > { %1680 = vmatpush.bf16.msrb.mxu0 %v2333_v15 }
  0xf0   : > { %1701 = vmatpush.bf16.msrb.mxu1 %v2381_v39 }
  0xf1   : > { %2526 = vmatpush.bf16.msrb.mxu2 %v2317_v40 }
  0xf2   : > { %2532 = vmatpush.bf16.msrb.mxu3 %v2381_v39 }
  0xf3   : > { %1681 = vmatpush.bf16.msrb.mxu0 %v2325_v26 }
  0xf4   : > { %1702 = vmatpush.bf16.msrb.mxu1 %v2373_v46 }
  0xf5   : > { %2527 = vmatpush.bf16.msrb.mxu2 %v2309_v49 }
  0xf6   : > { %2533 = vmatpush.bf16.msrb.mxu3 %v2373_v46 }
  0xf7   : > { %1682 = vmatpush.bf16.msrb.mxu0 %v2317_v40 }
  0xf8   : > { %1703 = vmatpush.bf16.msrb.mxu1 %v2365_v47 }
  0xf9   : > { %2528 = vmatpush.bf16.msrb.mxu2 %v2301_v53 }
  0xfa   : > { %2534 = vmatpush.bf16.msrb.mxu3 %v2365_v47  ;;  %1616 = vmatmul.bf16.gmra.mxu0 %v3066_v36 }
  0xfb   : > { %1683 = vmatpush.bf16.msrb.mxu0 %v2309_v49  ;;  %1635 = vmatmul.bf16.gmra.mxu1 %v3068_v38 }
  0xfc   : > { %1704 = vmatpush.bf16.msrb.mxu1 %v2357_v62  ;;  %1654 = vmatmul.bf16.gmra.mxu2 %v3072_v41 }
  0xfd   : > { %2529 = vmatpush.bf16.msrb.mxu2 %v2293_v61  ;;  %1673 = vmatmul.bf16.gmra.mxu3 %v3207_v54 }
  0xfe   : > { %2535 = vmatpush.bf16.msrb.mxu3 %v2357_v62 }
  0xff   : > { %1684 = vmatpush.bf16.msrb.mxu0 %v2301_v53 }
 0x100   : > { %1705 = vmatpush.bf16.msrb.mxu1 %v2349_v4 }
 0x101   : > { %2530 = vmatpush.bf16.msrb.mxu2 %v2285_v3 }
 0x102   : > { %2536 = vmatpush.bf16.msrb.mxu3 %v2349_v4 }
 0x103   : > { %1685 = vmatpush.bf16.msrb.mxu0 %v2293_v61 }
 0x107   : > { %1686 = vmatpush.bf16.msrb.mxu0 %v2285_v3 }
 0x10a   : > { %1687 = vmatmul.bf16.vlgmr.msrb.gmra.mxu0 %v3136_v48 }
 0x10b   : > { %2392 = vmatmul.msk.bf16.vlgmr.msrb.gmra.mxu1 %vm1444_vm0, %v3141_v52 }
 0x10c   : > { %1692 = vmatmul.bf16.vlgmr.msrb.gmra.mxu2 %v3209_v55 }
 0x10d   : > { %2393 = vmatmul.msk.bf16.vlgmr.msrb.gmra.mxu3 %vm1444_vm0, %v3214_v59 }
 0x11a   : > { %v3285_v10 = vpop.permute.xlu0 %816 }
 0x122   : > { %v3288_v11 = vpop.permute.xlu2 %1731  ;;  %v3293_v17 = vpop.permute.xlu1 %826 }
 0x123   : > { %v3290_v13 = vpop.permute.xlu0 %821 }
 0x127   : > { %v1460_v36 = vpop.f32.mrf.mxu0 }
 0x128   : > { %v1479_v38 = vpop.f32.mrf.mxu1  ;;  %v1461_v48 = vadd.f32 %v1460_v36, %v3285_v10 }
 0x12a   : > { %v1480_v59 = vadd.f32 %v1479_v38, %v1461_v48  ;;  %v3300_v43 = vpop.permute.xlu1 %831 }
 0x12c   : > { %v3295_v22 = vpop.permute.xlu2 %1736 }
 0x12f   : > { %v1498_v41 = vpop.f32.mrf.mxu2  ;;  %v1462_v54 = vpop.f32.mrf.mxu0 }
 0x130   : > { %v1517_v5 = vpop.f32.mrf.mxu3  ;;  %v1481_v6 = vpop.f32.mrf.mxu1  ;;  %v1499_v14 = vadd.f32 %v1498_v41, %v1480_v59  ;;  %v1463_v15 = vadd.f32 %v1462_v54, %v3290_v13 }
 0x132   : > { %v1518_v19 = vadd.f32 %v1517_v5, %v1499_v14  ;;  %v1482_v23 = vadd.f32 %v1481_v6, %v1463_v15 }
 0x137   : > { %v1500_v7 = vpop.f32.mrf.mxu2  ;;  %v1465_v28 = vpop.f32.mrf.mxu0 }
 0x138   : > { %v1519_v8 = vpop.f32.mrf.mxu3  ;;  %v1484_v9 = vpop.f32.mrf.mxu1  ;;  %v1501_v25 = vadd.f32 %v1500_v7, %v1482_v23  ;;  %v1466_v26 = vadd.f32 %v1465_v28, %v3293_v17 }
 0x139   : > { %v3302_v44 = vpop.permute.xlu0 %1741  ;;  %v3306_v49 = vpop.permute.xlu2 %1763 }
 0x13a   : > { %v1520_v32 = vadd.f32 %v1519_v8, %v1501_v25  ;;  %v1485_v35 = vadd.f32 %v1484_v9, %v1466_v26 }
 0x13f   : > { %v1503_v52 = vpop.f32.mrf.mxu2  ;;  %v1467_v29 = vpop.f32.mrf.mxu0 }
 0x140   : > { %v1522_v55 = vpop.f32.mrf.mxu3  ;;  %v1486_v12 = vpop.f32.mrf.mxu1  ;;  %v1504_v50 = vadd.f32 %v1503_v52, %v1485_v35  ;;  %v1468_v33 = vadd.f32 %v1467_v29, %v3300_v43 }
 0x141   : > { %v3314_v61 = vpop.permute.xlu1 %1746  ;;  %v3316_v1 = vpop.permute.xlu0 %1768 }
 0x142   : > { %v1523_v56 = vadd.f32 %v1522_v55, %v1504_v50  ;;  %v1487_v62 = vadd.f32 %v1486_v12, %v1468_v33 }
 0x147   : > { %v1505_v16 = vpop.f32.mrf.mxu2  ;;  %v1536_v20 = vpop.f32.mrf.mxu0 }
 0x148   : > { %v1524_v18 = vpop.f32.mrf.mxu3  ;;  %v1555_v21 = vpop.f32.mrf.mxu1  ;;  %v1537_v24 = vadd.f32 %v1536_v20, %v1518_v19  ;;  %v1506_v2 = vadd.f32 %v1505_v16, %v1487_v62 }
 0x149   : > { %v3321_v9 = vpop.permute.xlu1 %1773 }
 0x14a   : > { %v1556_v27 = vadd.f32 %v1555_v21, %v1537_v24  ;;  %v1525_v5 = vadd.f32 %v1524_v18, %v1506_v2  ;;  %v3326_v18 = vpop.permute.xlu2 %1778 }
 0x14f   : > { %v1574_v30 = vpop.f32.mrf.mxu2  ;;  %v1538_v40 = vpop.f32.mrf.mxu0 }
 0x150   : > { %v3298_v31 = vpop.f32.mrf.mxu3  ;;  %v1575_v39 = vadd.f32 %v1574_v30, %v1556_v27  ;;  %v1557_v42 = vpop.f32.mrf.mxu1  ;;  %v1539_v46 = vadd.f32 %v1538_v40, %v1520_v32 }
 0x151   : > { %v1594_v35 = vadd.f32 %v3298_v31, %v3285_v10 }
 0x152   : > { %v1717_v45 = vmax.f32 %v1575_v39, 0.0  ;;  %v1558_v34 = vadd.f32 %v1557_v42, %v1539_v46 }
 0x154   : > { %v1749_v51 = vmul.f32 %v3288_v11, %v1717_v45 }
 0x156   : > { %v1781_v37 = vadd.f32 %v3306_v49, %v1749_v51 }
 0x157   : > { %v1576_v47 = vpop.f32.mrf.mxu2  ;;  %v1541_v58 = vpop.f32.mrf.mxu0 }
 0x158   : > { %v1595_v53 = vpop.f32.mrf.mxu3  ;;  %1789 = vst [vmem:[%s3311_s12] sm:$0xff] %v1781_v37  ;;  %v1577_v57 = vadd.f32 %v1576_v47, %v1558_v34  ;;  %v1560_v60 = vpop.f32.mrf.mxu1  ;;  %v1542_v0 = vadd.f32 %v1541_v58, %v1523_v56 }
 0x159   : > { %v1596_v33 = vadd.f32 %v1595_v53, %v3290_v13 }
 0x15a   : > { %v1719_v63 = vmax.f32 %v1577_v57, 0.0  ;;  %v1561_v4 = vadd.f32 %v1560_v60, %v1542_v0 }
 0x15c   : > { %v1751_v3 = vmul.f32 %v3295_v22, %v1719_v63 }
 0x15e   : > { %v1783_v36 = vadd.f32 %v3316_v1, %v1751_v3 }
 0x15f   : > { %v1579_v38 = vpop.f32.mrf.mxu2  ;;  %v1543_v6 = vpop.f32.mrf.mxu0 }
 0x160   : > { %v1598_v41 = vpop.f32.mrf.mxu3  ;;  %1791 = vst [vmem:[%s3311_s12 + $0x10] sm:$0xff] %v1783_v36  ;;  %v1580_v54 = vadd.f32 %v1579_v38, %v1561_v4  ;;  %v1562_v7 = vpop.f32.mrf.mxu1  ;;  %v1544_v28 = vadd.f32 %v1543_v6, %v1525_v5 }
 0x161   : > { %v1599_v51 = vadd.f32 %v1598_v41, %v3293_v17 }
 0x162   : > { %v1721_v8 = vmax.f32 %v1580_v54, 0.0  ;;  %v1563_v52 = vadd.f32 %v1562_v7, %v1544_v28 }
 0x164   : > { %v1753_v48 = vmul.f32 %v3302_v44, %v1721_v8 }
 0x166   : > { %v1785_v55 = vadd.f32 %v3321_v9, %v1753_v48 }
 0x167   : > { %v1581_v29 = vpop.f32.mrf.mxu2  ;;  %v1612_v14 = vpop.f32.mrf.mxu0 }
 0x168   : > { %v1600_v59 = vpop.f32.mrf.mxu3  ;;  %1793 = vst [vmem:[%s3311_s12 + $0x20] sm:$0xff] %v1785_v55  ;;  %v1582_v12 = vadd.f32 %v1581_v29, %v1563_v52  ;;  %v1631_v15 = vpop.f32.mrf.mxu1  ;;  %v1613_v39 = vadd.f32 %v1612_v14, %v1594_v35 }
 0x169   : > { %v1601_v0 = vadd.f32 %v1600_v59, %v3300_v43 }
 0x16a   : > { %v1723_v16 = vmax.f32 %v1582_v12, 0.0  ;;  %v1632_v50 = vadd.f32 %v1631_v15, %v1613_v39 }
 0x16c   : > { %v1755_v19 = vmul.f32 %v3314_v61, %v1723_v16 }
 0x16e   : > { %v1787_v20 = vadd.f32 %v3326_v18, %v1755_v19 }
 0x16f   : > { %v1650_v21 = vpop.f32.mrf.mxu2  ;;  %v1614_v24 = vpop.f32.mrf.mxu0 }
 0x170   : > { %v1669_v23 = vpop.f32.mrf.mxu3  ;;  %1795 = vst [vmem:[%s3311_s12 + $0x30] sm:$0xff] %v1787_v20  ;;  %v1633_v25 = vpop.f32.mrf.mxu1  ;;  %v1651_v34 = vadd.f32 %v1650_v21, %v1632_v50  ;;  %v1615_v47 = vadd.f32 %v1614_v24, %v1596_v33 }
 0x172   : > { %v1670_v56 = vadd.f32 %v1669_v23, %v1651_v34  ;;  %v1634_v10 = vadd.f32 %v1633_v25, %v1615_v47 }
 0x177   : > { %v1652_v26 = vpop.f32.mrf.mxu2  ;;  %v1617_v30 = vpop.f32.mrf.mxu0 }
 0x178   : > { %v1671_v27 = vpop.f32.mrf.mxu3  ;;  %v1636_v32 = vpop.f32.mrf.mxu1  ;;  %v1618_v37 = vadd.f32 %v1617_v30, %v1599_v51  ;;  %v1653_v3 = vadd.f32 %v1652_v26, %v1634_v10  ;;  %v1831_v26 = vld [vmem:[%s3311_s12 + $0x30] sm:$0xff] (%p2652_p5) }
 0x179   : > { %1832 = vst [vmem:[%s1806_s14 + $0x60] sm:$0xff] (%p2652_p5), %v1831_v26 }
 0x17a   : > { %v1637_v60 = vadd.f32 %v1636_v32, %v1618_v37  ;;  %v1672_v53 = vadd.f32 %v1671_v27, %v1653_v3 }
 0x17f   : > { %v1655_v40 = vpop.f32.mrf.mxu2  ;;  %v1619_v45 = vpop.f32.mrf.mxu0 }
 0x180   : > { %v1674_v42 = vpop.f32.mrf.mxu3  ;;  %v1638_v46 = vpop.f32.mrf.mxu1  ;;  %v1656_v2 = vadd.f32 %v1655_v40, %v1637_v60  ;;  %v1620_v17 = vadd.f32 %v1619_v45, %v1601_v0 }
 0x182   : > { %v1675_v13 = vadd.f32 %v1674_v42, %v1656_v2  ;;  %v1639_v54 = vadd.f32 %v1638_v46, %v1620_v17 }
 0x187   : > { %v1657_v57 = vpop.f32.mrf.mxu2  ;;  %v1688_v62 = vpop.f32.mrf.mxu0 }
 0x188   : > { %v1676_v58 = vpop.f32.mrf.mxu3  ;;  %v1707_v63 = vpop.f32.mrf.mxu1  ;;  %v1689_v31 = vadd.f32 %v1688_v62, %v1670_v56  ;;  %v1658_v43 = vadd.f32 %v1657_v57, %v1639_v54 }
 0x18a   : > { %v1708_v4 = vadd.f32 %v1707_v63, %v1689_v31  ;;  %v1677_v12 = vadd.f32 %v1676_v58, %v1658_v43 }
 0x18c   : > { %v1718_v36 = vmax.f32 %v1708_v4, 0.0 }
 0x18e   : > { %v1750_v38 = vmul.f32 %v3288_v11, %v1718_v36 }
 0x18f   : > { %v1693_v41 = vpop.f32.mrf.mxu2  ;;  %v1690_v7 = vpop.f32.mrf.mxu0 }
 0x190   : > { %v1712_v5 = vpop.f32.mrf.mxu3  ;;  %v1694_v6 = vadd.f32 %v1693_v41, %v1675_v13  ;;  %v1782_v8 = vadd.f32 %v3306_v49, %v1750_v38  ;;  %v1691_v28 = vadd.f32 %v1690_v7, %v1672_v53  ;;  %v1709_v52 = vpop.f32.mrf.mxu1 }
 0x192   : > { %v1713_v48 = vadd.f32 %v1712_v5, %v1694_v6  ;;  %1790 = vst [vmem:[%s3311_s12 + $0x8] sm:$0xff] %v1782_v8  ;;  %v1710_v55 = vadd.f32 %v1709_v52, %v1691_v28 }
 0x194   : > { %v1722_v29 = vmax.f32 %v1713_v48, 0.0  ;;  %v1720_v59 = vmax.f32 %v1710_v55, 0.0 }
 0x196   : > { %v1754_v11 = vmul.f32 %v3302_v44, %v1722_v29  ;;  %v1752_v14 = vmul.f32 %v3295_v22, %v1720_v59  ;;  %v1819_v22 = vld [vmem:[%s3311_s12] sm:$0xff] (%p2652_p5) }
 0x197   : > { %v1695_v15 = vpop.f32.mrf.mxu2  ;;  %1820 = vst [vmem:[%s1806_s14] sm:$0xff] (%p2652_p5), %v1819_v22 }
 0x198   : > { %v1786_v16 = vadd.f32 %v3321_v9, %v1754_v11  ;;  %v1696_v49 = vadd.f32 %v1695_v15, %v1677_v12  ;;  %v1784_v19 = vadd.f32 %v3316_v1, %v1752_v14  ;;  %v1714_v20 = vpop.f32.mrf.mxu3  ;;  %v1827_v9 = vld [vmem:[%s3311_s12 + $0x20] sm:$0xff] (%p2652_p5) }
 0x199   : > { %v1821_v44 = vld [vmem:[%s3311_s12 + $0x8] sm:$0xff] (%p2652_p5)  ;;  %1828 = vst [vmem:[%s1806_s14 + $0x40] sm:$0xff] (%p2652_p5), %v1827_v9 }
 0x19a   : > { %1794 = vst [vmem:[%s3311_s12 + $0x28] sm:$0xff] %v1786_v16  ;;  %v1715_v21 = vadd.f32 %v1714_v20, %v1696_v49 }
 0x19b   : > { %1792 = vst [vmem:[%s3311_s12 + $0x18] sm:$0xff] %v1784_v19 }
 0x19c   : > { %v1724_v23 = vmax.f32 %v1715_v21, 0.0  ;;  %1822 = vst [vmem:[%s1806_s14 + $0x8] sm:$0xff] (%p2652_p5), %v1821_v44 }
 0x19e   : > { %v1756_v24 = vmul.f32 %v3314_v61, %v1724_v23  ;;  %1803 = sbr.rel (!%p2652_p5) target bundleno = 427 (0x1ab), region = 82  ;;  %v1823_v61 = vld [vmem:[%s3311_s12 + $0x10] sm:$0xff] (%p2652_p5) }
 0x19f   : > { %1824 = vst [vmem:[%s1806_s14 + $0x20] sm:$0xff] (%p2652_p5), %v1823_v61 }
 0x1a0   : > { %v1788_v25 = vadd.f32 %v3326_v18, %v1756_v24 }
 0x1a1   : > { %v1829_v18 = vld [vmem:[%s3311_s12 + $0x28] sm:$0xff] (%p2652_p5) }
 0x1a2   : > { %1796 = vst [vmem:[%s3311_s12 + $0x38] sm:$0xff] %v1788_v25  ;;  %v1825_v1 = vld [vmem:[%s3311_s12 + $0x18] sm:$0xff] (%p2652_p5) }
 0x1a3   : > { %1826 = vst [vmem:[%s1806_s14 + $0x28] sm:$0xff] %v1825_v1 }
 0x1a4   : > { %1830 = vst [vmem:[%s1806_s14 + $0x48] sm:$0xff] %v1829_v18 }
 0x1a9   : > { %v1833_v27 = vld [vmem:[%s3311_s12 + $0x38] sm:$0xff] }
 0x1aa   : > { %1834 = vst [vmem:[%s1806_s14 + $0x68] sm:$0xff] %v1833_v27 }
 0x1ab PF: > { %p12_p10 = scmp.ge.s32.totalorder %s2639_s22, 4   ;;  %s3380_s18 = smov %s2585_s19 }
 0x1ac   : > { %s3381_s19 = smov %s2650_s25  ;;  %s3382_s20 = smov %s2639_s22 }
 0x1ad   :  { %14 = sbr.rel (!%p12_p10) target bundleno = 2 (0x2), region = 136 }

// kernel: forward.8
= control target key start
LH: loop header
LB: loop body
LE: loop exit
PB: predicated region body
PF: predicated region fallthrough
CT: control target
= control target key end

     0   :  { %s4100_s18 = smov 0   ;;  %s4102_s19 = smov 0   ;;  %s5406_s0 = inlined_call_operand.vmem [shape: bf16[32,864], index: 0, kind: input, shape index: {}]   ;;  %s5407_s1 = inlined_call_operand.vmem [shape: bf16[864,1024], index: 1, kind: input, shape index: {}]   ;;  %s5408_s2 = inlined_call_operand.vmem [shape: f32[32,1], index: 2, kind: input, shape index: {}]   ;;  %s5409_s3 = inlined_call_operand.vmem [shape: f32[32,1], index: 3, kind: input, shape index: {}]   ;;  %s5410_s4 = inlined_call_operand.vmem [shape: f32[32,1], index: 4, kind: input, shape index: {}]   ;;  %s5411_s5 = inlined_call_operand.vmem [shape: f32[32,1024], index: 5, kind: output, shape index: {}]  }
   0x1   :  { %s4104_s20 = smov 0  }
   0x2 LB: > { %s2842_s21 = sadd.s32 4294967295, %s4067_s20   ;;  %s4117_s22 = sadd.s32 1, %s4067_s20   ;;  %s4067_s20 = sphi %s4104_s20, %s5415_s20   ;;  %s4063_s19 = sphi %s4102_s19, %s5414_s19   ;;  %s4059_s18 = sphi %s4100_s18, %s5413_s18  }
   0x3   : > { %s40_s23 = ssub.s32 %s4067_s20, %s4117_s22  ;;  %s43_s24 = sadd.s32 1, %s4063_s19 }
   0x4   : > { %p41_p0 = scmp.eq.s32.totalorder %s40_s23, 0  ;;  %p50_p1 = scmp.ne.s32.totalorder %s4063_s19, %s4059_s18 }
   0x5   : > { %p51_p2 = scmp.eq.s32.totalorder %s4067_s20, 0  ;;  %p143_p3 = scmp.eq.s32.totalorder %s2842_s21, 1 }
   0x6   : > { %s4128_s25 = scalar_select %p41_p0, %s4063_s19, %s43_s24  }
   0x7   : > { %p52_p4 = por %p51_p2, %p50_p1  ;;  %p4130_p5 = por %p143_p3, %p50_p1 }
   0x8   : > { %p2845_p6 = scmp.ge.s32.totalorder %s4067_s20, 2 }
   0xa   : > { %177 = sbr.rel (%p2845_p6) target bundleno = 235 (0xeb), region = 32 }
   0xf   : > { %180 = sbr.rel (!%p52_p4) target bundleno = 235 (0xeb), region = 36  ;;  %s182_s27 = sand.u32 (%p52_p4), 1, %s4063_s19  }
  0x10   : > { %s3783_s28 = sshll.u32 (%p52_p4), %s4067_s20, 4  ;;  %s4015_s29 = smul.u32 (%p52_p4), 1728, %s182_s27 }
  0x11   : > { %s4140_s7 = scalar_lea.vmem (%p52_p4), %s5407_s1, %s3783_s28 }
  0x12   : > { %v200_v0 = vld [vmem:[%s4140_s7] sm:$0xff] (%p52_p4)  ;;  %v202_v1 = vld [vmem:[%s4140_s7 + $0x8] sm:$0xff] (%p52_p4)  ;;  %s4145_s8 = scalar_lea.vmem (%p52_p4), [#allocation2], %s4015_s29 }
  0x13   : > { %v204_v2 = vld [vmem:[%s4140_s7 + $0x20] sm:$0xff] (%p52_p4)  ;;  %201 = vst [vmem:[%s4145_s8] sm:$0xff] (%p52_p4), %v200_v0  ;;  %v206_v3 = vld [vmem:[%s4140_s7 + $0x28] sm:$0xff] (%p52_p4) }
  0x14   : > { %203 = vst [vmem:[%s4145_s8 + $0x8] sm:$0xff] %v202_v1  ;;  %v208_v4 = vld [vmem:[%s4140_s7 + $0x40] sm:$0xff]  ;;  %v210_v5 = vld [vmem:[%s4140_s7 + $0x48] sm:$0xff] }
  0x15   : > { %205 = vst [vmem:[%s4145_s8 + $0x10] sm:$0xff] %v204_v2  ;;  %v212_v6 = vld [vmem:[%s4140_s7 + $0x60] sm:$0xff]  ;;  %v214_v7 = vld [vmem:[%s4140_s7 + $0x68] sm:$0xff] }
  0x16   : > { %207 = vst [vmem:[%s4145_s8 + $0x18] sm:$0xff] %v206_v3  ;;  %v216_v8 = vld [vmem:[%s4140_s7 + $0x80] sm:$0xff]  ;;  %v218_v9 = vld [vmem:[%s4140_s7 + $0x88] sm:$0xff] }
  0x17   : > { %209 = vst [vmem:[%s4145_s8 + $0x20] sm:$0xff] %v208_v4  ;;  %v220_v10 = vld [vmem:[%s4140_s7 + $0xa0] sm:$0xff]  ;;  %v222_v11 = vld [vmem:[%s4140_s7 + $0xa8] sm:$0xff] }
  0x18   : > { %211 = vst [vmem:[%s4145_s8 + $0x28] sm:$0xff] %v210_v5  ;;  %v224_v12 = vld [vmem:[%s4140_s7 + $0xc0] sm:$0xff]  ;;  %v226_v13 = vld [vmem:[%s4140_s7 + $0xc8] sm:$0xff] }
  0x19   : > { %213 = vst [vmem:[%s4145_s8 + $0x30] sm:$0xff] %v212_v6  ;;  %v228_v14 = vld [vmem:[%s4140_s7 + $0xe0] sm:$0xff]  ;;  %v230_v15 = vld [vmem:[%s4140_s7 + $0xe8] sm:$0xff] }
  0x1a   : > { %215 = vst [vmem:[%s4145_s8 + $0x38] sm:$0xff] %v214_v7  ;;  %v232_v16 = vld [vmem:[%s4140_s7 + $0x100] sm:$0xff]  ;;  %v234_v17 = vld [vmem:[%s4140_s7 + $0x108] sm:$0xff] }
  0x1b   : > { %217 = vst [vmem:[%s4145_s8 + $0x40] sm:$0xff] %v216_v8  ;;  %v236_v18 = vld [vmem:[%s4140_s7 + $0x120] sm:$0xff]  ;;  %v238_v19 = vld [vmem:[%s4140_s7 + $0x128] sm:$0xff] }
  0x1c   : > { %219 = vst [vmem:[%s4145_s8 + $0x48] sm:$0xff] %v218_v9  ;;  %v240_v20 = vld [vmem:[%s4140_s7 + $0x140] sm:$0xff]  ;;  %v242_v21 = vld [vmem:[%s4140_s7 + $0x148] sm:$0xff] }
  0x1d   : > { %221 = vst [vmem:[%s4145_s8 + $0x50] sm:$0xff] %v220_v10  ;;  %v244_v22 = vld [vmem:[%s4140_s7 + $0x160] sm:$0xff]  ;;  %v246_v23 = vld [vmem:[%s4140_s7 + $0x168] sm:$0xff] }
  0x1e   : > { %223 = vst [vmem:[%s4145_s8 + $0x58] sm:$0xff] %v222_v11  ;;  %v248_v24 = vld [vmem:[%s4140_s7 + $0x180] sm:$0xff]  ;;  %v250_v25 = vld [vmem:[%s4140_s7 + $0x188] sm:$0xff] }
  0x1f   : > { %225 = vst [vmem:[%s4145_s8 + $0x60] sm:$0xff] %v224_v12  ;;  %v252_v26 = vld [vmem:[%s4140_s7 + $0x1a0] sm:$0xff]  ;;  %v254_v27 = vld [vmem:[%s4140_s7 + $0x1a8] sm:$0xff] }
  0x20   : > { %227 = vst [vmem:[%s4145_s8 + $0x68] sm:$0xff] %v226_v13  ;;  %v256_v28 = vld [vmem:[%s4140_s7 + $0x1c0] sm:$0xff]  ;;  %v258_v29 = vld [vmem:[%s4140_s7 + $0x1c8] sm:$0xff] }
  0x21   : > { %229 = vst [vmem:[%s4145_s8 + $0x70] sm:$0xff] %v228_v14  ;;  %v260_v30 = vld [vmem:[%s4140_s7 + $0x1e0] sm:$0xff]  ;;  %v262_v31 = vld [vmem:[%s4140_s7 + $0x1e8] sm:$0xff] }
  0x22   : > { %231 = vst [vmem:[%s4145_s8 + $0x78] sm:$0xff] %v230_v15  ;;  %v264_v32 = vld [vmem:[%s4140_s7 + $0x200] sm:$0xff]  ;;  %v266_v33 = vld [vmem:[%s4140_s7 + $0x208] sm:$0xff] }
  0x23   : > { %233 = vst [vmem:[%s4145_s8 + $0x80] sm:$0xff] %v232_v16  ;;  %v268_v34 = vld [vmem:[%s4140_s7 + $0x220] sm:$0xff]  ;;  %v270_v35 = vld [vmem:[%s4140_s7 + $0x228] sm:$0xff] }
  0x24   : > { %235 = vst [vmem:[%s4145_s8 + $0x88] sm:$0xff] %v234_v17  ;;  %v272_v36 = vld [vmem:[%s4140_s7 + $0x240] sm:$0xff]  ;;  %v274_v37 = vld [vmem:[%s4140_s7 + $0x248] sm:$0xff] }
  0x25   : > { %237 = vst [vmem:[%s4145_s8 + $0x90] sm:$0xff] %v236_v18  ;;  %v276_v38 = vld [vmem:[%s4140_s7 + $0x260] sm:$0xff]  ;;  %v278_v39 = vld [vmem:[%s4140_s7 + $0x268] sm:$0xff] }
  0x26   : > { %239 = vst [vmem:[%s4145_s8 + $0x98] sm:$0xff] %v238_v19  ;;  %v280_v40 = vld [vmem:[%s4140_s7 + $0x280] sm:$0xff]  ;;  %v282_v41 = vld [vmem:[%s4140_s7 + $0x288] sm:$0xff] }
  0x27   : > { %241 = vst [vmem:[%s4145_s8 + $0xa0] sm:$0xff] %v240_v20  ;;  %v284_v42 = vld [vmem:[%s4140_s7 + $0x2a0] sm:$0xff]  ;;  %v286_v43 = vld [vmem:[%s4140_s7 + $0x2a8] sm:$0xff] }
  0x28   : > { %243 = vst [vmem:[%s4145_s8 + $0xa8] sm:$0xff] %v242_v21  ;;  %v288_v44 = vld [vmem:[%s4140_s7 + $0x2c0] sm:$0xff]  ;;  %v290_v45 = vld [vmem:[%s4140_s7 + $0x2c8] sm:$0xff] }
  0x29   : > { %245 = vst [vmem:[%s4145_s8 + $0xb0] sm:$0xff] %v244_v22  ;;  %v292_v46 = vld [vmem:[%s4140_s7 + $0x2e0] sm:$0xff]  ;;  %v294_v47 = vld [vmem:[%s4140_s7 + $0x2e8] sm:$0xff] }
  0x2a   : > { %247 = vst [vmem:[%s4145_s8 + $0xb8] sm:$0xff] %v246_v23  ;;  %v296_v48 = vld [vmem:[%s4140_s7 + $0x300] sm:$0xff]  ;;  %v298_v49 = vld [vmem:[%s4140_s7 + $0x308] sm:$0xff] }
  0x2b   : > { %249 = vst [vmem:[%s4145_s8 + $0xc0] sm:$0xff] %v248_v24  ;;  %v300_v50 = vld [vmem:[%s4140_s7 + $0x320] sm:$0xff]  ;;  %v302_v51 = vld [vmem:[%s4140_s7 + $0x328] sm:$0xff] }
  0x2c   : > { %251 = vst [vmem:[%s4145_s8 + $0xc8] sm:$0xff] %v250_v25  ;;  %v304_v52 = vld [vmem:[%s4140_s7 + $0x340] sm:$0xff]  ;;  %v306_v53 = vld [vmem:[%s4140_s7 + $0x348] sm:$0xff] }
  0x2d   : > { %253 = vst [vmem:[%s4145_s8 + $0xd0] sm:$0xff] %v252_v26  ;;  %v308_v54 = vld [vmem:[%s4140_s7 + $0x360] sm:$0xff]  ;;  %v310_v55 = vld [vmem:[%s4140_s7 + $0x368] sm:$0xff] }
  0x2e   : > { %255 = vst [vmem:[%s4145_s8 + $0xd8] sm:$0xff] %v254_v27  ;;  %v312_v56 = vld [vmem:[%s4140_s7 + $0x380] sm:$0xff]  ;;  %v314_v57 = vld [vmem:[%s4140_s7 + $0x388] sm:$0xff] }
  0x2f   : > { %257 = vst [vmem:[%s4145_s8 + $0xe0] sm:$0xff] %v256_v28  ;;  %v316_v58 = vld [vmem:[%s4140_s7 + $0x3a0] sm:$0xff]  ;;  %v318_v59 = vld [vmem:[%s4140_s7 + $0x3a8] sm:$0xff] }
  0x30   : > { %259 = vst [vmem:[%s4145_s8 + $0xe8] sm:$0xff] %v258_v29  ;;  %v320_v60 = vld [vmem:[%s4140_s7 + $0x3c0] sm:$0xff]  ;;  %v322_v61 = vld [vmem:[%s4140_s7 + $0x3c8] sm:$0xff] }
  0x31   : > { %261 = vst [vmem:[%s4145_s8 + $0xf0] sm:$0xff] %v260_v30  ;;  %v324_v62 = vld [vmem:[%s4140_s7 + $0x3e0] sm:$0xff]  ;;  %v326_v63 = vld [vmem:[%s4140_s7 + $0x3e8] sm:$0xff] }
  0x32   : > { %263 = vst [vmem:[%s4145_s8 + $0xf8] sm:$0xff] %v262_v31  ;;  %v328_v0 = vld [vmem:[%s4140_s7 + $0x400] sm:$0xff]  ;;  %v330_v1 = vld [vmem:[%s4140_s7 + $0x408] sm:$0xff] }
  0x33   : > { %265 = vst [vmem:[%s4145_s8 + $0x100] sm:$0xff] %v264_v32  ;;  %v332_v2 = vld [vmem:[%s4140_s7 + $0x420] sm:$0xff]  ;;  %v334_v3 = vld [vmem:[%s4140_s7 + $0x428] sm:$0xff] }
  0x34   : > { %267 = vst [vmem:[%s4145_s8 + $0x108] sm:$0xff] %v266_v33  ;;  %v336_v4 = vld [vmem:[%s4140_s7 + $0x440] sm:$0xff]  ;;  %v338_v5 = vld [vmem:[%s4140_s7 + $0x448] sm:$0xff] }
  0x35   : > { %269 = vst [vmem:[%s4145_s8 + $0x110] sm:$0xff] %v268_v34  ;;  %v340_v6 = vld [vmem:[%s4140_s7 + $0x460] sm:$0xff]  ;;  %v342_v7 = vld [vmem:[%s4140_s7 + $0x468] sm:$0xff] }
  0x36   : > { %271 = vst [vmem:[%s4145_s8 + $0x118] sm:$0xff] %v270_v35  ;;  %v344_v8 = vld [vmem:[%s4140_s7 + $0x480] sm:$0xff]  ;;  %v346_v9 = vld [vmem:[%s4140_s7 + $0x488] sm:$0xff] }
  0x37   : > { %273 = vst [vmem:[%s4145_s8 + $0x120] sm:$0xff] %v272_v36  ;;  %v348_v10 = vld [vmem:[%s4140_s7 + $0x4a0] sm:$0xff]  ;;  %v350_v11 = vld [vmem:[%s4140_s7 + $0x4a8] sm:$0xff] }
  0x38   : > { %275 = vst [vmem:[%s4145_s8 + $0x128] sm:$0xff] %v274_v37  ;;  %v352_v12 = vld [vmem:[%s4140_s7 + $0x4c0] sm:$0xff]  ;;  %v354_v13 = vld [vmem:[%s4140_s7 + $0x4c8] sm:$0xff] }
  0x39   : > { %277 = vst [vmem:[%s4145_s8 + $0x130] sm:$0xff] %v276_v38  ;;  %v356_v14 = vld [vmem:[%s4140_s7 + $0x4e0] sm:$0xff]  ;;  %v358_v15 = vld [vmem:[%s4140_s7 + $0x4e8] sm:$0xff] }
  0x3a   : > { %279 = vst [vmem:[%s4145_s8 + $0x138] sm:$0xff] %v278_v39  ;;  %v360_v16 = vld [vmem:[%s4140_s7 + $0x500] sm:$0xff]  ;;  %v362_v17 = vld [vmem:[%s4140_s7 + $0x508] sm:$0xff] }
  0x3b   : > { %281 = vst [vmem:[%s4145_s8 + $0x140] sm:$0xff] %v280_v40  ;;  %v364_v18 = vld [vmem:[%s4140_s7 + $0x520] sm:$0xff]  ;;  %v366_v19 = vld [vmem:[%s4140_s7 + $0x528] sm:$0xff] }
  0x3c   : > { %283 = vst [vmem:[%s4145_s8 + $0x148] sm:$0xff] %v282_v41  ;;  %v368_v20 = vld [vmem:[%s4140_s7 + $0x540] sm:$0xff]  ;;  %v370_v21 = vld [vmem:[%s4140_s7 + $0x548] sm:$0xff] }
  0x3d   : > { %285 = vst [vmem:[%s4145_s8 + $0x150] sm:$0xff] %v284_v42  ;;  %v372_v22 = vld [vmem:[%s4140_s7 + $0x560] sm:$0xff]  ;;  %v374_v23 = vld [vmem:[%s4140_s7 + $0x568] sm:$0xff] }
  0x3e   : > { %287 = vst [vmem:[%s4145_s8 + $0x158] sm:$0xff] %v286_v43  ;;  %v376_v24 = vld [vmem:[%s4140_s7 + $0x580] sm:$0xff]  ;;  %v378_v25 = vld [vmem:[%s4140_s7 + $0x588] sm:$0xff] }
  0x3f   : > { %289 = vst [vmem:[%s4145_s8 + $0x160] sm:$0xff] %v288_v44  ;;  %v380_v26 = vld [vmem:[%s4140_s7 + $0x5a0] sm:$0xff]  ;;  %v382_v27 = vld [vmem:[%s4140_s7 + $0x5a8] sm:$0xff] }
  0x40   : > { %291 = vst [vmem:[%s4145_s8 + $0x168] sm:$0xff] %v290_v45  ;;  %v384_v28 = vld [vmem:[%s4140_s7 + $0x5c0] sm:$0xff]  ;;  %v386_v29 = vld [vmem:[%s4140_s7 + $0x5c8] sm:$0xff] }
  0x41   : > { %293 = vst [vmem:[%s4145_s8 + $0x170] sm:$0xff] %v292_v46  ;;  %v388_v30 = vld [vmem:[%s4140_s7 + $0x5e0] sm:$0xff]  ;;  %v390_v31 = vld [vmem:[%s4140_s7 + $0x5e8] sm:$0xff] }
  0x42   : > { %295 = vst [vmem:[%s4145_s8 + $0x178] sm:$0xff] %v294_v47  ;;  %v392_v32 = vld [vmem:[%s4140_s7 + $0x600] sm:$0xff]  ;;  %v394_v33 = vld [vmem:[%s4140_s7 + $0x608] sm:$0xff] }
  0x43   : > { %297 = vst [vmem:[%s4145_s8 + $0x180] sm:$0xff] %v296_v48  ;;  %v396_v34 = vld [vmem:[%s4140_s7 + $0x620] sm:$0xff]  ;;  %v398_v35 = vld [vmem:[%s4140_s7 + $0x628] sm:$0xff] }
  0x44   : > { %299 = vst [vmem:[%s4145_s8 + $0x188] sm:$0xff] %v298_v49  ;;  %v400_v36 = vld [vmem:[%s4140_s7 + $0x640] sm:$0xff]  ;;  %v402_v37 = vld [vmem:[%s4140_s7 + $0x648] sm:$0xff] }
  0x45   : > { %301 = vst [vmem:[%s4145_s8 + $0x190] sm:$0xff] %v300_v50  ;;  %v404_v38 = vld [vmem:[%s4140_s7 + $0x660] sm:$0xff]  ;;  %v406_v39 = vld [vmem:[%s4140_s7 + $0x668] sm:$0xff] }
  0x46   : > { %303 = vst [vmem:[%s4145_s8 + $0x198] sm:$0xff] %v302_v51  ;;  %v408_v40 = vld [vmem:[%s4140_s7 + $0x680] sm:$0xff]  ;;  %v410_v41 = vld [vmem:[%s4140_s7 + $0x688] sm:$0xff] }
  0x47   : > { %305 = vst [vmem:[%s4145_s8 + $0x1a0] sm:$0xff] %v304_v52  ;;  %v412_v42 = vld [vmem:[%s4140_s7 + $0x6a0] sm:$0xff]  ;;  %v414_v43 = vld [vmem:[%s4140_s7 + $0x6a8] sm:$0xff] }
  0x48   : > { %307 = vst [vmem:[%s4145_s8 + $0x1a8] sm:$0xff] %v306_v53  ;;  %v416_v44 = vld [vmem:[%s4140_s7 + $0x6c0] sm:$0xff]  ;;  %v418_v45 = vld [vmem:[%s4140_s7 + $0x6c8] sm:$0xff] }
  0x49   : > { %309 = vst [vmem:[%s4145_s8 + $0x1b0] sm:$0xff] %v308_v54  ;;  %v420_v46 = vld [vmem:[%s4140_s7 + $0x6e0] sm:$0xff]  ;;  %v422_v47 = vld [vmem:[%s4140_s7 + $0x6e8] sm:$0xff] }
  0x4a   : > { %311 = vst [vmem:[%s4145_s8 + $0x1b8] sm:$0xff] %v310_v55  ;;  %v424_v48 = vld [vmem:[%s4140_s7 + $0x700] sm:$0xff]  ;;  %v426_v49 = vld [vmem:[%s4140_s7 + $0x708] sm:$0xff] }
  0x4b   : > { %313 = vst [vmem:[%s4145_s8 + $0x1c0] sm:$0xff] %v312_v56  ;;  %v428_v50 = vld [vmem:[%s4140_s7 + $0x720] sm:$0xff]  ;;  %v430_v51 = vld [vmem:[%s4140_s7 + $0x728] sm:$0xff] }
  0x4c   : > { %315 = vst [vmem:[%s4145_s8 + $0x1c8] sm:$0xff] %v314_v57  ;;  %v432_v52 = vld [vmem:[%s4140_s7 + $0x740] sm:$0xff]  ;;  %v434_v53 = vld [vmem:[%s4140_s7 + $0x748] sm:$0xff] }
  0x4d   : > { %317 = vst [vmem:[%s4145_s8 + $0x1d0] sm:$0xff] %v316_v58  ;;  %v436_v54 = vld [vmem:[%s4140_s7 + $0x760] sm:$0xff]  ;;  %v438_v55 = vld [vmem:[%s4140_s7 + $0x768] sm:$0xff] }
  0x4e   : > { %319 = vst [vmem:[%s4145_s8 + $0x1d8] sm:$0xff] %v318_v59  ;;  %v440_v56 = vld [vmem:[%s4140_s7 + $0x780] sm:$0xff]  ;;  %v442_v57 = vld [vmem:[%s4140_s7 + $0x788] sm:$0xff] }
  0x4f   : > { %321 = vst [vmem:[%s4145_s8 + $0x1e0] sm:$0xff] %v320_v60  ;;  %v444_v58 = vld [vmem:[%s4140_s7 + $0x7a0] sm:$0xff]  ;;  %v446_v59 = vld [vmem:[%s4140_s7 + $0x7a8] sm:$0xff] }
  0x50   : > { %323 = vst [vmem:[%s4145_s8 + $0x1e8] sm:$0xff] %v322_v61  ;;  %v448_v60 = vld [vmem:[%s4140_s7 + $0x7c0] sm:$0xff]  ;;  %v450_v61 = vld [vmem:[%s4140_s7 + $0x7c8] sm:$0xff] }
  0x51   : > { %325 = vst [vmem:[%s4145_s8 + $0x1f0] sm:$0xff] %v324_v62  ;;  %v452_v62 = vld [vmem:[%s4140_s7 + $0x7e0] sm:$0xff] }
  0x52   : > { %327 = vst [vmem:[%s4145_s8 + $0x1f8] sm:$0xff] %v326_v63  ;;  %v454_v63 = vld [vmem:[%s4140_s7 + $0x7e8] sm:$0xff] }
  0x53   : > { %329 = vst [vmem:[%s4145_s8 + $0x200] sm:$0xff] %v328_v0  ;;  %v456_v0 = vld [vmem:[%s4140_s7 + $0x800] sm:$0xff] }
  0x54   : > { %331 = vst [vmem:[%s4145_s8 + $0x208] sm:$0xff] %v330_v1  ;;  %v458_v1 = vld [vmem:[%s4140_s7 + $0x808] sm:$0xff] }
  0x55   : > { %333 = vst [vmem:[%s4145_s8 + $0x210] sm:$0xff] %v332_v2  ;;  %v460_v2 = vld [vmem:[%s4140_s7 + $0x820] sm:$0xff] }
  0x56   : > { %335 = vst [vmem:[%s4145_s8 + $0x218] sm:$0xff] %v334_v3  ;;  %v462_v3 = vld [vmem:[%s4140_s7 + $0x828] sm:$0xff] }
  0x57   : > { %337 = vst [vmem:[%s4145_s8 + $0x220] sm:$0xff] %v336_v4  ;;  %v464_v4 = vld [vmem:[%s4140_s7 + $0x840] sm:$0xff] }
  0x58   : > { %339 = vst [vmem:[%s4145_s8 + $0x228] sm:$0xff] %v338_v5  ;;  %v466_v5 = vld [vmem:[%s4140_s7 + $0x848] sm:$0xff] }
  0x59   : > { %341 = vst [vmem:[%s4145_s8 + $0x230] sm:$0xff] %v340_v6  ;;  %v468_v6 = vld [vmem:[%s4140_s7 + $0x860] sm:$0xff] }
  0x5a   : > { %343 = vst [vmem:[%s4145_s8 + $0x238] sm:$0xff] %v342_v7  ;;  %v470_v7 = vld [vmem:[%s4140_s7 + $0x868] sm:$0xff] }
  0x5b   : > { %345 = vst [vmem:[%s4145_s8 + $0x240] sm:$0xff] %v344_v8  ;;  %v472_v8 = vld [vmem:[%s4140_s7 + $0x880] sm:$0xff] }
  0x5c   : > { %347 = vst [vmem:[%s4145_s8 + $0x248] sm:$0xff] %v346_v9  ;;  %v474_v9 = vld [vmem:[%s4140_s7 + $0x888] sm:$0xff] }
  0x5d   : > { %349 = vst [vmem:[%s4145_s8 + $0x250] sm:$0xff] %v348_v10  ;;  %v476_v10 = vld [vmem:[%s4140_s7 + $0x8a0] sm:$0xff] }
  0x5e   : > { %351 = vst [vmem:[%s4145_s8 + $0x258] sm:$0xff] %v350_v11  ;;  %v478_v11 = vld [vmem:[%s4140_s7 + $0x8a8] sm:$0xff] }
  0x5f   : > { %353 = vst [vmem:[%s4145_s8 + $0x260] sm:$0xff] %v352_v12  ;;  %v480_v12 = vld [vmem:[%s4140_s7 + $0x8c0] sm:$0xff] }
  0x60   : > { %355 = vst [vmem:[%s4145_s8 + $0x268] sm:$0xff] %v354_v13  ;;  %v482_v13 = vld [vmem:[%s4140_s7 + $0x8c8] sm:$0xff] }
  0x61   : > { %357 = vst [vmem:[%s4145_s8 + $0x270] sm:$0xff] %v356_v14  ;;  %v484_v14 = vld [vmem:[%s4140_s7 + $0x8e0] sm:$0xff] }
  0x62   : > { %359 = vst [vmem:[%s4145_s8 + $0x278] sm:$0xff] %v358_v15  ;;  %v486_v15 = vld [vmem:[%s4140_s7 + $0x8e8] sm:$0xff] }
  0x63   : > { %361 = vst [vmem:[%s4145_s8 + $0x280] sm:$0xff] %v360_v16  ;;  %v488_v16 = vld [vmem:[%s4140_s7 + $0x900] sm:$0xff] }
  0x64   : > { %363 = vst [vmem:[%s4145_s8 + $0x288] sm:$0xff] %v362_v17  ;;  %v490_v17 = vld [vmem:[%s4140_s7 + $0x908] sm:$0xff] }
  0x65   : > { %365 = vst [vmem:[%s4145_s8 + $0x290] sm:$0xff] %v364_v18  ;;  %v492_v18 = vld [vmem:[%s4140_s7 + $0x920] sm:$0xff] }
  0x66   : > { %367 = vst [vmem:[%s4145_s8 + $0x298] sm:$0xff] %v366_v19  ;;  %v494_v19 = vld [vmem:[%s4140_s7 + $0x928] sm:$0xff] }
  0x67   : > { %369 = vst [vmem:[%s4145_s8 + $0x2a0] sm:$0xff] %v368_v20  ;;  %v496_v20 = vld [vmem:[%s4140_s7 + $0x940] sm:$0xff] }
  0x68   : > { %371 = vst [vmem:[%s4145_s8 + $0x2a8] sm:$0xff] %v370_v21  ;;  %v498_v21 = vld [vmem:[%s4140_s7 + $0x948] sm:$0xff] }
  0x69   : > { %373 = vst [vmem:[%s4145_s8 + $0x2b0] sm:$0xff] %v372_v22  ;;  %v500_v22 = vld [vmem:[%s4140_s7 + $0x960] sm:$0xff] }
  0x6a   : > { %375 = vst [vmem:[%s4145_s8 + $0x2b8] sm:$0xff] %v374_v23  ;;  %v502_v23 = vld [vmem:[%s4140_s7 + $0x968] sm:$0xff] }
  0x6b   : > { %377 = vst [vmem:[%s4145_s8 + $0x2c0] sm:$0xff] %v376_v24  ;;  %v504_v24 = vld [vmem:[%s4140_s7 + $0x980] sm:$0xff] }
  0x6c   : > { %379 = vst [vmem:[%s4145_s8 + $0x2c8] sm:$0xff] %v378_v25  ;;  %v506_v25 = vld [vmem:[%s4140_s7 + $0x988] sm:$0xff] }
  0x6d   : > { %381 = vst [vmem:[%s4145_s8 + $0x2d0] sm:$0xff] %v380_v26  ;;  %v508_v26 = vld [vmem:[%s4140_s7 + $0x9a0] sm:$0xff] }
  0x6e   : > { %383 = vst [vmem:[%s4145_s8 + $0x2d8] sm:$0xff] %v382_v27  ;;  %v510_v27 = vld [vmem:[%s4140_s7 + $0x9a8] sm:$0xff] }
  0x6f   : > { %385 = vst [vmem:[%s4145_s8 + $0x2e0] sm:$0xff] %v384_v28  ;;  %v512_v28 = vld [vmem:[%s4140_s7 + $0x9c0] sm:$0xff] }
  0x70   : > { %387 = vst [vmem:[%s4145_s8 + $0x2e8] sm:$0xff] %v386_v29  ;;  %v514_v29 = vld [vmem:[%s4140_s7 + $0x9c8] sm:$0xff] }
  0x71   : > { %389 = vst [vmem:[%s4145_s8 + $0x2f0] sm:$0xff] %v388_v30  ;;  %v516_v30 = vld [vmem:[%s4140_s7 + $0x9e0] sm:$0xff] }
  0x72   : > { %391 = vst [vmem:[%s4145_s8 + $0x2f8] sm:$0xff] %v390_v31  ;;  %v518_v31 = vld [vmem:[%s4140_s7 + $0x9e8] sm:$0xff] }
  0x73   : > { %393 = vst [vmem:[%s4145_s8 + $0x300] sm:$0xff] %v392_v32  ;;  %v520_v32 = vld [vmem:[%s4140_s7 + $0xa00] sm:$0xff] }
  0x74   : > { %395 = vst [vmem:[%s4145_s8 + $0x308] sm:$0xff] %v394_v33  ;;  %v522_v33 = vld [vmem:[%s4140_s7 + $0xa08] sm:$0xff] }
  0x75   : > { %397 = vst [vmem:[%s4145_s8 + $0x310] sm:$0xff] %v396_v34  ;;  %v524_v34 = vld [vmem:[%s4140_s7 + $0xa20] sm:$0xff] }
  0x76   : > { %399 = vst [vmem:[%s4145_s8 + $0x318] sm:$0xff] %v398_v35  ;;  %v526_v35 = vld [vmem:[%s4140_s7 + $0xa28] sm:$0xff] }
  0x77   : > { %401 = vst [vmem:[%s4145_s8 + $0x320] sm:$0xff] %v400_v36  ;;  %v528_v36 = vld [vmem:[%s4140_s7 + $0xa40] sm:$0xff] }
  0x78   : > { %403 = vst [vmem:[%s4145_s8 + $0x328] sm:$0xff] %v402_v37  ;;  %v530_v37 = vld [vmem:[%s4140_s7 + $0xa48] sm:$0xff] }
  0x79   : > { %405 = vst [vmem:[%s4145_s8 + $0x330] sm:$0xff] %v404_v38  ;;  %v532_v38 = vld [vmem:[%s4140_s7 + $0xa60] sm:$0xff] }
  0x7a   : > { %407 = vst [vmem:[%s4145_s8 + $0x338] sm:$0xff] %v406_v39  ;;  %v534_v39 = vld [vmem:[%s4140_s7 + $0xa68] sm:$0xff] }
  0x7b   : > { %409 = vst [vmem:[%s4145_s8 + $0x340] sm:$0xff] %v408_v40  ;;  %v536_v40 = vld [vmem:[%s4140_s7 + $0xa80] sm:$0xff] }
  0x7c   : > { %411 = vst [vmem:[%s4145_s8 + $0x348] sm:$0xff] %v410_v41  ;;  %v538_v41 = vld [vmem:[%s4140_s7 + $0xa88] sm:$0xff] }
  0x7d   : > { %413 = vst [vmem:[%s4145_s8 + $0x350] sm:$0xff] %v412_v42  ;;  %v540_v42 = vld [vmem:[%s4140_s7 + $0xaa0] sm:$0xff] }
  0x7e   : > { %415 = vst [vmem:[%s4145_s8 + $0x358] sm:$0xff] %v414_v43  ;;  %v542_v43 = vld [vmem:[%s4140_s7 + $0xaa8] sm:$0xff] }
  0x7f   : > { %417 = vst [vmem:[%s4145_s8 + $0x360] sm:$0xff] %v416_v44  ;;  %v544_v44 = vld [vmem:[%s4140_s7 + $0xac0] sm:$0xff] }
  0x80   : > { %419 = vst [vmem:[%s4145_s8 + $0x368] sm:$0xff] %v418_v45  ;;  %v546_v45 = vld [vmem:[%s4140_s7 + $0xac8] sm:$0xff] }
  0x81   : > { %421 = vst [vmem:[%s4145_s8 + $0x370] sm:$0xff] %v420_v46  ;;  %v548_v46 = vld [vmem:[%s4140_s7 + $0xae0] sm:$0xff] }
  0x82   : > { %423 = vst [vmem:[%s4145_s8 + $0x378] sm:$0xff] %v422_v47  ;;  %v550_v47 = vld [vmem:[%s4140_s7 + $0xae8] sm:$0xff] }
  0x83   : > { %425 = vst [vmem:[%s4145_s8 + $0x380] sm:$0xff] %v424_v48  ;;  %v552_v48 = vld [vmem:[%s4140_s7 + $0xb00] sm:$0xff] }
  0x84   : > { %427 = vst [vmem:[%s4145_s8 + $0x388] sm:$0xff] %v426_v49  ;;  %v554_v49 = vld [vmem:[%s4140_s7 + $0xb08] sm:$0xff] }
  0x85   : > { %429 = vst [vmem:[%s4145_s8 + $0x390] sm:$0xff] %v428_v50  ;;  %v556_v50 = vld [vmem:[%s4140_s7 + $0xb20] sm:$0xff] }
  0x86   : > { %431 = vst [vmem:[%s4145_s8 + $0x398] sm:$0xff] %v430_v51  ;;  %v558_v51 = vld [vmem:[%s4140_s7 + $0xb28] sm:$0xff] }
  0x87   : > { %433 = vst [vmem:[%s4145_s8 + $0x3a0] sm:$0xff] %v432_v52  ;;  %v560_v52 = vld [vmem:[%s4140_s7 + $0xb40] sm:$0xff] }
  0x88   : > { %435 = vst [vmem:[%s4145_s8 + $0x3a8] sm:$0xff] %v434_v53  ;;  %v562_v53 = vld [vmem:[%s4140_s7 + $0xb48] sm:$0xff] }
  0x89   : > { %437 = vst [vmem:[%s4145_s8 + $0x3b0] sm:$0xff] %v436_v54  ;;  %v564_v54 = vld [vmem:[%s4140_s7 + $0xb60] sm:$0xff] }
  0x8a   : > { %439 = vst [vmem:[%s4145_s8 + $0x3b8] sm:$0xff] %v438_v55  ;;  %v566_v55 = vld [vmem:[%s4140_s7 + $0xb68] sm:$0xff] }
  0x8b   : > { %441 = vst [vmem:[%s4145_s8 + $0x3c0] sm:$0xff] %v440_v56  ;;  %v568_v56 = vld [vmem:[%s4140_s7 + $0xb80] sm:$0xff] }
  0x8c   : > { %443 = vst [vmem:[%s4145_s8 + $0x3c8] sm:$0xff] %v442_v57  ;;  %v570_v57 = vld [vmem:[%s4140_s7 + $0xb88] sm:$0xff] }
  0x8d   : > { %445 = vst [vmem:[%s4145_s8 + $0x3d0] sm:$0xff] %v444_v58  ;;  %v572_v58 = vld [vmem:[%s4140_s7 + $0xba0] sm:$0xff] }
  0x8e   : > { %447 = vst [vmem:[%s4145_s8 + $0x3d8] sm:$0xff] %v446_v59  ;;  %v574_v59 = vld [vmem:[%s4140_s7 + $0xba8] sm:$0xff] }
  0x8f   : > { %449 = vst [vmem:[%s4145_s8 + $0x3e0] sm:$0xff] %v448_v60  ;;  %v576_v60 = vld [vmem:[%s4140_s7 + $0xbc0] sm:$0xff] }
  0x90   : > { %451 = vst [vmem:[%s4145_s8 + $0x3e8] sm:$0xff] %v450_v61  ;;  %v578_v61 = vld [vmem:[%s4140_s7 + $0xbc8] sm:$0xff] }
  0x91   : > { %453 = vst [vmem:[%s4145_s8 + $0x3f0] sm:$0xff] %v452_v62  ;;  %v580_v62 = vld [vmem:[%s4140_s7 + $0xbe0] sm:$0xff] }
  0x92   : > { %455 = vst [vmem:[%s4145_s8 + $0x3f8] sm:$0xff] %v454_v63  ;;  %v582_v63 = vld [vmem:[%s4140_s7 + $0xbe8] sm:$0xff] }
  0x93   : > { %457 = vst [vmem:[%s4145_s8 + $0x400] sm:$0xff] %v456_v0  ;;  %v584_v0 = vld [vmem:[%s4140_s7 + $0xc00] sm:$0xff] }
  0x94   : > { %459 = vst [vmem:[%s4145_s8 + $0x408] sm:$0xff] %v458_v1  ;;  %v586_v1 = vld [vmem:[%s4140_s7 + $0xc08] sm:$0xff] }
  0x95   : > { %461 = vst [vmem:[%s4145_s8 + $0x410] sm:$0xff] %v460_v2  ;;  %v588_v2 = vld [vmem:[%s4140_s7 + $0xc20] sm:$0xff] }
  0x96   : > { %463 = vst [vmem:[%s4145_s8 + $0x418] sm:$0xff] %v462_v3  ;;  %v590_v3 = vld [vmem:[%s4140_s7 + $0xc28] sm:$0xff] }
  0x97   : > { %465 = vst [vmem:[%s4145_s8 + $0x420] sm:$0xff] %v464_v4  ;;  %v592_v4 = vld [vmem:[%s4140_s7 + $0xc40] sm:$0xff] }
  0x98   : > { %467 = vst [vmem:[%s4145_s8 + $0x428] sm:$0xff] %v466_v5  ;;  %v594_v5 = vld [vmem:[%s4140_s7 + $0xc48] sm:$0xff] }
  0x99   : > { %469 = vst [vmem:[%s4145_s8 + $0x430] sm:$0xff] %v468_v6  ;;  %v596_v6 = vld [vmem:[%s4140_s7 + $0xc60] sm:$0xff] }
  0x9a   : > { %471 = vst [vmem:[%s4145_s8 + $0x438] sm:$0xff] %v470_v7  ;;  %v598_v7 = vld [vmem:[%s4140_s7 + $0xc68] sm:$0xff] }
  0x9b   : > { %473 = vst [vmem:[%s4145_s8 + $0x440] sm:$0xff] %v472_v8  ;;  %v600_v8 = vld [vmem:[%s4140_s7 + $0xc80] sm:$0xff] }
  0x9c   : > { %475 = vst [vmem:[%s4145_s8 + $0x448] sm:$0xff] %v474_v9  ;;  %v602_v9 = vld [vmem:[%s4140_s7 + $0xc88] sm:$0xff] }
  0x9d   : > { %477 = vst [vmem:[%s4145_s8 + $0x450] sm:$0xff] %v476_v10  ;;  %v604_v10 = vld [vmem:[%s4140_s7 + $0xca0] sm:$0xff] }
  0x9e   : > { %479 = vst [vmem:[%s4145_s8 + $0x458] sm:$0xff] %v478_v11  ;;  %v606_v11 = vld [vmem:[%s4140_s7 + $0xca8] sm:$0xff] }
  0x9f   : > { %481 = vst [vmem:[%s4145_s8 + $0x460] sm:$0xff] %v480_v12  ;;  %v608_v12 = vld [vmem:[%s4140_s7 + $0xcc0] sm:$0xff] }
  0xa0   : > { %483 = vst [vmem:[%s4145_s8 + $0x468] sm:$0xff] %v482_v13  ;;  %v610_v13 = vld [vmem:[%s4140_s7 + $0xcc8] sm:$0xff] }
  0xa1   : > { %485 = vst [vmem:[%s4145_s8 + $0x470] sm:$0xff] %v484_v14  ;;  %v612_v14 = vld [vmem:[%s4140_s7 + $0xce0] sm:$0xff] }
  0xa2   : > { %487 = vst [vmem:[%s4145_s8 + $0x478] sm:$0xff] %v486_v15  ;;  %v614_v15 = vld [vmem:[%s4140_s7 + $0xce8] sm:$0xff] }
  0xa3   : > { %489 = vst [vmem:[%s4145_s8 + $0x480] sm:$0xff] %v488_v16  ;;  %v616_v16 = vld [vmem:[%s4140_s7 + $0xd00] sm:$0xff] }
  0xa4   : > { %491 = vst [vmem:[%s4145_s8 + $0x488] sm:$0xff] %v490_v17  ;;  %v618_v17 = vld [vmem:[%s4140_s7 + $0xd08] sm:$0xff] }
  0xa5   : > { %493 = vst [vmem:[%s4145_s8 + $0x490] sm:$0xff] %v492_v18  ;;  %v620_v18 = vld [vmem:[%s4140_s7 + $0xd20] sm:$0xff] }
  0xa6   : > { %495 = vst [vmem:[%s4145_s8 + $0x498] sm:$0xff] %v494_v19  ;;  %v622_v19 = vld [vmem:[%s4140_s7 + $0xd28] sm:$0xff] }
  0xa7   : > { %497 = vst [vmem:[%s4145_s8 + $0x4a0] sm:$0xff] %v496_v20  ;;  %v624_v20 = vld [vmem:[%s4140_s7 + $0xd40] sm:$0xff] }
  0xa8   : > { %499 = vst [vmem:[%s4145_s8 + $0x4a8] sm:$0xff] %v498_v21  ;;  %v626_v21 = vld [vmem:[%s4140_s7 + $0xd48] sm:$0xff] }
  0xa9   : > { %501 = vst [vmem:[%s4145_s8 + $0x4b0] sm:$0xff] %v500_v22  ;;  %v628_v22 = vld [vmem:[%s4140_s7 + $0xd60] sm:$0xff] }
  0xaa   : > { %503 = vst [vmem:[%s4145_s8 + $0x4b8] sm:$0xff] %v502_v23  ;;  %v630_v23 = vld [vmem:[%s4140_s7 + $0xd68] sm:$0xff] }
  0xab   : > { %505 = vst [vmem:[%s4145_s8 + $0x4c0] sm:$0xff] %v504_v24 }
  0xac   : > { %507 = vst [vmem:[%s4145_s8 + $0x4c8] sm:$0xff] %v506_v25 }
  0xad   : > { %509 = vst [vmem:[%s4145_s8 + $0x4d0] sm:$0xff] %v508_v26 }
  0xae   : > { %511 = vst [vmem:[%s4145_s8 + $0x4d8] sm:$0xff] %v510_v27 }
  0xaf   : > { %513 = vst [vmem:[%s4145_s8 + $0x4e0] sm:$0xff] %v512_v28 }
  0xb0   : > { %515 = vst [vmem:[%s4145_s8 + $0x4e8] sm:$0xff] %v514_v29 }
  0xb1   : > { %517 = vst [vmem:[%s4145_s8 + $0x4f0] sm:$0xff] %v516_v30 }
  0xb2   : > { %519 = vst [vmem:[%s4145_s8 + $0x4f8] sm:$0xff] %v518_v31 }
  0xb3   : > { %521 = vst [vmem:[%s4145_s8 + $0x500] sm:$0xff] %v520_v32 }
  0xb4   : > { %523 = vst [vmem:[%s4145_s8 + $0x508] sm:$0xff] %v522_v33 }
  0xb5   : > { %525 = vst [vmem:[%s4145_s8 + $0x510] sm:$0xff] %v524_v34 }
  0xb6   : > { %527 = vst [vmem:[%s4145_s8 + $0x518] sm:$0xff] %v526_v35 }
  0xb7   : > { %529 = vst [vmem:[%s4145_s8 + $0x520] sm:$0xff] %v528_v36 }
  0xb8   : > { %531 = vst [vmem:[%s4145_s8 + $0x528] sm:$0xff] %v530_v37 }
  0xb9   : > { %533 = vst [vmem:[%s4145_s8 + $0x530] sm:$0xff] %v532_v38 }
  0xba   : > { %535 = vst [vmem:[%s4145_s8 + $0x538] sm:$0xff] %v534_v39 }
  0xbb   : > { %537 = vst [vmem:[%s4145_s8 + $0x540] sm:$0xff] %v536_v40 }
  0xbc   : > { %539 = vst [vmem:[%s4145_s8 + $0x548] sm:$0xff] %v538_v41 }
  0xbd   : > { %541 = vst [vmem:[%s4145_s8 + $0x550] sm:$0xff] %v540_v42 }
  0xbe   : > { %543 = vst [vmem:[%s4145_s8 + $0x558] sm:$0xff] %v542_v43 }
  0xbf   : > { %545 = vst [vmem:[%s4145_s8 + $0x560] sm:$0xff] %v544_v44 }
  0xc0   : > { %547 = vst [vmem:[%s4145_s8 + $0x568] sm:$0xff] %v546_v45 }
  0xc1   : > { %549 = vst [vmem:[%s4145_s8 + $0x570] sm:$0xff] %v548_v46 }
  0xc2   : > { %551 = vst [vmem:[%s4145_s8 + $0x578] sm:$0xff] %v550_v47 }
  0xc3   : > { %553 = vst [vmem:[%s4145_s8 + $0x580] sm:$0xff] %v552_v48 }
  0xc4   : > { %555 = vst [vmem:[%s4145_s8 + $0x588] sm:$0xff] %v554_v49 }
  0xc5   : > { %557 = vst [vmem:[%s4145_s8 + $0x590] sm:$0xff] %v556_v50 }
  0xc6   : > { %559 = vst [vmem:[%s4145_s8 + $0x598] sm:$0xff] %v558_v51 }
  0xc7   : > { %561 = vst [vmem:[%s4145_s8 + $0x5a0] sm:$0xff] %v560_v52 }
  0xc8   : > { %563 = vst [vmem:[%s4145_s8 + $0x5a8] sm:$0xff] %v562_v53 }
  0xc9   : > { %565 = vst [vmem:[%s4145_s8 + $0x5b0] sm:$0xff] %v564_v54 }
  0xca   : > { %567 = vst [vmem:[%s4145_s8 + $0x5b8] sm:$0xff] %v566_v55 }
  0xcb   : > { %569 = vst [vmem:[%s4145_s8 + $0x5c0] sm:$0xff] %v568_v56 }
  0xcc   : > { %571 = vst [vmem:[%s4145_s8 + $0x5c8] sm:$0xff] %v570_v57 }
  0xcd   : > { %573 = vst [vmem:[%s4145_s8 + $0x5d0] sm:$0xff] %v572_v58 }
  0xce   : > { %575 = vst [vmem:[%s4145_s8 + $0x5d8] sm:$0xff] %v574_v59 }
  0xcf   : > { %577 = vst [vmem:[%s4145_s8 + $0x5e0] sm:$0xff] %v576_v60 }
  0xd0   : > { %579 = vst [vmem:[%s4145_s8 + $0x5e8] sm:$0xff] %v578_v61 }
  0xd1   : > { %581 = vst [vmem:[%s4145_s8 + $0x5f0] sm:$0xff] %v580_v62 }
  0xd2   : > { %583 = vst [vmem:[%s4145_s8 + $0x5f8] sm:$0xff] %v582_v63 }
  0xd3   : > { %585 = vst [vmem:[%s4145_s8 + $0x600] sm:$0xff] %v584_v0 }
  0xd4   : > { %587 = vst [vmem:[%s4145_s8 + $0x608] sm:$0xff] %v586_v1 }
  0xd5   : > { %589 = vst [vmem:[%s4145_s8 + $0x610] sm:$0xff] %v588_v2 }
  0xd6   : > { %591 = vst [vmem:[%s4145_s8 + $0x618] sm:$0xff] %v590_v3 }
  0xd7   : > { %593 = vst [vmem:[%s4145_s8 + $0x620] sm:$0xff] %v592_v4 }
  0xd8   : > { %595 = vst [vmem:[%s4145_s8 + $0x628] sm:$0xff] %v594_v5 }
  0xd9   : > { %597 = vst [vmem:[%s4145_s8 + $0x630] sm:$0xff] %v596_v6 }
  0xda   : > { %599 = vst [vmem:[%s4145_s8 + $0x638] sm:$0xff] %v598_v7 }
  0xdb   : > { %601 = vst [vmem:[%s4145_s8 + $0x640] sm:$0xff] %v600_v8 }
  0xdc   : > { %603 = vst [vmem:[%s4145_s8 + $0x648] sm:$0xff] %v602_v9 }
  0xdd   : > { %605 = vst [vmem:[%s4145_s8 + $0x650] sm:$0xff] %v604_v10 }
  0xde   : > { %607 = vst [vmem:[%s4145_s8 + $0x658] sm:$0xff] %v606_v11 }
  0xdf   : > { %609 = vst [vmem:[%s4145_s8 + $0x660] sm:$0xff] %v608_v12 }
  0xe0   : > { %611 = vst [vmem:[%s4145_s8 + $0x668] sm:$0xff] %v610_v13 }
  0xe1   : > { %613 = vst [vmem:[%s4145_s8 + $0x670] sm:$0xff] %v612_v14 }
  0xe2   : > { %615 = vst [vmem:[%s4145_s8 + $0x678] sm:$0xff] %v614_v15 }
  0xe3   : > { %617 = vst [vmem:[%s4145_s8 + $0x680] sm:$0xff] %v616_v16 }
  0xe4   : > { %619 = vst [vmem:[%s4145_s8 + $0x688] sm:$0xff] %v618_v17 }
  0xe5   : > { %621 = vst [vmem:[%s4145_s8 + $0x690] sm:$0xff] %v620_v18 }
  0xe6   : > { %623 = vst [vmem:[%s4145_s8 + $0x698] sm:$0xff] %v622_v19 }
  0xe7   : > { %625 = vst [vmem:[%s4145_s8 + $0x6a0] sm:$0xff] %v624_v20 }
  0xe8   : > { %627 = vst [vmem:[%s4145_s8 + $0x6a8] sm:$0xff] %v626_v21 }
  0xe9   : > { %629 = vst [vmem:[%s4145_s8 + $0x6b0] sm:$0xff] %v628_v22 }
  0xea   : > { %631 = vst [vmem:[%s4145_s8 + $0x6b8] sm:$0xff] %v630_v23 }
  0xeb PF: > { %p2848_p7 = scmp.ge.s32.totalorder %s4067_s20, 1  ;;  %p636_p8 = scmp.lt.s32.totalorder %s4067_s20, 3 }
  0xed   : > { %p637_p9 = pnand %p2848_p7, %p636_p8 }
  0xee   : > { %s643_s9 = sand.u32 (!%p637_p9), 1, %s4059_s18  }
  0xef   : > { %640 = sbr.rel (%p637_p9) target bundleno = 653 (0x28d), region = 59  ;;  %s2849_s12 = sshll.u32 (!%p637_p9), %s643_s9, 7 }
  0xf0   : > { %s4016_s10 = smul.u32 (!%p637_p9), 1728, %s643_s9  ;;  %s5285_s18 = scalar_lea.vmem (!%p637_p9), [#allocation3], %s2849_s12 }
  0xf2   : > { %s4581_s11 = scalar_lea.vmem (!%p637_p9), [#allocation2], %s4016_s10 }
  0xf4   : > { %v3020_v24 = vld [vmem:[%s4581_s11 + $0xe0] sm:$0xf]  ;;  %v3828_v25 = vld [vmem:[%s4581_s11 + $0xec] sm:$0xf0]  ;;  %vm2078_vm0 = vcmask 785408   ;;  %s4014_s9 = sshll.u32 (%p4130_p5), %s2842_s21, 5 }
  0xf5   : > { %v3148_v26 = vld [vmem:[%s4581_s11 + $0x1e0] sm:$0xf]  ;;  %v3021_v27 = vor.u32 %v3828_v25, %v3020_v24  ;;  %v3860_v28 = vld [vmem:[%s4581_s11 + $0x1ec] sm:$0xf0]  ;;  %s2738_s26 = scalar_lea.vmem (%p4130_p5), %s5411_s5, %s4014_s9 }
  0xf6   : > { %v3276_v29 = vld [vmem:[%s4581_s11 + $0x2e0] sm:$0xf]  ;;  %v3892_v30 = vld [vmem:[%s4581_s11 + $0x2ec] sm:$0xf0]  ;;  %v3149_v31 = vor.u32 %v3860_v28, %v3148_v26 }
  0xf7   : > { %v3277_v32 = vor.u32 %v3892_v30, %v3276_v29  ;;  %v3404_v33 = vld [vmem:[%s4581_s11 + $0x3e0] sm:$0xf]  ;;  %v3924_v34 = vld [vmem:[%s4581_s11 + $0x3ec] sm:$0xf0]  ;;  %2085 = vmatpush.bf16.msra.mxu0 %v3021_v27 }
  0xf8   : > { %v3004_v35 = vld [vmem:[%s4581_s11 + $0xc0] sm:$0xf]  ;;  %v3405_v36 = vor.u32 %v3924_v34, %v3404_v33  ;;  %v3824_v37 = vld [vmem:[%s4581_s11 + $0xcc] sm:$0xf0]  ;;  %2104 = vmatpush.bf16.msra.mxu1 %v3149_v31 }
  0xf9   : > { %v3132_v38 = vld [vmem:[%s4581_s11 + $0x1c0] sm:$0xf]  ;;  %v3856_v39 = vld [vmem:[%s4581_s11 + $0x1cc] sm:$0xf0]  ;;  %2123 = vmatpush.bf16.msra.mxu2 %v3277_v32  ;;  %v3005_v40 = vor.u32 %v3824_v37, %v3004_v35 }
  0xfa   : > { %v3133_v41 = vor.u32 %v3856_v39, %v3132_v38  ;;  %v3260_v42 = vld [vmem:[%s4581_s11 + $0x2c0] sm:$0xf]  ;;  %v3888_v43 = vld [vmem:[%s4581_s11 + $0x2cc] sm:$0xf0]  ;;  %2142 = vmatpush.bf16.msra.mxu3 %v3405_v36 }
  0xfb   : > { %v3388_v44 = vld [vmem:[%s4581_s11 + $0x3c0] sm:$0xf]  ;;  %v3261_v45 = vor.u32 %v3888_v43, %v3260_v42  ;;  %v3920_v46 = vld [vmem:[%s4581_s11 + $0x3cc] sm:$0xf0]  ;;  %2086 = vmatpush.bf16.msra.mxu0 %v3005_v40 }
  0xfc   : > { %v2988_v47 = vld [vmem:[%s4581_s11 + $0xa0] sm:$0xf]  ;;  %v3820_v48 = vld [vmem:[%s4581_s11 + $0xac] sm:$0xf0]  ;;  %v3389_v49 = vor.u32 %v3920_v46, %v3388_v44  ;;  %2105 = vmatpush.bf16.msra.mxu1 %v3133_v41 }
  0xfd   : > { %v3116_v50 = vld [vmem:[%s4581_s11 + $0x1a0] sm:$0xf]  ;;  %v3852_v51 = vld [vmem:[%s4581_s11 + $0x1ac] sm:$0xf0]  ;;  %v2989_v53 = vor.u32 %v3820_v48, %v2988_v47  ;;  %2124 = vmatpush.bf16.msra.mxu2 %v3261_v45 }
  0xfe   : > { %v3244_v52 = vld [vmem:[%s4581_s11 + $0x2a0] sm:$0xf]  ;;  %v3884_v54 = vld [vmem:[%s4581_s11 + $0x2ac] sm:$0xf0]  ;;  %v3117_v57 = vor.u32 %v3852_v51, %v3116_v50  ;;  %2143 = vmatpush.bf16.msra.mxu3 %v3389_v49 }
  0xff   : > { %v3372_v55 = vld [vmem:[%s4581_s11 + $0x3a0] sm:$0xf]  ;;  %v3916_v56 = vld [vmem:[%s4581_s11 + $0x3ac] sm:$0xf0]  ;;  %v3245_v58 = vor.u32 %v3884_v54, %v3244_v52  ;;  %2087 = vmatpush.bf16.msra.mxu0 %v2989_v53  ;;  %v3787_v53 = vld [vmem:[%s5406_s0 + $0x18] sm:$0xf0] }
 0x100   : > { %v2972_v59 = vld [vmem:[%s4581_s11 + $0x80] sm:$0xf]  ;;  %v3816_v60 = vld [vmem:[%s4581_s11 + $0x8c] sm:$0xf0]  ;;  %v3373_v62 = vor.u32 %v3916_v56, %v3372_v55  ;;  %2106 = vmatpush.bf16.msra.mxu1 %v3117_v57  ;;  %v3784_v54 = vld [vmem:[%s5406_s0 + $0x4] sm:$0xf] }
 0x101   : > { %v3100_v61 = vld [vmem:[%s4581_s11 + $0x180] sm:$0xf]  ;;  %v3848_v63 = vld [vmem:[%s4581_s11 + $0x18c] sm:$0xf0]  ;;  %v2973_v4 = vor.u32 %v3816_v60, %v2972_v59  ;;  %2125 = vmatpush.bf16.msra.mxu2 %v3245_v58  ;;  %v2860_v59 = vld [vmem:[%s5406_s0 + $0x8] sm:$0xf] }
 0x102   : > { %v3228_v0 = vld [vmem:[%s4581_s11 + $0x280] sm:$0xf]  ;;  %v3880_v1 = vld [vmem:[%s4581_s11 + $0x28c] sm:$0xf0]  ;;  %v3101_v5 = vor.u32 %v3848_v63, %v3100_v61  ;;  %2144 = vmatpush.bf16.msra.mxu3 %v3373_v62 }
 0x103   : > { %v3356_v2 = vld [vmem:[%s4581_s11 + $0x380] sm:$0xf]  ;;  %v3912_v3 = vld [vmem:[%s4581_s11 + $0x38c] sm:$0xf0]  ;;  %v3229_v6 = vor.u32 %v3880_v1, %v3228_v0  ;;  %2088 = vmatpush.bf16.msra.mxu0 %v2973_v4  ;;  %v3788_v0 = vld [vmem:[%s5406_s0 + $0x20] sm:$0xf0] }
 0x104   : > { %v2956_v7 = vld [vmem:[%s4581_s11 + $0x60] sm:$0xf]  ;;  %v3812_v8 = vld [vmem:[%s4581_s11 + $0x6c] sm:$0xf0]  ;;  %v3357_v10 = vor.u32 %v3912_v3, %v3356_v2  ;;  %2107 = vmatpush.bf16.msra.mxu1 %v3101_v5  ;;  %v3785_v1 = vld [vmem:[%s5406_s0 + $0xc] sm:$0xf] }
 0x105   : > { %v3084_v9 = vld [vmem:[%s4581_s11 + $0x160] sm:$0xf]  ;;  %v3844_v11 = vld [vmem:[%s4581_s11 + $0x16c] sm:$0xf0]  ;;  %v2957_v16 = vor.u32 %v3812_v8, %v2956_v7  ;;  %2126 = vmatpush.bf16.msra.mxu2 %v3229_v6  ;;  %v2862_v2 = vld [vmem:[%s5406_s0 + $0x24] sm:$0xf0] }
 0x106   : > { %v3212_v12 = vld [vmem:[%s4581_s11 + $0x260] sm:$0xf]  ;;  %v3876_v13 = vld [vmem:[%s4581_s11 + $0x26c] sm:$0xf0]  ;;  %v3085_v17 = vor.u32 %v3844_v11, %v3084_v9  ;;  %2145 = vmatpush.bf16.msra.mxu3 %v3357_v10  ;;  %v3826_v7 = vld [vmem:[%s4581_s11 + $0xe4] sm:$0xf] }
 0x107   : > { %v3340_v14 = vld [vmem:[%s4581_s11 + $0x360] sm:$0xf]  ;;  %v3908_v15 = vld [vmem:[%s4581_s11 + $0x36c] sm:$0xf0]  ;;  %v3213_v18 = vor.u32 %v3876_v13, %v3212_v12  ;;  %2089 = vmatpush.bf16.msra.mxu0 %v2957_v16  ;;  %v3022_v10 = vld [vmem:[%s4581_s11 + $0xf0] sm:$0xf0] }
 0x108   : > { %v2940_v19 = vld [vmem:[%s4581_s11 + $0x40] sm:$0xf]  ;;  %v3808_v20 = vld [vmem:[%s4581_s11 + $0x4c] sm:$0xf0]  ;;  %v3341_v22 = vor.u32 %v3908_v15, %v3340_v14  ;;  %2108 = vmatpush.bf16.msra.mxu1 %v3085_v17  ;;  %v4685_v14 = vor.u32 %v3788_v0, %v2860_v59  ;;  %v4689_v17 = vor.u32 %v3785_v1, %v2862_v2  ;;  %v905_v1 = vld [vmem:[%s5408_s2 + $0x8] sm:$0xff] }
 0x109   : > { %v3068_v21 = vld [vmem:[%s4581_s11 + $0x140] sm:$0xf]  ;;  %v3840_v23 = vld [vmem:[%s4581_s11 + $0x14c] sm:$0xf0]  ;;  %v2941_v28 = vor.u32 %v3808_v20, %v2940_v19  ;;  %2127 = vmatpush.bf16.msra.mxu2 %v3213_v18  ;;  %v3025_v19 = vor.u32 %v3826_v7, %v3022_v10 }
 0x10a   : > { %v3196_v24 = vld [vmem:[%s4581_s11 + $0x240] sm:$0xf]  ;;  %v3872_v25 = vld [vmem:[%s4581_s11 + $0x24c] sm:$0xf0]  ;;  %v3069_v29 = vor.u32 %v3840_v23, %v3068_v21  ;;  %2146 = vmatpush.bf16.msra.mxu3 %v3341_v22  ;;  %v3822_v22 = vld [vmem:[%s4581_s11 + $0xc4] sm:$0xf] }
 0x10b   : > { %v3324_v26 = vld [vmem:[%s4581_s11 + $0x340] sm:$0xf]  ;;  %v3904_v27 = vld [vmem:[%s4581_s11 + $0x34c] sm:$0xf0]  ;;  %v3197_v30 = vor.u32 %v3872_v25, %v3196_v24  ;;  %2090 = vmatpush.bf16.msra.mxu0 %v2941_v28  ;;  %v3006_v25 = vld [vmem:[%s4581_s11 + $0xd0] sm:$0xf0] }
 0x10c   : > { %v2924_v31 = vld [vmem:[%s4581_s11 + $0x20] sm:$0xf]  ;;  %v3804_v32 = vld [vmem:[%s4581_s11 + $0x2c] sm:$0xf0]  ;;  %v3325_v34 = vor.u32 %v3904_v27, %v3324_v26  ;;  %2109 = vmatpush.bf16.msra.mxu1 %v3069_v29 }
 0x10d   : > { %v3052_v33 = vld [vmem:[%s4581_s11 + $0x120] sm:$0xf]  ;;  %v3836_v35 = vld [vmem:[%s4581_s11 + $0x12c] sm:$0xf0]  ;;  %v2925_v41 = vor.u32 %v3804_v32, %v2924_v31  ;;  %2128 = vmatpush.bf16.msra.mxu2 %v3197_v30  ;;  %v3009_v32 = vor.u32 %v3822_v22, %v3006_v25 }
 0x10e   : > { %v3180_v36 = vld [vmem:[%s4581_s11 + $0x220] sm:$0xf]  ;;  %v3868_v37 = vld [vmem:[%s4581_s11 + $0x22c] sm:$0xf0]  ;;  %v3053_v45 = vor.u32 %v3836_v35, %v3052_v33  ;;  %2147 = vmatpush.bf16.msra.mxu3 %v3325_v34  ;;  %v3818_v35 = vld [vmem:[%s4581_s11 + $0xa4] sm:$0xf] }
 0x10f   : > { %v3308_v38 = vld [vmem:[%s4581_s11 + $0x320] sm:$0xf]  ;;  %v3900_v39 = vld [vmem:[%s4581_s11 + $0x32c] sm:$0xf0]  ;;  %v3181_v46 = vor.u32 %v3868_v37, %v3180_v36  ;;  %2091 = vmatpush.bf16.msra.mxu0 %v2925_v41 }
 0x110   : > { %v2908_v40 = vld [vmem:[%s4581_s11] sm:$0xf]  ;;  %v3800_v42 = vld [vmem:[%s4581_s11 + $0xc] sm:$0xf0]  ;;  %v3309_v50 = vor.u32 %v3900_v39, %v3308_v38  ;;  %2110 = vmatpush.bf16.msra.mxu1 %v3053_v45  ;;  %v2990_v38 = vld [vmem:[%s4581_s11 + $0xb0] sm:$0xf0] }
 0x111   : > { %v3036_v43 = vld [vmem:[%s4581_s11 + $0x100] sm:$0xf]  ;;  %v3832_v44 = vld [vmem:[%s4581_s11 + $0x10c] sm:$0xf0]  ;;  %v2909_v58 = vor.u32 %v3800_v42, %v2908_v40  ;;  %2129 = vmatpush.bf16.msra.mxu2 %v3181_v46  ;;  %v4069_v39 = vmov 0  }
 0x112   : > { %v3164_v47 = vld [vmem:[%s4581_s11 + $0x200] sm:$0xf]  ;;  %v3864_v48 = vld [vmem:[%s4581_s11 + $0x20c] sm:$0xf0]  ;;  %v3037_v62 = vor.u32 %v3832_v44, %v3036_v43  ;;  %2148 = vmatpush.bf16.msra.mxu3 %v3309_v50  ;;  %4042 = vset.pattern.permute.xlu0 %v4069_v39  ;;  %v2880_v50 = vld [vmem:[%s5406_s0 + $0x38] sm:$0xf] }
 0x113   : > { %v3292_v49 = vld [vmem:[%s4581_s11 + $0x300] sm:$0xf]  ;;  %v3896_v51 = vld [vmem:[%s4581_s11 + $0x30c] sm:$0xf0]  ;;  %v3165_v63 = vor.u32 %v3864_v48, %v3164_v47  ;;  %2092 = vmatpush.bf16.msra.mxu0 %v2909_v58  ;;  %4043 = vset.pattern.permute.xlu1 %v4069_v39  ;;  %v3814_v47 = vld [vmem:[%s4581_s11 + $0x84] sm:$0xf]  ;;  %v2993_v48 = vor.u32 %v3818_v35, %v2990_v38 }
 0x114   : > { %v2852_v52 = vld [vmem:[%s5406_s0] sm:$0xf]  ;;  %v4012_v57 = vld [vmem:[%s4581_s11 + $0x6ac] sm:$0xf0]  ;;  %v3293_v3 = vor.u32 %v3896_v51, %v3292_v49  ;;  %2111 = vmatpush.bf16.msra.mxu1 %v3037_v62  ;;  %4044 = vset.pattern.permute.xlu2 %v4069_v39  ;;  %v2974_v49 = vld [vmem:[%s4581_s11 + $0x90] sm:$0xf0] }
 0x115   : > { %v2854_v55 = vld [vmem:[%s5406_s0 + $0x1c] sm:$0xf0]  ;;  %v3988_v61 = vld [vmem:[%s4581_s11 + $0x5ec] sm:$0xf0]  ;;  %v4678_v8 = vor.u32 %v3787_v53, %v2852_v52  ;;  %2130 = vmatpush.bf16.msra.mxu2 %v3165_v63  ;;  %v3794_v51 = vld [vmem:[%s5406_s0 + $0x50] sm:$0xf0] }
 0x116   : > { %v3756_v56 = vld [vmem:[%s4581_s11 + $0x6a0] sm:$0xf]  ;;  %v3956_v6 = vld [vmem:[%s4581_s11 + $0x4ec] sm:$0xf0]  ;;  %v4683_v13 = vor.u32 %v3784_v54, %v2854_v55  ;;  %2149 = vmatpush.bf16.msra.mxu3 %v3293_v3  ;;  %v3791_v54 = vld [vmem:[%s5406_s0 + $0x3c] sm:$0xf]  ;;  %v2977_v3 = vor.u32 %v3814_v47, %v2974_v49 }
 0x117   : > { %v3660_v60 = vld [vmem:[%s4581_s11 + $0x5e0] sm:$0xf]  ;;  %v3757_v4 = vor.u32 %v4012_v57, %v3756_v56  ;;  %v4008_v12 = vld [vmem:[%s4581_s11 + $0x68c] sm:$0xf0]  ;;  %2093 = vmatmul.bf16.vlgmr.msra.gmra.mxu0 %v4678_v8  ;;  %v2882_v55 = vld [vmem:[%s5406_s0 + $0x54] sm:$0xf0] }
 0x118   : > { %v3532_v5 = vld [vmem:[%s4581_s11 + $0x4e0] sm:$0xf]  ;;  %v3661_v9 = vor.u32 %v3988_v61, %v3660_v60  ;;  %v3984_v16 = vld [vmem:[%s4581_s11 + $0x5cc] sm:$0xf0]  ;;  %2112 = vmatmul.bf16.vlgmr.msra.gmra.mxu1 %v4683_v13  ;;  %2131 = vmatmul.bf16.vlgmr.msra.gmra.mxu2 %v4685_v14  ;;  %v3795_v57 = vld [vmem:[%s5406_s0 + $0x58] sm:$0xf0] }
 0x119   : > { %v3740_v11 = vld [vmem:[%s4581_s11 + $0x680] sm:$0xf]  ;;  %v3533_v18 = vor.u32 %v3956_v6, %v3532_v5  ;;  %2201 = vmatpush.bf16.msrb.mxu2 %v3757_v4  ;;  %v3952_v21 = vld [vmem:[%s4581_s11 + $0x4cc] sm:$0xf0]  ;;  %2150 = vmatmul.bf16.vlgmr.msra.gmra.mxu3 %v4689_v17  ;;  %v3792_v60 = vld [vmem:[%s5406_s0 + $0x44] sm:$0xf] }
 0x11a   : > { %v3644_v15 = vld [vmem:[%s4581_s11 + $0x5c0] sm:$0xf]  ;;  %v3741_v23 = vor.u32 %v4008_v12, %v3740_v11  ;;  %2180 = vmatpush.bf16.msrb.mxu1 %v3661_v9  ;;  %v4004_v27 = vld [vmem:[%s4581_s11 + $0x66c] sm:$0xf0]  ;;  %2218 = vmatpush.bf16.msrb.mxu3 %v3025_v19  ;;  %v3810_v6 = vld [vmem:[%s4581_s11 + $0x64] sm:$0xf]  ;;  %v4755_v9 = vor.u32 %v3794_v51, %v2880_v50 }
 0x11b   : > { %v3516_v20 = vld [vmem:[%s4581_s11 + $0x4c0] sm:$0xf]  ;;  %v3645_v24 = vor.u32 %v3984_v16, %v3644_v15  ;;  %v3980_v29 = vld [vmem:[%s4581_s11 + $0x5ac] sm:$0xf0]  ;;  %2161 = vmatpush.bf16.msrb.mxu0 %v3533_v18  ;;  %v2958_v11 = vld [vmem:[%s4581_s11 + $0x70] sm:$0xf0]  ;;  %v4760_v16 = vor.u32 %v3791_v54, %v2882_v55 }
 0x11c   : > { %v3724_v26 = vld [vmem:[%s4581_s11 + $0x660] sm:$0xf]  ;;  %v3517_v30 = vor.u32 %v3952_v21, %v3516_v20  ;;  %v3948_v34 = vld [vmem:[%s4581_s11 + $0x4ac] sm:$0xf0]  ;;  %v3374_v49 = vld [vmem:[%s4581_s11 + $0x3b0] sm:$0xf0] }
 0x11d   : > { %v3628_v28 = vld [vmem:[%s4581_s11 + $0x5a0] sm:$0xf]  ;;  %2202 = vmatpush.bf16.msrb.mxu2 %v3741_v23  ;;  %v3725_v36 = vor.u32 %v4004_v27, %v3724_v26  ;;  %v4000_v41 = vld [vmem:[%s4581_s11 + $0x64c] sm:$0xf0]  ;;  %v2961_v23 = vor.u32 %v3810_v6, %v2958_v11  ;;  %v3922_v27 = vld [vmem:[%s4581_s11 + $0x3e4] sm:$0xf] }
 0x11e   : > { %v904_v31 = vld [vmem:[%s5408_s2] sm:$0xff]  ;;  %2181 = vmatpush.bf16.msrb.mxu1 %v3645_v24  ;;  %v3629_v37 = vor.u32 %v3980_v29, %v3628_v28  ;;  %v3976_v43 = vld [vmem:[%s4581_s11 + $0x58c] sm:$0xf0]  ;;  %2219 = vmatpush.bf16.msrb.mxu3 %v3009_v32  ;;  %v3786_v6 = vld [vmem:[%s5406_s0 + $0x14] sm:$0xf] }
 0x11f   : > { %v3500_v33 = vld [vmem:[%s4581_s11 + $0x4a0] sm:$0xf]  ;;  %910 = vperm.xlu0 %4042, %v904_v31   ;;  %2162 = vmatpush.bf16.msrb.mxu0 %v3517_v30  ;;  %v3944_v46 = vld [vmem:[%s4581_s11 + $0x48c] sm:$0xf0]  ;;  %v3806_v29 = vld [vmem:[%s4581_s11 + $0x44] sm:$0xf] }
 0x120   : > { %v3708_v40 = vld [vmem:[%s4581_s11 + $0x640] sm:$0xf]  ;;  %v3501_v44 = vor.u32 %v3948_v34, %v3500_v33  ;;  %v3996_v59 = vld [vmem:[%s4581_s11 + $0x62c] sm:$0xf0]  ;;  %v2942_v30 = vld [vmem:[%s4581_s11 + $0x50] sm:$0xf0] }
 0x121   : > { %v3612_v42 = vld [vmem:[%s4581_s11 + $0x580] sm:$0xf]  ;;  %2203 = vmatpush.bf16.msrb.mxu2 %v3725_v36  ;;  %v3709_v52 = vor.u32 %v4000_v41, %v3708_v40  ;;  %v3972_v62 = vld [vmem:[%s4581_s11 + $0x56c] sm:$0xf0]  ;;  %v3406_v31 = vld [vmem:[%s4581_s11 + $0x3f0] sm:$0xf0]  ;;  %v2945_v38 = vor.u32 %v3806_v29, %v2942_v30 }
 0x122   : > { %v3484_v45 = vld [vmem:[%s4581_s11 + $0x480] sm:$0xf]  ;;  %2182 = vmatpush.bf16.msrb.mxu1 %v3629_v37  ;;  %v3613_v53 = vor.u32 %v3976_v43, %v3612_v42  ;;  %v906_v2 = vld [vmem:[%s5408_s2 + $0x10] sm:$0xff]  ;;  %2220 = vmatpush.bf16.msrb.mxu3 %v2993_v48  ;;  %v3409_v34 = vor.u32 %v3922_v27, %v3406_v31  ;;  %v907_v36 = vld [vmem:[%s5408_s2 + $0x18] sm:$0xff] }
 0x123   : > { %v2888_v56 = vld [vmem:[%s5406_s0 + $0x40] sm:$0xf]  ;;  %2163 = vmatpush.bf16.msrb.mxu0 %v3501_v44  ;;  %v3485_v63 = vor.u32 %v3944_v46, %v3484_v45  ;;  %v3940_v5 = vld [vmem:[%s4581_s11 + $0x46c] sm:$0xf0]  ;;  %920 = vperm.xlu1 %4043, %v906_v2   ;;  %v3918_v37 = vld [vmem:[%s4581_s11 + $0x3c4] sm:$0xf] }
 0x124   : > { %v3692_v58 = vld [vmem:[%s4581_s11 + $0x620] sm:$0xf]  ;;  %v3992_v15 = vld [vmem:[%s4581_s11 + $0x60c] sm:$0xf0]  ;;  %v4762_v18 = vor.u32 %v3795_v57, %v2888_v56  ;;  %v3390_v41 = vld [vmem:[%s4581_s11 + $0x3d0] sm:$0xf0] }
 0x125   : > { %v3596_v61 = vld [vmem:[%s4581_s11 + $0x560] sm:$0xf]  ;;  %2204 = vmatpush.bf16.msrb.mxu2 %v3709_v52  ;;  %v3693_v7 = vor.u32 %v3996_v59, %v3692_v58  ;;  %v3968_v20 = vld [vmem:[%s4581_s11 + $0x54c] sm:$0xf0]  ;;  %v3802_v43 = vld [vmem:[%s4581_s11 + $0x24] sm:$0xf]  ;;  %v3393_v46 = vor.u32 %v3918_v37, %v3390_v41 }
 0x126   : > { %v2890_v0 = vld [vmem:[%s5406_s0 + $0x5c] sm:$0xf0]  ;;  %2183 = vmatpush.bf16.msrb.mxu1 %v3613_v53  ;;  %v3597_v10 = vor.u32 %v3972_v62, %v3596_v61  ;;  %2221 = vmatpush.bf16.msrb.mxu3 %v2977_v3  ;;  %v3936_v25 = vld [vmem:[%s4581_s11 + $0x44c] sm:$0xf0]  ;;  %v2926_v44 = vld [vmem:[%s4581_s11 + $0x30] sm:$0xf0] }
 0x127   : > { %v3468_v4 = vld [vmem:[%s4581_s11 + $0x460] sm:$0xf]  ;;  %915 = vperm.xlu0 %4042, %v905_v1   ;;  %2164 = vmatpush.bf16.msrb.mxu0 %v3485_v63  ;;  %v4766_v21 = vor.u32 %v3792_v60, %v2890_v0  ;;  %v3964_v33 = vld [vmem:[%s4581_s11 + $0x52c] sm:$0xf0]  ;;  %v3914_v48 = vld [vmem:[%s4581_s11 + $0x3a4] sm:$0xf]  ;;  %v2929_v54 = vor.u32 %v3802_v43, %v2926_v44 }
 0x128   : > { %v3676_v12 = vld [vmem:[%s4581_s11 + $0x600] sm:$0xf]  ;;  %v3469_v22 = vor.u32 %v3940_v5, %v3468_v4  ;;  %2098 = vmatmul.bf16.gmra.mxu0 %v4755_v9  ;;  %2117 = vmatmul.bf16.gmra.mxu1 %v4760_v16  ;;  %v3932_v40 = vld [vmem:[%s4581_s11 + $0x42c] sm:$0xf0]  ;;  %v3890_v52 = vld [vmem:[%s4581_s11 + $0x2e4] sm:$0xf]  ;;  %v3377_v0 = vor.u32 %v3914_v48, %v3374_v49 }
 0x129   : > { %v3580_v19 = vld [vmem:[%s4581_s11 + $0x540] sm:$0xf]  ;;  %2205 = vmatpush.bf16.msrb.mxu2 %v3693_v7  ;;  %v3677_v26 = vor.u32 %v3992_v15, %v3676_v12  ;;  %2155 = vmatmul.bf16.gmra.mxu3 %v4766_v21  ;;  %v3960_v47 = vld [vmem:[%s4581_s11 + $0x50c] sm:$0xf0]  ;;  %v3278_v53 = vld [vmem:[%s4581_s11 + $0x2f0] sm:$0xf0] }
 0x12a   : > { %v3452_v24 = vld [vmem:[%s4581_s11 + $0x440] sm:$0xf]  ;;  %2184 = vmatpush.bf16.msrb.mxu1 %v3597_v10  ;;  %v3581_v28 = vor.u32 %v3968_v20, %v3580_v19  ;;  %2136 = vmatmul.bf16.gmra.mxu2 %v4762_v18  ;;  %v3928_v55 = vld [vmem:[%s4581_s11 + $0x40c] sm:$0xf0]  ;;  %v3798_v56 = vld [vmem:[%s4581_s11 + $0x4] sm:$0xf]  ;;  %v3281_v1 = vor.u32 %v3890_v52, %v3278_v53 }
 0x12b   : > { %v3564_v32 = vld [vmem:[%s4581_s11 + $0x520] sm:$0xf]  ;;  %2165 = vmatpush.bf16.msrb.mxu0 %v3469_v22  ;;  %v3453_v35 = vor.u32 %v3936_v25, %v3452_v24  ;;  %2222 = vmatpush.bf16.msrb.mxu3 %v2961_v23  ;;  %v2910_v57 = vld [vmem:[%s4581_s11 + $0x10] sm:$0xf0]  ;;  %v2868_v59 = vld [vmem:[%s5406_s0 + $0x10] sm:$0xf] }
 0x12c   : > { %v3436_v39 = vld [vmem:[%s4581_s11 + $0x420] sm:$0xf]  ;;  %v3565_v42 = vor.u32 %v3964_v33, %v3564_v32  ;;  %925 = vperm.xlu1 %4043, %v907_v36   ;;  %v3789_v60 = vld [vmem:[%s5406_s0 + $0x28] sm:$0xf0]  ;;  %v3858_v61 = vld [vmem:[%s4581_s11 + $0x1e4] sm:$0xf]  ;;  %v2913_v11 = vor.u32 %v3798_v56, %v2910_v57 }
 0x12d   : > { %2206 = vmatpush.bf16.msrb.mxu2 %v3677_v26  ;;  %v3548_v45 = vld [vmem:[%s4581_s11 + $0x500] sm:$0xf]  ;;  %v3437_v50 = vor.u32 %v3932_v40, %v3436_v39  ;;  %v3150_v62 = vld [vmem:[%s4581_s11 + $0x1f0] sm:$0xf0]  ;;  %v3954_v63 = vld [vmem:[%s4581_s11 + $0x4e4] sm:$0xf]  ;;  %v4828_v27 = vor.u32 %v3789_v60, %v2868_v59 }
 0x12e   : > { %2185 = vmatpush.bf16.msrb.mxu1 %v3581_v28  ;;  %v3420_v51 = vld [vmem:[%s4581_s11 + $0x400] sm:$0xf]  ;;  %v3549_v58 = vor.u32 %v3960_v47, %v3548_v45  ;;  %v3534_v2 = vld [vmem:[%s4581_s11 + $0x4f0] sm:$0xf0]  ;;  %v3910_v3 = vld [vmem:[%s4581_s11 + $0x384] sm:$0xf]  ;;  %v3153_v15 = vor.u32 %v3858_v61, %v3150_v62 }
 0x12f   : > { %2166 = vmatpush.bf16.msrb.mxu0 %v3453_v35  ;;  %2223 = vmatpush.bf16.msrb.mxu3 %v2945_v38  ;;  %v3358_v4 = vld [vmem:[%s4581_s11 + $0x390] sm:$0xf0]  ;;  %v3421_v5 = vor.u32 %v3928_v55, %v3420_v51  ;;  %v2870_v7 = vld [vmem:[%s5406_s0 + $0x2c] sm:$0xf0]  ;;  %v2876_v10 = vld [vmem:[%s5406_s0 + $0x18] sm:$0xf]  ;;  %v3537_v22 = vor.u32 %v3954_v63, %v3534_v2 }
 0x130   : > { %v3790_v12 = vld [vmem:[%s5406_s0 + $0x30] sm:$0xf0]  ;;  %v3854_v19 = vld [vmem:[%s4581_s11 + $0x1c4] sm:$0xf]  ;;  %v3361_v26 = vor.u32 %v3910_v3, %v3358_v4  ;;  %v4830_v28 = vor.u32 %v3786_v6, %v2870_v7  ;;  %v3793_v3 = vld [vmem:[%s5406_s0 + $0x4c] sm:$0xf] }
 0x131   : > { %2275 = vmatpush.bf16.msra.mxu2 %v3409_v34  ;;  %v3134_v20 = vld [vmem:[%s4581_s11 + $0x1d0] sm:$0xf0]  ;;  %v3886_v23 = vld [vmem:[%s4581_s11 + $0x2c4] sm:$0xf]  ;;  %v4835_v32 = vor.u32 %v3790_v12, %v2876_v10  ;;  %v2636_v7 = vld [vmem:[%s5409_s3 + $0x18] sm:$0xff] }
 0x132   : > { %2186 = vmatpush.bf16.msrb.mxu1 %v3565_v42  ;;  %v3262_v24 = vld [vmem:[%s4581_s11 + $0x2d0] sm:$0xf0]  ;;  %v3950_v25 = vld [vmem:[%s4581_s11 + $0x4c4] sm:$0xf]  ;;  %v3137_v33 = vor.u32 %v3854_v19, %v3134_v20  ;;  %v2904_v19 = vld [vmem:[%s5406_s0 + $0x50] sm:$0xf] }
 0x133   : > { %2167 = vmatpush.bf16.msrb.mxu0 %v3437_v50  ;;  %2224 = vmatpush.bf16.msrb.mxu3 %v2929_v54  ;;  %v3518_v29 = vld [vmem:[%s4581_s11 + $0x4d0] sm:$0xf0]  ;;  %v3906_v30 = vld [vmem:[%s4581_s11 + $0x364] sm:$0xf]  ;;  %v3265_v34 = vor.u32 %v3886_v23, %v3262_v24  ;;  %v2674_v20 = vld [vmem:[%s5410_s4 + $0x8] sm:$0xff] }
 0x134   : > { %v3342_v31 = vld [vmem:[%s4581_s11 + $0x370] sm:$0xf0]  ;;  %v3850_v35 = vld [vmem:[%s4581_s11 + $0x1a4] sm:$0xf]  ;;  %v3521_v37 = vor.u32 %v3950_v25, %v3518_v29  ;;  %2654 = vperm.xlu1 %4043, %v2636_v7  }
 0x135   : > { %2276 = vmatpush.bf16.msra.mxu2 %v3393_v46  ;;  %v3118_v36 = vld [vmem:[%s4581_s11 + $0x1b0] sm:$0xf0]  ;;  %v3882_v38 = vld [vmem:[%s4581_s11 + $0x2a4] sm:$0xf]  ;;  %v3345_v41 = vor.u32 %v3906_v30, %v3342_v31 }
 0x136   : > { %2187 = vmatpush.bf16.msrb.mxu1 %v3549_v58  ;;  %v3246_v39 = vld [vmem:[%s4581_s11 + $0x2b0] sm:$0xf0]  ;;  %v3946_v40 = vld [vmem:[%s4581_s11 + $0x4a4] sm:$0xf]  ;;  %v3121_v46 = vor.u32 %v3850_v35, %v3118_v36 }
 0x137   : > { %2168 = vmatpush.bf16.msrb.mxu0 %v3421_v5  ;;  %2225 = vmatpush.bf16.msrb.mxu3 %v2913_v11  ;;  %v3502_v42 = vld [vmem:[%s4581_s11 + $0x4b0] sm:$0xf0]  ;;  %v3902_v43 = vld [vmem:[%s4581_s11 + $0x344] sm:$0xf]  ;;  %v3249_v47 = vor.u32 %v3882_v38, %v3246_v39  ;;  %v3028_v38 = vld [vmem:[%s4581_s11 + $0xe8] sm:$0xf] }
 0x138   : > { %v3326_v44 = vld [vmem:[%s4581_s11 + $0x350] sm:$0xf0]  ;;  %v3846_v48 = vld [vmem:[%s4581_s11 + $0x184] sm:$0xf]  ;;  %v3505_v50 = vor.u32 %v3946_v40, %v3502_v42  ;;  %v3829_v39 = vld [vmem:[%s4581_s11 + $0xf4] sm:$0xf0] }
 0x139   : > { %2277 = vmatpush.bf16.msra.mxu2 %v3377_v0  ;;  %2188 = vmatmul.bf16.vlgmr.msrb.gmra.mxu1 %v4830_v28  ;;  %v2635_v45 = vld [vmem:[%s5409_s3 + $0x10] sm:$0xff]  ;;  %v3878_v51 = vld [vmem:[%s4581_s11 + $0x284] sm:$0xf]  ;;  %v3329_v54 = vor.u32 %v3902_v43, %v3326_v44 }
 0x13a   : > { %2256 = vmatpush.bf16.msra.mxu1 %v3281_v1  ;;  %2169 = vmatmul.bf16.vlgmr.msrb.gmra.mxu0 %v4828_v27  ;;  %v3102_v49 = vld [vmem:[%s4581_s11 + $0x190] sm:$0xf0]  ;;  %v3942_v53 = vld [vmem:[%s4581_s11 + $0x484] sm:$0xf]  ;;  %v2896_v1 = vld [vmem:[%s5406_s0 + $0x48] sm:$0xf] }
 0x13b   : > { %2237 = vmatpush.bf16.msra.mxu0 %v3153_v15  ;;  %2294 = vmatpush.bf16.msra.mxu3 %v3537_v22  ;;  %v3230_v52 = vld [vmem:[%s4581_s11 + $0x290] sm:$0xf0]  ;;  %v3898_v56 = vld [vmem:[%s4581_s11 + $0x324] sm:$0xf]  ;;  %v3105_v59 = vor.u32 %v3846_v48, %v3102_v49  ;;  %v2898_v15 = vld [vmem:[%s5406_s0 + $0x64] sm:$0xf0]  ;;  %v3029_v49 = vor.u32 %v3829_v39, %v3028_v38 }
 0x13c   : > { %3770 = vmatmul.msk.bf16.vlgmr.msrb.gmra.mxu2 %vm2078_vm0, %v4835_v32  ;;  %2226 = vmatmul.bf16.vlgmr.msrb.gmra.mxu3 %v4678_v8  ;;  %v3486_v55 = vld [vmem:[%s4581_s11 + $0x490] sm:$0xf0]  ;;  %v3842_v58 = vld [vmem:[%s4581_s11 + $0x164] sm:$0xf]  ;;  %v3233_v60 = vor.u32 %v3878_v51, %v3230_v52  ;;  %v3797_v22 = vld [vmem:[%s5406_s0 + $0x68] sm:$0xf0]  ;;  %v4903_v36 = vor.u32 %v3793_v3, %v2898_v15 }
 0x13d   : > { %2278 = vmatpush.bf16.msra.mxu2 %v3361_v26  ;;  %2649 = vperm.xlu0 %4042, %v2635_v45   ;;  %v3310_v57 = vld [vmem:[%s4581_s11 + $0x330] sm:$0xf0]  ;;  %v3874_v62 = vld [vmem:[%s4581_s11 + $0x264] sm:$0xf]  ;;  %v3489_v0 = vor.u32 %v3942_v53, %v3486_v55  ;;  %v4908_v40 = vor.u32 %v3797_v22, %v2904_v19  ;;  %v3012_v51 = vld [vmem:[%s4581_s11 + $0xc8] sm:$0xf] }
 0x13e   : > { %2257 = vmatpush.bf16.msra.mxu1 %v3265_v34  ;;  %v3086_v61 = vld [vmem:[%s4581_s11 + $0x170] sm:$0xf0]  ;;  %v2633_v63 = vld [vmem:[%s5409_s3] sm:$0xff]  ;;  %v3313_v6 = vor.u32 %v3898_v56, %v3310_v57  ;;  %v3825_v52 = vld [vmem:[%s4581_s11 + $0xd4] sm:$0xf0] }
 0x13f   : > { %2238 = vmatpush.bf16.msra.mxu0 %v3137_v33  ;;  %2295 = vmatpush.bf16.msra.mxu3 %v3521_v37  ;;  %v3796_v2 = vld [vmem:[%s5406_s0 + $0x60] sm:$0xf0]  ;;  %v3214_v4 = vld [vmem:[%s4581_s11 + $0x270] sm:$0xf0]  ;;  %v3089_v23 = vor.u32 %v3842_v58, %v3086_v61  ;;  %v2634_v53 = vld [vmem:[%s5409_s3 + $0x8] sm:$0xff] }
 0x140   : > { %v3938_v5 = vld [vmem:[%s4581_s11 + $0x464] sm:$0xf]  ;;  %v3470_v10 = vld [vmem:[%s4581_s11 + $0x470] sm:$0xf0]  ;;  %2639 = vperm.xlu2 %4044, %v2633_v63   ;;  %v3217_v24 = vor.u32 %v3874_v62, %v3214_v4  ;;  %v4901_v35 = vor.u32 %v3796_v2, %v2896_v1  ;;  %v3156_v3 = vld [vmem:[%s4581_s11 + $0x1e8] sm:$0xf] }
 0x141   : > { %2279 = vmatpush.bf16.msra.mxu2 %v3345_v41  ;;  %v3894_v11 = vld [vmem:[%s4581_s11 + $0x304] sm:$0xf]  ;;  %v3294_v12 = vld [vmem:[%s4581_s11 + $0x310] sm:$0xf0]  ;;  %v3473_v29 = vor.u32 %v3938_v5, %v3470_v10  ;;  %v3861_v4 = vld [vmem:[%s4581_s11 + $0x1f4] sm:$0xf0] }
 0x142   : > { %2258 = vmatpush.bf16.msra.mxu1 %v3249_v47  ;;  %v3838_v25 = vld [vmem:[%s4581_s11 + $0x144] sm:$0xf]  ;;  %v3070_v26 = vld [vmem:[%s4581_s11 + $0x150] sm:$0xf0]  ;;  %v3297_v34 = vor.u32 %v3894_v11, %v3294_v12  ;;  %v2996_v11 = vld [vmem:[%s4581_s11 + $0xa8] sm:$0xf] }
 0x143   : > { %2239 = vmatpush.bf16.msra.mxu0 %v3121_v46  ;;  %2296 = vmatpush.bf16.msra.mxu3 %v3505_v50  ;;  %v3870_v30 = vld [vmem:[%s4581_s11 + $0x244] sm:$0xf]  ;;  %v3198_v31 = vld [vmem:[%s4581_s11 + $0x250] sm:$0xf0]  ;;  %v3073_v41 = vor.u32 %v3838_v25, %v3070_v26  ;;  %v3821_v12 = vld [vmem:[%s4581_s11 + $0xb4] sm:$0xf0] }
 0x144   : > { %v3934_v33 = vld [vmem:[%s4581_s11 + $0x444] sm:$0xf]  ;;  %v3454_v37 = vld [vmem:[%s4581_s11 + $0x450] sm:$0xf0]  ;;  %v3201_v42 = vor.u32 %v3870_v30, %v3198_v31  ;;  %v2997_v25 = vor.u32 %v3821_v12, %v2996_v11  ;;  %v3140_v26 = vld [vmem:[%s4581_s11 + $0x1c8] sm:$0xf] }
 0x145   : > { %2280 = vmatpush.bf16.msra.mxu2 %v3329_v54  ;;  %2684 = vperm.xlu0 %4042, %v2674_v20   ;;  %v3834_v43 = vld [vmem:[%s4581_s11 + $0x124] sm:$0xf]  ;;  %v3054_v44 = vld [vmem:[%s4581_s11 + $0x130] sm:$0xf0]  ;;  %v3457_v45 = vor.u32 %v3934_v33, %v3454_v37  ;;  %v3157_v20 = vor.u32 %v3861_v4, %v3156_v3  ;;  %v2980_v39 = vld [vmem:[%s4581_s11 + $0x88] sm:$0xf] }
 0x146   : > { %2259 = vmatpush.bf16.msra.mxu1 %v3233_v60  ;;  %v3866_v46 = vld [vmem:[%s4581_s11 + $0x224] sm:$0xf]  ;;  %v3182_v47 = vld [vmem:[%s4581_s11 + $0x230] sm:$0xf0]  ;;  %v3057_v55 = vor.u32 %v3834_v43, %v3054_v44  ;;  %v3124_v43 = vld [vmem:[%s4581_s11 + $0x1a8] sm:$0xf] }
 0x147   : > { %2240 = vmatpush.bf16.msra.mxu0 %v3105_v59  ;;  %2297 = vmatpush.bf16.msra.mxu3 %v3489_v0  ;;  %v3930_v48 = vld [vmem:[%s4581_s11 + $0x424] sm:$0xf]  ;;  %v3438_v50 = vld [vmem:[%s4581_s11 + $0x430] sm:$0xf0]  ;;  %v3185_v56 = vor.u32 %v3866_v46, %v3182_v47  ;;  %v3013_v0 = vor.u32 %v3825_v52, %v3012_v51  ;;  %v3853_v44 = vld [vmem:[%s4581_s11 + $0x1b4] sm:$0xf0] }
 0x148   : > { %v2675_v54 = vld [vmem:[%s5410_s4 + $0x10] sm:$0xff]  ;;  %v3830_v57 = vld [vmem:[%s4581_s11 + $0x104] sm:$0xf]  ;;  %v3441_v60 = vor.u32 %v3930_v48, %v3438_v50  ;;  %2644 = vperm.xlu2 %4044, %v2634_v53   ;;  %v2964_v52 = vld [vmem:[%s4581_s11 + $0x68] sm:$0xf] }
 0x149   : > { %2281 = vmatpush.bf16.msra.mxu2 %v3313_v6  ;;  %2193 = vmatmul.bf16.gmra.mxu1 %v4903_v36  ;;  %v3038_v58 = vld [vmem:[%s4581_s11 + $0x110] sm:$0xf0]  ;;  %v3862_v59 = vld [vmem:[%s4581_s11 + $0x204] sm:$0xf]  ;;  %v3813_v53 = vld [vmem:[%s4581_s11 + $0x74] sm:$0xf0] }
 0x14a   : > { %2260 = vmatpush.bf16.msra.mxu1 %v3217_v24  ;;  %2174 = vmatmul.bf16.gmra.mxu0 %v4901_v35  ;;  %v3166_v61 = vld [vmem:[%s4581_s11 + $0x210] sm:$0xf0]  ;;  %v3926_v62 = vld [vmem:[%s4581_s11 + $0x404] sm:$0xf]  ;;  %v3041_v7 = vor.u32 %v3830_v57, %v3038_v58  ;;  %v3092_v4 = vld [vmem:[%s4581_s11 + $0x168] sm:$0xf] }
 0x14b   : > { %2241 = vmatpush.bf16.msra.mxu0 %v3089_v23  ;;  %2298 = vmatpush.bf16.msra.mxu3 %v3473_v29  ;;  %v3422_v63 = vld [vmem:[%s4581_s11 + $0x410] sm:$0xf0]  ;;  %v3986_v1 = vld [vmem:[%s4581_s11 + $0x5e4] sm:$0xf]  ;;  %v3169_v10 = vor.u32 %v3862_v59, %v3166_v61  ;;  %v3857_v29 = vld [vmem:[%s4581_s11 + $0x1d4] sm:$0xf0] }
 0x14c   : > { %3771 = vmatmul.msk.bf16.gmra.mxu2 %vm2078_vm0, %v4908_v40  ;;  %2231 = vmatmul.bf16.gmra.mxu3 %v4755_v9  ;;  %v3662_v2 = vld [vmem:[%s4581_s11 + $0x5f0] sm:$0xf0]  ;;  %v4010_v5 = vld [vmem:[%s4581_s11 + $0x6a4] sm:$0xf]  ;;  %v3425_v15 = vor.u32 %v3926_v62, %v3422_v63 }
 0x14d   : > { %2282 = vmatpush.bf16.msra.mxu2 %v3297_v34  ;;  %2689 = vperm.xlu1 %4043, %v2675_v54   ;;  %v3758_v6 = vld [vmem:[%s4581_s11 + $0x6b0] sm:$0xf0]  ;;  %v3665_v19 = vor.u32 %v3986_v1, %v3662_v2  ;;  %v3982_v23 = vld [vmem:[%s4581_s11 + $0x5c4] sm:$0xf]  ;;  %v3125_v54 = vor.u32 %v3853_v44, %v3124_v43  ;;  %v3809_v1 = vld [vmem:[%s4581_s11 + $0x54] sm:$0xf0] }
 0x14e   : > { %2261 = vmatpush.bf16.msra.mxu1 %v3201_v42  ;;  %v3761_v22 = vor.u32 %v4010_v5, %v3758_v6  ;;  %v3646_v24 = vld [vmem:[%s4581_s11 + $0x5d0] sm:$0xf0]  ;;  %v2673_v30 = vld [vmem:[%s5410_s4] sm:$0xff]  ;;  %v3141_v42 = vor.u32 %v3857_v29, %v3140_v26  ;;  %v2676_v2 = vld [vmem:[%s5410_s4 + $0x18] sm:$0xff] }
 0x14f   : > { %2242 = vmatpush.bf16.msra.mxu0 %v3073_v41  ;;  %2299 = vmatpush.bf16.msra.mxu3 %v3457_v45  ;;  %v3649_v31 = vor.u32 %v3982_v23, %v3646_v24  ;;  %v3978_v33 = vld [vmem:[%s4581_s11 + $0x5a4] sm:$0xf]  ;;  %v3742_v37 = vld [vmem:[%s4581_s11 + $0x690] sm:$0xf0]  ;;  %v3817_v41 = vld [vmem:[%s4581_s11 + $0x94] sm:$0xf0] }
 0x150   : > { %v4006_v34 = vld [vmem:[%s4581_s11 + $0x684] sm:$0xf]  ;;  %v3630_v38 = vld [vmem:[%s4581_s11 + $0x5b0] sm:$0xf0]  ;;  %2679 = vperm.xlu2 %4044, %v2673_v30   ;;  %v2981_v47 = vor.u32 %v3817_v41, %v2980_v39  ;;  %v3845_v5 = vld [vmem:[%s4581_s11 + $0x174] sm:$0xf0] }
 0x151   : > { %2351 = vmatpush.bf16.msrb.mxu2 %v3029_v49  ;;  %v3745_v45 = vor.u32 %v4006_v34, %v3742_v37  ;;  %v3633_v46 = vor.u32 %v3978_v33, %v3630_v38  ;;  %v3974_v48 = vld [vmem:[%s4581_s11 + $0x584] sm:$0xf]  ;;  %v3726_v50 = vld [vmem:[%s4581_s11 + $0x670] sm:$0xf0]  ;;  %v3093_v23 = vor.u32 %v3845_v5, %v3092_v4  ;;  %v3076_v24 = vld [vmem:[%s4581_s11 + $0x148] sm:$0xf] }
 0x152   : > { %2262 = vmatpush.bf16.msra.mxu1 %v3185_v56  ;;  %v4002_v49 = vld [vmem:[%s4581_s11 + $0x664] sm:$0xf]  ;;  %v3614_v51 = vld [vmem:[%s4581_s11 + $0x590] sm:$0xf0]  ;;  %v3849_v56 = vld [vmem:[%s4581_s11 + $0x194] sm:$0xf0] }
 0x153   : > { %2243 = vmatpush.bf16.msra.mxu0 %v3057_v55  ;;  %2300 = vmatpush.bf16.msra.mxu3 %v3441_v60  ;;  %v3108_v55 = vld [vmem:[%s4581_s11 + $0x188] sm:$0xf]  ;;  %v3729_v57 = vor.u32 %v4002_v49, %v3726_v50  ;;  %v3970_v58 = vld [vmem:[%s4581_s11 + $0x564] sm:$0xf]  ;;  %v3617_v59 = vor.u32 %v3974_v48, %v3614_v51  ;;  %v2965_v60 = vor.u32 %v3813_v53, %v2964_v52  ;;  %v3598_v61 = vld [vmem:[%s4581_s11 + $0x570] sm:$0xf0] }
 0x154   : > { %v3998_v62 = vld [vmem:[%s4581_s11 + $0x644] sm:$0xf]  ;;  %v3710_v63 = vld [vmem:[%s4581_s11 + $0x650] sm:$0xf0]  ;;  %v3109_v3 = vor.u32 %v3849_v56, %v3108_v55  ;;  %v2916_v38 = vld [vmem:[%s4581_s11 + $0x8] sm:$0xf] }
 0x155   : > { %2352 = vmatpush.bf16.msrb.mxu2 %v3013_v0  ;;  %v2948_v0 = vld [vmem:[%s4581_s11 + $0x48] sm:$0xf]  ;;  %v3713_v6 = vor.u32 %v3998_v62, %v3710_v63  ;;  %v3966_v11 = vld [vmem:[%s4581_s11 + $0x544] sm:$0xf]  ;;  %v3566_v33 = vld [vmem:[%s4581_s11 + $0x530] sm:$0xf0] }
 0x156   : > { %2263 = vmatpush.bf16.msra.mxu1 %v3169_v10  ;;  %v2949_v10 = vor.u32 %v3809_v1, %v2948_v0  ;;  %v3994_v12 = vld [vmem:[%s4581_s11 + $0x624] sm:$0xf]  ;;  %v3678_v37 = vld [vmem:[%s4581_s11 + $0x610] sm:$0xf0]  ;;  %v3801_v39 = vld [vmem:[%s4581_s11 + $0x14] sm:$0xf0] }
 0x157   : > { %2244 = vmatpush.bf16.msra.mxu0 %v3041_v7  ;;  %2301 = vmatpush.bf16.msra.mxu3 %v3425_v15  ;;  %v3601_v7 = vor.u32 %v3970_v58, %v3598_v61  ;;  %v3694_v15 = vld [vmem:[%s4581_s11 + $0x630] sm:$0xf0]  ;;  %v3962_v26 = vld [vmem:[%s4581_s11 + $0x524] sm:$0xf]  ;;  %v3540_v41 = vld [vmem:[%s4581_s11 + $0x4e8] sm:$0xf]  ;;  %v2917_v50 = vor.u32 %v3801_v39, %v2916_v38 }
 0x158   : > { %2694 = vperm.xlu2 %4044, %v2676_v2   ;;  %v3697_v29 = vor.u32 %v3994_v12, %v3694_v15  ;;  %v3990_v34 = vld [vmem:[%s4581_s11 + $0x604] sm:$0xf]  ;;  %v3412_v43 = vld [vmem:[%s4581_s11 + $0x3e8] sm:$0xf]  ;;  %v3925_v44 = vld [vmem:[%s4581_s11 + $0x3f4] sm:$0xf0] }
 0x159   : > { %2353 = vmatpush.bf16.msrb.mxu2 %v2997_v25  ;;  %2264 = vmatmul.bf16.vlgmr.msra.gmra.mxu1 %v4685_v14  ;;  %v3841_v25 = vld [vmem:[%s4581_s11 + $0x154] sm:$0xf0]  ;;  %v3060_v48 = vld [vmem:[%s4581_s11 + $0x128] sm:$0xf]  ;;  %v3958_v51 = vld [vmem:[%s4581_s11 + $0x504] sm:$0xf]  ;;  %v3413_v55 = vor.u32 %v3925_v44, %v3412_v43 }
 0x15a   : > { %2334 = vmatpush.bf16.msrb.mxu1 %v3761_v22  ;;  %2245 = vmatmul.bf16.vlgmr.msra.gmra.mxu0 %v4683_v13  ;;  %v3805_v22 = vld [vmem:[%s4581_s11 + $0x34] sm:$0xf0]  ;;  %v3550_v52 = vld [vmem:[%s4581_s11 + $0x510] sm:$0xf0]  ;;  %v3044_v63 = vld [vmem:[%s4581_s11 + $0x108] sm:$0xf] }
 0x15b   : > { %2313 = vmatpush.bf16.msrb.mxu0 %v3665_v19  ;;  %2370 = vmatpush.bf16.msrb.mxu3 %v3157_v20  ;;  %v3582_v19 = vld [vmem:[%s4581_s11 + $0x550] sm:$0xf0]  ;;  %v2932_v20 = vld [vmem:[%s4581_s11 + $0x28] sm:$0xf]  ;;  %v3837_v49 = vld [vmem:[%s4581_s11 + $0x134] sm:$0xf0]  ;;  %v3553_v62 = vor.u32 %v3958_v51, %v3550_v52 }
 0x15c   : > { %2283 = vmatmul.bf16.vlgmr.msra.gmra.mxu2 %v4689_v17  ;;  %2302 = vmatmul.bf16.vlgmr.msra.gmra.mxu3 %v4828_v27  ;;  %v3585_v30 = vor.u32 %v3966_v11, %v3582_v19  ;;  %v3893_v56 = vld [vmem:[%s4581_s11 + $0x2f4] sm:$0xf0]  ;;  %v3668_v2 = vld [vmem:[%s4581_s11 + $0x5e8] sm:$0xf] }
 0x15d   : > { %2354 = vmatpush.bf16.msrb.mxu2 %v2981_v47  ;;  %v3569_v47 = vor.u32 %v3962_v26, %v3566_v33  ;;  %v3953_v58 = vld [vmem:[%s4581_s11 + $0x4d4] sm:$0xf0]  ;;  %v3268_v5 = vld [vmem:[%s4581_s11 + $0x2c8] sm:$0xf] }
 0x15e   : > { %2335 = vmatpush.bf16.msrb.mxu1 %v3745_v45  ;;  %v3077_v45 = vor.u32 %v3841_v25, %v3076_v24  ;;  %v3921_v61 = vld [vmem:[%s4581_s11 + $0x3d4] sm:$0xf0]  ;;  %v3380_v15 = vld [vmem:[%s4581_s11 + $0x3a8] sm:$0xf] }
 0x15f   : > { %2314 = vmatpush.bf16.msrb.mxu0 %v3649_v31  ;;  %2371 = vmatpush.bf16.msrb.mxu3 %v3141_v42  ;;  %v2933_v31 = vor.u32 %v3805_v22, %v2932_v20  ;;  %v3957_v42 = vld [vmem:[%s4581_s11 + $0x4f4] sm:$0xf0]  ;;  %v3636_v33 = vld [vmem:[%s4581_s11 + $0x5a8] sm:$0xf] }
 0x160   : > { %v3541_v53 = vor.u32 %v3957_v42, %v3540_v41  ;;  %v3833_v0 = vld [vmem:[%s4581_s11 + $0x114] sm:$0xf0]  ;;  %v3364_v39 = vld [vmem:[%s4581_s11 + $0x388] sm:$0xf] }
 0x161   : > { %2355 = vmatpush.bf16.msrb.mxu2 %v2965_v60  ;;  %v3396_v60 = vld [vmem:[%s4581_s11 + $0x3c8] sm:$0xf]  ;;  %v3949_v11 = vld [vmem:[%s4581_s11 + $0x4b4] sm:$0xf0]  ;;  %v3045_v12 = vor.u32 %v3833_v0, %v3044_v63 }
 0x162   : > { %2336 = vmatpush.bf16.msrb.mxu1 %v3729_v57  ;;  %v3524_v57 = vld [vmem:[%s4581_s11 + $0x4c8] sm:$0xf]  ;;  %v3917_v19 = vld [vmem:[%s4581_s11 + $0x3b4] sm:$0xf0] }
 0x163   : > { %2315 = vmatpush.bf16.msrb.mxu0 %v3633_v46  ;;  %2372 = vmatpush.bf16.msrb.mxu3 %v3125_v54  ;;  %v3681_v46 = vor.u32 %v3990_v34, %v3678_v37  ;;  %v3284_v54 = vld [vmem:[%s4581_s11 + $0x2e8] sm:$0xf]  ;;  %v3525_v4 = vor.u32 %v3953_v58, %v3524_v57  ;;  %v3985_v24 = vld [vmem:[%s4581_s11 + $0x5d4] sm:$0xf0]  ;;  %v3381_v26 = vor.u32 %v3917_v19, %v3380_v15 }
 0x164   : > { %v3285_v1 = vor.u32 %v3893_v56, %v3284_v54  ;;  %v3492_v34 = vld [vmem:[%s4581_s11 + $0x488] sm:$0xf]  ;;  %v3945_v37 = vld [vmem:[%s4581_s11 + $0x494] sm:$0xf0] }
 0x165   : > { %2356 = vmatpush.bf16.msrb.mxu2 %v2949_v10  ;;  %v3508_v10 = vld [vmem:[%s4581_s11 + $0x4a8] sm:$0xf]  ;;  %v3981_v38 = vld [vmem:[%s4581_s11 + $0x5b4] sm:$0xf0]  ;;  %v3493_v43 = vor.u32 %v3945_v37, %v3492_v34 }
 0x166   : > { %2337 = vmatpush.bf16.msrb.mxu1 %v3713_v6  ;;  %v3889_v6 = vld [vmem:[%s4581_s11 + $0x2d4] sm:$0xf0]  ;;  %v3509_v25 = vor.u32 %v3949_v11, %v3508_v10  ;;  %v3236_v44 = vld [vmem:[%s4581_s11 + $0x288] sm:$0xf] }
 0x167   : > { %2316 = vmatpush.bf16.msrb.mxu0 %v3617_v59  ;;  %2373 = vmatpush.bf16.msrb.mxu3 %v3109_v3  ;;  %v3061_v59 = vor.u32 %v3837_v49, %v3060_v48  ;;  %v3989_v3 = vld [vmem:[%s4581_s11 + $0x5f4] sm:$0xf0]  ;;  %v3269_v22 = vor.u32 %v3889_v6, %v3268_v5  ;;  %v3620_v48 = vld [vmem:[%s4581_s11 + $0x588] sm:$0xf] }
 0x168   : > { %v3669_v20 = vor.u32 %v3989_v3, %v3668_v2  ;;  %v3913_v41 = vld [vmem:[%s4581_s11 + $0x394] sm:$0xf0]  ;;  %v3476_v49 = vld [vmem:[%s4581_s11 + $0x468] sm:$0xf] }
 0x169   : > { %2357 = vmatpush.bf16.msrb.mxu2 %v2933_v31  ;;  %2269 = vmatmul.bf16.gmra.mxu1 %v4762_v18  ;;  %v3977_v51 = vld [vmem:[%s4581_s11 + $0x594] sm:$0xf0]  ;;  %v3348_v52 = vld [vmem:[%s4581_s11 + $0x368] sm:$0xf] }
 0x16a   : > { %2338 = vmatpush.bf16.msrb.mxu1 %v3697_v29  ;;  %2250 = vmatmul.bf16.gmra.mxu0 %v4760_v16  ;;  %v3252_v29 = vld [vmem:[%s4581_s11 + $0x2a8] sm:$0xf]  ;;  %v3877_v57 = vld [vmem:[%s4581_s11 + $0x274] sm:$0xf0]  ;;  %v3621_v58 = vor.u32 %v3977_v51, %v3620_v48 }
 0x16b   : > { %2317 = vmatpush.bf16.msrb.mxu0 %v3601_v7  ;;  %2374 = vmatpush.bf16.msrb.mxu3 %v3093_v23  ;;  %v3397_v7 = vor.u32 %v3921_v61, %v3396_v60  ;;  %v3652_v23 = vld [vmem:[%s4581_s11 + $0x5c8] sm:$0xf]  ;;  %v3973_v63 = vld [vmem:[%s4581_s11 + $0x574] sm:$0xf0] }
 0x16c   : > { %2288 = vmatmul.bf16.gmra.mxu2 %v4766_v21  ;;  %2307 = vmatmul.bf16.gmra.mxu3 %v4901_v35  ;;  %v3653_v31 = vor.u32 %v3985_v24, %v3652_v23  ;;  %v3220_v56 = vld [vmem:[%s4581_s11 + $0x268] sm:$0xf]  ;;  %v3873_v5 = vld [vmem:[%s4581_s11 + $0x254] sm:$0xf0] }
 0x16d   : > { %2358 = vmatpush.bf16.msrb.mxu2 %v2917_v50  ;;  %v3941_v50 = vld [vmem:[%s4581_s11 + $0x474] sm:$0xf0]  ;;  %v3604_v60 = vld [vmem:[%s4581_s11 + $0x568] sm:$0xf]  ;;  %v3221_v2 = vor.u32 %v3877_v57, %v3220_v56  ;;  %v3286_v57 = vld [vmem:[%s4581_s11 + $0x2f8] sm:$0xf0] }
 0x16e   : > { %2339 = vmatpush.bf16.msrb.mxu1 %v3681_v46  ;;  %v3637_v46 = vor.u32 %v3981_v38, %v3636_v33  ;;  %v3460_v61 = vld [vmem:[%s4581_s11 + $0x448] sm:$0xf]  ;;  %v3605_v6 = vor.u32 %v3973_v63, %v3604_v60  ;;  %v3969_v15 = vld [vmem:[%s4581_s11 + $0x554] sm:$0xf0] }
 0x16f   : > { %2318 = vmatpush.bf16.msrb.mxu0 %v3585_v30  ;;  %2375 = vmatpush.bf16.msrb.mxu3 %v3077_v45  ;;  %v3885_v30 = vld [vmem:[%s4581_s11 + $0x2b4] sm:$0xf0]  ;;  %v3332_v0 = vld [vmem:[%s4581_s11 + $0x348] sm:$0xf] }
 0x170   : > { %v3253_v42 = vor.u32 %v3885_v30, %v3252_v29  ;;  %v3881_v45 = vld [vmem:[%s4581_s11 + $0x294] sm:$0xf0]  ;;  %v3588_v10 = vld [vmem:[%s4581_s11 + $0x548] sm:$0xf] }
 0x171   : > { %2427 = vmatpush.bf16.msra.mxu2 %v3541_v53  ;;  %v3909_v53 = vld [vmem:[%s4581_s11 + $0x374] sm:$0xf0]  ;;  %v3237_v54 = vor.u32 %v3881_v45, %v3236_v44  ;;  %v3444_v11 = vld [vmem:[%s4581_s11 + $0x428] sm:$0xf]  ;;  %v3589_v29 = vor.u32 %v3969_v15, %v3588_v10  ;;  %v3851_v10 = vld [vmem:[%s4581_s11 + $0x1ac] sm:$0xf] }
 0x172   : > { %2408 = vmatpush.bf16.msra.mxu1 %v3413_v55  ;;  %v3477_v55 = vor.u32 %v3941_v50, %v3476_v49  ;;  %v3316_v19 = vld [vmem:[%s4581_s11 + $0x328] sm:$0xf]  ;;  %v3929_v34 = vld [vmem:[%s4581_s11 + $0x414] sm:$0xf0]  ;;  %v2998_v15 = vld [vmem:[%s4581_s11 + $0xb8] sm:$0xf0] }
 0x173   : > { %2319 = vmatpush.bf16.msrb.mxu0 %v3569_v47  ;;  %2376 = vmatpush.bf16.msrb.mxu3 %v3061_v59  ;;  %v3365_v47 = vor.u32 %v3913_v41, %v3364_v39  ;;  %v3349_v59 = vor.u32 %v3909_v53, %v3348_v52  ;;  %v3188_v24 = vld [vmem:[%s4581_s11 + $0x228] sm:$0xf]  ;;  %v3897_v38 = vld [vmem:[%s4581_s11 + $0x314] sm:$0xf0]  ;;  %v3859_v39 = vld [vmem:[%s4581_s11 + $0x1ec] sm:$0xf] }
 0x174   : > { %v3428_v33 = vld [vmem:[%s4581_s11 + $0x408] sm:$0xf]  ;;  %v3158_v41 = vld [vmem:[%s4581_s11 + $0x1f8] sm:$0xf0]  ;;  %v3865_v48 = vld [vmem:[%s4581_s11 + $0x214] sm:$0xf0] }
 0x175   : > { %2428 = vmatpush.bf16.msra.mxu2 %v3525_v4  ;;  %v3204_v4 = vld [vmem:[%s4581_s11 + $0x248] sm:$0xf]  ;;  %v3429_v45 = vor.u32 %v3929_v34, %v3428_v33  ;;  %v3961_v51 = vld [vmem:[%s4581_s11 + $0x514] sm:$0xf0]  ;;  %v3161_v52 = vor.u32 %v3859_v39, %v3158_v41  ;;  %v3815_v34 = vld [vmem:[%s4581_s11 + $0x8c] sm:$0xf] }
 0x176   : > { %2409 = vmatpush.bf16.msra.mxu1 %v3397_v7  ;;  %v3300_v37 = vld [vmem:[%s4581_s11 + $0x308] sm:$0xf]  ;;  %v4013_v56 = vld [vmem:[%s4581_s11 + $0x6b4] sm:$0xf0] }
 0x177   : > { %2320 = vmatpush.bf16.msrb.mxu0 %v3553_v62  ;;  %2377 = vmatpush.bf16.msrb.mxu3 %v3045_v12  ;;  %v3937_v62 = vld [vmem:[%s4581_s11 + $0x454] sm:$0xf0]  ;;  %v3301_v49 = vor.u32 %v3897_v38, %v3300_v37  ;;  %v3556_v50 = vld [vmem:[%s4581_s11 + $0x508] sm:$0xf]  ;;  %v2982_v38 = vld [vmem:[%s4581_s11 + $0x98] sm:$0xf0] }
 0x178   : > { %v3461_v3 = vor.u32 %v3937_v62, %v3460_v61  ;;  %v3933_v12 = vld [vmem:[%s4581_s11 + $0x434] sm:$0xf0]  ;;  %v3823_v61 = vld [vmem:[%s4581_s11 + $0xcc] sm:$0xf]  ;;  %v3014_v62 = vld [vmem:[%s4581_s11 + $0xd8] sm:$0xf0]  ;;  %v3557_v63 = vor.u32 %v3961_v51, %v3556_v50 }
 0x179   : > { %2429 = vmatpush.bf16.msra.mxu2 %v3509_v25  ;;  %3772 = vmatmul.msk.bf16.vlgmr.msrb.gmra.mxu1 %vm2078_vm0, %v4835_v32  ;;  %v3445_v23 = vor.u32 %v3933_v12, %v3444_v11  ;;  %v3869_v25 = vld [vmem:[%s4581_s11 + $0x234] sm:$0xf0]  ;;  %v3126_v11 = vld [vmem:[%s4581_s11 + $0x1b8] sm:$0xf0]  ;;  %v3819_v12 = vld [vmem:[%s4581_s11 + $0xac] sm:$0xf] }
 0x17a   : > { %2410 = vmatpush.bf16.msra.mxu1 %v3381_v26  ;;  %2321 = vmatmul.bf16.vlgmr.msrb.gmra.mxu0 %v4830_v28  ;;  %v3572_v26 = vld [vmem:[%s4581_s11 + $0x528] sm:$0xf]  ;;  %v3189_v44 = vor.u32 %v3869_v25, %v3188_v24  ;;  %v4005_v24 = vld [vmem:[%s4581_s11 + $0x674] sm:$0xf0]  ;;  %v3001_v25 = vor.u32 %v3819_v12, %v2998_v15  ;;  %v3811_v50 = vld [vmem:[%s4581_s11 + $0x6c] sm:$0xf] }
 0x17b   : > { %2389 = vmatpush.bf16.msra.mxu0 %v3285_v1  ;;  %2446 = vmatpush.bf16.msra.mxu3 %v3669_v20  ;;  %v3905_v1 = vld [vmem:[%s4581_s11 + $0x354] sm:$0xf0]  ;;  %v3716_v39 = vld [vmem:[%s4581_s11 + $0x648] sm:$0xf]  ;;  %v3871_v15 = vld [vmem:[%s4581_s11 + $0x24c] sm:$0xf] }
 0x17c   : > { %2359 = vmatmul.bf16.vlgmr.msrb.gmra.mxu2 %v4678_v8  ;;  %2378 = vmatmul.bf16.vlgmr.msrb.gmra.mxu3 %v4683_v13  ;;  %v3333_v7 = vor.u32 %v3905_v1, %v3332_v0  ;;  %v3901_v20 = vld [vmem:[%s4581_s11 + $0x334] sm:$0xf0] }
 0x17d   : > { %2430 = vmatpush.bf16.msra.mxu2 %v3493_v43  ;;  %v3317_v30 = vor.u32 %v3901_v20, %v3316_v19  ;;  %v3030_v43 = vld [vmem:[%s4581_s11 + $0xf8] sm:$0xf0]  ;;  %v4001_v41 = vld [vmem:[%s4581_s11 + $0x654] sm:$0xf0] }
 0x17e   : > { %2411 = vmatpush.bf16.msra.mxu1 %v3365_v47  ;;  %v3717_v51 = vor.u32 %v4001_v41, %v3716_v39 }
 0x17f   : > { %2390 = vmatpush.bf16.msra.mxu0 %v3269_v22  ;;  %2447 = vmatpush.bf16.msra.mxu3 %v3653_v31  ;;  %v3205_v22 = vor.u32 %v3873_v5, %v3204_v4  ;;  %v3965_v31 = vld [vmem:[%s4581_s11 + $0x534] sm:$0xf0]  ;;  %v3748_v4 = vld [vmem:[%s4581_s11 + $0x688] sm:$0xf] }
 0x180   : > { %v3573_v47 = vor.u32 %v3965_v31, %v3572_v26  ;;  %v4009_v5 = vld [vmem:[%s4581_s11 + $0x694] sm:$0xf0]  ;;  %v3883_v26 = vld [vmem:[%s4581_s11 + $0x2ac] sm:$0xf]  ;;  %v3110_v31 = vld [vmem:[%s4581_s11 + $0x198] sm:$0xf0] }
 0x181   : > { %2431 = vmatpush.bf16.msra.mxu2 %v3477_v55  ;;  %v3764_v55 = vld [vmem:[%s4581_s11 + $0x6a8] sm:$0xf]  ;;  %v3749_v19 = vor.u32 %v4009_v5, %v3748_v4  ;;  %v3993_v5 = vld [vmem:[%s4581_s11 + $0x614] sm:$0xf0] }
 0x182   : > { %2412 = vmatpush.bf16.msra.mxu1 %v3349_v59  ;;  %v3142_v59 = vld [vmem:[%s4581_s11 + $0x1d8] sm:$0xf0]  ;;  %v3765_v0 = vor.u32 %v4013_v56, %v3764_v55  ;;  %v3684_v4 = vld [vmem:[%s4581_s11 + $0x608] sm:$0xf] }
 0x183   : > { %2391 = vmatpush.bf16.msra.mxu0 %v3253_v42  ;;  %2448 = vmatpush.bf16.msra.mxu3 %v3637_v46  ;;  %v3827_v42 = vld [vmem:[%s4581_s11 + $0xec] sm:$0xf]  ;;  %v3172_v46 = vld [vmem:[%s4581_s11 + $0x208] sm:$0xf] }
 0x184   : > { %v3033_v53 = vor.u32 %v3827_v42, %v3030_v43  ;;  %v3173_v60 = vor.u32 %v3865_v48, %v3172_v46  ;;  %v3238_v46 = vld [vmem:[%s4581_s11 + $0x298] sm:$0xf0]  ;;  %v3843_v48 = vld [vmem:[%s4581_s11 + $0x16c] sm:$0xf] }
 0x185   : > { %2432 = vmatpush.bf16.msra.mxu2 %v3461_v3  ;;  %v3887_v3 = vld [vmem:[%s4581_s11 + $0x2cc] sm:$0xf] }
 0x186   : > { %2413 = vmatpush.bf16.msra.mxu1 %v3333_v7  ;;  %v3270_v7 = vld [vmem:[%s4581_s11 + $0x2d8] sm:$0xf0] }
 0x187   : > { %2392 = vmatpush.bf16.msra.mxu0 %v3237_v54  ;;  %2449 = vmatpush.bf16.msra.mxu3 %v3621_v58  ;;  %v3891_v54 = vld [vmem:[%s4581_s11 + $0x2ec] sm:$0xf]  ;;  %v3273_v20 = vor.u32 %v3887_v3, %v3270_v7  ;;  %v2950_v3 = vld [vmem:[%s4581_s11 + $0x58] sm:$0xf0] }
 0x188   : > { %v3855_v58 = vld [vmem:[%s4581_s11 + $0x1cc] sm:$0xf]  ;;  %v3289_v1 = vor.u32 %v3891_v54, %v3286_v57  ;;  %v3997_v54 = vld [vmem:[%s4581_s11 + $0x634] sm:$0xf0] }
 0x189   : > { %2433 = vmatpush.bf16.msra.mxu2 %v3445_v23  ;;  %3773 = vmatmul.msk.bf16.gmra.mxu1 %vm2078_vm0, %v4908_v40  ;;  %v3732_v23 = vld [vmem:[%s4581_s11 + $0x668] sm:$0xf]  ;;  %v3875_v57 = vld [vmem:[%s4581_s11 + $0x26c] sm:$0xf] }
 0x18a   : > { %2414 = vmatpush.bf16.msra.mxu1 %v3317_v30  ;;  %2326 = vmatmul.bf16.gmra.mxu0 %v4903_v36  ;;  %v3847_v30 = vld [vmem:[%s4581_s11 + $0x18c] sm:$0xf]  ;;  %v3733_v33 = vor.u32 %v4005_v24, %v3732_v23  ;;  %v3062_v23 = vld [vmem:[%s4581_s11 + $0x138] sm:$0xf0]  ;;  %v3685_v24 = vor.u32 %v3993_v5, %v3684_v4 }
 0x18b   : > { %2393 = vmatpush.bf16.msra.mxu0 %v3221_v2  ;;  %2450 = vmatpush.bf16.msra.mxu3 %v3605_v6  ;;  %v3145_v2 = vor.u32 %v3855_v58, %v3142_v59  ;;  %v3017_v6 = vor.u32 %v3823_v61, %v3014_v62  ;;  %v3222_v58 = vld [vmem:[%s4581_s11 + $0x278] sm:$0xf0]  ;;  %v3839_v61 = vld [vmem:[%s4581_s11 + $0x14c] sm:$0xf] }
 0x18c   : > { %2364 = vmatmul.bf16.gmra.mxu2 %v4755_v9  ;;  %2383 = vmatmul.bf16.gmra.mxu3 %v4760_v16  ;;  %v3078_v62 = vld [vmem:[%s4581_s11 + $0x158] sm:$0xf0]  ;;  %v3923_v7 = vld [vmem:[%s4581_s11 + $0x3ec] sm:$0xf] }
 0x18d   : > { %2434 = vmatpush.bf16.msra.mxu2 %v3429_v45  ;;  %v3879_v45 = vld [vmem:[%s4581_s11 + $0x28c] sm:$0xf]  ;;  %v3081_v12 = vor.u32 %v3839_v61, %v3078_v62  ;;  %v3174_v61 = vld [vmem:[%s4581_s11 + $0x218] sm:$0xf0] }
 0x18e   : > { %2415 = vmatpush.bf16.msra.mxu1 %v3301_v49  ;;  %v3094_v49 = vld [vmem:[%s4581_s11 + $0x178] sm:$0xf0]  ;;  %v3241_v55 = vor.u32 %v3879_v45, %v3238_v46  ;;  %v3983_v4 = vld [vmem:[%s4581_s11 + $0x5cc] sm:$0xf] }
 0x18f   : > { %2394 = vmatpush.bf16.msra.mxu0 %v3205_v22  ;;  %2451 = vmatpush.bf16.msra.mxu3 %v3589_v29  ;;  %v3129_v22 = vor.u32 %v3851_v10, %v3126_v11  ;;  %v3254_v29 = vld [vmem:[%s4581_s11 + $0x2b8] sm:$0xf0]  ;;  %v3097_v56 = vor.u32 %v3843_v48, %v3094_v49  ;;  %v3225_v11 = vor.u32 %v3875_v57, %v3222_v58  ;;  %v3987_v48 = vld [vmem:[%s4581_s11 + $0x5ec] sm:$0xf] }
 0x190   : > { %v3257_v43 = vor.u32 %v3883_v26, %v3254_v29  ;;  %v3414_v10 = vld [vmem:[%s4581_s11 + $0x3f8] sm:$0xf0]  ;;  %v3863_v58 = vld [vmem:[%s4581_s11 + $0x20c] sm:$0xf] }
 0x191   : > { %2503 = vmatpush.bf16.msrb.mxu2 %v3161_v52  ;;  %v2966_v52 = vld [vmem:[%s4581_s11 + $0x78] sm:$0xf0]  ;;  %v3417_v29 = vor.u32 %v3923_v7, %v3414_v10  ;;  %v3951_v10 = vld [vmem:[%s4581_s11 + $0x4cc] sm:$0xf] }
 0x192   : > { %2484 = vmatpush.bf16.msrb.mxu1 %v3033_v53  ;;  %v3700_v53 = vld [vmem:[%s4581_s11 + $0x628] sm:$0xf]  ;;  %v2934_v26 = vld [vmem:[%s4581_s11 + $0x38] sm:$0xf0] }
 0x193   : > { %2395 = vmatpush.bf16.msra.mxu0 %v3189_v44  ;;  %2452 = vmatpush.bf16.msra.mxu3 %v3573_v47  ;;  %v3113_v44 = vor.u32 %v3847_v30, %v3110_v31  ;;  %v2985_v47 = vor.u32 %v3815_v34, %v2982_v38  ;;  %v3190_v34 = vld [vmem:[%s4581_s11 + $0x238] sm:$0xf0]  ;;  %v3831_v38 = vld [vmem:[%s4581_s11 + $0x10c] sm:$0xf] }
 0x194   : > { %v5106_v37 = vpop.f32.mrf.mxu0  ;;  %v2918_v45 = vld [vmem:[%s4581_s11 + $0x18] sm:$0xf0] }
 0x195   : > { %2504 = vmatpush.bf16.msrb.mxu2 %v3145_v2  ;;  %v5111_v42 = vpop.f32.mrf.mxu1  ;;  %v3670_v49 = vld [vmem:[%s4581_s11 + $0x5f8] sm:$0xf0] }
 0x196   : > { %2485 = vmatpush.bf16.msrb.mxu1 %v3017_v6  ;;  %v3673_v62 = vor.u32 %v3987_v48, %v3670_v49  ;;  %v3654_v5 = vld [vmem:[%s4581_s11 + $0x5d8] sm:$0xf0]  ;;  %v3911_v48 = vld [vmem:[%s4581_s11 + $0x38c] sm:$0xf] }
 0x197   : > { %2396 = vmatpush.bf16.msra.mxu0 %v3173_v60  ;;  %2453 = vmatpush.bf16.msra.mxu3 %v3557_v63  ;;  %v2969_v60 = vor.u32 %v3811_v50, %v2966_v52  ;;  %v3807_v63 = vld [vmem:[%s4581_s11 + $0x4c] sm:$0xf]  ;;  %v3366_v49 = vld [vmem:[%s4581_s11 + $0x398] sm:$0xf0] }
 0x198   : > { %v3955_v50 = vld [vmem:[%s4581_s11 + $0x4ec] sm:$0xf] }
 0x199   : > { %2505 = vmatpush.bf16.msrb.mxu2 %v3129_v22  ;;  %2416 = vmatmul.bf16.vlgmr.msra.gmra.mxu1 %v4689_v17  ;;  %v3835_v22 = vld [vmem:[%s4581_s11 + $0x12c] sm:$0xf] }
 0x19a   : > { %2486 = vmatpush.bf16.msrb.mxu1 %v3001_v25  ;;  %2397 = vmatmul.bf16.vlgmr.msra.gmra.mxu0 %v4685_v14  ;;  %v3803_v25 = vld [vmem:[%s4581_s11 + $0x2c] sm:$0xf]  ;;  %v3065_v31 = vor.u32 %v3835_v22, %v3062_v23  ;;  %v5189_v23 = vpop.permute.xlu2 %2639 }
 0x19b   : > { %2467 = vmatpush.bf16.msrb.mxu0 %v3765_v0  ;;  %2522 = vmatpush.bf16.msrb.mxu3 %v3289_v1  ;;  %v5127_v59 = vpop.f32.mrf.mxu2  ;;  %v3701_v0 = vor.u32 %v3997_v54, %v3700_v53  ;;  %v2937_v41 = vor.u32 %v3803_v25, %v2934_v26  ;;  %v3542_v53 = vld [vmem:[%s4581_s11 + $0x4f8] sm:$0xf0]  ;;  %v3919_v54 = vld [vmem:[%s4581_s11 + $0x3cc] sm:$0xf] }
 0x19c   : > { %2435 = vmatmul.bf16.vlgmr.msra.gmra.mxu2 %v4828_v27  ;;  %2454 = vmatmul.bf16.vlgmr.msra.gmra.mxu3 %v4830_v28  ;;  %v5132_v1 = vpop.f32.mrf.mxu3  ;;  %v5134_v2 = vpop.f32.mrf.mxu0  ;;  %v3979_v25 = vld [vmem:[%s4581_s11 + $0x5ac] sm:$0xf]  ;;  %v3638_v26 = vld [vmem:[%s4581_s11 + $0x5b8] sm:$0xf0] }
 0x19d   : > { %2506 = vmatpush.bf16.msrb.mxu2 %v3113_v44  ;;  %v5139_v6 = vpop.f32.mrf.mxu1  ;;  %v3799_v44 = vld [vmem:[%s4581_s11 + $0xc] sm:$0xf] }
 0x19e   : > { %2487 = vmatpush.bf16.msrb.mxu1 %v2985_v47 }
 0x19f   : > { %2468 = vmatpush.bf16.msrb.mxu0 %v3749_v19  ;;  %2523 = vmatpush.bf16.msrb.mxu3 %v3273_v20  ;;  %v2953_v19 = vor.u32 %v3807_v63, %v2950_v3  ;;  %v3206_v20 = vld [vmem:[%s4581_s11 + $0x258] sm:$0xf0]  ;;  %v4011_v63 = vld [vmem:[%s4581_s11 + $0x6ac] sm:$0xf]  ;;  %v3545_v3 = vor.u32 %v3955_v50, %v3542_v53  ;;  %v3641_v53 = vor.u32 %v3979_v25, %v3638_v26 }
 0x1a0   : > { %v3209_v30 = vor.u32 %v3871_v15, %v3206_v20  ;;  %v3915_v15 = vld [vmem:[%s4581_s11 + $0x3ac] sm:$0xf]  ;;  %v3177_v20 = vor.u32 %v3863_v58, %v3174_v61 }
 0x1a1   : > { %2507 = vmatpush.bf16.msrb.mxu2 %v3097_v56  ;;  %v4003_v58 = vld [vmem:[%s4581_s11 + $0x66c] sm:$0xf] }
 0x1a2   : > { %2488 = vmatpush.bf16.msrb.mxu1 %v2969_v60  ;;  %v2921_v60 = vor.u32 %v3799_v44, %v2918_v45  ;;  %v3510_v45 = vld [vmem:[%s4581_s11 + $0x4b8] sm:$0xf0]  ;;  %v5231_v26 = vpop.permute.xlu2 %2644 }
 0x1a3   : > { %2469 = vmatpush.bf16.msrb.mxu0 %v3733_v33  ;;  %2524 = vmatpush.bf16.msrb.mxu3 %v3257_v43  ;;  %v3867_v33 = vld [vmem:[%s4581_s11 + $0x22c] sm:$0xf]  ;;  %v5152_v39 = vpop.f32.mrf.mxu2  ;;  %v3046_v43 = vld [vmem:[%s4581_s11 + $0x118] sm:$0xf0] }
 0x1a4   : > { %v5157_v46 = vpop.f32.mrf.mxu3  ;;  %v3193_v56 = vor.u32 %v3867_v33, %v3190_v34  ;;  %v3049_v57 = vor.u32 %v3831_v38, %v3046_v43  ;;  %v4007_v33 = vld [vmem:[%s4581_s11 + $0x68c] sm:$0xf]  ;;  %v3750_v34 = vld [vmem:[%s4581_s11 + $0x698] sm:$0xf0] }
 0x1a5   : > { %2508 = vmatpush.bf16.msrb.mxu2 %v3081_v12  ;;  %v5159_v47 = vpop.f32.mrf.mxu0  ;;  %v5166_v52 = vpop.f32.mrf.mxu1  ;;  %v3526_v12 = vld [vmem:[%s4581_s11 + $0x4d8] sm:$0xf0] }
 0x1a6   : > { %2489 = vmatpush.bf16.msrb.mxu1 %v2953_v19  ;;  %v3382_v19 = vld [vmem:[%s4581_s11 + $0x3b8] sm:$0xf0] }
 0x1a7   : > { %2470 = vmatpush.bf16.msrb.mxu0 %v3717_v51  ;;  %2525 = vmatpush.bf16.msrb.mxu3 %v3241_v55  ;;  %v5164_v51 = vpop.permute.xlu0 %910  ;;  %v3398_v55 = vld [vmem:[%s4581_s11 + $0x3d8] sm:$0xf0]  ;;  %v3385_v38 = vor.u32 %v3915_v15, %v3382_v19  ;;  %v3999_v15 = vld [vmem:[%s4581_s11 + $0x64c] sm:$0xf] }
 0x1a8   : > { %v3401_v7 = vor.u32 %v3919_v54, %v3398_v55  ;;  %v3753_v54 = vor.u32 %v4007_v33, %v3750_v34  ;;  %v3975_v55 = vld [vmem:[%s4581_s11 + $0x58c] sm:$0xf]  ;;  %v3718_v19 = vld [vmem:[%s4581_s11 + $0x658] sm:$0xf0] }
 0x1a9   : > { %2509 = vmatpush.bf16.msrb.mxu2 %v3065_v31  ;;  %2421 = vmatmul.bf16.gmra.mxu1 %v4766_v21  ;;  %v3529_v31 = vor.u32 %v3951_v10, %v3526_v12  ;;  %v3907_v10 = vld [vmem:[%s4581_s11 + $0x36c] sm:$0xf] }
 0x1aa   : > { %2490 = vmatpush.bf16.msrb.mxu1 %v2937_v41  ;;  %2402 = vmatmul.bf16.gmra.mxu0 %v4762_v18  ;;  %v3947_v41 = vld [vmem:[%s4581_s11 + $0x4ac] sm:$0xf] }
 0x1ab   : > { %2471 = vmatpush.bf16.msrb.mxu0 %v3701_v0  ;;  %2526 = vmatpush.bf16.msrb.mxu3 %v3225_v11  ;;  %v3766_v0 = vld [vmem:[%s4581_s11 + $0x6b8] sm:$0xf0]  ;;  %v2095_v11 = vadd.f32 %v5106_v37, %v5164_v51  ;;  %v3939_v34 = vld [vmem:[%s4581_s11 + $0x46c] sm:$0xf] }
 0x1ac   : > { %2440 = vmatmul.bf16.gmra.mxu2 %v4901_v35  ;;  %2459 = vmatmul.bf16.gmra.mxu3 %v4903_v36  ;;  %v3769_v37 = vor.u32 %v4011_v63, %v3766_v0  ;;  %v3943_v63 = vld [vmem:[%s4581_s11 + $0x48c] sm:$0xf]  ;;  %v3494_v0 = vld [vmem:[%s4581_s11 + $0x498] sm:$0xf0] }
 0x1ad   : > { %2510 = vmatpush.bf16.msrb.mxu2 %v3049_v57  ;;  %v5187_v22 = vpop.f32.mrf.mxu2  ;;  %v2114_v43 = vadd.f32 %v5111_v42, %v2095_v11  ;;  %v5201_v44 = vpop.f32.mrf.mxu1  ;;  %v3513_v42 = vor.u32 %v3947_v41, %v3510_v45  ;;  %v3369_v57 = vor.u32 %v3911_v48, %v3366_v49  ;;  %v3350_v11 = vld [vmem:[%s4581_s11 + $0x378] sm:$0xf0]  ;;  %v3721_v45 = vor.u32 %v3999_v15, %v3718_v19  ;;  %v3903_v48 = vld [vmem:[%s4581_s11 + $0x34c] sm:$0xf] }
 0x1ae   : > { %2491 = vmatpush.bf16.msrb.mxu1 %v2921_v60  ;;  %v3734_v60 = vld [vmem:[%s4581_s11 + $0x678] sm:$0xf0]  ;;  %v3353_v33 = vor.u32 %v3907_v10, %v3350_v11 }
 0x1af   : > { %2472 = vmatpush.bf16.msrb.mxu0 %v3685_v24  ;;  %2527 = vmatpush.bf16.msrb.mxu3 %v3209_v30  ;;  %v3657_v24 = vor.u32 %v3983_v4, %v3654_v5  ;;  %v5195_v30 = vpop.f32.mrf.mxu0  ;;  %v5206_v50 = vpop.permute.xlu0 %915  ;;  %v2133_v61 = vadd.f32 %v5127_v59, %v2114_v43  ;;  %v3737_v5 = vor.u32 %v4003_v58, %v3734_v60  ;;  %v3334_v49 = vld [vmem:[%s4581_s11 + $0x358] sm:$0xf0] }
 0x1b0   : > { %v5222_v59 = vpop.permute.xlu1 %920  ;;  %v3462_v58 = vld [vmem:[%s4581_s11 + $0x458] sm:$0xf0] }
 0x1b1   : > { %2579 = vmatpush.bf16.msra.mxu2 %v3673_v62  ;;  %v2097_v62 = vadd.f32 %v5134_v2, %v5206_v50  ;;  %v3606_v2 = vld [vmem:[%s4581_s11 + $0x578] sm:$0xf0] }
 0x1b2   : > { %2560 = vmatpush.bf16.msra.mxu1 %v3545_v3 }
 0x1b3   : > { %2541 = vmatpush.bf16.msra.mxu0 %v3417_v29  ;;  %2528 = vmatpush.bf16.msrb.mxu3 %v3193_v56  ;;  %v5193_v29 = vpop.f32.mrf.mxu3  ;;  %v3622_v56 = vld [vmem:[%s4581_s11 + $0x598] sm:$0xf0]  ;;  %v2116_v25 = vadd.f32 %v5139_v6, %v2097_v62  ;;  %v3899_v62 = vld [vmem:[%s4581_s11 + $0x32c] sm:$0xf] }
 0x1b4   : > { %v3625_v4 = vor.u32 %v3975_v55, %v3622_v56  ;;  %v3590_v6 = vld [vmem:[%s4581_s11 + $0x558] sm:$0xf0]  ;;  %v3337_v56 = vor.u32 %v3903_v48, %v3334_v49 }
 0x1b5   : > { %2580 = vmatpush.bf16.msra.mxu2 %v3657_v24  ;;  %v5217_v3 = vpop.f32.mrf.mxu2  ;;  %v2135_v55 = vadd.f32 %v5152_v39, %v2116_v25  ;;  %v3931_v25 = vld [vmem:[%s4581_s11 + $0x42c] sm:$0xf] }
 0x1b6   : > { %2561 = vmatpush.bf16.msra.mxu1 %v3529_v31  ;;  %v2189_v24 = vpop.f32.mrf.mxu1  ;;  %v3497_v31 = vor.u32 %v3943_v63, %v3494_v0  ;;  %v3318_v63 = vld [vmem:[%s4581_s11 + $0x338] sm:$0xf0] }
 0x1b7   : > { %2542 = vmatpush.bf16.msra.mxu0 %v3401_v7  ;;  %2529 = vmatpush.bf16.msrb.mxu3 %v3177_v20  ;;  %v3971_v7 = vld [vmem:[%s4581_s11 + $0x56c] sm:$0xf]  ;;  %v2152_v20 = vadd.f32 %v5132_v1, %v2133_v61  ;;  %v3574_v0 = vld [vmem:[%s4581_s11 + $0x538] sm:$0xf0] }
 0x1b8   : > { %v3609_v43 = vor.u32 %v3971_v7, %v3606_v2  ;;  %v3967_v1 = vld [vmem:[%s4581_s11 + $0x54c] sm:$0xf]  ;;  %v2154_v7 = vadd.f32 %v5157_v46, %v2135_v55  ;;  %v5261_v19 = vpop.permute.xlu1 %925 }
 0x1b9   : > { %2581 = vmatpush.bf16.msra.mxu2 %v3641_v53  ;;  %2492 = vmatmul.bf16.vlgmr.msrb.gmra.mxu1 %v4678_v8  ;;  %v3995_v53 = vld [vmem:[%s4581_s11 + $0x62c] sm:$0xf]  ;;  %v3593_v39 = vor.u32 %v3967_v1, %v3590_v6  ;;  %v3558_v1 = vld [vmem:[%s4581_s11 + $0x518] sm:$0xf0]  ;;  %v2102_v6 = vadd.f32 %v5195_v30, %v5261_v19 }
 0x1ba   : > { %2562 = vmatpush.bf16.msra.mxu1 %v3513_v42  ;;  %3774 = vmatmul.msk.bf16.vlgmr.msrb.gmra.mxu0 %vm2078_vm0, %v4835_v32  ;;  %v2100_v42 = vadd.f32 %v5159_v47, %v5222_v59  ;;  %v3963_v61 = vld [vmem:[%s4581_s11 + $0x52c] sm:$0xf] }
 0x1bb   : > { %2600 = vmatpush.bf16.msra.mxu3 %v3769_v37  ;;  %2543 = vmatpush.bf16.msra.mxu0 %v3385_v38  ;;  %v5224_v12 = vpop.f32.mrf.mxu3  ;;  %v2170_v37 = vpop.f32.mrf.mxu0  ;;  %v3478_v38 = vld [vmem:[%s4581_s11 + $0x478] sm:$0xf0] }
 0x1bc   : > { %v2171_v41 = vadd.f32 %v2170_v37, %v2152_v20  ;;  %2511 = vmatmul.bf16.vlgmr.msrb.gmra.mxu2 %v4683_v13  ;;  %2530 = vmatmul.bf16.vlgmr.msrb.gmra.mxu3 %v4685_v14  ;;  %v3481_v8 = vor.u32 %v3939_v34, %v3478_v38  ;;  %v2119_v10 = vadd.f32 %v5166_v52, %v2100_v42  ;;  %v5263_v20 = vpop.permute.xlu0 %2649  ;;  %v3895_v34 = vld [vmem:[%s4581_s11 + $0x30c] sm:$0xf]  ;;  %v3302_v38 = vld [vmem:[%s4581_s11 + $0x318] sm:$0xf0] }
 0x1bd   : > { %2582 = vmatpush.bf16.msra.mxu2 %v3625_v4  ;;  %v3991_v4 = vld [vmem:[%s4581_s11 + $0x60c] sm:$0xf]  ;;  %v3577_v52 = vor.u32 %v3963_v61, %v3574_v0 }
 0x1be   : > { %2563 = vmatpush.bf16.msra.mxu1 %v3497_v31  ;;  %v2190_v60 = vadd.f32 %v2189_v24, %v2171_v41  ;;  %v2191_v15 = vpop.f32.mrf.mxu1  ;;  %v3321_v24 = vor.u32 %v3899_v62, %v3318_v63  ;;  %v3446_v31 = vld [vmem:[%s4581_s11 + $0x438] sm:$0xf0]  ;;  %v2138_v48 = vadd.f32 %v5187_v22, %v2119_v10  ;;  %v2121_v63 = vadd.f32 %v5201_v44, %v2102_v6 }
 0x1bf   : > { %2601 = vmatpush.bf16.msra.mxu3 %v3753_v54  ;;  %2544 = vmatpush.bf16.msra.mxu0 %v3369_v57  ;;  %v3702_v54 = vld [vmem:[%s4581_s11 + $0x638] sm:$0xf0]  ;;  %v3935_v57 = vld [vmem:[%s4581_s11 + $0x44c] sm:$0xf]  ;;  %v2208_v13 = vpop.f32.mrf.mxu2 }
 0x1c0   : > { %v3705_v47 = vor.u32 %v3995_v53, %v3702_v54  ;;  %v2209_v11 = vadd.f32 %v2208_v13, %v2190_v60  ;;  %v3465_v37 = vor.u32 %v3935_v57, %v3462_v58  ;;  %v3449_v53 = vor.u32 %v3931_v25, %v3446_v31  ;;  %v3430_v57 = vld [vmem:[%s4581_s11 + $0x418] sm:$0xf0] }
 0x1c1   : > { %2583 = vmatpush.bf16.msra.mxu2 %v3609_v43  ;;  %v5271_v43 = vpop.permute.xlu2 %2679  ;;  %v3305_v54 = vor.u32 %v3895_v34, %v3302_v38  ;;  %v2157_v22 = vadd.f32 %v5193_v29, %v2138_v48 }
 0x1c2   : > { %2564 = vmatpush.bf16.msra.mxu1 %v3481_v8  ;;  %v2617_v46 = vmax.f32 %v2209_v11, 0.0 }
 0x1c3   : > { %2602 = vmatpush.bf16.msra.mxu3 %v3737_v5  ;;  %2545 = vmatpush.bf16.msra.mxu0 %v3353_v33  ;;  %v5254_v14 = vpop.f32.mrf.mxu3  ;;  %v3686_v5 = vld [vmem:[%s4581_s11 + $0x618] sm:$0xf0]  ;;  %v2172_v2 = vpop.f32.mrf.mxu0 }
 0x1c4   : > { %v2173_v33 = vadd.f32 %v2172_v2, %v2154_v7  ;;  %v3689_v41 = vor.u32 %v3991_v4, %v3686_v5  ;;  %v2657_v49 = vmul.f32 %v5189_v23, %v2617_v46  ;;  %v5294_v29 = vpop.permute.xlu0 %2684  ;;  %v2140_v4 = vadd.f32 %v5217_v3, %v2121_v63 }
 0x1c5   : > { %2584 = vmatpush.bf16.msra.mxu2 %v3593_v39 }
 0x1c6   : > { %2565 = vmatpush.bf16.msra.mxu1 %v3465_v37  ;;  %v2192_v55 = vadd.f32 %v2191_v15, %v2173_v33  ;;  %v2697_v42 = vadd.f32 %v5271_v43, %v2657_v49  ;;  %v2194_v61 = vpop.f32.mrf.mxu1  ;;  %v2159_v2 = vadd.f32 %v5224_v12, %v2140_v4 }
 0x1c7   : > { %2603 = vmatpush.bf16.msra.mxu3 %v3721_v45  ;;  %2546 = vmatpush.bf16.msra.mxu0 %v3337_v56  ;;  %v3959_v45 = vld [vmem:[%s4581_s11 + $0x50c] sm:$0xf]  ;;  %v2210_v58 = vpop.f32.mrf.mxu2 }
 0x1c8   : > { %v3561_v8 = vor.u32 %v3959_v45, %v3558_v1  ;;  %v3927_v56 = vld [vmem:[%s4581_s11 + $0x40c] sm:$0xf]  ;;  %2713 = vst [vmem:[%s5285_s18] sm:$0xff] %v2697_v42  ;;  %v2211_v30 = vadd.f32 %v2210_v58, %v2192_v55  ;;  %v2228_v42 = vadd.f32 %v5254_v14, %v5164_v51 }
 0x1c9   : > { %2585 = vmatpush.bf16.msra.mxu2 %v3577_v52  ;;  %v3433_v62 = vor.u32 %v3927_v56, %v3430_v57  ;;  %2497 = vmatmul.bf16.gmra.mxu1 %v4755_v9 }
 0x1ca   : > { %2566 = vmatpush.bf16.msra.mxu1 %v3449_v53  ;;  %v2621_v13 = vmax.f32 %v2211_v30, 0.0  ;;  %3775 = vmatmul.msk.bf16.gmra.mxu0 %vm2078_vm0, %v4908_v40 }
 0x1cb   : > { %2604 = vmatpush.bf16.msra.mxu3 %v3705_v47  ;;  %2547 = vmatpush.bf16.msra.mxu0 %v3321_v24  ;;  %v5282_v60 = vpop.f32.mrf.mxu3  ;;  %v2175_v39 = vpop.f32.mrf.mxu0 }
 0x1cc   : > { %v5288_v47 = vpop.permute.xlu1 %2654  ;;  %v2176_v0 = vadd.f32 %v2175_v39, %v2157_v22  ;;  %v2661_v5 = vmul.f32 %v5231_v26, %v2621_v13  ;;  %2516 = vmatmul.bf16.gmra.mxu2 %v4760_v16  ;;  %2535 = vmatmul.bf16.gmra.mxu3 %v4762_v18  ;;  %v2230_v22 = vadd.f32 %v5282_v60, %v5206_v50 }
 0x1cd   : > { %2586 = vmatpush.bf16.msra.mxu2 %v3561_v8 }
 0x1ce   : > { %2567 = vmatpush.bf16.msra.mxu1 %v3433_v62  ;;  %v2195_v44 = vadd.f32 %v2194_v61, %v2176_v0  ;;  %v2701_v7 = vadd.f32 %v5294_v29, %v2661_v5  ;;  %v2196_v37 = vpop.f32.mrf.mxu1 }
 0x1cf   : > { %2605 = vmatpush.bf16.msra.mxu3 %v3689_v41  ;;  %2548 = vmatpush.bf16.msra.mxu0 %v3305_v54  ;;  %v2213_v10 = vpop.f32.mrf.mxu2  ;;  %v5310_v41 = vpop.permute.xlu2 %2694 }
 0x1d0   : > { %2717 = vst [vmem:[%s5285_s18 + $0x20] sm:$0xff] %v2701_v7  ;;  %v2214_v9 = vadd.f32 %v2213_v10, %v2195_v44 }
 0x1d2   : > { %v2625_v3 = vmax.f32 %v2214_v9, 0.0 }
 0x1d3   : > { %v2232_v11 = vpop.f32.mrf.mxu3  ;;  %v2177_v15 = vpop.f32.mrf.mxu0 }
 0x1d4   : > { %v2178_v24 = vadd.f32 %v2177_v15, %v2159_v2  ;;  %v5303_v25 = vpop.permute.xlu1 %2689  ;;  %v2665_v16 = vmul.f32 %v5263_v20, %v2625_v3 }
 0x1d6   : > { %v2197_v18 = vadd.f32 %v2196_v37, %v2178_v24  ;;  %v2705_v31 = vadd.f32 %v5303_v25, %v2665_v16  ;;  %v2265_v12 = vpop.f32.mrf.mxu1 }
 0x1d7   : > { %v2215_v46 = vpop.f32.mrf.mxu2 }
 0x1d8   : > { %2721 = vst [vmem:[%s5285_s18 + $0x40] sm:$0xff] %v2705_v31  ;;  %v2216_v52 = vadd.f32 %v2215_v46, %v2197_v18 }
 0x1d9   : > { %2568 = vmatmul.bf16.vlgmr.msra.gmra.mxu1 %v4828_v27 }
 0x1da   : > { %v2629_v38 = vmax.f32 %v2216_v52, 0.0  ;;  %2549 = vmatmul.bf16.vlgmr.msra.gmra.mxu0 %v4689_v17 }
 0x1db   : > { %v2234_v33 = vpop.f32.mrf.mxu3  ;;  %v2246_v34 = vpop.f32.mrf.mxu0 }
 0x1dc   : > { %v2669_v45 = vmul.f32 %v5288_v47, %v2629_v38  ;;  %2587 = vmatmul.bf16.vlgmr.msra.gmra.mxu2 %v4830_v28  ;;  %3776 = vmatmul.msk.bf16.vlgmr.msra.gmra.mxu3 %vm2078_vm0, %v4835_v32  ;;  %v2247_v28 = vadd.f32 %v2246_v34, %v2228_v42  ;;  %v2235_v24 = vadd.f32 %v2234_v33, %v5261_v19 }
 0x1de   : > { %v2709_v1 = vadd.f32 %v5310_v41, %v2669_v45  ;;  %v2267_v53 = vpop.f32.mrf.mxu1  ;;  %v2266_v58 = vadd.f32 %v2265_v12, %v2247_v28 }
 0x1df   : > { %v2284_v48 = vpop.f32.mrf.mxu2 }
 0x1e0   : > { %2725 = vst [vmem:[%s5285_s18 + $0x60] sm:$0xff] %v2709_v1  ;;  %v2285_v30 = vadd.f32 %v2284_v48, %v2266_v58 }
 0x1e3   : > { %v2303_v49 = vpop.f32.mrf.mxu3  ;;  %v2248_v6 = vpop.f32.mrf.mxu0 }
 0x1e4   : > { %v2249_v14 = vadd.f32 %v2248_v6, %v2230_v22  ;;  %v2304_v39 = vadd.f32 %v2303_v49, %v2285_v30 }
 0x1e6   : > { %v2270_v27 = vpop.f32.mrf.mxu1 }
 0x1e7   : > { %v2286_v54 = vpop.f32.mrf.mxu2 }
 0x1e9   : > { %2573 = vmatmul.bf16.gmra.mxu1 %v4901_v35 }
 0x1ea   : > { %2554 = vmatmul.bf16.gmra.mxu0 %v4766_v21 }
 0x1eb   : > { %v2305_v17 = vpop.f32.mrf.mxu3  ;;  %v2251_v55 = vpop.f32.mrf.mxu0 }
 0x1ec   : > { %2592 = vmatmul.bf16.gmra.mxu2 %v4903_v36  ;;  %3777 = vmatmul.msk.bf16.gmra.mxu3 %vm2078_vm0, %v4908_v40  ;;  %v2268_v36 = vadd.f32 %v2267_v53, %v2249_v14  ;;  %v2233_v40 = vadd.f32 %v2232_v11, %v5222_v59 }
 0x1ee   : > { %v2272_v57 = vpop.f32.mrf.mxu1  ;;  %v2287_v13 = vadd.f32 %v2286_v54, %v2268_v36  ;;  %v2252_v4 = vadd.f32 %v2251_v55, %v2233_v40 }
 0x1ef   : > { %v2289_v32 = vpop.f32.mrf.mxu2 }
 0x1f0   : > { %v2306_v44 = vadd.f32 %v2305_v17, %v2287_v13  ;;  %v2271_v15 = vadd.f32 %v2270_v27, %v2252_v4 }
 0x1f2   : > { %v2290_v11 = vadd.f32 %v2289_v32, %v2271_v15 }
 0x1f3   : > { %v2308_v8 = vpop.f32.mrf.mxu3  ;;  %v2253_v56 = vpop.f32.mrf.mxu0 }
 0x1f4   : > { %v2254_v18 = vadd.f32 %v2253_v56, %v2235_v24  ;;  %v2309_v46 = vadd.f32 %v2308_v8, %v2290_v11 }
 0x1f6   : > { %v2341_v62 = vpop.f32.mrf.mxu1  ;;  %v2273_v1 = vadd.f32 %v2272_v57, %v2254_v18 }
 0x1f7   : > { %v2291_v21 = vpop.f32.mrf.mxu2 }
 0x1f8   : > { %v2292_v6 = vadd.f32 %v2291_v21, %v2273_v1 }
 0x1fb   : > { %v2310_v61 = vpop.f32.mrf.mxu3  ;;  %v2322_v35 = vpop.f32.mrf.mxu0 }
 0x1fc   : > { %v2323_v63 = vadd.f32 %v2322_v35, %v2304_v39  ;;  %v2311_v54 = vadd.f32 %v2310_v61, %v2292_v6 }
 0x1fe   : > { %v2342_v0 = vadd.f32 %v2341_v62, %v2323_v63  ;;  %v2343_v9 = vpop.f32.mrf.mxu1 }
 0x1ff   : > { %v2360_v60 = vpop.f32.mrf.mxu2 }
 0x200   : > { %v2618_v5 = vmax.f32 %v2342_v0, 0.0  ;;  %v2361_v63 = vadd.f32 %v2360_v60, %v5164_v51 }
 0x202   : > { %v2658_v7 = vmul.f32 %v5189_v23, %v2618_v5 }
 0x203   : > { %v2379_v10 = vpop.f32.mrf.mxu3  ;;  %v2324_v2 = vpop.f32.mrf.mxu0 }
 0x204   : > { %v2698_v37 = vadd.f32 %v5271_v43, %v2658_v7  ;;  %v2325_v3 = vadd.f32 %v2324_v2, %v2306_v44  ;;  %v2380_v5 = vadd.f32 %v2379_v10, %v2361_v63 }
 0x206   : > { %2714 = vst [vmem:[%s5285_s18 + $0x8] sm:$0xff] %v2698_v37  ;;  %v2344_v16 = vadd.f32 %v2343_v9, %v2325_v3  ;;  %v2346_v45 = vpop.f32.mrf.mxu1 }
 0x207   : > { %v2362_v34 = vpop.f32.mrf.mxu2 }
 0x208   : > { %v2622_v31 = vmax.f32 %v2344_v16, 0.0  ;;  %v2363_v7 = vadd.f32 %v2362_v34, %v5206_v50 }
 0x20a   : > { %v2662_v52 = vmul.f32 %v5231_v26, %v2622_v31 }
 0x20b   : > { %v2381_v12 = vpop.f32.mrf.mxu3  ;;  %v2327_v38 = vpop.f32.mrf.mxu0 }
 0x20c   : > { %v2702_v48 = vadd.f32 %v5294_v29, %v2662_v52  ;;  %v2328_v49 = vadd.f32 %v2327_v38, %v2309_v46  ;;  %v2382_v24 = vadd.f32 %v2381_v12, %v2363_v7 }
 0x20e   : > { %2718 = vst [vmem:[%s5285_s18 + $0x28] sm:$0xff] %v2702_v48  ;;  %v2347_v33 = vadd.f32 %v2346_v45, %v2328_v49  ;;  %v2348_v28 = vpop.f32.mrf.mxu1 }
 0x20f   : > { %v2365_v55 = vpop.f32.mrf.mxu2 }
 0x210   : > { %v2626_v53 = vmax.f32 %v2347_v33, 0.0  ;;  %v2366_v18 = vadd.f32 %v2365_v55, %v5222_v59 }
 0x212   : > { %v2666_v17 = vmul.f32 %v5263_v20, %v2626_v53 }
 0x213   : > { %v2384_v27 = vpop.f32.mrf.mxu3  ;;  %v2329_v42 = vpop.f32.mrf.mxu0 }
 0x214   : > { %v2706_v32 = vadd.f32 %v5303_v25, %v2666_v17  ;;  %v2330_v8 = vadd.f32 %v2329_v42, %v2311_v54  ;;  %v2385_v1 = vadd.f32 %v2384_v27, %v2366_v18 }
 0x216   : > { %2722 = vst [vmem:[%s5285_s18 + $0x48] sm:$0xff] %v2706_v32  ;;  %v2349_v56 = vadd.f32 %v2348_v28, %v2330_v8  ;;  %v2417_v39 = vpop.f32.mrf.mxu1 }
 0x217   : > { %v2367_v22 = vpop.f32.mrf.mxu2 }
 0x218   : > { %v2630_v57 = vmax.f32 %v2349_v56, 0.0  ;;  %v2368_v12 = vadd.f32 %v2367_v22, %v5261_v19 }
 0x21a   : > { %v2670_v58 = vmul.f32 %v5288_v47, %v2630_v57 }
 0x21b   : > { %v2386_v30 = vpop.f32.mrf.mxu3  ;;  %v2398_v14 = vpop.f32.mrf.mxu0 }
 0x21c   : > { %v2710_v21 = vadd.f32 %v5310_v41, %v2670_v58  ;;  %v2399_v44 = vadd.f32 %v2398_v14, %v2380_v5  ;;  %v2387_v8 = vadd.f32 %v2386_v30, %v2368_v12 }
 0x21e   : > { %2726 = vst [vmem:[%s5285_s18 + $0x68] sm:$0xff] %v2710_v21  ;;  %v2419_v36 = vpop.f32.mrf.mxu1  ;;  %v2418_v3 = vadd.f32 %v2417_v39, %v2399_v44 }
 0x21f   : > { %v2436_v61 = vpop.f32.mrf.mxu2 }
 0x220   : > { %v2437_v11 = vadd.f32 %v2436_v61, %v2418_v3 }
 0x223   : > { %v2455_v35 = vpop.f32.mrf.mxu3  ;;  %v2400_v62 = vpop.f32.mrf.mxu0 }
 0x224   : > { %v2401_v16 = vadd.f32 %v2400_v62, %v2382_v24  ;;  %v2456_v31 = vadd.f32 %v2455_v35, %v2437_v11 }
 0x226   : > { %v2422_v4 = vpop.f32.mrf.mxu1  ;;  %v2420_v10 = vadd.f32 %v2419_v36, %v2401_v16 }
 0x227   : > { %v2438_v40 = vpop.f32.mrf.mxu2 }
 0x228   : > { %v2439_v34 = vadd.f32 %v2438_v40, %v2420_v10 }
 0x22b   : > { %v2457_v13 = vpop.f32.mrf.mxu3  ;;  %v2403_v0 = vpop.f32.mrf.mxu0 }
 0x22c   : > { %v2404_v49 = vadd.f32 %v2403_v0, %v2385_v1  ;;  %v2458_v33 = vadd.f32 %v2457_v13, %v2439_v34 }
 0x22e   : > { %v2424_v37 = vpop.f32.mrf.mxu1  ;;  %v2423_v28 = vadd.f32 %v2422_v4, %v2404_v49 }
 0x22f   : > { %v2441_v2 = vpop.f32.mrf.mxu2 }
 0x230   : > { %v2442_v27 = vadd.f32 %v2441_v2, %v2423_v28 }
 0x233   : > { %v2460_v9 = vpop.f32.mrf.mxu3  ;;  %v2405_v15 = vpop.f32.mrf.mxu0 }
 0x234   : > { %v2406_v57 = vadd.f32 %v2405_v15, %v2387_v8  ;;  %v2461_v14 = vadd.f32 %v2460_v9, %v2442_v27 }
 0x236   : > { %v2493_v38 = vpop.f32.mrf.mxu1  ;;  %v2425_v62 = vadd.f32 %v2424_v37, %v2406_v57 }
 0x237   : > { %v2443_v60 = vpop.f32.mrf.mxu2  ;;  %v2494_v44 = vadd.f32 %v2493_v38, %v5164_v51 }
 0x238   : > { %v2444_v63 = vadd.f32 %v2443_v60, %v2425_v62 }
 0x23b   : > { %v2462_v46 = vpop.f32.mrf.mxu3  ;;  %v2474_v52 = vpop.f32.mrf.mxu0 }
 0x23c   : > { %v2475_v45 = vadd.f32 %v2474_v52, %v2456_v31  ;;  %v2463_v13 = vadd.f32 %v2462_v46, %v2444_v63 }
 0x23e   : > { %v2619_v48 = vmax.f32 %v2475_v45, 0.0  ;;  %v2495_v42 = vpop.f32.mrf.mxu1 }
 0x23f   : > { %v2512_v54 = vpop.f32.mrf.mxu2  ;;  %v2496_v46 = vadd.f32 %v2495_v42, %v5206_v50 }
 0x240   : > { %v2659_v6 = vmul.f32 %v5189_v23, %v2619_v48  ;;  %v2513_v37 = vadd.f32 %v2512_v54, %v2494_v44 }
 0x242   : > { %v2699_v53 = vadd.f32 %v5271_v43, %v2659_v6 }
 0x243   : > { %v2531_v17 = vpop.f32.mrf.mxu3  ;;  %v2476_v55 = vpop.f32.mrf.mxu0 }
 0x244   : > { %2715 = vst [vmem:[%s5285_s18 + $0x10] sm:$0xff] %v2699_v53  ;;  %v2477_v32 = vadd.f32 %v2476_v55, %v2458_v33  ;;  %v2532_v18 = vadd.f32 %v2531_v17, %v2513_v37  ;;  %v2761_v37 = vld [vmem:[%s5285_s18 + $0x28] sm:$0xff] (%p4130_p5) }
 0x245   : > { %2762 = vst [vmem:[%s2738_s26 + $0x48] sm:$0xff] (%p4130_p5), %v2761_v37 }
 0x246   : > { %v2623_v56 = vmax.f32 %v2477_v32, 0.0  ;;  %v2498_v35 = vpop.f32.mrf.mxu1 }
 0x247   : > { %v2514_v39 = vpop.f32.mrf.mxu2  ;;  %v2499_v34 = vadd.f32 %v2498_v35, %v5222_v59 }
 0x248   : > { %v2663_v58 = vmul.f32 %v5231_v26, %v2623_v56  ;;  %v2515_v51 = vadd.f32 %v2514_v39, %v2496_v46  ;;  %v2777_v46 = vld [vmem:[%s5285_s18 + $0x68] sm:$0xff] (%p4130_p5) }
 0x249   : > { %2778 = vst [vmem:[%s2738_s26 + $0xc8] sm:$0xff] (%p4130_p5), %v2777_v46 }
 0x24a   : > { %v2703_v22 = vadd.f32 %v5294_v29, %v2663_v58 }
 0x24b   : > { %v2533_v21 = vpop.f32.mrf.mxu3  ;;  %v2479_v61 = vpop.f32.mrf.mxu0 }
 0x24c   : > { %2719 = vst [vmem:[%s5285_s18 + $0x30] sm:$0xff] %v2703_v22  ;;  %v2480_v36 = vadd.f32 %v2479_v61, %v2461_v14  ;;  %v2534_v1 = vadd.f32 %v2533_v21, %v2515_v51 }
 0x24e   : > { %v2627_v40 = vmax.f32 %v2480_v36, 0.0  ;;  %v2500_v2 = vpop.f32.mrf.mxu1 }
 0x24f   : > { %v2517_v4 = vpop.f32.mrf.mxu2  ;;  %v2501_v59 = vadd.f32 %v2500_v2, %v5261_v19 }
 0x250   : > { %v2667_v30 = vmul.f32 %v5263_v20, %v2627_v40  ;;  %v2518_v53 = vadd.f32 %v2517_v4, %v2499_v34 }
 0x252   : > { %v2707_v0 = vadd.f32 %v5303_v25, %v2667_v30 }
 0x253   : > { %v2536_v5 = vpop.f32.mrf.mxu3  ;;  %v2481_v7 = vpop.f32.mrf.mxu0 }
 0x254   : > { %2723 = vst [vmem:[%s5285_s18 + $0x50] sm:$0xff] %v2707_v0  ;;  %v2482_v9 = vadd.f32 %v2481_v7, %v2463_v13  ;;  %v2537_v28 = vadd.f32 %v2536_v5, %v2518_v53 }
 0x256   : > { %v2631_v15 = vmax.f32 %v2482_v9, 0.0  ;;  %v2569_v60 = vpop.f32.mrf.mxu1 }
 0x257   : > { %v2519_v11 = vpop.f32.mrf.mxu2 }
 0x258   : > { %v2671_v3 = vmul.f32 %v5288_v47, %v2631_v15  ;;  %v2520_v14 = vadd.f32 %v2519_v11, %v2501_v59  ;;  %v2759_v15 = vld [vmem:[%s5285_s18 + $0x20] sm:$0xff] (%p4130_p5) }
 0x259   : > { %2760 = vst [vmem:[%s2738_s26 + $0x40] sm:$0xff] (%p4130_p5), %v2759_v15  ;;  %v2767_v11 = vld [vmem:[%s5285_s18 + $0x40] sm:$0xff] (%p4130_p5) }
 0x25a   : > { %v2711_v24 = vadd.f32 %v5310_v41, %v2671_v3  ;;  %v2763_v3 = vld [vmem:[%s5285_s18 + $0x30] sm:$0xff] (%p4130_p5)  ;;  %2768 = vst [vmem:[%s2738_s26 + $0x80] sm:$0xff] (%p4130_p5), %v2767_v11 }
 0x25b   : > { %v2538_v16 = vpop.f32.mrf.mxu3  ;;  %v2550_v31 = vpop.f32.mrf.mxu0  ;;  %2764 = vst [vmem:[%s2738_s26 + $0x50] sm:$0xff] (%p4130_p5), %v2763_v3 }
 0x25c   : > { %2727 = vst [vmem:[%s5285_s18 + $0x70] sm:$0xff] %v2711_v24  ;;  %v2551_v52 = vadd.f32 %v2550_v31, %v2532_v18  ;;  %v2539_v35 = vadd.f32 %v2538_v16, %v2520_v14  ;;  %v2769_v16 = vld [vmem:[%s5285_s18 + $0x48] sm:$0xff] (%p4130_p5)  ;;  %v2771_v18 = vld [vmem:[%s5285_s18 + $0x50] sm:$0xff] (%p4130_p5) }
 0x25d   : > { %2770 = vst [vmem:[%s2738_s26 + $0x88] sm:$0xff] (%p4130_p5), %v2769_v16 }
 0x25e   : > { %v2570_v38 = vadd.f32 %v2569_v60, %v2551_v52  ;;  %v2571_v6 = vpop.f32.mrf.mxu1  ;;  %v2775_v60 = vld [vmem:[%s5285_s18 + $0x60] sm:$0xff] (%p4130_p5)  ;;  %2772 = vst [vmem:[%s2738_s26 + $0x90] sm:$0xff] (%p4130_p5), %v2771_v18 }
 0x25f   : > { %v2588_v10 = vpop.f32.mrf.mxu2  ;;  %2776 = vst [vmem:[%s2738_s26 + $0xc0] sm:$0xff] (%p4130_p5), %v2775_v60 }
 0x260   : > { %v2589_v48 = vadd.f32 %v2588_v10, %v2570_v38 }
 0x263   : > { %v2607_v45 = vpop.f32.mrf.mxu3  ;;  %v2552_v49 = vpop.f32.mrf.mxu0  ;;  %v2779_v52 = vld [vmem:[%s5285_s18 + $0x70] sm:$0xff] (%p4130_p5) }
 0x264   : > { %v2608_v12 = vadd.f32 %v2607_v45, %v2589_v48  ;;  %v2553_v33 = vadd.f32 %v2552_v49, %v2534_v1  ;;  %2780 = vst [vmem:[%s2738_s26 + $0xd0] sm:$0xff] (%p4130_p5), %v2779_v52 }
 0x266   : > { %v2620_v54 = vmax.f32 %v2608_v12, 0.0  ;;  %v2572_v55 = vadd.f32 %v2571_v6, %v2553_v33  ;;  %v2574_v58 = vpop.f32.mrf.mxu1 }
 0x267   : > { %v2590_v50 = vpop.f32.mrf.mxu2 }
 0x268   : > { %v2660_v17 = vmul.f32 %v5189_v23, %v2620_v54  ;;  %v2591_v8 = vadd.f32 %v2590_v50, %v2572_v55 }
 0x26a   : > { %v2700_v32 = vadd.f32 %v5271_v43, %v2660_v17 }
 0x26b   : > { %v2609_v42 = vpop.f32.mrf.mxu3  ;;  %v2555_v27 = vpop.f32.mrf.mxu0 }
 0x26c   : > { %2716 = vst [vmem:[%s5285_s18 + $0x18] sm:$0xff] %v2700_v32  ;;  %v2610_v56 = vadd.f32 %v2609_v42, %v2591_v8  ;;  %v2556_v57 = vadd.f32 %v2555_v27, %v2537_v28 }
 0x26e   : > { %v2624_v22 = vmax.f32 %v2610_v56, 0.0  ;;  %v2575_v23 = vadd.f32 %v2574_v58, %v2556_v57  ;;  %v2576_v30 = vpop.f32.mrf.mxu1 }
 0x26f   : > { %v2593_v21 = vpop.f32.mrf.mxu2 }
 0x270   : > { %v2664_v39 = vmul.f32 %v5231_v26, %v2624_v22  ;;  %v2594_v62 = vadd.f32 %v2593_v21, %v2575_v23 }
 0x272   : > { %v2704_v43 = vadd.f32 %v5294_v29, %v2664_v39 }
 0x273   : > { %v2612_v61 = vpop.f32.mrf.mxu3  ;;  %v2557_v36 = vpop.f32.mrf.mxu0 }
 0x274   : > { %2720 = vst [vmem:[%s5285_s18 + $0x38] sm:$0xff] %v2704_v43  ;;  %v2613_v19 = vadd.f32 %v2612_v61, %v2594_v62  ;;  %v2558_v63 = vadd.f32 %v2557_v36, %v2539_v35 }
 0x276   : > { %v2628_v40 = vmax.f32 %v2613_v19, 0.0  ;;  %v2577_v0 = vadd.f32 %v2576_v30, %v2558_v63 }
 0x277   : > { %v2595_v4 = vpop.f32.mrf.mxu2 }
 0x278   : > { %v2668_v13 = vmul.f32 %v5263_v20, %v2628_v40  ;;  %v2596_v5 = vadd.f32 %v2595_v4, %v2577_v0  ;;  %v2751_v20 = vld [vmem:[%s5285_s18] sm:$0xff] (%p4130_p5) }
 0x279   : > { %2752 = vst [vmem:[%s2738_s26] sm:$0xff] (%p4130_p5), %v2751_v20 }
 0x27a   : > { %v2708_v26 = vadd.f32 %v5303_v25, %v2668_v13  ;;  %v2755_v25 = vld [vmem:[%s5285_s18 + $0x10] sm:$0xff] (%p4130_p5) }
 0x27b   : > { %v2614_v44 = vpop.f32.mrf.mxu3  ;;  %2756 = vst [vmem:[%s2738_s26 + $0x10] sm:$0xff] (%p4130_p5), %v2755_v25  ;;  %v2765_v24 = vld [vmem:[%s5285_s18 + $0x38] sm:$0xff] (%p4130_p5) }
 0x27c   : > { %2724 = vst [vmem:[%s5285_s18 + $0x58] sm:$0xff] %v2708_v26  ;;  %v2615_v7 = vadd.f32 %v2614_v44, %v2596_v5 }
 0x27d   : > { %2766 = vst [vmem:[%s2738_s26 + $0x58] sm:$0xff] (%p4130_p5), %v2765_v24 }
 0x27e   : > { %v2632_v2 = vmax.f32 %v2615_v7, 0.0 }
 0x280   : > { %v2672_v29 = vmul.f32 %v5288_v47, %v2632_v2  ;;  %2735 = sbr.rel (!%p4130_p5) target bundleno = 653 (0x28d), region = 67  ;;  %v2753_v47 = vld [vmem:[%s5285_s18 + $0x8] sm:$0xff] (%p4130_p5) }
 0x281   : > { %2754 = vst [vmem:[%s2738_s26 + $0x8] sm:$0xff] (%p4130_p5), %v2753_v47 }
 0x282   : > { %v2712_v9 = vadd.f32 %v5310_v41, %v2672_v29  ;;  %v2757_v41 = vld [vmem:[%s5285_s18 + $0x18] sm:$0xff] (%p4130_p5) }
 0x283   : > { %2758 = vst [vmem:[%s2738_s26 + $0x18] sm:$0xff] (%p4130_p5), %v2757_v41  ;;  %v2773_v31 = vld [vmem:[%s5285_s18 + $0x58] sm:$0xff] (%p4130_p5) }
 0x284   : > { %2728 = vst [vmem:[%s5285_s18 + $0x78] sm:$0xff] %v2712_v9 }
 0x285   : > { %2774 = vst [vmem:[%s2738_s26 + $0x98] sm:$0xff] %v2773_v31 }
 0x28b   : > { %v2781_v51 = vld [vmem:[%s5285_s18 + $0x78] sm:$0xff] }
 0x28c   : > { %2782 = vst [vmem:[%s2738_s26 + $0xd8] sm:$0xff] %v2781_v51 }
 0x28d PF: > { %p12_p10 = scmp.ge.s32.totalorder %s4117_s22, 4   ;;  %s5413_s18 = smov %s4063_s19 }
 0x28e   : > { %s5414_s19 = smov %s4128_s25  ;;  %s5415_s20 = smov %s4117_s22 }
 0x28f   :  { %14 = sbr.rel (!%p12_p10) target bundleno = 2 (0x2), region = 121 }

// kernel: forward.9
= control target key start
LH: loop header
LB: loop body
LE: loop exit
PB: predicated region body
PF: predicated region fallthrough
CT: control target
= control target key end

     0   :  { %s2466_s0 = inlined_call_operand.vmem [shape: bf16[2,256], index: 0, kind: input, shape index: {}]   ;;  %s2467_s1 = inlined_call_operand.vmem [shape: bf16[256,768], index: 1, kind: input, shape index: {}]   ;;  %s2468_s2 = inlined_call_operand.vmem [shape: f32[1,768], index: 2, kind: input, shape index: {}]   ;;  %s2469_s3 = inlined_call_operand.vmem [shape: f32[768,3], index: 3, kind: input, shape index: {}]   ;;  %s2470_s4 = inlined_call_operand.vmem [shape: f32[1,3], index: 4, kind: input, shape index: {}]   ;;  %s2471_s5 = inlined_call_operand.hbm [shape: f32[2,3], index: 5, kind: output, shape index: {}]  }
   0x1   :  { %v1193_v0 = vld [vmem:[%s2467_s1 + $0x150] sm:$0xf]  ;;  %v1452_v1 = vld [vmem:[%s2467_s1 + $0x164] sm:$0xf0]  ;;  %v1449_v5 = vld [vmem:[%s2467_s1 + $0x154] sm:$0xf] }
   0x2   :  { %v1385_v2 = vld [vmem:[%s2467_s1 + $0x2d0] sm:$0xf]  ;;  %v1194_v3 = vor.u32 %v1452_v1, %v1193_v0  ;;  %v1500_v4 = vld [vmem:[%s2467_s1 + $0x2e4] sm:$0xf0]  ;;  %v1195_v6 = vld [vmem:[%s2467_s1 + $0x168] sm:$0xf0] }
   0x3   :  { %v1386_v7 = vor.u32 %v1500_v4, %v1385_v2  ;;  %v1198_v8 = vor.u32 %v1449_v5, %v1195_v6  ;;  %v1497_v9 = vld [vmem:[%s2467_s1 + $0x2d4] sm:$0xf]  ;;  %v1387_v10 = vld [vmem:[%s2467_s1 + $0x2e8] sm:$0xf0]  ;;  %v1169_v11 = vld [vmem:[%s2467_s1 + $0x120] sm:$0xf] }
   0x4   :  { %618 = vmatpush.bf16.msra.mxu0 %v1194_v3  ;;  %v1390_v12 = vor.u32 %v1497_v9, %v1387_v10  ;;  %v1446_v13 = vld [vmem:[%s2467_s1 + $0x134] sm:$0xf0]  ;;  %v1361_v14 = vld [vmem:[%s2467_s1 + $0x2a0] sm:$0xf]  ;;  %v1443_v18 = vld [vmem:[%s2467_s1 + $0x124] sm:$0xf] }
   0x5   :  { %v1494_v15 = vld [vmem:[%s2467_s1 + $0x2b4] sm:$0xf0]  ;;  %631 = vmatpush.bf16.msra.mxu1 %v1386_v7  ;;  %644 = vmatpush.bf16.msra.mxu2 %v1198_v8  ;;  %v1170_v16 = vor.u32 %v1446_v13, %v1169_v11  ;;  %v1171_v19 = vld [vmem:[%s2467_s1 + $0x138] sm:$0xf0]  ;;  %v1491_v20 = vld [vmem:[%s2467_s1 + $0x2a4] sm:$0xf] }
   0x6   :  { %v1362_v17 = vor.u32 %v1494_v15, %v1361_v14  ;;  %657 = vmatpush.bf16.msra.mxu3 %v1390_v12  ;;  %v1174_v21 = vor.u32 %v1443_v18, %v1171_v19  ;;  %v1363_v22 = vld [vmem:[%s2467_s1 + $0x2b8] sm:$0xf0]  ;;  %v1145_v23 = vld [vmem:[%s2467_s1 + $0xf0] sm:$0xf]  ;;  %v1440_v24 = vld [vmem:[%s2467_s1 + $0x104] sm:$0xf0] }
   0x7   :  { %v1366_v25 = vor.u32 %v1491_v20, %v1363_v22  ;;  %v1337_v26 = vld [vmem:[%s2467_s1 + $0x270] sm:$0xf]  ;;  %v1488_v27 = vld [vmem:[%s2467_s1 + $0x284] sm:$0xf0]  ;;  %v1437_v28 = vld [vmem:[%s2467_s1 + $0xf4] sm:$0xf]  ;;  %v1146_v29 = vor.u32 %v1440_v24, %v1145_v23 }
   0x8   :  { %619 = vmatpush.bf16.msra.mxu0 %v1170_v16  ;;  %v1147_v30 = vld [vmem:[%s2467_s1 + $0x108] sm:$0xf0]  ;;  %v1485_v31 = vld [vmem:[%s2467_s1 + $0x274] sm:$0xf]  ;;  %v1338_v33 = vor.u32 %v1488_v27, %v1337_v26  ;;  %v1121_v35 = vld [vmem:[%s2467_s1 + $0xc0] sm:$0xf] }
   0x9   :  { %v1339_v32 = vld [vmem:[%s2467_s1 + $0x288] sm:$0xf0]  ;;  %632 = vmatpush.bf16.msra.mxu1 %v1362_v17  ;;  %645 = vmatpush.bf16.msra.mxu2 %v1174_v21  ;;  %v1150_v34 = vor.u32 %v1437_v28, %v1147_v30  ;;  %v1434_v36 = vld [vmem:[%s2467_s1 + $0xd4] sm:$0xf0]  ;;  %v1313_v37 = vld [vmem:[%s2467_s1 + $0x240] sm:$0xf] }
   0xa   :  { %658 = vmatpush.bf16.msra.mxu3 %v1366_v25  ;;  %v1342_v38 = vor.u32 %v1485_v31, %v1339_v32  ;;  %v1482_v39 = vld [vmem:[%s2467_s1 + $0x254] sm:$0xf0]  ;;  %v1431_v40 = vld [vmem:[%s2467_s1 + $0xc4] sm:$0xf]  ;;  %v1123_v41 = vld [vmem:[%s2467_s1 + $0xd8] sm:$0xf0]  ;;  %v1122_v44 = vor.u32 %v1434_v36, %v1121_v35 }
   0xb   :  { %v1479_v42 = vld [vmem:[%s2467_s1 + $0x244] sm:$0xf]  ;;  %v1315_v43 = vld [vmem:[%s2467_s1 + $0x258] sm:$0xf0]  ;;  %v1314_v45 = vor.u32 %v1482_v39, %v1313_v37  ;;  %v1126_v46 = vor.u32 %v1431_v40, %v1123_v41  ;;  %v1097_v47 = vld [vmem:[%s2467_s1 + $0x90] sm:$0xf] }
   0xc   :  { %620 = vmatpush.bf16.msra.mxu0 %v1146_v29  ;;  %v1428_v48 = vld [vmem:[%s2467_s1 + $0xa4] sm:$0xf0]  ;;  %v1289_v49 = vld [vmem:[%s2467_s1 + $0x210] sm:$0xf]  ;;  %v1318_v50 = vor.u32 %v1479_v42, %v1315_v43  ;;  %v1425_v52 = vld [vmem:[%s2467_s1 + $0x94] sm:$0xf] }
   0xd   :  { %633 = vmatpush.bf16.msra.mxu1 %v1338_v33  ;;  %646 = vmatpush.bf16.msra.mxu2 %v1150_v34  ;;  %v1476_v51 = vld [vmem:[%s2467_s1 + $0x224] sm:$0xf0]  ;;  %v1099_v53 = vld [vmem:[%s2467_s1 + $0xa8] sm:$0xf0]  ;;  %v1473_v54 = vld [vmem:[%s2467_s1 + $0x214] sm:$0xf]  ;;  %v1098_v56 = vor.u32 %v1428_v48, %v1097_v47 }
   0xe   :  { %659 = vmatpush.bf16.msra.mxu3 %v1342_v38  ;;  %v1291_v55 = vld [vmem:[%s2467_s1 + $0x228] sm:$0xf0]  ;;  %v1290_v57 = vor.u32 %v1476_v51, %v1289_v49  ;;  %v1102_v58 = vor.u32 %v1425_v52, %v1099_v53  ;;  %v1073_v59 = vld [vmem:[%s2467_s1 + $0x60] sm:$0xf]  ;;  %v1422_v60 = vld [vmem:[%s2467_s1 + $0x74] sm:$0xf0] }
   0xf   :  { %v1265_v61 = vld [vmem:[%s2467_s1 + $0x1e0] sm:$0xf]  ;;  %v1294_v62 = vor.u32 %v1473_v54, %v1291_v55  ;;  %v1470_v63 = vld [vmem:[%s2467_s1 + $0x1f4] sm:$0xf0]  ;;  %v1419_v0 = vld [vmem:[%s2467_s1 + $0x64] sm:$0xf]  ;;  %v1074_v4 = vor.u32 %v1422_v60, %v1073_v59 }
  0x10   :  { %621 = vmatpush.bf16.msra.mxu0 %v1122_v44  ;;  %v1075_v1 = vld [vmem:[%s2467_s1 + $0x78] sm:$0xf0]  ;;  %v1467_v2 = vld [vmem:[%s2467_s1 + $0x1e4] sm:$0xf]  ;;  %v1266_v5 = vor.u32 %v1470_v63, %v1265_v61  ;;  %v1049_v7 = vld [vmem:[%s2467_s1 + $0x30] sm:$0xf] }
  0x11   :  { %634 = vmatpush.bf16.msra.mxu1 %v1314_v45  ;;  %647 = vmatpush.bf16.msra.mxu2 %v1126_v46  ;;  %v1267_v3 = vld [vmem:[%s2467_s1 + $0x1f8] sm:$0xf0]  ;;  %v1078_v6 = vor.u32 %v1419_v0, %v1075_v1  ;;  %v1416_v8 = vld [vmem:[%s2467_s1 + $0x44] sm:$0xf0]  ;;  %v1241_v9 = vld [vmem:[%s2467_s1 + $0x1b0] sm:$0xf] }
  0x12   :  { %660 = vmatpush.bf16.msra.mxu3 %v1318_v50  ;;  %v1270_v10 = vor.u32 %v1467_v2, %v1267_v3  ;;  %v1464_v11 = vld [vmem:[%s2467_s1 + $0x1c4] sm:$0xf0]  ;;  %v1413_v12 = vld [vmem:[%s2467_s1 + $0x34] sm:$0xf]  ;;  %v1051_v13 = vld [vmem:[%s2467_s1 + $0x48] sm:$0xf0]  ;;  %v1050_v16 = vor.u32 %v1416_v8, %v1049_v7 }
  0x13   :  { %v1461_v14 = vld [vmem:[%s2467_s1 + $0x1b4] sm:$0xf]  ;;  %v1243_v15 = vld [vmem:[%s2467_s1 + $0x1c8] sm:$0xf0]  ;;  %v1025_v17 = vld [vmem:[%s2467_s1] sm:$0xf]  ;;  %v1242_v19 = vor.u32 %v1464_v11, %v1241_v9  ;;  %v1054_v20 = vor.u32 %v1413_v12, %v1051_v13 }
  0x14   :  { %622 = vmatpush.bf16.msra.mxu0 %v1098_v56  ;;  %v1410_v18 = vld [vmem:[%s2467_s1 + $0x14] sm:$0xf0]  ;;  %v1217_v21 = vld [vmem:[%s2467_s1 + $0x180] sm:$0xf]  ;;  %v1407_v23 = vld [vmem:[%s2467_s1 + $0x4] sm:$0xf]  ;;  %v1246_v24 = vor.u32 %v1461_v14, %v1243_v15 }
  0x15   :  { %635 = vmatpush.bf16.msra.mxu1 %v1290_v57  ;;  %648 = vmatpush.bf16.msra.mxu2 %v1102_v58  ;;  %v1458_v22 = vld [vmem:[%s2467_s1 + $0x194] sm:$0xf0]  ;;  %v1027_v25 = vld [vmem:[%s2467_s1 + $0x18] sm:$0xf0]  ;;  %v1455_v26 = vld [vmem:[%s2467_s1 + $0x184] sm:$0xf]  ;;  %v1026_v31 = vor.u32 %v1410_v18, %v1025_v17 }
  0x16   :  { %661 = vmatpush.bf16.msra.mxu3 %v1294_v62  ;;  %v1219_v27 = vld [vmem:[%s2467_s1 + $0x198] sm:$0xf0]  ;;  %v1201_v28 = vld [vmem:[%s2467_s1 + $0x158] sm:$0xf]  ;;  %v1453_v29 = vld [vmem:[%s2467_s1 + $0x16c] sm:$0xf0]  ;;  %v1218_v35 = vor.u32 %v1458_v22, %v1217_v21  ;;  %v1030_v36 = vor.u32 %v1407_v23, %v1027_v25 }
  0x17   :  { %v1393_v30 = vld [vmem:[%s2467_s1 + $0x2d8] sm:$0xf]  ;;  %v1501_v32 = vld [vmem:[%s2467_s1 + $0x2ec] sm:$0xf0]  ;;  %v1450_v33 = vld [vmem:[%s2467_s1 + $0x15c] sm:$0xf]  ;;  %v1222_v39 = vor.u32 %v1455_v26, %v1219_v27  ;;  %v1202_v40 = vor.u32 %v1453_v29, %v1201_v28 }
  0x18   :  { %623 = vmatpush.bf16.msra.mxu0 %v1074_v4  ;;  %v1203_v34 = vld [vmem:[%s2467_s1 + $0x170] sm:$0xf0]  ;;  %v1498_v37 = vld [vmem:[%s2467_s1 + $0x2dc] sm:$0xf]  ;;  %v1394_v41 = vor.u32 %v1501_v32, %v1393_v30  ;;  %v1177_v43 = vld [vmem:[%s2467_s1 + $0x128] sm:$0xf] }
  0x19   :  { %636 = vmatpush.bf16.msra.mxu1 %v1266_v5  ;;  %649 = vmatpush.bf16.msra.mxu2 %v1078_v6  ;;  %v1395_v38 = vld [vmem:[%s2467_s1 + $0x2f0] sm:$0xf0]  ;;  %v1206_v42 = vor.u32 %v1450_v33, %v1203_v34  ;;  %v1447_v44 = vld [vmem:[%s2467_s1 + $0x13c] sm:$0xf0]  ;;  %v1369_v45 = vld [vmem:[%s2467_s1 + $0x2a8] sm:$0xf] }
  0x1a   :  { %662 = vmatpush.bf16.msra.mxu3 %v1270_v10  ;;  %v1398_v46 = vor.u32 %v1498_v37, %v1395_v38  ;;  %v1495_v47 = vld [vmem:[%s2467_s1 + $0x2bc] sm:$0xf0]  ;;  %v1444_v48 = vld [vmem:[%s2467_s1 + $0x12c] sm:$0xf]  ;;  %v1179_v49 = vld [vmem:[%s2467_s1 + $0x140] sm:$0xf0]  ;;  %v1178_v53 = vor.u32 %v1447_v44, %v1177_v43 }
  0x1b   :  { %v1492_v50 = vld [vmem:[%s2467_s1 + $0x2ac] sm:$0xf]  ;;  %v1371_v51 = vld [vmem:[%s2467_s1 + $0x2c0] sm:$0xf0]  ;;  %v21_v52 = vld [vmem:[%s2466_s0] sm:$0x3]  ;;  %v1370_v54 = vor.u32 %v1495_v47, %v1369_v45  ;;  %v1182_v55 = vor.u32 %v1444_v48, %v1179_v49 }
  0x1c   :  { %624 = vmatpush.bf16.msra.mxu0 %v1050_v16  ;;  %133 = vst [vmem:[#allocation1] ss:$9 sm:$0xff] %v21_v52  ;;  %v1153_v56 = vld [vmem:[%s2467_s1 + $0xf8] sm:$0xf]  ;;  %v1441_v57 = vld [vmem:[%s2467_s1 + $0x10c] sm:$0xf0]  ;;  %v1374_v59 = vor.u32 %v1492_v50, %v1371_v51 }
  0x1d   :  { %637 = vmatpush.bf16.msra.mxu1 %v1242_v19  ;;  %650 = vmatpush.bf16.msra.mxu2 %v1054_v20  ;;  %v1345_v58 = vld [vmem:[%s2467_s1 + $0x278] sm:$0xf]  ;;  %v1489_v60 = vld [vmem:[%s2467_s1 + $0x28c] sm:$0xf0]  ;;  %v1438_v61 = vld [vmem:[%s2467_s1 + $0xfc] sm:$0xf]  ;;  %v1154_v1 = vor.u32 %v1441_v57, %v1153_v56 }
  0x1e   :  { %663 = vmatpush.bf16.msra.mxu3 %v1246_v24  ;;  %v1155_v62 = vld [vmem:[%s2467_s1 + $0x110] sm:$0xf0]  ;;  %v1486_v63 = vld [vmem:[%s2467_s1 + $0x27c] sm:$0xf]  ;;  %v1346_v2 = vor.u32 %v1489_v60, %v1345_v58  ;;  %v1129_v4 = vld [vmem:[%s2467_s1 + $0xc8] sm:$0xf] }
  0x1f   :  { %v1347_v0 = vld [vmem:[%s2467_s1 + $0x290] sm:$0xf0]  ;;  %v1158_v3 = vor.u32 %v1438_v61, %v1155_v62  ;;  %v1435_v5 = vld [vmem:[%s2467_s1 + $0xdc] sm:$0xf0]  ;;  %v1321_v6 = vld [vmem:[%s2467_s1 + $0x248] sm:$0xf] }
  0x20   :  { %625 = vmatpush.bf16.msra.mxu0 %v1026_v31  ;;  %v1350_v7 = vor.u32 %v1486_v63, %v1347_v0  ;;  %v1483_v8 = vld [vmem:[%s2467_s1 + $0x25c] sm:$0xf0]  ;;  %v1432_v9 = vld [vmem:[%s2467_s1 + $0xcc] sm:$0xf]  ;;  %v1131_v10 = vld [vmem:[%s2467_s1 + $0xe0] sm:$0xf0]  ;;  %v1130_v14 = vor.u32 %v1435_v5, %v1129_v4 }
  0x21   :  { %638 = vmatpush.bf16.msra.mxu1 %v1218_v35  ;;  %651 = vmatpush.bf16.msra.mxu2 %v1030_v36  ;;  %v1480_v11 = vld [vmem:[%s2467_s1 + $0x24c] sm:$0xf]  ;;  %v1323_v12 = vld [vmem:[%s2467_s1 + $0x260] sm:$0xf0]  ;;  %v1322_v16 = vor.u32 %v1483_v8, %v1321_v6  ;;  %v1134_v17 = vor.u32 %v1432_v9, %v1131_v10  ;;  %v1105_v18 = vld [vmem:[%s2467_s1 + $0x98] sm:$0xf] }
  0x22   :  { %664 = vmatpush.bf16.msra.mxu3 %v1222_v39  ;;  %v1429_v19 = vld [vmem:[%s2467_s1 + $0xac] sm:$0xf0]  ;;  %v1297_v20 = vld [vmem:[%s2467_s1 + $0x218] sm:$0xf]  ;;  %v1326_v21 = vor.u32 %v1480_v11, %v1323_v12  ;;  %v1426_v23 = vld [vmem:[%s2467_s1 + $0x9c] sm:$0xf] }
  0x23   :  { %v1857_v13 = vld [vmem:[#allocation1] sm:$0xff]  ;;  %v1860_v15 = vld [vmem:[#allocation1 + $0x9] sm:$0xff]  ;;  %v1107_v24 = vld [vmem:[%s2467_s1 + $0xb0] sm:$0xf0]  ;;  %v1106_v27 = vor.u32 %v1429_v19, %v1105_v18 }
  0x24   :  { %670 = vmatpush.bf16.msrb.mxu0 %v1202_v40  ;;  %652 = vmatmul.bf16.vlgmr.msra.gmra.mxu2 %v1857_v13  ;;  %v1477_v22 = vld [vmem:[%s2467_s1 + $0x22c] sm:$0xf0]  ;;  %v1474_v25 = vld [vmem:[%s2467_s1 + $0x21c] sm:$0xf]  ;;  %v1299_v26 = vld [vmem:[%s2467_s1 + $0x230] sm:$0xf0]  ;;  %v1110_v29 = vor.u32 %v1426_v23, %v1107_v24 }
  0x25   :  { %683 = vmatpush.bf16.msrb.mxu1 %v1394_v41  ;;  %696 = vmatpush.bf16.msrb.mxu2 %v1206_v42  ;;  %v1298_v28 = vor.u32 %v1477_v22, %v1297_v20  ;;  %v1081_v30 = vld [vmem:[%s2467_s1 + $0x68] sm:$0xf]  ;;  %v1423_v31 = vld [vmem:[%s2467_s1 + $0x7c] sm:$0xf0]  ;;  %v1302_v33 = vor.u32 %v1474_v25, %v1299_v26  ;;  %v1420_v35 = vld [vmem:[%s2467_s1 + $0x6c] sm:$0xf] }
  0x26   :  { %709 = vmatpush.bf16.msrb.mxu3 %v1398_v46  ;;  %626 = vmatmul.bf16.vlgmr.msra.gmra.mxu0 %v1857_v13  ;;  %v1273_v32 = vld [vmem:[%s2467_s1 + $0x1e8] sm:$0xf]  ;;  %v1471_v34 = vld [vmem:[%s2467_s1 + $0x1fc] sm:$0xf0]  ;;  %v1083_v36 = vld [vmem:[%s2467_s1 + $0x80] sm:$0xf0]  ;;  %v1082_v39 = vor.u32 %v1423_v31, %v1081_v30 }
  0x27   :  { %639 = vmatmul.bf16.vlgmr.msra.gmra.mxu1 %v1860_v15  ;;  %665 = vmatmul.bf16.vlgmr.msra.gmra.mxu3 %v1860_v15  ;;  %v1468_v37 = vld [vmem:[%s2467_s1 + $0x1ec] sm:$0xf]  ;;  %v1275_v38 = vld [vmem:[%s2467_s1 + $0x200] sm:$0xf0]  ;;  %v1274_v40 = vor.u32 %v1471_v34, %v1273_v32  ;;  %v1086_v41 = vor.u32 %v1420_v35, %v1083_v36  ;;  %v1057_v42 = vld [vmem:[%s2467_s1 + $0x38] sm:$0xf] }
  0x28   :  { %671 = vmatpush.bf16.msrb.mxu0 %v1178_v53  ;;  %v1417_v43 = vld [vmem:[%s2467_s1 + $0x4c] sm:$0xf0]  ;;  %v1249_v44 = vld [vmem:[%s2467_s1 + $0x1b8] sm:$0xf]  ;;  %v1278_v45 = vor.u32 %v1468_v37, %v1275_v38  ;;  %v1414_v47 = vld [vmem:[%s2467_s1 + $0x3c] sm:$0xf] }
  0x29   :  { %684 = vmatpush.bf16.msrb.mxu1 %v1370_v54  ;;  %697 = vmatpush.bf16.msrb.mxu2 %v1182_v55  ;;  %v1465_v46 = vld [vmem:[%s2467_s1 + $0x1cc] sm:$0xf0]  ;;  %v1059_v48 = vld [vmem:[%s2467_s1 + $0x50] sm:$0xf0]  ;;  %v1462_v49 = vld [vmem:[%s2467_s1 + $0x1bc] sm:$0xf]  ;;  %v1058_v51 = vor.u32 %v1417_v43, %v1057_v42 }
  0x2a   :  { %710 = vmatpush.bf16.msrb.mxu3 %v1374_v59  ;;  %v1251_v50 = vld [vmem:[%s2467_s1 + $0x1d0] sm:$0xf0]  ;;  %v1033_v52 = vld [vmem:[%s2467_s1 + $0x8] sm:$0xf]  ;;  %v1411_v53 = vld [vmem:[%s2467_s1 + $0x1c] sm:$0xf0]  ;;  %v1250_v54 = vor.u32 %v1465_v46, %v1249_v44  ;;  %v1062_v55 = vor.u32 %v1414_v47, %v1059_v48 }
  0x2b   :  { %v1225_v56 = vld [vmem:[%s2467_s1 + $0x188] sm:$0xf]  ;;  %v1459_v57 = vld [vmem:[%s2467_s1 + $0x19c] sm:$0xf0]  ;;  %v1408_v58 = vld [vmem:[%s2467_s1 + $0xc] sm:$0xf]  ;;  %v1254_v59 = vor.u32 %v1462_v49, %v1251_v50 }
  0x2c   :  { %672 = vmatpush.bf16.msrb.mxu0 %v1154_v1  ;;  %v1035_v60 = vld [vmem:[%s2467_s1 + $0x20] sm:$0xf0]  ;;  %v1456_v61 = vld [vmem:[%s2467_s1 + $0x18c] sm:$0xf]  ;;  %v1209_v63 = vld [vmem:[%s2467_s1 + $0x160] sm:$0xf]  ;;  %v1226_v6 = vor.u32 %v1459_v57, %v1225_v56 }
  0x2d   :  { %685 = vmatpush.bf16.msrb.mxu1 %v1346_v2  ;;  %698 = vmatpush.bf16.msrb.mxu2 %v1158_v3  ;;  %v1227_v62 = vld [vmem:[%s2467_s1 + $0x1a0] sm:$0xf0]  ;;  %v1454_v0 = vld [vmem:[%s2467_s1 + $0x174] sm:$0xf0]  ;;  %v1401_v1 = vld [vmem:[%s2467_s1 + $0x2e0] sm:$0xf]  ;;  %v1034_v2 = vor.u32 %v1411_v53, %v1033_v52 }
  0x2e   :  { %711 = vmatpush.bf16.msrb.mxu3 %v1350_v7  ;;  %v1502_v3 = vld [vmem:[%s2467_s1 + $0x2f4] sm:$0xf0]  ;;  %v1451_v4 = vld [vmem:[%s2467_s1 + $0x164] sm:$0xf]  ;;  %v1211_v5 = vld [vmem:[%s2467_s1 + $0x178] sm:$0xf0]  ;;  %v1038_v7 = vor.u32 %v1408_v58, %v1035_v60  ;;  %v1230_v10 = vor.u32 %v1456_v61, %v1227_v62  ;;  %v1210_v11 = vor.u32 %v1454_v0, %v1209_v63 }
  0x2f   :  { %v1499_v8 = vld [vmem:[%s2467_s1 + $0x2e4] sm:$0xf]  ;;  %v1403_v9 = vld [vmem:[%s2467_s1 + $0x2f8] sm:$0xf0]  ;;  %v1402_v12 = vor.u32 %v1502_v3, %v1401_v1  ;;  %v1377_v18 = vld [vmem:[%s2467_s1 + $0x2b0] sm:$0xf] }
  0x30   :  { %673 = vmatpush.bf16.msrb.mxu0 %v1130_v14  ;;  %v1214_v14 = vor.u32 %v1451_v4, %v1211_v5  ;;  %v1406_v19 = vor.u32 %v1499_v8, %v1403_v9  ;;  %v1496_v20 = vld [vmem:[%s2467_s1 + $0x2c4] sm:$0xf0]  ;;  %v1187_v22 = vld [vmem:[%s2467_s1 + $0x148] sm:$0xf0]  ;;  %v1493_v23 = vld [vmem:[%s2467_s1 + $0x2b4] sm:$0xf] }
  0x31   :  { %686 = vmatpush.bf16.msrb.mxu1 %v1322_v16  ;;  %699 = vmatpush.bf16.msrb.mxu2 %v1134_v17  ;;  %v1185_v16 = vld [vmem:[%s2467_s1 + $0x130] sm:$0xf]  ;;  %v1448_v17 = vld [vmem:[%s2467_s1 + $0x144] sm:$0xf0]  ;;  %v1379_v24 = vld [vmem:[%s2467_s1 + $0x2c8] sm:$0xf0]  ;;  %v1378_v26 = vor.u32 %v1496_v20, %v1377_v18 }
  0x32   :  { %712 = vmatpush.bf16.msrb.mxu3 %v1326_v21  ;;  %v1445_v21 = vld [vmem:[%s2467_s1 + $0x134] sm:$0xf]  ;;  %v1186_v25 = vor.u32 %v1448_v17, %v1185_v16  ;;  %v1353_v30 = vld [vmem:[%s2467_s1 + $0x280] sm:$0xf]  ;;  %v1382_v31 = vor.u32 %v1493_v23, %v1379_v24  ;;  %v1490_v32 = vld [vmem:[%s2467_s1 + $0x294] sm:$0xf0] }
  0x33   :  { %v1163_v34 = vld [vmem:[%s2467_s1 + $0x118] sm:$0xf0]  ;;  %v1487_v35 = vld [vmem:[%s2467_s1 + $0x284] sm:$0xf]  ;;  %v1137_v38 = vld [vmem:[%s2467_s1 + $0xd0] sm:$0xf] }
  0x34   :  { %674 = vmatpush.bf16.msrb.mxu0 %v1106_v27  ;;  %v1190_v27 = vor.u32 %v1445_v21, %v1187_v22  ;;  %v1355_v36 = vld [vmem:[%s2467_s1 + $0x298] sm:$0xf0]  ;;  %v1329_v42 = vld [vmem:[%s2467_s1 + $0x250] sm:$0xf]  ;;  %v1484_v43 = vld [vmem:[%s2467_s1 + $0x264] sm:$0xf0] }
  0x35   :  { %687 = vmatpush.bf16.msrb.mxu1 %v1298_v28  ;;  %700 = vmatpush.bf16.msrb.mxu2 %v1110_v29  ;;  %v1161_v28 = vld [vmem:[%s2467_s1 + $0x100] sm:$0xf]  ;;  %v1442_v29 = vld [vmem:[%s2467_s1 + $0x114] sm:$0xf0]  ;;  %v1358_v44 = vor.u32 %v1487_v35, %v1355_v36  ;;  %v1139_v46 = vld [vmem:[%s2467_s1 + $0xe8] sm:$0xf0] }
  0x36   :  { %713 = vmatpush.bf16.msrb.mxu3 %v1302_v33  ;;  %v1439_v33 = vld [vmem:[%s2467_s1 + $0x104] sm:$0xf]  ;;  %v1162_v37 = vor.u32 %v1442_v29, %v1161_v28 }
  0x38   :  { %675 = vmatpush.bf16.msrb.mxu0 %v1082_v39  ;;  %v1354_v39 = vor.u32 %v1490_v32, %v1353_v30 }
  0x39   :  { %688 = vmatpush.bf16.msrb.mxu1 %v1274_v40  ;;  %701 = vmatpush.bf16.msrb.mxu2 %v1086_v41  ;;  %v1166_v40 = vor.u32 %v1439_v33, %v1163_v34  ;;  %v1436_v41 = vld [vmem:[%s2467_s1 + $0xe4] sm:$0xf0] }
  0x3a   :  { %714 = vmatpush.bf16.msrb.mxu3 %v1278_v45  ;;  %v1433_v45 = vld [vmem:[%s2467_s1 + $0xd4] sm:$0xf] }
  0x3c   :  { %676 = vmatpush.bf16.msrb.mxu0 %v1058_v51 }
  0x3d   :  { %689 = vmatpush.bf16.msrb.mxu1 %v1250_v54  ;;  %702 = vmatpush.bf16.msrb.mxu2 %v1062_v55 }
  0x3e   :  { %715 = vmatpush.bf16.msrb.mxu3 %v1254_v59 }
  0x40   :  { %677 = vmatpush.bf16.msrb.mxu0 %v1034_v2 }
  0x41   :  { %690 = vmatpush.bf16.msrb.mxu1 %v1226_v6  ;;  %703 = vmatpush.bf16.msrb.mxu2 %v1038_v7 }
  0x42   :  { %716 = vmatpush.bf16.msrb.mxu3 %v1230_v10 }
  0x43   :  { %678 = vmatmul.bf16.vlgmr.msrb.gmra.mxu0 %v1857_v13 }
  0x44   :  { %722 = vmatpush.bf16.msra.mxu0 %v1210_v11  ;;  %704 = vmatmul.bf16.vlgmr.msrb.gmra.mxu2 %v1857_v13 }
  0x45   :  { %735 = vmatpush.bf16.msra.mxu1 %v1402_v12  ;;  %748 = vmatpush.bf16.msra.mxu2 %v1214_v14 }
  0x46   :  { %761 = vmatpush.bf16.msra.mxu3 %v1406_v19  ;;  %691 = vmatmul.bf16.vlgmr.msrb.gmra.mxu1 %v1860_v15 }
  0x47   :  { %717 = vmatmul.bf16.vlgmr.msrb.gmra.mxu3 %v1860_v15 }
  0x48   :  { %723 = vmatpush.bf16.msra.mxu0 %v1186_v25 }
  0x49   :  { %736 = vmatpush.bf16.msra.mxu1 %v1378_v26  ;;  %749 = vmatpush.bf16.msra.mxu2 %v1190_v27 }
  0x4a   :  { %762 = vmatpush.bf16.msra.mxu3 %v1382_v31 }
  0x4b   :  { %10 = vsyncpa [#allocation3], 0  ;;  %v1481_v47 = vld [vmem:[%s2467_s1 + $0x254] sm:$0xf]  ;;  %v1331_v48 = vld [vmem:[%s2467_s1 + $0x268] sm:$0xf0]  ;;  %v1138_v49 = vor.u32 %v1436_v41, %v1137_v38  ;;  %v1330_v50 = vor.u32 %v1484_v43, %v1329_v42  ;;  %v1142_v51 = vor.u32 %v1433_v45, %v1139_v46 }
  0x4c   :  { %724 = vmatpush.bf16.msra.mxu0 %v1162_v37  ;;  %v1113_v52 = vld [vmem:[%s2467_s1 + $0xa0] sm:$0xf]  ;;  %v1430_v53 = vld [vmem:[%s2467_s1 + $0xb4] sm:$0xf0]  ;;  %v1334_v55 = vor.u32 %v1481_v47, %v1331_v48  ;;  %v1427_v57 = vld [vmem:[%s2467_s1 + $0xa4] sm:$0xf] }
  0x4d   :  { %737 = vmatpush.bf16.msra.mxu1 %v1354_v39  ;;  %750 = vmatpush.bf16.msra.mxu2 %v1166_v40  ;;  %v1305_v54 = vld [vmem:[%s2467_s1 + $0x220] sm:$0xf]  ;;  %v1478_v56 = vld [vmem:[%s2467_s1 + $0x234] sm:$0xf0]  ;;  %v1115_v58 = vld [vmem:[%s2467_s1 + $0xb8] sm:$0xf0]  ;;  %v1114_v61 = vor.u32 %v1430_v53, %v1113_v52 }
  0x4e   :  { %763 = vmatpush.bf16.msra.mxu3 %v1358_v44  ;;  %v1475_v59 = vld [vmem:[%s2467_s1 + $0x224] sm:$0xf]  ;;  %v1307_v60 = vld [vmem:[%s2467_s1 + $0x238] sm:$0xf0]  ;;  %v1306_v62 = vor.u32 %v1478_v56, %v1305_v54  ;;  %v1118_v63 = vor.u32 %v1427_v57, %v1115_v58  ;;  %v1089_v0 = vld [vmem:[%s2467_s1 + $0x70] sm:$0xf] }
  0x4f   :  { %v1424_v1 = vld [vmem:[%s2467_s1 + $0x84] sm:$0xf0]  ;;  %v1281_v2 = vld [vmem:[%s2467_s1 + $0x1f0] sm:$0xf]  ;;  %v1310_v3 = vor.u32 %v1475_v59, %v1307_v60  ;;  %v1421_v5 = vld [vmem:[%s2467_s1 + $0x74] sm:$0xf] }
  0x50   :  { %725 = vmatpush.bf16.msra.mxu0 %v1138_v49  ;;  %v1472_v4 = vld [vmem:[%s2467_s1 + $0x204] sm:$0xf0]  ;;  %v1091_v6 = vld [vmem:[%s2467_s1 + $0x88] sm:$0xf0]  ;;  %v1469_v7 = vld [vmem:[%s2467_s1 + $0x1f4] sm:$0xf]  ;;  %v1090_v9 = vor.u32 %v1424_v1, %v1089_v0 }
  0x51   :  { %738 = vmatpush.bf16.msra.mxu1 %v1330_v50  ;;  %751 = vmatpush.bf16.msra.mxu2 %v1142_v51  ;;  %v1283_v8 = vld [vmem:[%s2467_s1 + $0x208] sm:$0xf0]  ;;  %v1282_v10 = vor.u32 %v1472_v4, %v1281_v2  ;;  %v1094_v11 = vor.u32 %v1421_v5, %v1091_v6  ;;  %v1065_v12 = vld [vmem:[%s2467_s1 + $0x40] sm:$0xf]  ;;  %v1418_v14 = vld [vmem:[%s2467_s1 + $0x54] sm:$0xf0] }
  0x52   :  { %764 = vmatpush.bf16.msra.mxu3 %v1334_v55  ;;  %v1257_v16 = vld [vmem:[%s2467_s1 + $0x1c0] sm:$0xf]  ;;  %v1286_v17 = vor.u32 %v1469_v7, %v1283_v8  ;;  %v1466_v18 = vld [vmem:[%s2467_s1 + $0x1d4] sm:$0xf0]  ;;  %v1415_v19 = vld [vmem:[%s2467_s1 + $0x44] sm:$0xf]  ;;  %v1066_v23 = vor.u32 %v1418_v14, %v1065_v12 }
  0x53   :  { %v1067_v20 = vld [vmem:[%s2467_s1 + $0x58] sm:$0xf0]  ;;  %v1463_v21 = vld [vmem:[%s2467_s1 + $0x1c4] sm:$0xf]  ;;  %v1258_v24 = vor.u32 %v1466_v18, %v1257_v16  ;;  %v1041_v26 = vld [vmem:[%s2467_s1 + $0x10] sm:$0xf] }
  0x54   :  { %726 = vmatpush.bf16.msra.mxu0 %v1114_v61  ;;  %v1259_v22 = vld [vmem:[%s2467_s1 + $0x1d8] sm:$0xf0]  ;;  %v1070_v25 = vor.u32 %v1415_v19, %v1067_v20  ;;  %v1412_v27 = vld [vmem:[%s2467_s1 + $0x24] sm:$0xf0]  ;;  %v1233_v28 = vld [vmem:[%s2467_s1 + $0x190] sm:$0xf] }
  0x55   :  { %739 = vmatpush.bf16.msra.mxu1 %v1306_v62  ;;  %752 = vmatpush.bf16.msra.mxu2 %v1118_v63  ;;  %v1262_v29 = vor.u32 %v1463_v21, %v1259_v22  ;;  %v1460_v30 = vld [vmem:[%s2467_s1 + $0x1a4] sm:$0xf0]  ;;  %v1409_v31 = vld [vmem:[%s2467_s1 + $0x14] sm:$0xf]  ;;  %v1043_v32 = vld [vmem:[%s2467_s1 + $0x28] sm:$0xf0]  ;;  %v1042_v35 = vor.u32 %v1412_v27, %v1041_v26 }
  0x56   :  { %765 = vmatpush.bf16.msra.mxu3 %v1310_v3  ;;  %v1457_v33 = vld [vmem:[%s2467_s1 + $0x194] sm:$0xf]  ;;  %v1235_v34 = vld [vmem:[%s2467_s1 + $0x1a8] sm:$0xf0]  ;;  %v1234_v36 = vor.u32 %v1460_v30, %v1233_v28  ;;  %v1046_v37 = vor.u32 %v1409_v31, %v1043_v32  ;;  %v795_v39 = vld [vmem:[%s2469_s3 + $0x78] sm:$0xff]  ;;  %s1535_s23 = smov [#allocation2]  }
  0x57   :  { %v1238_v38 = vor.u32 %v1457_v33, %v1235_v34  ;;  %v827_v40 = vld [vmem:[%s2469_s3 + $0x178] sm:$0xff]  ;;  %v794_v41 = vld [vmem:[%s2469_s3 + $0x70] sm:$0xff]  ;;  %v793_v44 = vld [vmem:[%s2469_s3 + $0x68] sm:$0xff]  ;;  %vm1005_vm0 = vcmask 17408  }
  0x58   :  { %727 = vmatpush.bf16.msra.mxu0 %v1090_v9  ;;  %v826_v42 = vld [vmem:[%s2469_s3 + $0x170] sm:$0xff]  ;;  %v811_v43 = vld [vmem:[%s2469_s3 + $0xf8] sm:$0xff]  ;;  %v825_v46 = vld [vmem:[%s2469_s3 + $0x168] sm:$0xff] }
  0x59   :  { %740 = vmatpush.bf16.msra.mxu1 %v1282_v10  ;;  %753 = vmatpush.bf16.msra.mxu2 %v1094_v11  ;;  %v843_v45 = vld [vmem:[%s2469_s3 + $0x1f8] sm:$0xff]  ;;  %v810_v47 = vld [vmem:[%s2469_s3 + $0xf0] sm:$0xff]  ;;  %v809_v48 = vld [vmem:[%s2469_s3 + $0xe8] sm:$0xff] }
  0x5a   :  { %766 = vmatpush.bf16.msra.mxu3 %v1286_v17  ;;  %v791_v49 = vld [vmem:[%s2469_s3 + $0x58] sm:$0xff]  ;;  %v790_v50 = vld [vmem:[%s2469_s3 + $0x50] sm:$0xff]  ;;  %v808_v53 = vld [vmem:[%s2469_s3 + $0xe0] sm:$0xff] }
  0x5b   :  { %v823_v51 = vld [vmem:[%s2469_s3 + $0x158] sm:$0xff]  ;;  %v842_v52 = vld [vmem:[%s2469_s3 + $0x1f0] sm:$0xff]  ;;  %v789_v54 = vld [vmem:[%s2469_s3 + $0x48] sm:$0xff] }
  0x5c   :  { %728 = vmatpush.bf16.msra.mxu0 %v1066_v23  ;;  %v822_v55 = vld [vmem:[%s2469_s3 + $0x150] sm:$0xff]  ;;  %v841_v56 = vld [vmem:[%s2469_s3 + $0x1e8] sm:$0xff]  ;;  %v807_v57 = vld [vmem:[%s2469_s3 + $0xd8] sm:$0xff] }
  0x5d   :  { %741 = vmatpush.bf16.msra.mxu1 %v1258_v24  ;;  %754 = vmatpush.bf16.msra.mxu2 %v1070_v25  ;;  %v788_v58 = vld [vmem:[%s2469_s3 + $0x40] sm:$0xff]  ;;  %v821_v59 = vld [vmem:[%s2469_s3 + $0x148] sm:$0xff]  ;;  %v806_v61 = vld [vmem:[%s2469_s3 + $0xd0] sm:$0xff] }
  0x5e   :  { %767 = vmatpush.bf16.msra.mxu3 %v1262_v29  ;;  %v840_v60 = vld [vmem:[%s2469_s3 + $0x1e0] sm:$0xff]  ;;  %v787_v62 = vld [vmem:[%s2469_s3 + $0x38] sm:$0xff]  ;;  %v805_v1 = vld [vmem:[%s2469_s3 + $0xc8] sm:$0xff] }
  0x5f   :  { %v820_v63 = vld [vmem:[%s2469_s3 + $0x140] sm:$0xff]  ;;  %v839_v0 = vld [vmem:[%s2469_s3 + $0x1d8] sm:$0xff]  ;;  %v786_v2 = vld [vmem:[%s2469_s3 + $0x30] sm:$0xff] }
  0x60   :  { %729 = vmatpush.bf16.msra.mxu0 %v1042_v35  ;;  %v819_v3 = vld [vmem:[%s2469_s3 + $0x138] sm:$0xff]  ;;  %v838_v4 = vld [vmem:[%s2469_s3 + $0x1d0] sm:$0xff]  ;;  %v804_v5 = vld [vmem:[%s2469_s3 + $0xc0] sm:$0xff] }
  0x61   :  { %742 = vmatpush.bf16.msra.mxu1 %v1234_v36  ;;  %755 = vmatpush.bf16.msra.mxu2 %v1046_v37  ;;  %v785_v6 = vld [vmem:[%s2469_s3 + $0x28] sm:$0xff]  ;;  %v818_v7 = vld [vmem:[%s2469_s3 + $0x130] sm:$0xff]  ;;  %v803_v9 = vld [vmem:[%s2469_s3 + $0xb8] sm:$0xff] }
  0x62   :  { %768 = vmatpush.bf16.msra.mxu3 %v1238_v38  ;;  %v837_v8 = vld [vmem:[%s2469_s3 + $0x1c8] sm:$0xff]  ;;  %v784_v10 = vld [vmem:[%s2469_s3 + $0x20] sm:$0xff]  ;;  %v802_v14 = vld [vmem:[%s2469_s3 + $0xb0] sm:$0xff] }
  0x63   :  { %730 = vmatmul.bf16.vlgmr.msra.gmra.mxu0 %v1857_v13  ;;  %v817_v11 = vld [vmem:[%s2469_s3 + $0x128] sm:$0xff]  ;;  %v836_v12 = vld [vmem:[%s2469_s3 + $0x1c0] sm:$0xff]  ;;  %v783_v16 = vld [vmem:[%s2469_s3 + $0x18] sm:$0xff] }
  0x64   :  { %880 = vmatpush.msrb.mxu0 %v795_v39  ;;  %743 = vmatmul.bf16.vlgmr.msra.gmra.mxu1 %v1860_v15  ;;  %v816_v17 = vld [vmem:[%s2469_s3 + $0x120] sm:$0xff]  ;;  %v835_v18 = vld [vmem:[%s2469_s3 + $0x1b8] sm:$0xff]  ;;  %v801_v19 = vld [vmem:[%s2469_s3 + $0xa8] sm:$0xff] }
  0x65   :  { %920 = vmatpush.msrb.mxu2 %v827_v40  ;;  %769 = vmatmul.bf16.vlgmr.msra.gmra.mxu3 %v1860_v15  ;;  %v824_v15 = vld [vmem:[%s2469_s3 + $0x160] sm:$0xff]  ;;  %v782_v20 = vld [vmem:[%s2469_s3 + $0x10] sm:$0xff]  ;;  %v815_v21 = vld [vmem:[%s2469_s3 + $0x118] sm:$0xff] }
  0x66   :  { %756 = vmatmul.bf16.vlgmr.msra.gmra.mxu2 %v1857_v13  ;;  %881 = vmatpush.msrb.mxu0 %v794_v41  ;;  %v792_v13 = vld [vmem:[%s2469_s3 + $0x60] sm:$0xff]  ;;  %v834_v22 = vld [vmem:[%s2469_s3 + $0x1b0] sm:$0xff]  ;;  %v781_v24 = vld [vmem:[%s2469_s3 + $0x8] sm:$0xff] }
  0x67   :  { %921 = vmatpush.msrb.mxu2 %v826_v42  ;;  %900 = vmatpush.msrb.mxu1 %v811_v43  ;;  %v800_v23 = vld [vmem:[%s2469_s3 + $0xa0] sm:$0xff]  ;;  %v814_v25 = vld [vmem:[%s2469_s3 + $0x110] sm:$0xff]  ;;  %v833_v26 = vld [vmem:[%s2469_s3 + $0x1a8] sm:$0xff] }
  0x68   :  { %882 = vmatpush.msrb.mxu0 %v793_v44  ;;  %940 = vmatpush.msrb.mxu3 %v843_v45  ;;  %v2320_v27 = vld [vmem:[%s2468_s2] sm:$0x3f]  ;;  %v799_v28 = vld [vmem:[%s2469_s3 + $0x98] sm:$0xff]  ;;  %v813_v30 = vld [vmem:[%s2469_s3 + $0x108] sm:$0xff]  ;;  %s1014_s2 = sshll.u32 %s2471_s5, 4  ;;  %s1015_s2 = int_to_ptr.hbm [resolvable:$true] %s1014_s2 }
  0x69   :  { %922 = vmatpush.msrb.mxu2 %v825_v46  ;;  %901 = vmatpush.msrb.mxu1 %v810_v47  ;;  %v780_v29 = vld [vmem:[%s2469_s3] sm:$0xff]  ;;  %v798_v32 = vld [vmem:[%s2469_s3 + $0x90] sm:$0xff]  ;;  %v859_v33 = vld [vmem:[%s2469_s3 + $0x278] sm:$0xff]  ;;  %v120_v34 = vperm.slane %v2320_v27, 0  ;;  %v121_v45 = vperm.slane %v2320_v27, 1 }
  0x6a   :  { %883 = vmatpush.msrb.mxu0 %v792_v13  ;;  %941 = vmatpush.msrb.mxu3 %v842_v52  ;;  %v832_v31 = vld [vmem:[%s2469_s3 + $0x1a0] sm:$0xff]  ;;  %v831_v36 = vld [vmem:[%s2469_s3 + $0x198] sm:$0xff]  ;;  %v797_v37 = vld [vmem:[%s2469_s3 + $0x88] sm:$0xff] }
  0x6b   :  { %923 = vmatpush.msrb.mxu2 %v824_v15  ;;  %902 = vmatpush.msrb.mxu1 %v809_v48  ;;  %v812_v35 = vld [vmem:[%s2469_s3 + $0x100] sm:$0xff]  ;;  %v858_v38 = vld [vmem:[%s2469_s3 + $0x270] sm:$0xff]  ;;  %v857_v42 = vld [vmem:[%s2469_s3 + $0x268] sm:$0xff] }
  0x6c   :  { %884 = vmatpush.msrb.mxu0 %v791_v49  ;;  %942 = vmatpush.msrb.mxu3 %v841_v56  ;;  %v830_v39 = vld [vmem:[%s2469_s3 + $0x190] sm:$0xff]  ;;  %v796_v41 = vld [vmem:[%s2469_s3 + $0x80] sm:$0xff]  ;;  %v829_v46 = vld [vmem:[%s2469_s3 + $0x188] sm:$0xff] }
  0x6d   :  { %924 = vmatpush.msrb.mxu2 %v823_v51  ;;  %903 = vmatpush.msrb.mxu1 %v808_v53  ;;  %v856_v47 = vld [vmem:[%s2469_s3 + $0x260] sm:$0xff]  ;;  %v875_v13 = vld [vmem:[%s2469_s3 + $0x2f8] sm:$0xff]  ;;  %v874_v51 = vld [vmem:[%s2469_s3 + $0x2f0] sm:$0xff] }
  0x6e   :  { %885 = vmatpush.msrb.mxu0 %v790_v50  ;;  %943 = vmatpush.msrb.mxu3 %v840_v60  ;;  %v828_v15 = vld [vmem:[%s2469_s3 + $0x180] sm:$0xff]  ;;  %v855_v50 = vld [vmem:[%s2469_s3 + $0x258] sm:$0xff] }
  0x6f   :  { %925 = vmatpush.msrb.mxu2 %v822_v55  ;;  %904 = vmatpush.msrb.mxu1 %v807_v57  ;;  %v873_v55 = vld [vmem:[%s2469_s3 + $0x2e8] sm:$0xff]  ;;  %v872_v56 = vld [vmem:[%s2469_s3 + $0x2e0] sm:$0xff] }
  0x70   :  { %886 = vmatpush.msrb.mxu0 %v789_v54  ;;  %944 = vmatpush.msrb.mxu3 %v839_v0  ;;  %v854_v54 = vld [vmem:[%s2469_s3 + $0x250] sm:$0xff] }
  0x71   :  { %926 = vmatpush.msrb.mxu2 %v821_v59  ;;  %905 = vmatpush.msrb.mxu1 %v806_v61  ;;  %v871_v61 = vld [vmem:[%s2469_s3 + $0x2d8] sm:$0xff] }
  0x72   :  { %887 = vmatpush.msrb.mxu0 %v788_v58  ;;  %945 = vmatpush.msrb.mxu3 %v838_v4  ;;  %v853_v58 = vld [vmem:[%s2469_s3 + $0x248] sm:$0xff] }
  0x73   :  { %927 = vmatpush.msrb.mxu2 %v820_v63  ;;  %906 = vmatpush.msrb.mxu1 %v805_v1  ;;  %v852_v63 = vld [vmem:[%s2469_s3 + $0x240] sm:$0xff]  ;;  %v870_v1 = vld [vmem:[%s2469_s3 + $0x2d0] sm:$0xff]  ;;  %v869_v4 = vld [vmem:[%s2469_s3 + $0x2c8] sm:$0xff] }
  0x74   :  { %888 = vmatpush.msrb.mxu0 %v787_v62  ;;  %946 = vmatpush.msrb.mxu3 %v837_v8  ;;  %v849_v8 = vld [vmem:[%s2469_s3 + $0x228] sm:$0xff] }
  0x75   :  { %928 = vmatpush.msrb.mxu2 %v819_v3  ;;  %907 = vmatpush.msrb.mxu1 %v804_v5  ;;  %v850_v5 = vld [vmem:[%s2469_s3 + $0x230] sm:$0xff] }
  0x76   :  { %889 = vmatpush.msrb.mxu0 %v786_v2  ;;  %947 = vmatpush.msrb.mxu3 %v836_v12  ;;  %v851_v2 = vld [vmem:[%s2469_s3 + $0x238] sm:$0xff] }
  0x77   :  { %929 = vmatpush.msrb.mxu2 %v818_v7  ;;  %908 = vmatpush.msrb.mxu1 %v803_v9  ;;  %v867_v9 = vld [vmem:[%s2469_s3 + $0x2b8] sm:$0xff] }
  0x78   :  { %890 = vmatpush.msrb.mxu0 %v785_v6  ;;  %948 = vmatpush.msrb.mxu3 %v835_v18  ;;  %v868_v6 = vld [vmem:[%s2469_s3 + $0x2c0] sm:$0xff]  ;;  %v847_v12 = vld [vmem:[%s2469_s3 + $0x218] sm:$0xff]  ;;  %v865_v18 = vld [vmem:[%s2469_s3 + $0x2a8] sm:$0xff] }
  0x79   :  { %930 = vmatpush.msrb.mxu2 %v817_v11  ;;  %909 = vmatpush.msrb.mxu1 %v802_v14  ;;  %v122_v11 = vperm.slane %v2320_v27, 2  ;;  %v866_v14 = vld [vmem:[%s2469_s3 + $0x2b0] sm:$0xff] }
  0x7a   :  { %891 = vmatpush.msrb.mxu0 %v784_v10  ;;  %949 = vmatpush.msrb.mxu3 %v834_v22  ;;  %v848_v10 = vld [vmem:[%s2469_s3 + $0x220] sm:$0xff] }
  0x7b   :  { %931 = vmatpush.msrb.mxu2 %v816_v17  ;;  %910 = vmatpush.msrb.mxu1 %v801_v19  ;;  %v846_v17 = vld [vmem:[%s2469_s3 + $0x210] sm:$0xff]  ;;  %v864_v22 = vld [vmem:[%s2469_s3 + $0x2a0] sm:$0xff] }
  0x7c   :  { %892 = vmatpush.msrb.mxu0 %v783_v16  ;;  %950 = vmatpush.msrb.mxu3 %v833_v26  ;;  %v863_v26 = vld [vmem:[%s2469_s3 + $0x298] sm:$0xff] }
  0x7d   :  { %932 = vmatpush.msrb.mxu2 %v815_v21  ;;  %911 = vmatpush.msrb.mxu1 %v800_v23  ;;  %v845_v21 = vld [vmem:[%s2469_s3 + $0x208] sm:$0xff] }
  0x7e   :  { %893 = vmatpush.msrb.mxu0 %v782_v20  ;;  %951 = vmatpush.msrb.mxu3 %v832_v31 }
  0x7f   :  { %933 = vmatpush.msrb.mxu2 %v814_v25  ;;  %912 = vmatpush.msrb.mxu1 %v799_v28  ;;  %v844_v25 = vld [vmem:[%s2469_s3 + $0x200] sm:$0xff] }
  0x80   :  { %894 = vmatpush.msrb.mxu0 %v781_v24  ;;  %952 = vmatpush.msrb.mxu3 %v831_v36  ;;  %v123_v24 = vperm.slane %v2320_v27, 3  ;;  %v860_v36 = vld [vmem:[%s2469_s3 + $0x280] sm:$0xff] }
  0x81   :  { %934 = vmatpush.msrb.mxu2 %v813_v30  ;;  %913 = vmatpush.msrb.mxu1 %v798_v32 }
  0x82   :  { %895 = vmatpush.msrb.mxu0 %v780_v29  ;;  %953 = vmatpush.msrb.mxu3 %v830_v39  ;;  %v862_v29 = vld [vmem:[%s2469_s3 + $0x290] sm:$0xff] }
  0x83   :  { %935 = vmatpush.msrb.mxu2 %v812_v35  ;;  %914 = vmatpush.msrb.mxu1 %v797_v37 }
  0x84   :  { %960 = vmatpush.msra.mxu0 %v859_v33  ;;  %954 = vmatpush.msrb.mxu3 %v829_v46  ;;  %v125_v46 = vperm.slane %v2320_v27, 5 }
  0x85   :  { %915 = vmatpush.msrb.mxu1 %v796_v41  ;;  %v124_v41 = vperm.slane %v2320_v27, 4 }
  0x86   :  { %961 = vmatpush.msra.mxu0 %v858_v38  ;;  %955 = vmatpush.msrb.mxu3 %v828_v15 }
  0x87   :  { %980 = vmatpush.msra.mxu1 %v875_v13 }
  0x88   :  { %962 = vmatpush.msra.mxu0 %v857_v42 }
  0x89   :  { %981 = vmatpush.msra.mxu1 %v874_v51 }
  0x8a   :  { %963 = vmatpush.msra.mxu0 %v856_v47 }
  0x8b   :  { %982 = vmatpush.msra.mxu1 %v873_v55  ;;  %v1504_v55 = vld [vmem:[%s2470_s4] ss:$0 sm:$0xff]  ;;  %s1012_s4 = sshll.u32 %s1535_s23, 4  ;;  %s1013_s4 = int_to_ptr.vmem [resolvable:$true] %s1012_s4 }
  0x8c   :  { %964 = vmatpush.msra.mxu0 %v855_v50 }
  0x8d   :  { %983 = vmatpush.msra.mxu1 %v872_v56 }
  0x8e   :  { %965 = vmatpush.msra.mxu0 %v854_v54 }
  0x8f   :  { %984 = vmatpush.msra.mxu1 %v871_v61 }
  0x90   :  { %966 = vmatpush.msra.mxu0 %v853_v58 }
  0x91   :  { %985 = vmatpush.msra.mxu1 %v870_v1 }
  0x92   :  { %967 = vmatpush.msra.mxu0 %v852_v63 }
  0x93   :  { %986 = vmatpush.msra.mxu1 %v869_v4 }
  0x94   :  { %968 = vmatpush.msra.mxu0 %v851_v2 }
  0x95   :  { %987 = vmatpush.msra.mxu1 %v868_v6 }
  0x96   :  { %969 = vmatpush.msra.mxu0 %v850_v5 }
  0x97   :  { %988 = vmatpush.msra.mxu1 %v867_v9 }
  0x98   :  { %970 = vmatpush.msra.mxu0 %v849_v8 }
  0x99   :  { %989 = vmatpush.msra.mxu1 %v866_v14 }
  0x9a   :  { %971 = vmatpush.msra.mxu0 %v848_v10 }
  0x9b   :  { %990 = vmatpush.msra.mxu1 %v865_v18 }
  0x9c   :  { %972 = vmatpush.msra.mxu0 %v847_v12 }
  0x9d   :  { %991 = vmatpush.msra.mxu1 %v864_v22 }
  0x9e   :  { %973 = vmatpush.msra.mxu0 %v846_v17 }
  0x9f   :  { %992 = vmatpush.msra.mxu1 %v863_v26 }
  0xa0   :  { %974 = vmatpush.msra.mxu0 %v845_v21 }
  0xa1   :  { %993 = vmatpush.msra.mxu1 %v862_v29 }
  0xa2   :  { %975 = vmatpush.msra.mxu0 %v844_v25 }
  0xa3   :  { %v627_v40 = vpop.f32.mrf.mxu0 }
  0xa4   :  { %v628_v43 = vadd.f32 %v627_v40, %v120_v34  ;;  %v640_v44 = vpop.f32.mrf.mxu1  ;;  %v861_v34 = vld [vmem:[%s2469_s3 + $0x288] sm:$0xff] }
  0xa5   :  { %994 = vmatpush.msra.mxu1 %v861_v34 }
  0xa6   :  { %v641_v48 = vadd.f32 %v640_v44, %v628_v43 }
  0xa7   :  { %v653_v49 = vpop.f32.mrf.mxu2  ;;  %995 = vmatpush.msra.mxu1 %v860_v36 }
  0xa8   :  { %v774_v52 = vmax.f32 %v641_v48, 0.0  ;;  %v654_v53 = vadd.f32 %v653_v49, %v121_v45 }
  0xaa   :  { %v666_v57 = vpop.f32.mrf.mxu3  ;;  %896 = vmatmul.f32.vlgmr.msrb.gmra.mxu0 %v774_v52 }
  0xab   :  { %v629_v59 = vpop.f32.mrf.mxu0  ;;  %v667_v60 = vadd.f32 %v666_v57, %v654_v53 }
  0xac   :  { %v642_v62 = vpop.f32.mrf.mxu1 }
  0xad   :  { %v775_v0 = vmax.f32 %v667_v60, 0.0 }
  0xaf   :  { %v655_v3 = vpop.f32.mrf.mxu2  ;;  %916 = vmatmul.f32.vlgmr.msrb.gmra.mxu1 %v775_v0 }
  0xb2   :  { %v668_v7 = vpop.f32.mrf.mxu3 }
  0xc0   :  { %v679_v16 = vpop.f32.mrf.mxu0 }
  0xc1   :  { %v680_v19 = vadd.f32 %v679_v16, %v122_v11 }
  0xc3   :  { %v692_v20 = vpop.f32.mrf.mxu1 }
  0xc4   :  { %v693_v23 = vadd.f32 %v692_v20, %v680_v19 }
  0xc6   :  { %v776_v28 = vmax.f32 %v693_v23, 0.0 }
  0xc7   :  { %v705_v30 = vpop.f32.mrf.mxu2 }
  0xc8   :  { %936 = vmatmul.f32.vlgmr.msrb.gmra.mxu2 %v776_v28  ;;  %v706_v31 = vadd.f32 %v705_v30, %v123_v24  ;;  %v681_v33 = vpop.f32.mrf.mxu0 }
  0xca   :  { %v718_v32 = vpop.f32.mrf.mxu3 }
  0xcb   :  { %v694_v35 = vpop.f32.mrf.mxu1  ;;  %v719_v37 = vadd.f32 %v718_v32, %v706_v31 }
  0xcd   :  { %v777_v38 = vmax.f32 %v719_v37, 0.0 }
  0xcf   :  { %956 = vmatmul.f32.vlgmr.msrb.gmra.mxu3 %v777_v38  ;;  %v707_v39 = vpop.f32.mrf.mxu2 }
  0xd2   :  { %v720_v40 = vpop.f32.mrf.mxu3 }
  0xe0   :  { %v731_v42 = vpop.f32.mrf.mxu0 }
  0xe1   :  { %v732_v43 = vadd.f32 %v731_v42, %v124_v41  ;;  %v744_v44 = vpop.f32.mrf.mxu1 }
  0xe3   :  { %v745_v45 = vadd.f32 %v744_v44, %v732_v43 }
  0xe5   :  { %v778_v47 = vmax.f32 %v745_v45, 0.0 }
  0xe7   :  { %976 = vmatmul.f32.vlgmr.msra.gmra.mxu0 %v778_v47 }
  0xe8   :  { %v770_v48 = vpop.f32.mrf.mxu3  ;;  %v733_v49 = vpop.f32.mrf.mxu0 }
  0xe9   :  { %v757_v13 = vpop.f32.mrf.mxu2  ;;  %v746_v50 = vpop.f32.mrf.mxu1 }
  0xea   :  { %v758_v15 = vadd.f32 %v757_v13, %v125_v46 }
  0xec   :  { %v771_v51 = vadd.f32 %v770_v48, %v758_v15 }
  0xee   :  { %v779_v52 = vmax.f32 %v771_v51, 0.0 }
  0xf0   :  { %996 = vmatmul.f32.vlgmr.msra.gmra.mxu1 %v779_v52  ;;  %v772_v54 = vpop.f32.mrf.mxu3 }
  0xf1   :  { %v759_v53 = vpop.f32.mrf.mxu2 }
 0x127   :  { %v897_v56 = vpop.f32.mrf.mxu0 }
 0x128   :  { %v898_v57 = vadd.f32 %v1504_v55, %v897_v56 }
 0x12c   :  { %v917_v58 = vpop.f32.mrf.mxu1 }
 0x12d   :  { %v918_v27 = vadd.f32 %v917_v58, %v898_v57 }
 0x14b   :  { %v937_v59 = vpop.f32.mrf.mxu2 }
 0x14c   :  { %v938_v61 = vadd.f32 %v937_v59, %v918_v27 }
 0x152   :  { %v957_v60 = vpop.f32.mrf.mxu3 }
 0x153   :  { %v958_v63 = vadd.f32 %v957_v60, %v938_v61 }
 0x164   :  { %v977_v62 = vpop.f32.mrf.mxu0 }
 0x165   :  { %v978_v0 = vadd.f32 %v977_v62, %v958_v63 }
 0x16d   :  { %v997_v1 = vpop.f32.mrf.mxu1 }
 0x16e   :  { %v998_v2 = vadd.f32 %v997_v1, %v978_v0 }
 0x170   :  { %v1000_v3 = vsub.f32 0.0, %v998_v2 }
 0x172   :  { %v1001_v4 = vmul.f32 1.442695, %v1000_v3 }
 0x174   :  { %1505 = vpow2.f32 %v1001_v4 }
 0x17a   :  { %v1506_v5 = vpop.eup %1505 }
 0x17b   :  { %v1003_v6 = vadd.f32 1.0, %v1506_v5 }
 0x17d   :  { %1507 = vrcp.f32 %v1003_v6 }
 0x183   :  { %v1508_v7 = vpop.eup %1507 }
 0x184   :  { %1006 = vst.msk [vmem:[#allocation2] sm:$0x3] %vm1005_vm0, %v1508_v7 }
 0x185   :  { %1017 = dma.vmem_to_hbm [thread:$0]  %s1013_s4, 32, %s1015_s2, [#allocation3]  }
 0x186   :  { %1533 = dma.done.wait [#allocation3], 32  }
 0x187   :  { %1534 = vsyncadd [#allocation3], 4294967264 }
 0x188   :  { %1022 = vsyncpa [#allocation3], 1 }

</bundles_post_ra>
